<compile_context>
chip_gen: v5e
topology: v5e:2x2
jax: 0.10.0
libtpu: 0.0.40
codegen_flags: <defaults>
</compile_context>

<pallas_src>
import jax
import jax.numpy as jnp
from jax import lax
from jax.experimental import pallas as pl
from jax.experimental.pallas import tpu as pltpu

N_HOSTS = 16
N_FEATS = 3 * N_HOSTS              # 48
N_WINDOW = 3
N_LATENT = 10
EMBED = 2 * N_FEATS + 1            # 97  (MHA embed dim)
ENC_IN = N_WINDOW * EMBED          # 291
ENC_OUT = N_HOSTS * N_LATENT       # 160
PROTO_DIM = 8

GATES = 3 * N_WINDOW               # 9 (GRU gates r|z|n)
QKV_STRIDE = 128                   # lane-aligned stride of q/k/v in the packed in-proj
LAT_STRIDE = 16                    # lane stride of each host's decoded block
LAT_PAD = N_HOSTS * LAT_STRIDE     # 256
N_DEC = 2 + PROTO_DIM              # 10 fused decoder outputs per host


# --------------------------------------------------------------------------- #
# Fused kernel: GRU + GAT + MHA + (encoder ∘ decoders), one window per grid step
# --------------------------------------------------------------------------- #
def fpe16_kernel(t_ref, h0_ref, sp_ref, qkvg_ref, qkvsb_ref, wobo_ref,
                 fw_ref, fb_ref, out_ref):
    f32 = jnp.float32
    cdims = (((0,), (0,)), ((), ()))          # contract axis 0 of both operands

    t = t_ref[0]                              # (3, 48)  raw PyTorch layout
    sp = sp_ref[...]                          # (8, 16)  packed small params

    whh0 = sp[3:4, 0:GATES]                   # rows of W_hh.T -> VPU recurrent matvec
    whh1 = sp[4:5, 0:GATES]
    whh2 = sp[5:6, 0:GATES]
    b_ih = sp[6:7, 0:GATES]
    b_hh = sp[7:8, 0:GATES]

    # ---------------- one fused MXU push on t: xg | z_src | edge logits ----------
    mix = lax.dot_general(t, sp[0:3, :], cdims, preferred_element_type=f32)   # (48, 16)
    xg_all = mix[:, 0:GATES] + b_ih           # (48, 9)  GRU input-gate transform
    z_src = mix[:, GATES:GATES + 3]           # (48, 3)  GAT fc(source nodes)
    e = mix[:, 12:13]                         # (48, 1)  a_src . z_src

    # ---------------- GAT: 48 source nodes -> one sink node (zero features) ------
    e = jnp.where(e >= 0, e, 0.01 * e)        # leaky_relu on edge logits (sink term is 0)
    e = e - jnp.max(e, axis=0, keepdims=True)
    ew = jnp.exp(e)
    inv_sum = pl.reciprocal(jnp.sum(ew, axis=0, keepdims=True), approx=True)  # (1, 1)
    h_sink = jnp.sum(ew * z_src, axis=0, keepdims=True) * inv_sum             # (1, 3)

    # ---------------- MHA in-proj seed: sink rank-1 term + q|k|v biases ----------
    # (zero GAT columns of concat_t dropped; GRU contribution accumulated below)
    qkv = h_sink.T * qkvsb_ref[0:1, :] + qkvsb_ref[1:2, :]                    # (3, 384)

    # ---------------- GRU(3 -> 3), 48 timesteps, gates r|z|n, h carried in vregs -
    h = h0_ref[0]                             # (1, 3)
    row_id = lax.broadcasted_iota(jnp.int32, (8, 1), 0)
    for blk in range(N_FEATS // 8):           # 6 blocks x 8 unrolled steps
        xg_blk = xg_all[blk * 8:(blk + 1) * 8, :]          # (8, 9) in-register slice
        rows = jnp.zeros((8, N_WINDOW), f32)
        for j in range(8):
            xg = xg_blk[j:j + 1, :]                         # (1, 9)
            hg = h[:, 0:1] * whh0 + h[:, 1:2] * whh1 + h[:, 2:3] * whh2 + b_hh
            rz = jax.nn.sigmoid(xg[:, 0:6] + hg[:, 0:6])    # packed r|z -> one EUP push
            n = jnp.tanh(xg[:, 6:9] + rz[:, 0:3] * hg[:, 6:9])
            h = (1.0 - rz[:, 3:6]) * n + rz[:, 3:6] * h
            rows = jnp.where(row_id == j, h, rows)          # assemble block in vregs
        # partial in-proj contribution of this block (hidden under the serial GRU chain)
        qkv = qkv + lax.dot_general(rows, qkvg_ref[blk * 8:(blk + 1) * 8, :],
                                    cdims, preferred_element_type=f32)

    # ---------------- MHA(97, 1) self-attention ----------------------------------
    q = qkv[:, 0:EMBED]
    k = qkv[:, QKV_STRIDE:QKV_STRIDE + EMBED]
    v = qkv[:, 2 * QKV_STRIDE:2 * QKV_STRIDE + EMBED]

    scores = lax.dot_general(q, k, (((1,), (1,)), ((), ())),
                             preferred_element_type=f32) * (1.0 / float(EMBED) ** 0.5)
    scores = scores - jnp.max(scores, axis=-1, keepdims=True)
    pw = jnp.exp(scores)
    p_att = pw * pl.reciprocal(jnp.sum(pw, axis=-1, keepdims=True), approx=True)
    attn = jnp.dot(p_att, v, preferred_element_type=f32)                      # (3, 97)
    o = (jnp.dot(attn, wobo_ref[0:EMBED, :], preferred_element_type=f32)
         + wobo_ref[EMBED:EMBED + 1, :])                                      # (3, 97)

    # ---------------- fused (encoder ∘ decoders) on o.view(-1) -------------------
    # nn.LeakyReLU(True) is identity, so enc/dec are composed offline; the 2-way
    # softmax is folded in as a sigmoid pair -> one sigmoid finishes everything.
    acc = (jnp.dot(o[0:1, :], fw_ref[0], preferred_element_type=f32)
           + jnp.dot(o[1:2, :], fw_ref[1], preferred_element_type=f32)
           + jnp.dot(o[2:3, :], fw_ref[2], preferred_element_type=f32)
           + fb_ref[...])                                                     # (1, 256)
    out_ref[0] = jax.nn.sigmoid(acc)          # lane-dense writeback: host h at [h*16, h*16+10)


# --------------------------------------------------------------------------- #
# Parameter init (torch-like uniform fan-in) and ONE-TIME kernel packing       #
# --------------------------------------------------------------------------- #
def init_params(key):
    def lin(k, out_dim, in_dim, bias=True):
        k1, k2 = jax.random.split(k)
        s = 1.0 / float(in_dim) ** 0.5
        w = jax.random.uniform(k1, (out_dim, in_dim), jnp.float32, -s, s)
        b = (jax.random.uniform(k2, (1, out_dim), jnp.float32, -s, s) if bias else None)
        return w, b

    keys = jax.random.split(key, 9)
    p = {}
    p['w_ih'], p['b_ih'] = lin(keys[0], GATES, N_WINDOW)                 # GRU input weights
    p['w_hh'], p['b_hh'] = lin(keys[1], GATES, N_WINDOW)                 # GRU hidden weights
    p['gat_fc_w'], _ = lin(keys[2], N_WINDOW, N_WINDOW, bias=False)      # GAT fc
    p['gat_attn_w'], _ = lin(keys[3], 1, 2 * N_WINDOW, bias=False)       # GAT attn_fc
    p['mha_in_w'], p['mha_in_b'] = lin(keys[4], 3 * EMBED, EMBED)        # MHA in_proj
    p['mha_out_w'], p['mha_out_b'] = lin(keys[5], EMBED, EMBED)          # MHA out_proj
    p['enc_w'], p['enc_b'] = lin(keys[6], ENC_OUT, ENC_IN)               # encoder Linear
    p['ano_w'], p['ano_b'] = lin(keys[7], 2, N_LATENT)                   # anomaly decoder
    p['pro_w'], p['pro_b'] = lin(keys[8], PROTO_DIM, N_LATENT)           # prototype decoder
    return p


def prepare_params(p):
    """One-time packing / transposing / offline fusion (outside the hot path)."""
    f32 = jnp.float32

    # small pack: [W_ih.T | gat_W.T | gat_W.T @ a_src] (rows 0:3) + GRU hidden wts/biases
    gat_wT = p['gat_fc_w'].T                                             # (3, 3)
    a_src = p['gat_attn_w'][0, 0:N_WINDOW].reshape(N_WINDOW, 1)          # (3, 1)
    sp = jnp.zeros((8, 16), f32)
    sp = sp.at[0:3, 0:GATES].set(p['w_ih'].T)
    sp = sp.at[0:3, GATES:GATES + 3].set(gat_wT)
    sp = sp.at[0:3, 12:13].set(gat_wT @ a_src)                           # fused edge-logit col
    sp = sp.at[3:6, 0:GATES].set(p['w_hh'].T)
    sp = sp.at[6, 0:GATES].set(p['b_ih'][0])
    sp = sp.at[7, 0:GATES].set(p['b_hh'][0])

    # MHA in-proj: keep only GRU rows (0..47) and the sink row (96); lane stride 128.
    wq, wk, wv = jnp.split(p['mha_in_w'], 3, axis=0)                     # (97, 97) each
    bq, bk, bv = jnp.split(p['mha_in_b'], 3, axis=1)                     # (1, 97) each
    qkv_g = jnp.zeros((N_FEATS, 3 * QKV_STRIDE), f32)                    # (48, 384)
    qkv_sb = jnp.zeros((2, 3 * QKV_STRIDE), f32)                         # row0: sink wts, row1: biases
    for idx, (w, b) in enumerate(((wq, bq), (wk, bk), (wv, bv))):
        wT = w.T
        c0 = idx * QKV_STRIDE
        qkv_g = qkv_g.at[:, c0:c0 + EMBED].set(wT[0:N_FEATS])
        qkv_sb = qkv_sb.at[0, c0:c0 + EMBED].set(wT[2 * N_FEATS])
        qkv_sb = qkv_sb.at[1, c0:c0 + EMBED].set(b[0])

    # MHA out-proj (+ bias) pack
    wo_bo = jnp.concatenate([p['mha_out_w'].T, p['mha_out_b']], axis=0)  # (98, 97)

    # decoders with the 2-way softmax rewritten as a sigmoid pair:
    #   softmax([a,b]) = [sigmoid(a-b), sigmoid(b-a)]
    ano_wT = p['ano_w'].T                                                # (10, 2)
    d = ano_wT[:, 0:1] - ano_wT[:, 1:2]
    dec_w = jnp.concatenate([d, -d, p['pro_w'].T], axis=1)               # (10, 10)
    db = p['ano_b'][0, 0] - p['ano_b'][0, 1]
    dec_b = jnp.concatenate([jnp.stack([db, -db]), p['pro_b'][0]])       # (10,)

    # encoder ∘ decoders fusion (LeakyReLU(True) == identity): host h's 10 fused
    # outputs live at lanes [h*16, h*16+10) of a (291, 256) weight.
    enc_wT = p['enc_w'].T                                                # (291, 160)
    enc_b = p['enc_b'][0]                                                # (160,)
    fw = jnp.zeros((ENC_IN, LAT_PAD), f32)
    fb = jnp.zeros((1, LAT_PAD), f32)
    for h in range(N_HOSTS):
        src = slice(h * N_LATENT, (h + 1) * N_LATENT)
        dst = slice(h * LAT_STRIDE, h * LAT_STRIDE + N_DEC)
        fw = fw.at[:, dst].set(enc_wT[:, src] @ dec_w)
        fb = fb.at[0, dst].set(enc_b[src] @ dec_w + dec_b)
    fw3 = fw.reshape(N_WINDOW, EMBED, LAT_PAD)                           # (3, 97, 256)

    return dict(sp=sp, qkv_g=qkv_g, qkv_sb=qkv_sb, wo_bo=wo_bo, fw3=fw3, fb=fb)


# --------------------------------------------------------------------------- #
# Forward wrapper: batched grid, weights VMEM-resident via constant index maps #
# --------------------------------------------------------------------------- #
@jax.jit
def fpe16_forward(t, s, h0, kp):
    """t: (B, 3, 48), s: unused (mirrors forward(t, s)), h0: (B, 1, 3)."""
    del s
    B = t.shape[0]
    out = pl.pallas_call(
        fpe16_kernel,
        out_shape=jax.ShapeDtypeStruct((B, 1, LAT_PAD), jnp.float32),
        grid=(B,),
        in_specs=[
            pl.BlockSpec((1, N_WINDOW, N_FEATS), lambda b: (b, 0, 0)),        # t (streams)
            pl.BlockSpec((1, 1, N_WINDOW), lambda b: (b, 0, 0)),              # h0 (streams)
            pl.BlockSpec((8, 16), lambda b: (0, 0)),                          # sp (resident)
            pl.BlockSpec((N_FEATS, 3 * QKV_STRIDE), lambda b: (0, 0)),        # qkv_g (resident)
            pl.BlockSpec((2, 3 * QKV_STRIDE), lambda b: (0, 0)),              # qkv_sb (resident)
            pl.BlockSpec((EMBED + 1, EMBED), lambda b: (0, 0)),               # wo_bo (resident)
            pl.BlockSpec((N_WINDOW, EMBED, LAT_PAD), lambda b: (0, 0, 0)),    # fused enc∘dec W
            pl.BlockSpec((1, LAT_PAD), lambda b: (0, 0)),                     # fused enc∘dec b
        ],
        out_specs=pl.BlockSpec((1, 1, LAT_PAD), lambda b: (b, 0, 0)),
        compiler_params=pltpu.CompilerParams(dimension_semantics=("parallel",)),
    )(t, h0, kp['sp'], kp['qkv_g'], kp['qkv_sb'], kp['wo_bo'], kp['fw3'], kp['fb'])

    out = out.reshape(B, N_HOSTS, LAT_STRIDE)          # host h == row h
    anomaly = out[:, :, 0:2]                           # == softmax per host (sigmoid pair)
    proto = out[:, :, 2:2 + PROTO_DIM]                 # == sigmoid(prototype logits)
    return anomaly, proto


if __name__ == "__main__":
    key = jax.random.PRNGKey(0)
    k_param, k_t, k_h = jax.random.split(key, 3)
    raw_params = init_params(k_param)
    kparams = prepare_params(raw_params)               # one-time packing / offline fusion

    B = 4                                               # batch of windows (grid axis)
    t = jax.random.normal(k_t, (B, N_WINDOW, N_FEATS), jnp.float32)   # (B, 3, 48)
    s = jnp.zeros((B, N_HOSTS, N_HOSTS), jnp.float32)                 # unused, mirrors forward(t, s)
    # torch draws h0 ~ randn inside encode(); passed as an explicit per-window input here.
    h0 = jax.random.normal(k_h, (B, 1, N_WINDOW), jnp.float32)

    anomaly_scores, prototypes = fpe16_forward(t, s, h0, kparams)
    jax.block_until_ready((anomaly_scores, prototypes))

    assert anomaly_scores.shape == (B, N_HOSTS, 2)
    assert prototypes.shape == (B, N_HOSTS, PROTO_DIM)
    # softmax pairs must sum to ~1, sigmoid outputs strictly in (0, 1)
    assert jnp.allclose(jnp.sum(anomaly_scores, axis=-1), 1.0, atol=1e-5)
    assert bool(jnp.all((prototypes > 0.0) & (prototypes < 1.0)))
    print("KERNEL_OK")
</pallas_src>

<mosaic_0001>
module attributes {stable_mosaic.version = 11 : i64} {
  func.func @fpe16_kernel(%arg0: i32, %arg1: memref<1x3x48xf32, #tpu.memory_space<vmem>>, %arg2: memref<1x1x3xf32, #tpu.memory_space<vmem>>, %arg3: memref<8x16xf32, #tpu.memory_space<vmem>>, %arg4: memref<48x384xf32, #tpu.memory_space<vmem>>, %arg5: memref<2x384xf32, #tpu.memory_space<vmem>>, %arg6: memref<98x97xf32, #tpu.memory_space<vmem>>, %arg7: memref<3x97x256xf32, #tpu.memory_space<vmem>>, %arg8: memref<1x256xf32, #tpu.memory_space<vmem>>, %arg9: memref<1x1x256xf32, #tpu.memory_space<vmem>>) attributes {dimension_semantics = [#tpu.dimension_semantics<parallel>], iteration_bounds = array<i64: 4>, scalar_prefetch = 0 : i64, scratch_operands = 0 : i64, tpu.core_type = #tpu.core_type<tc>, window_params = [{transform_indices = @transform_0, window_bounds = array<i64: 1, 3, 48>}, {transform_indices = @transform_1, window_bounds = array<i64: 1, 1, 3>}, {pipeline_mode = #tpu.pipeline_mode<synchronous>, transform_indices = @transform_2, window_bounds = array<i64: 8, 16>}, {pipeline_mode = #tpu.pipeline_mode<synchronous>, transform_indices = @transform_3, window_bounds = array<i64: 48, 384>}, {pipeline_mode = #tpu.pipeline_mode<synchronous>, transform_indices = @transform_4, window_bounds = array<i64: 2, 384>}, {pipeline_mode = #tpu.pipeline_mode<synchronous>, transform_indices = @transform_5, window_bounds = array<i64: 98, 97>}, {pipeline_mode = #tpu.pipeline_mode<synchronous>, transform_indices = @transform_6, window_bounds = array<i64: 3, 97, 256>}, {pipeline_mode = #tpu.pipeline_mode<synchronous>, transform_indices = @transform_7, window_bounds = array<i64: 1, 256>}, {transform_indices = @transform_8, window_bounds = array<i64: 1, 1, 256>}]} {
    %c0 = arith.constant 0 : index
    %c0_0 = arith.constant 0 : index
    %c0_1 = arith.constant 0 : index
    %0 = vector.load %arg1[%c0, %c0_0, %c0_1] : memref<1x3x48xf32, #tpu.memory_space<vmem>>, vector<1x3x48xf32>
    %1 = vector.shape_cast %0 : vector<1x3x48xf32> to vector<3x48xf32>
    %c0_2 = arith.constant 0 : index
    %c0_3 = arith.constant 0 : index
    %2 = vector.load %arg3[%c0_2, %c0_3] : memref<8x16xf32, #tpu.memory_space<vmem>>, vector<8x16xf32>
    %3 = vector.extract_strided_slice %2 {offsets = [3, 0], sizes = [1, 9], strides = [1, 1]} : vector<8x16xf32> to vector<1x9xf32>
    %4 = vector.extract_strided_slice %2 {offsets = [4, 0], sizes = [1, 9], strides = [1, 1]} : vector<8x16xf32> to vector<1x9xf32>
    %5 = vector.extract_strided_slice %2 {offsets = [5, 0], sizes = [1, 9], strides = [1, 1]} : vector<8x16xf32> to vector<1x9xf32>
    %6 = vector.extract_strided_slice %2 {offsets = [6, 0], sizes = [1, 9], strides = [1, 1]} : vector<8x16xf32> to vector<1x9xf32>
    %7 = vector.extract_strided_slice %2 {offsets = [7, 0], sizes = [1, 9], strides = [1, 1]} : vector<8x16xf32> to vector<1x9xf32>
    %8 = vector.extract_strided_slice %2 {offsets = [0, 0], sizes = [3, 16], strides = [1, 1]} : vector<8x16xf32> to vector<3x16xf32>
    %cst = arith.constant dense<0.000000e+00> : vector<48x16xf32>
    %9 = tpu.matmul %1, %8, %cst {dimension_numbers = #tpu.dot_dimension_numbers<[0], [0], [1], [1], [0, 1, 1, 1], [], []>} : vector<3x48xf32>, vector<3x16xf32>, vector<48x16xf32> -> vector<48x16xf32>
    %10 = vector.extract_strided_slice %9 {offsets = [0, 0], sizes = [48, 9], strides = [1, 1]} : vector<48x16xf32> to vector<48x9xf32>
    %11 = vector.broadcast %6 : vector<1x9xf32> to vector<48x9xf32>
    %12 = arith.addf %10, %11 : vector<48x9xf32>
    %13 = vector.extract_strided_slice %9 {offsets = [0, 9], sizes = [48, 3], strides = [1, 1]} : vector<48x16xf32> to vector<48x3xf32>
    %14 = vector.extract_strided_slice %9 {offsets = [0, 12], sizes = [48, 1], strides = [1, 1]} : vector<48x16xf32> to vector<48x1xf32>
    %cst_4 = arith.constant 0.000000e+00 : f32
    %15 = vector.broadcast %cst_4 : f32 to vector<48x1xf32>
    %16 = arith.cmpf oge, %14, %15 : vector<48x1xf32>
    %cst_5 = arith.constant 0.00999999977 : f32
    %17 = vector.broadcast %cst_5 : f32 to vector<48x1xf32>
    %18 = arith.mulf %17, %14 : vector<48x1xf32>
    %19 = arith.select %16, %14, %18 : vector<48x1xi1>, vector<48x1xf32>
    %cst_6 = arith.constant dense<0xFF800000> : vector<1xf32>
    %20 = vector.multi_reduction <maximumf>, %19, %cst_6 [0] : vector<48x1xf32> to vector<1xf32>
    %21 = vector.shape_cast %20 : vector<1xf32> to vector<1x1xf32>
    %22 = vector.broadcast %21 : vector<1x1xf32> to vector<48x1xf32>
    %23 = arith.subf %19, %22 : vector<48x1xf32>
    %24 = math.exp %23 : vector<48x1xf32>
    %cst_7 = arith.constant dense<0.000000e+00> : vector<1xf32>
    %25 = vector.multi_reduction <add>, %24, %cst_7 [0] : vector<48x1xf32> to vector<1xf32>
    %26 = vector.shape_cast %25 : vector<1xf32> to vector<1x1xf32>
    %27 = tpu.reciprocal %26 {approx = true} : vector<1x1xf32> -> vector<1x1xf32>
    %28 = vector.broadcast %24 : vector<48x1xf32> to vector<48x3xf32>
    %29 = arith.mulf %28, %13 : vector<48x3xf32>
    %cst_8 = arith.constant dense<0.000000e+00> : vector<3xf32>
    %30 = vector.multi_reduction <add>, %29, %cst_8 [0] : vector<48x3xf32> to vector<3xf32>
    %31 = vector.shape_cast %30 : vector<3xf32> to vector<1x3xf32>
    %32 = vector.broadcast %27 : vector<1x1xf32> to vector<1x3xf32>
    %33 = arith.mulf %31, %32 : vector<1x3xf32>
    %34 = tpu.transpose %33, [1, 0] : vector<1x3xf32> -> vector<3x1xf32>
    %c0_9 = arith.constant 0 : index
    %c0_10 = arith.constant 0 : index
    %35 = vector.load %arg5[%c0_9, %c0_10] : memref<2x384xf32, #tpu.memory_space<vmem>>, vector<1x384xf32>
    %36 = vector.broadcast %34 : vector<3x1xf32> to vector<3x384xf32>
    %37 = vector.broadcast %35 : vector<1x384xf32> to vector<3x384xf32>
    %38 = arith.mulf %36, %37 : vector<3x384xf32>
    %c1 = arith.constant 1 : index
    %c0_11 = arith.constant 0 : index
    %39 = vector.load %arg5[%c1, %c0_11] : memref<2x384xf32, #tpu.memory_space<vmem>>, vector<1x384xf32>
    %40 = vector.broadcast %39 : vector<1x384xf32> to vector<3x384xf32>
    %41 = arith.addf %38, %40 : vector<3x384xf32>
    %c0_12 = arith.constant 0 : index
    %c0_13 = arith.constant 0 : index
    %c0_14 = arith.constant 0 : index
    %42 = vector.load %arg2[%c0_12, %c0_13, %c0_14] : memref<1x1x3xf32, #tpu.memory_space<vmem>>, vector<1x1x3xf32>
    %43 = vector.shape_cast %42 : vector<1x1x3xf32> to vector<1x3xf32>
    %44 = tpu.iota {dimensions = array<i32: 0>} : vector<8x1xi32>
    %45 = vector.extract_strided_slice %12 {offsets = [0, 0], sizes = [8, 9], strides = [1, 1]} : vector<48x9xf32> to vector<8x9xf32>
    %cst_15 = arith.constant 0.000000e+00 : f32
    %46 = vector.broadcast %cst_15 : f32 to vector<8x3xf32>
    %47 = vector.extract_strided_slice %45 {offsets = [0, 0], sizes = [1, 9], strides = [1, 1]} : vector<8x9xf32> to vector<1x9xf32>
    %48 = vector.extract_strided_slice %43 {offsets = [0, 0], sizes = [1, 1], strides = [1, 1]} : vector<1x3xf32> to vector<1x1xf32>
    %49 = vector.broadcast %48 : vector<1x1xf32> to vector<1x9xf32>
    %50 = arith.mulf %49, %3 : vector<1x9xf32>
    %51 = vector.extract_strided_slice %43 {offsets = [0, 1], sizes = [1, 1], strides = [1, 1]} : vector<1x3xf32> to vector<1x1xf32>
    %52 = vector.broadcast %51 : vector<1x1xf32> to vector<1x9xf32>
    %53 = arith.mulf %52, %4 : vector<1x9xf32>
    %54 = arith.addf %50, %53 : vector<1x9xf32>
    %55 = vector.extract_strided_slice %43 {offsets = [0, 2], sizes = [1, 1], strides = [1, 1]} : vector<1x3xf32> to vector<1x1xf32>
    %56 = vector.broadcast %55 : vector<1x1xf32> to vector<1x9xf32>
    %57 = arith.mulf %56, %5 : vector<1x9xf32>
    %58 = arith.addf %54, %57 : vector<1x9xf32>
    %59 = arith.addf %58, %7 : vector<1x9xf32>
    %60 = vector.extract_strided_slice %47 {offsets = [0, 0], sizes = [1, 6], strides = [1, 1]} : vector<1x9xf32> to vector<1x6xf32>
    %61 = vector.extract_strided_slice %59 {offsets = [0, 0], sizes = [1, 6], strides = [1, 1]} : vector<1x9xf32> to vector<1x6xf32>
    %62 = arith.addf %60, %61 : vector<1x6xf32>
    %63 = arith.negf %62 : vector<1x6xf32>
    %64 = math.exp %63 : vector<1x6xf32>
    %cst_16 = arith.constant 1.000000e+00 : f32
    %65 = vector.broadcast %cst_16 : f32 to vector<1x6xf32>
    %66 = arith.addf %65, %64 : vector<1x6xf32>
    %67 = arith.divf %65, %66 : vector<1x6xf32>
    %68 = vector.extract_strided_slice %47 {offsets = [0, 6], sizes = [1, 3], strides = [1, 1]} : vector<1x9xf32> to vector<1x3xf32>
    %69 = vector.extract_strided_slice %67 {offsets = [0, 0], sizes = [1, 3], strides = [1, 1]} : vector<1x6xf32> to vector<1x3xf32>
    %70 = vector.extract_strided_slice %59 {offsets = [0, 6], sizes = [1, 3], strides = [1, 1]} : vector<1x9xf32> to vector<1x3xf32>
    %71 = arith.mulf %69, %70 : vector<1x3xf32>
    %72 = arith.addf %68, %71 : vector<1x3xf32>
    %73 = math.tanh %72 : vector<1x3xf32>
    %74 = vector.extract_strided_slice %67 {offsets = [0, 3], sizes = [1, 3], strides = [1, 1]} : vector<1x6xf32> to vector<1x3xf32>
    %cst_17 = arith.constant 1.000000e+00 : f32
    %75 = vector.broadcast %cst_17 : f32 to vector<1x3xf32>
    %76 = arith.subf %75, %74 : vector<1x3xf32>
    %77 = arith.mulf %76, %73 : vector<1x3xf32>
    %78 = vector.extract_strided_slice %67 {offsets = [0, 3], sizes = [1, 3], strides = [1, 1]} : vector<1x6xf32> to vector<1x3xf32>
    %79 = arith.mulf %78, %43 : vector<1x3xf32>
    %80 = arith.addf %77, %79 : vector<1x3xf32>
    %c0_i32 = arith.constant 0 : i32
    %81 = vector.broadcast %c0_i32 : i32 to vector<8x1xi32>
    %82 = arith.cmpi eq, %44, %81 : vector<8x1xi32>
    %83 = vector.shape_cast %82 : vector<8x1xi1> to vector<8x1xi1>
    %84 = vector.broadcast %83 : vector<8x1xi1> to vector<8x3xi1>
    %85 = vector.shape_cast %80 : vector<1x3xf32> to vector<1x3xf32>
    %86 = vector.broadcast %85 : vector<1x3xf32> to vector<8x3xf32>
    %87 = arith.select %84, %86, %46 : vector<8x3xi1>, vector<8x3xf32>
    %88 = vector.extract_strided_slice %45 {offsets = [1, 0], sizes = [1, 9], strides = [1, 1]} : vector<8x9xf32> to vector<1x9xf32>
    %89 = vector.extract_strided_slice %80 {offsets = [0, 0], sizes = [1, 1], strides = [1, 1]} : vector<1x3xf32> to vector<1x1xf32>
    %90 = vector.broadcast %89 : vector<1x1xf32> to vector<1x9xf32>
    %91 = arith.mulf %90, %3 : vector<1x9xf32>
    %92 = vector.extract_strided_slice %80 {offsets = [0, 1], sizes = [1, 1], strides = [1, 1]} : vector<1x3xf32> to vector<1x1xf32>
    %93 = vector.broadcast %92 : vector<1x1xf32> to vector<1x9xf32>
    %94 = arith.mulf %93, %4 : vector<1x9xf32>
    %95 = arith.addf %91, %94 : vector<1x9xf32>
    %96 = vector.extract_strided_slice %80 {offsets = [0, 2], sizes = [1, 1], strides = [1, 1]} : vector<1x3xf32> to vector<1x1xf32>
    %97 = vector.broadcast %96 : vector<1x1xf32> to vector<1x9xf32>
    %98 = arith.mulf %97, %5 : vector<1x9xf32>
    %99 = arith.addf %95, %98 : vector<1x9xf32>
    %100 = arith.addf %99, %7 : vector<1x9xf32>
    %101 = vector.extract_strided_slice %88 {offsets = [0, 0], sizes = [1, 6], strides = [1, 1]} : vector<1x9xf32> to vector<1x6xf32>
    %102 = vector.extract_strided_slice %100 {offsets = [0, 0], sizes = [1, 6], strides = [1, 1]} : vector<1x9xf32> to vector<1x6xf32>
    %103 = arith.addf %101, %102 : vector<1x6xf32>
    %104 = arith.negf %103 : vector<1x6xf32>
    %105 = math.exp %104 : vector<1x6xf32>
    %cst_18 = arith.constant 1.000000e+00 : f32
    %106 = vector.broadcast %cst_18 : f32 to vector<1x6xf32>
    %107 = arith.addf %106, %105 : vector<1x6xf32>
    %108 = arith.divf %106, %107 : vector<1x6xf32>
    %109 = vector.extract_strided_slice %88 {offsets = [0, 6], sizes = [1, 3], strides = [1, 1]} : vector<1x9xf32> to vector<1x3xf32>
    %110 = vector.extract_strided_slice %108 {offsets = [0, 0], sizes = [1, 3], strides = [1, 1]} : vector<1x6xf32> to vector<1x3xf32>
    %111 = vector.extract_strided_slice %100 {offsets = [0, 6], sizes = [1, 3], strides = [1, 1]} : vector<1x9xf32> to vector<1x3xf32>
    %112 = arith.mulf %110, %111 : vector<1x3xf32>
    %113 = arith.addf %109, %112 : vector<1x3xf32>
    %114 = math.tanh %113 : vector<1x3xf32>
    %115 = vector.extract_strided_slice %108 {offsets = [0, 3], sizes = [1, 3], strides = [1, 1]} : vector<1x6xf32> to vector<1x3xf32>
    %cst_19 = arith.constant 1.000000e+00 : f32
    %116 = vector.broadcast %cst_19 : f32 to vector<1x3xf32>
    %117 = arith.subf %116, %115 : vector<1x3xf32>
    %118 = arith.mulf %117, %114 : vector<1x3xf32>
    %119 = vector.extract_strided_slice %108 {offsets = [0, 3], sizes = [1, 3], strides = [1, 1]} : vector<1x6xf32> to vector<1x3xf32>
    %120 = arith.mulf %119, %80 : vector<1x3xf32>
    %121 = arith.addf %118, %120 : vector<1x3xf32>
    %c1_i32 = arith.constant 1 : i32
    %122 = vector.broadcast %c1_i32 : i32 to vector<8x1xi32>
    %123 = arith.cmpi eq, %44, %122 : vector<8x1xi32>
    %124 = vector.shape_cast %123 : vector<8x1xi1> to vector<8x1xi1>
    %125 = vector.broadcast %124 : vector<8x1xi1> to vector<8x3xi1>
    %126 = vector.shape_cast %121 : vector<1x3xf32> to vector<1x3xf32>
    %127 = vector.broadcast %126 : vector<1x3xf32> to vector<8x3xf32>
    %128 = arith.select %125, %127, %87 : vector<8x3xi1>, vector<8x3xf32>
    %129 = vector.extract_strided_slice %45 {offsets = [2, 0], sizes = [1, 9], strides = [1, 1]} : vector<8x9xf32> to vector<1x9xf32>
    %130 = vector.extract_strided_slice %121 {offsets = [0, 0], sizes = [1, 1], strides = [1, 1]} : vector<1x3xf32> to vector<1x1xf32>
    %131 = vector.broadcast %130 : vector<1x1xf32> to vector<1x9xf32>
    %132 = arith.mulf %131, %3 : vector<1x9xf32>
    %133 = vector.extract_strided_slice %121 {offsets = [0, 1], sizes = [1, 1], strides = [1, 1]} : vector<1x3xf32> to vector<1x1xf32>
    %134 = vector.broadcast %133 : vector<1x1xf32> to vector<1x9xf32>
    %135 = arith.mulf %134, %4 : vector<1x9xf32>
    %136 = arith.addf %132, %135 : vector<1x9xf32>
    %137 = vector.extract_strided_slice %121 {offsets = [0, 2], sizes = [1, 1], strides = [1, 1]} : vector<1x3xf32> to vector<1x1xf32>
    %138 = vector.broadcast %137 : vector<1x1xf32> to vector<1x9xf32>
    %139 = arith.mulf %138, %5 : vector<1x9xf32>
    %140 = arith.addf %136, %139 : vector<1x9xf32>
    %141 = arith.addf %140, %7 : vector<1x9xf32>
    %142 = vector.extract_strided_slice %129 {offsets = [0, 0], sizes = [1, 6], strides = [1, 1]} : vector<1x9xf32> to vector<1x6xf32>
    %143 = vector.extract_strided_slice %141 {offsets = [0, 0], sizes = [1, 6], strides = [1, 1]} : vector<1x9xf32> to vector<1x6xf32>
    %144 = arith.addf %142, %143 : vector<1x6xf32>
    %145 = arith.negf %144 : vector<1x6xf32>
    %146 = math.exp %145 : vector<1x6xf32>
    %cst_20 = arith.constant 1.000000e+00 : f32
    %147 = vector.broadcast %cst_20 : f32 to vector<1x6xf32>
    %148 = arith.addf %147, %146 : vector<1x6xf32>
    %149 = arith.divf %147, %148 : vector<1x6xf32>
    %150 = vector.extract_strided_slice %129 {offsets = [0, 6], sizes = [1, 3], strides = [1, 1]} : vector<1x9xf32> to vector<1x3xf32>
    %151 = vector.extract_strided_slice %149 {offsets = [0, 0], sizes = [1, 3], strides = [1, 1]} : vector<1x6xf32> to vector<1x3xf32>
    %152 = vector.extract_strided_slice %141 {offsets = [0, 6], sizes = [1, 3], strides = [1, 1]} : vector<1x9xf32> to vector<1x3xf32>
    %153 = arith.mulf %151, %152 : vector<1x3xf32>
    %154 = arith.addf %150, %153 : vector<1x3xf32>
    %155 = math.tanh %154 : vector<1x3xf32>
    %156 = vector.extract_strided_slice %149 {offsets = [0, 3], sizes = [1, 3], strides = [1, 1]} : vector<1x6xf32> to vector<1x3xf32>
    %cst_21 = arith.constant 1.000000e+00 : f32
    %157 = vector.broadcast %cst_21 : f32 to vector<1x3xf32>
    %158 = arith.subf %157, %156 : vector<1x3xf32>
    %159 = arith.mulf %158, %155 : vector<1x3xf32>
    %160 = vector.extract_strided_slice %149 {offsets = [0, 3], sizes = [1, 3], strides = [1, 1]} : vector<1x6xf32> to vector<1x3xf32>
    %161 = arith.mulf %160, %121 : vector<1x3xf32>
    %162 = arith.addf %159, %161 : vector<1x3xf32>
    %c2_i32 = arith.constant 2 : i32
    %163 = vector.broadcast %c2_i32 : i32 to vector<8x1xi32>
    %164 = arith.cmpi eq, %44, %163 : vector<8x1xi32>
    %165 = vector.shape_cast %164 : vector<8x1xi1> to vector<8x1xi1>
    %166 = vector.broadcast %165 : vector<8x1xi1> to vector<8x3xi1>
    %167 = vector.shape_cast %162 : vector<1x3xf32> to vector<1x3xf32>
    %168 = vector.broadcast %167 : vector<1x3xf32> to vector<8x3xf32>
    %169 = arith.select %166, %168, %128 : vector<8x3xi1>, vector<8x3xf32>
    %170 = vector.extract_strided_slice %45 {offsets = [3, 0], sizes = [1, 9], strides = [1, 1]} : vector<8x9xf32> to vector<1x9xf32>
    %171 = vector.extract_strided_slice %162 {offsets = [0, 0], sizes = [1, 1], strides = [1, 1]} : vector<1x3xf32> to vector<1x1xf32>
    %172 = vector.broadcast %171 : vector<1x1xf32> to vector<1x9xf32>
    %173 = arith.mulf %172, %3 : vector<1x9xf32>
    %174 = vector.extract_strided_slice %162 {offsets = [0, 1], sizes = [1, 1], strides = [1, 1]} : vector<1x3xf32> to vector<1x1xf32>
    %175 = vector.broadcast %174 : vector<1x1xf32> to vector<1x9xf32>
    %176 = arith.mulf %175, %4 : vector<1x9xf32>
    %177 = arith.addf %173, %176 : vector<1x9xf32>
    %178 = vector.extract_strided_slice %162 {offsets = [0, 2], sizes = [1, 1], strides = [1, 1]} : vector<1x3xf32> to vector<1x1xf32>
    %179 = vector.broadcast %178 : vector<1x1xf32> to vector<1x9xf32>
    %180 = arith.mulf %179, %5 : vector<1x9xf32>
    %181 = arith.addf %177, %180 : vector<1x9xf32>
    %182 = arith.addf %181, %7 : vector<1x9xf32>
    %183 = vector.extract_strided_slice %170 {offsets = [0, 0], sizes = [1, 6], strides = [1, 1]} : vector<1x9xf32> to vector<1x6xf32>
    %184 = vector.extract_strided_slice %182 {offsets = [0, 0], sizes = [1, 6], strides = [1, 1]} : vector<1x9xf32> to vector<1x6xf32>
    %185 = arith.addf %183, %184 : vector<1x6xf32>
    %186 = arith.negf %185 : vector<1x6xf32>
    %187 = math.exp %186 : vector<1x6xf32>
    %cst_22 = arith.constant 1.000000e+00 : f32
    %188 = vector.broadcast %cst_22 : f32 to vector<1x6xf32>
    %189 = arith.addf %188, %187 : vector<1x6xf32>
    %190 = arith.divf %188, %189 : vector<1x6xf32>
    %191 = vector.extract_strided_slice %170 {offsets = [0, 6], sizes = [1, 3], strides = [1, 1]} : vector<1x9xf32> to vector<1x3xf32>
    %192 = vector.extract_strided_slice %190 {offsets = [0, 0], sizes = [1, 3], strides = [1, 1]} : vector<1x6xf32> to vector<1x3xf32>
    %193 = vector.extract_strided_slice %182 {offsets = [0, 6], sizes = [1, 3], strides = [1, 1]} : vector<1x9xf32> to vector<1x3xf32>
    %194 = arith.mulf %192, %193 : vector<1x3xf32>
    %195 = arith.addf %191, %194 : vector<1x3xf32>
    %196 = math.tanh %195 : vector<1x3xf32>
    %197 = vector.extract_strided_slice %190 {offsets = [0, 3], sizes = [1, 3], strides = [1, 1]} : vector<1x6xf32> to vector<1x3xf32>
    %cst_23 = arith.constant 1.000000e+00 : f32
    %198 = vector.broadcast %cst_23 : f32 to vector<1x3xf32>
    %199 = arith.subf %198, %197 : vector<1x3xf32>
    %200 = arith.mulf %199, %196 : vector<1x3xf32>
    %201 = vector.extract_strided_slice %190 {offsets = [0, 3], sizes = [1, 3], strides = [1, 1]} : vector<1x6xf32> to vector<1x3xf32>
    %202 = arith.mulf %201, %162 : vector<1x3xf32>
    %203 = arith.addf %200, %202 : vector<1x3xf32>
    %c3_i32 = arith.constant 3 : i32
    %204 = vector.broadcast %c3_i32 : i32 to vector<8x1xi32>
    %205 = arith.cmpi eq, %44, %204 : vector<8x1xi32>
    %206 = vector.shape_cast %205 : vector<8x1xi1> to vector<8x1xi1>
    %207 = vector.broadcast %206 : vector<8x1xi1> to vector<8x3xi1>
    %208 = vector.shape_cast %203 : vector<1x3xf32> to vector<1x3xf32>
    %209 = vector.broadcast %208 : vector<1x3xf32> to vector<8x3xf32>
    %210 = arith.select %207, %209, %169 : vector<8x3xi1>, vector<8x3xf32>
    %211 = vector.extract_strided_slice %45 {offsets = [4, 0], sizes = [1, 9], strides = [1, 1]} : vector<8x9xf32> to vector<1x9xf32>
    %212 = vector.extract_strided_slice %203 {offsets = [0, 0], sizes = [1, 1], strides = [1, 1]} : vector<1x3xf32> to vector<1x1xf32>
    %213 = vector.broadcast %212 : vector<1x1xf32> to vector<1x9xf32>
    %214 = arith.mulf %213, %3 : vector<1x9xf32>
    %215 = vector.extract_strided_slice %203 {offsets = [0, 1], sizes = [1, 1], strides = [1, 1]} : vector<1x3xf32> to vector<1x1xf32>
    %216 = vector.broadcast %215 : vector<1x1xf32> to vector<1x9xf32>
    %217 = arith.mulf %216, %4 : vector<1x9xf32>
    %218 = arith.addf %214, %217 : vector<1x9xf32>
    %219 = vector.extract_strided_slice %203 {offsets = [0, 2], sizes = [1, 1], strides = [1, 1]} : vector<1x3xf32> to vector<1x1xf32>
    %220 = vector.broadcast %219 : vector<1x1xf32> to vector<1x9xf32>
    %221 = arith.mulf %220, %5 : vector<1x9xf32>
    %222 = arith.addf %218, %221 : vector<1x9xf32>
    %223 = arith.addf %222, %7 : vector<1x9xf32>
    %224 = vector.extract_strided_slice %211 {offsets = [0, 0], sizes = [1, 6], strides = [1, 1]} : vector<1x9xf32> to vector<1x6xf32>
    %225 = vector.extract_strided_slice %223 {offsets = [0, 0], sizes = [1, 6], strides = [1, 1]} : vector<1x9xf32> to vector<1x6xf32>
    %226 = arith.addf %224, %225 : vector<1x6xf32>
    %227 = arith.negf %226 : vector<1x6xf32>
    %228 = math.exp %227 : vector<1x6xf32>
    %cst_24 = arith.constant 1.000000e+00 : f32
    %229 = vector.broadcast %cst_24 : f32 to vector<1x6xf32>
    %230 = arith.addf %229, %228 : vector<1x6xf32>
    %231 = arith.divf %229, %230 : vector<1x6xf32>
    %232 = vector.extract_strided_slice %211 {offsets = [0, 6], sizes = [1, 3], strides = [1, 1]} : vector<1x9xf32> to vector<1x3xf32>
    %233 = vector.extract_strided_slice %231 {offsets = [0, 0], sizes = [1, 3], strides = [1, 1]} : vector<1x6xf32> to vector<1x3xf32>
    %234 = vector.extract_strided_slice %223 {offsets = [0, 6], sizes = [1, 3], strides = [1, 1]} : vector<1x9xf32> to vector<1x3xf32>
    %235 = arith.mulf %233, %234 : vector<1x3xf32>
    %236 = arith.addf %232, %235 : vector<1x3xf32>
    %237 = math.tanh %236 : vector<1x3xf32>
    %238 = vector.extract_strided_slice %231 {offsets = [0, 3], sizes = [1, 3], strides = [1, 1]} : vector<1x6xf32> to vector<1x3xf32>
    %cst_25 = arith.constant 1.000000e+00 : f32
    %239 = vector.broadcast %cst_25 : f32 to vector<1x3xf32>
    %240 = arith.subf %239, %238 : vector<1x3xf32>
    %241 = arith.mulf %240, %237 : vector<1x3xf32>
    %242 = vector.extract_strided_slice %231 {offsets = [0, 3], sizes = [1, 3], strides = [1, 1]} : vector<1x6xf32> to vector<1x3xf32>
    %243 = arith.mulf %242, %203 : vector<1x3xf32>
    %244 = arith.addf %241, %243 : vector<1x3xf32>
    %c4_i32 = arith.constant 4 : i32
    %245 = vector.broadcast %c4_i32 : i32 to vector<8x1xi32>
    %246 = arith.cmpi eq, %44, %245 : vector<8x1xi32>
    %247 = vector.shape_cast %246 : vector<8x1xi1> to vector<8x1xi1>
    %248 = vector.broadcast %247 : vector<8x1xi1> to vector<8x3xi1>
    %249 = vector.shape_cast %244 : vector<1x3xf32> to vector<1x3xf32>
    %250 = vector.broadcast %249 : vector<1x3xf32> to vector<8x3xf32>
    %251 = arith.select %248, %250, %210 : vector<8x3xi1>, vector<8x3xf32>
    %252 = vector.extract_strided_slice %45 {offsets = [5, 0], sizes = [1, 9], strides = [1, 1]} : vector<8x9xf32> to vector<1x9xf32>
    %253 = vector.extract_strided_slice %244 {offsets = [0, 0], sizes = [1, 1], strides = [1, 1]} : vector<1x3xf32> to vector<1x1xf32>
    %254 = vector.broadcast %253 : vector<1x1xf32> to vector<1x9xf32>
    %255 = arith.mulf %254, %3 : vector<1x9xf32>
    %256 = vector.extract_strided_slice %244 {offsets = [0, 1], sizes = [1, 1], strides = [1, 1]} : vector<1x3xf32> to vector<1x1xf32>
    %257 = vector.broadcast %256 : vector<1x1xf32> to vector<1x9xf32>
    %258 = arith.mulf %257, %4 : vector<1x9xf32>
    %259 = arith.addf %255, %258 : vector<1x9xf32>
    %260 = vector.extract_strided_slice %244 {offsets = [0, 2], sizes = [1, 1], strides = [1, 1]} : vector<1x3xf32> to vector<1x1xf32>
    %261 = vector.broadcast %260 : vector<1x1xf32> to vector<1x9xf32>
    %262 = arith.mulf %261, %5 : vector<1x9xf32>
    %263 = arith.addf %259, %262 : vector<1x9xf32>
    %264 = arith.addf %263, %7 : vector<1x9xf32>
    %265 = vector.extract_strided_slice %252 {offsets = [0, 0], sizes = [1, 6], strides = [1, 1]} : vector<1x9xf32> to vector<1x6xf32>
    %266 = vector.extract_strided_slice %264 {offsets = [0, 0], sizes = [1, 6], strides = [1, 1]} : vector<1x9xf32> to vector<1x6xf32>
    %267 = arith.addf %265, %266 : vector<1x6xf32>
    %268 = arith.negf %267 : vector<1x6xf32>
    %269 = math.exp %268 : vector<1x6xf32>
    %cst_26 = arith.constant 1.000000e+00 : f32
    %270 = vector.broadcast %cst_26 : f32 to vector<1x6xf32>
    %271 = arith.addf %270, %269 : vector<1x6xf32>
    %272 = arith.divf %270, %271 : vector<1x6xf32>
    %273 = vector.extract_strided_slice %252 {offsets = [0, 6], sizes = [1, 3], strides = [1, 1]} : vector<1x9xf32> to vector<1x3xf32>
    %274 = vector.extract_strided_slice %272 {offsets = [0, 0], sizes = [1, 3], strides = [1, 1]} : vector<1x6xf32> to vector<1x3xf32>
    %275 = vector.extract_strided_slice %264 {offsets = [0, 6], sizes = [1, 3], strides = [1, 1]} : vector<1x9xf32> to vector<1x3xf32>
    %276 = arith.mulf %274, %275 : vector<1x3xf32>
    %277 = arith.addf %273, %276 : vector<1x3xf32>
    %278 = math.tanh %277 : vector<1x3xf32>
    %279 = vector.extract_strided_slice %272 {offsets = [0, 3], sizes = [1, 3], strides = [1, 1]} : vector<1x6xf32> to vector<1x3xf32>
    %cst_27 = arith.constant 1.000000e+00 : f32
    %280 = vector.broadcast %cst_27 : f32 to vector<1x3xf32>
    %281 = arith.subf %280, %279 : vector<1x3xf32>
    %282 = arith.mulf %281, %278 : vector<1x3xf32>
    %283 = vector.extract_strided_slice %272 {offsets = [0, 3], sizes = [1, 3], strides = [1, 1]} : vector<1x6xf32> to vector<1x3xf32>
    %284 = arith.mulf %283, %244 : vector<1x3xf32>
    %285 = arith.addf %282, %284 : vector<1x3xf32>
    %c5_i32 = arith.constant 5 : i32
    %286 = vector.broadcast %c5_i32 : i32 to vector<8x1xi32>
    %287 = arith.cmpi eq, %44, %286 : vector<8x1xi32>
    %288 = vector.shape_cast %287 : vector<8x1xi1> to vector<8x1xi1>
    %289 = vector.broadcast %288 : vector<8x1xi1> to vector<8x3xi1>
    %290 = vector.shape_cast %285 : vector<1x3xf32> to vector<1x3xf32>
    %291 = vector.broadcast %290 : vector<1x3xf32> to vector<8x3xf32>
    %292 = arith.select %289, %291, %251 : vector<8x3xi1>, vector<8x3xf32>
    %293 = vector.extract_strided_slice %45 {offsets = [6, 0], sizes = [1, 9], strides = [1, 1]} : vector<8x9xf32> to vector<1x9xf32>
    %294 = vector.extract_strided_slice %285 {offsets = [0, 0], sizes = [1, 1], strides = [1, 1]} : vector<1x3xf32> to vector<1x1xf32>
    %295 = vector.broadcast %294 : vector<1x1xf32> to vector<1x9xf32>
    %296 = arith.mulf %295, %3 : vector<1x9xf32>
    %297 = vector.extract_strided_slice %285 {offsets = [0, 1], sizes = [1, 1], strides = [1, 1]} : vector<1x3xf32> to vector<1x1xf32>
    %298 = vector.broadcast %297 : vector<1x1xf32> to vector<1x9xf32>
    %299 = arith.mulf %298, %4 : vector<1x9xf32>
    %300 = arith.addf %296, %299 : vector<1x9xf32>
    %301 = vector.extract_strided_slice %285 {offsets = [0, 2], sizes = [1, 1], strides = [1, 1]} : vector<1x3xf32> to vector<1x1xf32>
    %302 = vector.broadcast %301 : vector<1x1xf32> to vector<1x9xf32>
    %303 = arith.mulf %302, %5 : vector<1x9xf32>
    %304 = arith.addf %300, %303 : vector<1x9xf32>
    %305 = arith.addf %304, %7 : vector<1x9xf32>
    %306 = vector.extract_strided_slice %293 {offsets = [0, 0], sizes = [1, 6], strides = [1, 1]} : vector<1x9xf32> to vector<1x6xf32>
    %307 = vector.extract_strided_slice %305 {offsets = [0, 0], sizes = [1, 6], strides = [1, 1]} : vector<1x9xf32> to vector<1x6xf32>
    %308 = arith.addf %306, %307 : vector<1x6xf32>
    %309 = arith.negf %308 : vector<1x6xf32>
    %310 = math.exp %309 : vector<1x6xf32>
    %cst_28 = arith.constant 1.000000e+00 : f32
    %311 = vector.broadcast %cst_28 : f32 to vector<1x6xf32>
    %312 = arith.addf %311, %310 : vector<1x6xf32>
    %313 = arith.divf %311, %312 : vector<1x6xf32>
    %314 = vector.extract_strided_slice %293 {offsets = [0, 6], sizes = [1, 3], strides = [1, 1]} : vector<1x9xf32> to vector<1x3xf32>
    %315 = vector.extract_strided_slice %313 {offsets = [0, 0], sizes = [1, 3], strides = [1, 1]} : vector<1x6xf32> to vector<1x3xf32>
    %316 = vector.extract_strided_slice %305 {offsets = [0, 6], sizes = [1, 3], strides = [1, 1]} : vector<1x9xf32> to vector<1x3xf32>
    %317 = arith.mulf %315, %316 : vector<1x3xf32>
    %318 = arith.addf %314, %317 : vector<1x3xf32>
    %319 = math.tanh %318 : vector<1x3xf32>
    %320 = vector.extract_strided_slice %313 {offsets = [0, 3], sizes = [1, 3], strides = [1, 1]} : vector<1x6xf32> to vector<1x3xf32>
    %cst_29 = arith.constant 1.000000e+00 : f32
    %321 = vector.broadcast %cst_29 : f32 to vector<1x3xf32>
    %322 = arith.subf %321, %320 : vector<1x3xf32>
    %323 = arith.mulf %322, %319 : vector<1x3xf32>
    %324 = vector.extract_strided_slice %313 {offsets = [0, 3], sizes = [1, 3], strides = [1, 1]} : vector<1x6xf32> to vector<1x3xf32>
    %325 = arith.mulf %324, %285 : vector<1x3xf32>
    %326 = arith.addf %323, %325 : vector<1x3xf32>
    %c6_i32 = arith.constant 6 : i32
    %327 = vector.broadcast %c6_i32 : i32 to vector<8x1xi32>
    %328 = arith.cmpi eq, %44, %327 : vector<8x1xi32>
    %329 = vector.shape_cast %328 : vector<8x1xi1> to vector<8x1xi1>
    %330 = vector.broadcast %329 : vector<8x1xi1> to vector<8x3xi1>
    %331 = vector.shape_cast %326 : vector<1x3xf32> to vector<1x3xf32>
    %332 = vector.broadcast %331 : vector<1x3xf32> to vector<8x3xf32>
    %333 = arith.select %330, %332, %292 : vector<8x3xi1>, vector<8x3xf32>
    %334 = vector.extract_strided_slice %45 {offsets = [7, 0], sizes = [1, 9], strides = [1, 1]} : vector<8x9xf32> to vector<1x9xf32>
    %335 = vector.extract_strided_slice %326 {offsets = [0, 0], sizes = [1, 1], strides = [1, 1]} : vector<1x3xf32> to vector<1x1xf32>
    %336 = vector.broadcast %335 : vector<1x1xf32> to vector<1x9xf32>
    %337 = arith.mulf %336, %3 : vector<1x9xf32>
    %338 = vector.extract_strided_slice %326 {offsets = [0, 1], sizes = [1, 1], strides = [1, 1]} : vector<1x3xf32> to vector<1x1xf32>
    %339 = vector.broadcast %338 : vector<1x1xf32> to vector<1x9xf32>
    %340 = arith.mulf %339, %4 : vector<1x9xf32>
    %341 = arith.addf %337, %340 : vector<1x9xf32>
    %342 = vector.extract_strided_slice %326 {offsets = [0, 2], sizes = [1, 1], strides = [1, 1]} : vector<1x3xf32> to vector<1x1xf32>
    %343 = vector.broadcast %342 : vector<1x1xf32> to vector<1x9xf32>
    %344 = arith.mulf %343, %5 : vector<1x9xf32>
    %345 = arith.addf %341, %344 : vector<1x9xf32>
    %346 = arith.addf %345, %7 : vector<1x9xf32>
    %347 = vector.extract_strided_slice %334 {offsets = [0, 0], sizes = [1, 6], strides = [1, 1]} : vector<1x9xf32> to vector<1x6xf32>
    %348 = vector.extract_strided_slice %346 {offsets = [0, 0], sizes = [1, 6], strides = [1, 1]} : vector<1x9xf32> to vector<1x6xf32>
    %349 = arith.addf %347, %348 : vector<1x6xf32>
    %350 = arith.negf %349 : vector<1x6xf32>
    %351 = math.exp %350 : vector<1x6xf32>
    %cst_30 = arith.constant 1.000000e+00 : f32
    %352 = vector.broadcast %cst_30 : f32 to vector<1x6xf32>
    %353 = arith.addf %352, %351 : vector<1x6xf32>
    %354 = arith.divf %352, %353 : vector<1x6xf32>
    %355 = vector.extract_strided_slice %334 {offsets = [0, 6], sizes = [1, 3], strides = [1, 1]} : vector<1x9xf32> to vector<1x3xf32>
    %356 = vector.extract_strided_slice %354 {offsets = [0, 0], sizes = [1, 3], strides = [1, 1]} : vector<1x6xf32> to vector<1x3xf32>
    %357 = vector.extract_strided_slice %346 {offsets = [0, 6], sizes = [1, 3], strides = [1, 1]} : vector<1x9xf32> to vector<1x3xf32>
    %358 = arith.mulf %356, %357 : vector<1x3xf32>
    %359 = arith.addf %355, %358 : vector<1x3xf32>
    %360 = math.tanh %359 : vector<1x3xf32>
    %361 = vector.extract_strided_slice %354 {offsets = [0, 3], sizes = [1, 3], strides = [1, 1]} : vector<1x6xf32> to vector<1x3xf32>
    %cst_31 = arith.constant 1.000000e+00 : f32
    %362 = vector.broadcast %cst_31 : f32 to vector<1x3xf32>
    %363 = arith.subf %362, %361 : vector<1x3xf32>
    %364 = arith.mulf %363, %360 : vector<1x3xf32>
    %365 = vector.extract_strided_slice %354 {offsets = [0, 3], sizes = [1, 3], strides = [1, 1]} : vector<1x6xf32> to vector<1x3xf32>
    %366 = arith.mulf %365, %326 : vector<1x3xf32>
    %367 = arith.addf %364, %366 : vector<1x3xf32>
    %c7_i32 = arith.constant 7 : i32
    %368 = vector.broadcast %c7_i32 : i32 to vector<8x1xi32>
    %369 = arith.cmpi eq, %44, %368 : vector<8x1xi32>
    %370 = vector.shape_cast %369 : vector<8x1xi1> to vector<8x1xi1>
    %371 = vector.broadcast %370 : vector<8x1xi1> to vector<8x3xi1>
    %372 = vector.shape_cast %367 : vector<1x3xf32> to vector<1x3xf32>
    %373 = vector.broadcast %372 : vector<1x3xf32> to vector<8x3xf32>
    %374 = arith.select %371, %373, %333 : vector<8x3xi1>, vector<8x3xf32>
    %c0_32 = arith.constant 0 : index
    %c0_33 = arith.constant 0 : index
    %375 = vector.load %arg4[%c0_32, %c0_33] : memref<48x384xf32, #tpu.memory_space<vmem>>, vector<8x384xf32>
    %cst_34 = arith.constant dense<0.000000e+00> : vector<3x384xf32>
    %376 = tpu.matmul %374, %375, %cst_34 {dimension_numbers = #tpu.dot_dimension_numbers<[0], [0], [1], [1], [0, 1, 1, 1], [], []>} : vector<8x3xf32>, vector<8x384xf32>, vector<3x384xf32> -> vector<3x384xf32>
    %377 = arith.addf %41, %376 : vector<3x384xf32>
    %378 = vector.extract_strided_slice %12 {offsets = [8, 0], sizes = [8, 9], strides = [1, 1]} : vector<48x9xf32> to vector<8x9xf32>
    %cst_35 = arith.constant 0.000000e+00 : f32
    %379 = vector.broadcast %cst_35 : f32 to vector<8x3xf32>
    %380 = vector.extract_strided_slice %378 {offsets = [0, 0], sizes = [1, 9], strides = [1, 1]} : vector<8x9xf32> to vector<1x9xf32>
    %381 = vector.extract_strided_slice %367 {offsets = [0, 0], sizes = [1, 1], strides = [1, 1]} : vector<1x3xf32> to vector<1x1xf32>
    %382 = vector.broadcast %381 : vector<1x1xf32> to vector<1x9xf32>
    %383 = arith.mulf %382, %3 : vector<1x9xf32>
    %384 = vector.extract_strided_slice %367 {offsets = [0, 1], sizes = [1, 1], strides = [1, 1]} : vector<1x3xf32> to vector<1x1xf32>
    %385 = vector.broadcast %384 : vector<1x1xf32> to vector<1x9xf32>
    %386 = arith.mulf %385, %4 : vector<1x9xf32>
    %387 = arith.addf %383, %386 : vector<1x9xf32>
    %388 = vector.extract_strided_slice %367 {offsets = [0, 2], sizes = [1, 1], strides = [1, 1]} : vector<1x3xf32> to vector<1x1xf32>
    %389 = vector.broadcast %388 : vector<1x1xf32> to vector<1x9xf32>
    %390 = arith.mulf %389, %5 : vector<1x9xf32>
    %391 = arith.addf %387, %390 : vector<1x9xf32>
    %392 = arith.addf %391, %7 : vector<1x9xf32>
    %393 = vector.extract_strided_slice %380 {offsets = [0, 0], sizes = [1, 6], strides = [1, 1]} : vector<1x9xf32> to vector<1x6xf32>
    %394 = vector.extract_strided_slice %392 {offsets = [0, 0], sizes = [1, 6], strides = [1, 1]} : vector<1x9xf32> to vector<1x6xf32>
    %395 = arith.addf %393, %394 : vector<1x6xf32>
    %396 = arith.negf %395 : vector<1x6xf32>
    %397 = math.exp %396 : vector<1x6xf32>
    %cst_36 = arith.constant 1.000000e+00 : f32
    %398 = vector.broadcast %cst_36 : f32 to vector<1x6xf32>
    %399 = arith.addf %398, %397 : vector<1x6xf32>
    %400 = arith.divf %398, %399 : vector<1x6xf32>
    %401 = vector.extract_strided_slice %380 {offsets = [0, 6], sizes = [1, 3], strides = [1, 1]} : vector<1x9xf32> to vector<1x3xf32>
    %402 = vector.extract_strided_slice %400 {offsets = [0, 0], sizes = [1, 3], strides = [1, 1]} : vector<1x6xf32> to vector<1x3xf32>
    %403 = vector.extract_strided_slice %392 {offsets = [0, 6], sizes = [1, 3], strides = [1, 1]} : vector<1x9xf32> to vector<1x3xf32>
    %404 = arith.mulf %402, %403 : vector<1x3xf32>
    %405 = arith.addf %401, %404 : vector<1x3xf32>
    %406 = math.tanh %405 : vector<1x3xf32>
    %407 = vector.extract_strided_slice %400 {offsets = [0, 3], sizes = [1, 3], strides = [1, 1]} : vector<1x6xf32> to vector<1x3xf32>
    %cst_37 = arith.constant 1.000000e+00 : f32
    %408 = vector.broadcast %cst_37 : f32 to vector<1x3xf32>
    %409 = arith.subf %408, %407 : vector<1x3xf32>
    %410 = arith.mulf %409, %406 : vector<1x3xf32>
    %411 = vector.extract_strided_slice %400 {offsets = [0, 3], sizes = [1, 3], strides = [1, 1]} : vector<1x6xf32> to vector<1x3xf32>
    %412 = arith.mulf %411, %367 : vector<1x3xf32>
    %413 = arith.addf %410, %412 : vector<1x3xf32>
    %c0_i32_38 = arith.constant 0 : i32
    %414 = vector.broadcast %c0_i32_38 : i32 to vector<8x1xi32>
    %415 = arith.cmpi eq, %44, %414 : vector<8x1xi32>
    %416 = vector.shape_cast %415 : vector<8x1xi1> to vector<8x1xi1>
    %417 = vector.broadcast %416 : vector<8x1xi1> to vector<8x3xi1>
    %418 = vector.shape_cast %413 : vector<1x3xf32> to vector<1x3xf32>
    %419 = vector.broadcast %418 : vector<1x3xf32> to vector<8x3xf32>
    %420 = arith.select %417, %419, %379 : vector<8x3xi1>, vector<8x3xf32>
    %421 = vector.extract_strided_slice %378 {offsets = [1, 0], sizes = [1, 9], strides = [1, 1]} : vector<8x9xf32> to vector<1x9xf32>
    %422 = vector.extract_strided_slice %413 {offsets = [0, 0], sizes = [1, 1], strides = [1, 1]} : vector<1x3xf32> to vector<1x1xf32>
    %423 = vector.broadcast %422 : vector<1x1xf32> to vector<1x9xf32>
    %424 = arith.mulf %423, %3 : vector<1x9xf32>
    %425 = vector.extract_strided_slice %413 {offsets = [0, 1], sizes = [1, 1], strides = [1, 1]} : vector<1x3xf32> to vector<1x1xf32>
    %426 = vector.broadcast %425 : vector<1x1xf32> to vector<1x9xf32>
    %427 = arith.mulf %426, %4 : vector<1x9xf32>
    %428 = arith.addf %424, %427 : vector<1x9xf32>
    %429 = vector.extract_strided_slice %413 {offsets = [0, 2], sizes = [1, 1], strides = [1, 1]} : vector<1x3xf32> to vector<1x1xf32>
    %430 = vector.broadcast %429 : vector<1x1xf32> to vector<1x9xf32>
    %431 = arith.mulf %430, %5 : vector<1x9xf32>
    %432 = arith.addf %428, %431 : vector<1x9xf32>
    %433 = arith.addf %432, %7 : vector<1x9xf32>
    %434 = vector.extract_strided_slice %421 {offsets = [0, 0], sizes = [1, 6], strides = [1, 1]} : vector<1x9xf32> to vector<1x6xf32>
    %435 = vector.extract_strided_slice %433 {offsets = [0, 0], sizes = [1, 6], strides = [1, 1]} : vector<1x9xf32> to vector<1x6xf32>
    %436 = arith.addf %434, %435 : vector<1x6xf32>
    %437 = arith.negf %436 : vector<1x6xf32>
    %438 = math.exp %437 : vector<1x6xf32>
    %cst_39 = arith.constant 1.000000e+00 : f32
    %439 = vector.broadcast %cst_39 : f32 to vector<1x6xf32>
    %440 = arith.addf %439, %438 : vector<1x6xf32>
    %441 = arith.divf %439, %440 : vector<1x6xf32>
    %442 = vector.extract_strided_slice %421 {offsets = [0, 6], sizes = [1, 3], strides = [1, 1]} : vector<1x9xf32> to vector<1x3xf32>
    %443 = vector.extract_strided_slice %441 {offsets = [0, 0], sizes = [1, 3], strides = [1, 1]} : vector<1x6xf32> to vector<1x3xf32>
    %444 = vector.extract_strided_slice %433 {offsets = [0, 6], sizes = [1, 3], strides = [1, 1]} : vector<1x9xf32> to vector<1x3xf32>
    %445 = arith.mulf %443, %444 : vector<1x3xf32>
    %446 = arith.addf %442, %445 : vector<1x3xf32>
    %447 = math.tanh %446 : vector<1x3xf32>
    %448 = vector.extract_strided_slice %441 {offsets = [0, 3], sizes = [1, 3], strides = [1, 1]} : vector<1x6xf32> to vector<1x3xf32>
    %cst_40 = arith.constant 1.000000e+00 : f32
    %449 = vector.broadcast %cst_40 : f32 to vector<1x3xf32>
    %450 = arith.subf %449, %448 : vector<1x3xf32>
    %451 = arith.mulf %450, %447 : vector<1x3xf32>
    %452 = vector.extract_strided_slice %441 {offsets = [0, 3], sizes = [1, 3], strides = [1, 1]} : vector<1x6xf32> to vector<1x3xf32>
    %453 = arith.mulf %452, %413 : vector<1x3xf32>
    %454 = arith.addf %451, %453 : vector<1x3xf32>
    %c1_i32_41 = arith.constant 1 : i32
    %455 = vector.broadcast %c1_i32_41 : i32 to vector<8x1xi32>
    %456 = arith.cmpi eq, %44, %455 : vector<8x1xi32>
    %457 = vector.shape_cast %456 : vector<8x1xi1> to vector<8x1xi1>
    %458 = vector.broadcast %457 : vector<8x1xi1> to vector<8x3xi1>
    %459 = vector.shape_cast %454 : vector<1x3xf32> to vector<1x3xf32>
    %460 = vector.broadcast %459 : vector<1x3xf32> to vector<8x3xf32>
    %461 = arith.select %458, %460, %420 : vector<8x3xi1>, vector<8x3xf32>
    %462 = vector.extract_strided_slice %378 {offsets = [2, 0], sizes = [1, 9], strides = [1, 1]} : vector<8x9xf32> to vector<1x9xf32>
    %463 = vector.extract_strided_slice %454 {offsets = [0, 0], sizes = [1, 1], strides = [1, 1]} : vector<1x3xf32> to vector<1x1xf32>
    %464 = vector.broadcast %463 : vector<1x1xf32> to vector<1x9xf32>
    %465 = arith.mulf %464, %3 : vector<1x9xf32>
    %466 = vector.extract_strided_slice %454 {offsets = [0, 1], sizes = [1, 1], strides = [1, 1]} : vector<1x3xf32> to vector<1x1xf32>
    %467 = vector.broadcast %466 : vector<1x1xf32> to vector<1x9xf32>
    %468 = arith.mulf %467, %4 : vector<1x9xf32>
    %469 = arith.addf %465, %468 : vector<1x9xf32>
    %470 = vector.extract_strided_slice %454 {offsets = [0, 2], sizes = [1, 1], strides = [1, 1]} : vector<1x3xf32> to vector<1x1xf32>
    %471 = vector.broadcast %470 : vector<1x1xf32> to vector<1x9xf32>
    %472 = arith.mulf %471, %5 : vector<1x9xf32>
    %473 = arith.addf %469, %472 : vector<1x9xf32>
    %474 = arith.addf %473, %7 : vector<1x9xf32>
    %475 = vector.extract_strided_slice %462 {offsets = [0, 0], sizes = [1, 6], strides = [1, 1]} : vector<1x9xf32> to vector<1x6xf32>
    %476 = vector.extract_strided_slice %474 {offsets = [0, 0], sizes = [1, 6], strides = [1, 1]} : vector<1x9xf32> to vector<1x6xf32>
    %477 = arith.addf %475, %476 : vector<1x6xf32>
    %478 = arith.negf %477 : vector<1x6xf32>
    %479 = math.exp %478 : vector<1x6xf32>
    %cst_42 = arith.constant 1.000000e+00 : f32
    %480 = vector.broadcast %cst_42 : f32 to vector<1x6xf32>
    %481 = arith.addf %480, %479 : vector<1x6xf32>
    %482 = arith.divf %480, %481 : vector<1x6xf32>
    %483 = vector.extract_strided_slice %462 {offsets = [0, 6], sizes = [1, 3], strides = [1, 1]} : vector<1x9xf32> to vector<1x3xf32>
    %484 = vector.extract_strided_slice %482 {offsets = [0, 0], sizes = [1, 3], strides = [1, 1]} : vector<1x6xf32> to vector<1x3xf32>
    %485 = vector.extract_strided_slice %474 {offsets = [0, 6], sizes = [1, 3], strides = [1, 1]} : vector<1x9xf32> to vector<1x3xf32>
    %486 = arith.mulf %484, %485 : vector<1x3xf32>
    %487 = arith.addf %483, %486 : vector<1x3xf32>
    %488 = math.tanh %487 : vector<1x3xf32>
    %489 = vector.extract_strided_slice %482 {offsets = [0, 3], sizes = [1, 3], strides = [1, 1]} : vector<1x6xf32> to vector<1x3xf32>
    %cst_43 = arith.constant 1.000000e+00 : f32
    %490 = vector.broadcast %cst_43 : f32 to vector<1x3xf32>
    %491 = arith.subf %490, %489 : vector<1x3xf32>
    %492 = arith.mulf %491, %488 : vector<1x3xf32>
    %493 = vector.extract_strided_slice %482 {offsets = [0, 3], sizes = [1, 3], strides = [1, 1]} : vector<1x6xf32> to vector<1x3xf32>
    %494 = arith.mulf %493, %454 : vector<1x3xf32>
    %495 = arith.addf %492, %494 : vector<1x3xf32>
    %c2_i32_44 = arith.constant 2 : i32
    %496 = vector.broadcast %c2_i32_44 : i32 to vector<8x1xi32>
    %497 = arith.cmpi eq, %44, %496 : vector<8x1xi32>
    %498 = vector.shape_cast %497 : vector<8x1xi1> to vector<8x1xi1>
    %499 = vector.broadcast %498 : vector<8x1xi1> to vector<8x3xi1>
    %500 = vector.shape_cast %495 : vector<1x3xf32> to vector<1x3xf32>
    %501 = vector.broadcast %500 : vector<1x3xf32> to vector<8x3xf32>
    %502 = arith.select %499, %501, %461 : vector<8x3xi1>, vector<8x3xf32>
    %503 = vector.extract_strided_slice %378 {offsets = [3, 0], sizes = [1, 9], strides = [1, 1]} : vector<8x9xf32> to vector<1x9xf32>
    %504 = vector.extract_strided_slice %495 {offsets = [0, 0], sizes = [1, 1], strides = [1, 1]} : vector<1x3xf32> to vector<1x1xf32>
    %505 = vector.broadcast %504 : vector<1x1xf32> to vector<1x9xf32>
    %506 = arith.mulf %505, %3 : vector<1x9xf32>
    %507 = vector.extract_strided_slice %495 {offsets = [0, 1], sizes = [1, 1], strides = [1, 1]} : vector<1x3xf32> to vector<1x1xf32>
    %508 = vector.broadcast %507 : vector<1x1xf32> to vector<1x9xf32>
    %509 = arith.mulf %508, %4 : vector<1x9xf32>
    %510 = arith.addf %506, %509 : vector<1x9xf32>
    %511 = vector.extract_strided_slice %495 {offsets = [0, 2], sizes = [1, 1], strides = [1, 1]} : vector<1x3xf32> to vector<1x1xf32>
    %512 = vector.broadcast %511 : vector<1x1xf32> to vector<1x9xf32>
    %513 = arith.mulf %512, %5 : vector<1x9xf32>
    %514 = arith.addf %510, %513 : vector<1x9xf32>
    %515 = arith.addf %514, %7 : vector<1x9xf32>
    %516 = vector.extract_strided_slice %503 {offsets = [0, 0], sizes = [1, 6], strides = [1, 1]} : vector<1x9xf32> to vector<1x6xf32>
    %517 = vector.extract_strided_slice %515 {offsets = [0, 0], sizes = [1, 6], strides = [1, 1]} : vector<1x9xf32> to vector<1x6xf32>
    %518 = arith.addf %516, %517 : vector<1x6xf32>
    %519 = arith.negf %518 : vector<1x6xf32>
    %520 = math.exp %519 : vector<1x6xf32>
    %cst_45 = arith.constant 1.000000e+00 : f32
    %521 = vector.broadcast %cst_45 : f32 to vector<1x6xf32>
    %522 = arith.addf %521, %520 : vector<1x6xf32>
    %523 = arith.divf %521, %522 : vector<1x6xf32>
    %524 = vector.extract_strided_slice %503 {offsets = [0, 6], sizes = [1, 3], strides = [1, 1]} : vector<1x9xf32> to vector<1x3xf32>
    %525 = vector.extract_strided_slice %523 {offsets = [0, 0], sizes = [1, 3], strides = [1, 1]} : vector<1x6xf32> to vector<1x3xf32>
    %526 = vector.extract_strided_slice %515 {offsets = [0, 6], sizes = [1, 3], strides = [1, 1]} : vector<1x9xf32> to vector<1x3xf32>
    %527 = arith.mulf %525, %526 : vector<1x3xf32>
    %528 = arith.addf %524, %527 : vector<1x3xf32>
    %529 = math.tanh %528 : vector<1x3xf32>
    %530 = vector.extract_strided_slice %523 {offsets = [0, 3], sizes = [1, 3], strides = [1, 1]} : vector<1x6xf32> to vector<1x3xf32>
    %cst_46 = arith.constant 1.000000e+00 : f32
    %531 = vector.broadcast %cst_46 : f32 to vector<1x3xf32>
    %532 = arith.subf %531, %530 : vector<1x3xf32>
    %533 = arith.mulf %532, %529 : vector<1x3xf32>
    %534 = vector.extract_strided_slice %523 {offsets = [0, 3], sizes = [1, 3], strides = [1, 1]} : vector<1x6xf32> to vector<1x3xf32>
    %535 = arith.mulf %534, %495 : vector<1x3xf32>
    %536 = arith.addf %533, %535 : vector<1x3xf32>
    %c3_i32_47 = arith.constant 3 : i32
    %537 = vector.broadcast %c3_i32_47 : i32 to vector<8x1xi32>
    %538 = arith.cmpi eq, %44, %537 : vector<8x1xi32>
    %539 = vector.shape_cast %538 : vector<8x1xi1> to vector<8x1xi1>
    %540 = vector.broadcast %539 : vector<8x1xi1> to vector<8x3xi1>
    %541 = vector.shape_cast %536 : vector<1x3xf32> to vector<1x3xf32>
    %542 = vector.broadcast %541 : vector<1x3xf32> to vector<8x3xf32>
    %543 = arith.select %540, %542, %502 : vector<8x3xi1>, vector<8x3xf32>
    %544 = vector.extract_strided_slice %378 {offsets = [4, 0], sizes = [1, 9], strides = [1, 1]} : vector<8x9xf32> to vector<1x9xf32>
    %545 = vector.extract_strided_slice %536 {offsets = [0, 0], sizes = [1, 1], strides = [1, 1]} : vector<1x3xf32> to vector<1x1xf32>
    %546 = vector.broadcast %545 : vector<1x1xf32> to vector<1x9xf32>
    %547 = arith.mulf %546, %3 : vector<1x9xf32>
    %548 = vector.extract_strided_slice %536 {offsets = [0, 1], sizes = [1, 1], strides = [1, 1]} : vector<1x3xf32> to vector<1x1xf32>
    %549 = vector.broadcast %548 : vector<1x1xf32> to vector<1x9xf32>
    %550 = arith.mulf %549, %4 : vector<1x9xf32>
    %551 = arith.addf %547, %550 : vector<1x9xf32>
    %552 = vector.extract_strided_slice %536 {offsets = [0, 2], sizes = [1, 1], strides = [1, 1]} : vector<1x3xf32> to vector<1x1xf32>
    %553 = vector.broadcast %552 : vector<1x1xf32> to vector<1x9xf32>
    %554 = arith.mulf %553, %5 : vector<1x9xf32>
    %555 = arith.addf %551, %554 : vector<1x9xf32>
    %556 = arith.addf %555, %7 : vector<1x9xf32>
    %557 = vector.extract_strided_slice %544 {offsets = [0, 0], sizes = [1, 6], strides = [1, 1]} : vector<1x9xf32> to vector<1x6xf32>
    %558 = vector.extract_strided_slice %556 {offsets = [0, 0], sizes = [1, 6], strides = [1, 1]} : vector<1x9xf32> to vector<1x6xf32>
    %559 = arith.addf %557, %558 : vector<1x6xf32>
    %560 = arith.negf %559 : vector<1x6xf32>
    %561 = math.exp %560 : vector<1x6xf32>
    %cst_48 = arith.constant 1.000000e+00 : f32
    %562 = vector.broadcast %cst_48 : f32 to vector<1x6xf32>
    %563 = arith.addf %562, %561 : vector<1x6xf32>
    %564 = arith.divf %562, %563 : vector<1x6xf32>
    %565 = vector.extract_strided_slice %544 {offsets = [0, 6], sizes = [1, 3], strides = [1, 1]} : vector<1x9xf32> to vector<1x3xf32>
    %566 = vector.extract_strided_slice %564 {offsets = [0, 0], sizes = [1, 3], strides = [1, 1]} : vector<1x6xf32> to vector<1x3xf32>
    %567 = vector.extract_strided_slice %556 {offsets = [0, 6], sizes = [1, 3], strides = [1, 1]} : vector<1x9xf32> to vector<1x3xf32>
    %568 = arith.mulf %566, %567 : vector<1x3xf32>
    %569 = arith.addf %565, %568 : vector<1x3xf32>
    %570 = math.tanh %569 : vector<1x3xf32>
    %571 = vector.extract_strided_slice %564 {offsets = [0, 3], sizes = [1, 3], strides = [1, 1]} : vector<1x6xf32> to vector<1x3xf32>
    %cst_49 = arith.constant 1.000000e+00 : f32
    %572 = vector.broadcast %cst_49 : f32 to vector<1x3xf32>
    %573 = arith.subf %572, %571 : vector<1x3xf32>
    %574 = arith.mulf %573, %570 : vector<1x3xf32>
    %575 = vector.extract_strided_slice %564 {offsets = [0, 3], sizes = [1, 3], strides = [1, 1]} : vector<1x6xf32> to vector<1x3xf32>
    %576 = arith.mulf %575, %536 : vector<1x3xf32>
    %577 = arith.addf %574, %576 : vector<1x3xf32>
    %c4_i32_50 = arith.constant 4 : i32
    %578 = vector.broadcast %c4_i32_50 : i32 to vector<8x1xi32>
    %579 = arith.cmpi eq, %44, %578 : vector<8x1xi32>
    %580 = vector.shape_cast %579 : vector<8x1xi1> to vector<8x1xi1>
    %581 = vector.broadcast %580 : vector<8x1xi1> to vector<8x3xi1>
    %582 = vector.shape_cast %577 : vector<1x3xf32> to vector<1x3xf32>
    %583 = vector.broadcast %582 : vector<1x3xf32> to vector<8x3xf32>
    %584 = arith.select %581, %583, %543 : vector<8x3xi1>, vector<8x3xf32>
    %585 = vector.extract_strided_slice %378 {offsets = [5, 0], sizes = [1, 9], strides = [1, 1]} : vector<8x9xf32> to vector<1x9xf32>
    %586 = vector.extract_strided_slice %577 {offsets = [0, 0], sizes = [1, 1], strides = [1, 1]} : vector<1x3xf32> to vector<1x1xf32>
    %587 = vector.broadcast %586 : vector<1x1xf32> to vector<1x9xf32>
    %588 = arith.mulf %587, %3 : vector<1x9xf32>
    %589 = vector.extract_strided_slice %577 {offsets = [0, 1], sizes = [1, 1], strides = [1, 1]} : vector<1x3xf32> to vector<1x1xf32>
    %590 = vector.broadcast %589 : vector<1x1xf32> to vector<1x9xf32>
    %591 = arith.mulf %590, %4 : vector<1x9xf32>
    %592 = arith.addf %588, %591 : vector<1x9xf32>
    %593 = vector.extract_strided_slice %577 {offsets = [0, 2], sizes = [1, 1], strides = [1, 1]} : vector<1x3xf32> to vector<1x1xf32>
    %594 = vector.broadcast %593 : vector<1x1xf32> to vector<1x9xf32>
    %595 = arith.mulf %594, %5 : vector<1x9xf32>
    %596 = arith.addf %592, %595 : vector<1x9xf32>
    %597 = arith.addf %596, %7 : vector<1x9xf32>
    %598 = vector.extract_strided_slice %585 {offsets = [0, 0], sizes = [1, 6], strides = [1, 1]} : vector<1x9xf32> to vector<1x6xf32>
    %599 = vector.extract_strided_slice %597 {offsets = [0, 0], sizes = [1, 6], strides = [1, 1]} : vector<1x9xf32> to vector<1x6xf32>
    %600 = arith.addf %598, %599 : vector<1x6xf32>
    %601 = arith.negf %600 : vector<1x6xf32>
    %602 = math.exp %601 : vector<1x6xf32>
    %cst_51 = arith.constant 1.000000e+00 : f32
    %603 = vector.broadcast %cst_51 : f32 to vector<1x6xf32>
    %604 = arith.addf %603, %602 : vector<1x6xf32>
    %605 = arith.divf %603, %604 : vector<1x6xf32>
    %606 = vector.extract_strided_slice %585 {offsets = [0, 6], sizes = [1, 3], strides = [1, 1]} : vector<1x9xf32> to vector<1x3xf32>
    %607 = vector.extract_strided_slice %605 {offsets = [0, 0], sizes = [1, 3], strides = [1, 1]} : vector<1x6xf32> to vector<1x3xf32>
    %608 = vector.extract_strided_slice %597 {offsets = [0, 6], sizes = [1, 3], strides = [1, 1]} : vector<1x9xf32> to vector<1x3xf32>
    %609 = arith.mulf %607, %608 : vector<1x3xf32>
    %610 = arith.addf %606, %609 : vector<1x3xf32>
    %611 = math.tanh %610 : vector<1x3xf32>
    %612 = vector.extract_strided_slice %605 {offsets = [0, 3], sizes = [1, 3], strides = [1, 1]} : vector<1x6xf32> to vector<1x3xf32>
    %cst_52 = arith.constant 1.000000e+00 : f32
    %613 = vector.broadcast %cst_52 : f32 to vector<1x3xf32>
    %614 = arith.subf %613, %612 : vector<1x3xf32>
    %615 = arith.mulf %614, %611 : vector<1x3xf32>
    %616 = vector.extract_strided_slice %605 {offsets = [0, 3], sizes = [1, 3], strides = [1, 1]} : vector<1x6xf32> to vector<1x3xf32>
    %617 = arith.mulf %616, %577 : vector<1x3xf32>
    %618 = arith.addf %615, %617 : vector<1x3xf32>
    %c5_i32_53 = arith.constant 5 : i32
    %619 = vector.broadcast %c5_i32_53 : i32 to vector<8x1xi32>
    %620 = arith.cmpi eq, %44, %619 : vector<8x1xi32>
    %621 = vector.shape_cast %620 : vector<8x1xi1> to vector<8x1xi1>
    %622 = vector.broadcast %621 : vector<8x1xi1> to vector<8x3xi1>
    %623 = vector.shape_cast %618 : vector<1x3xf32> to vector<1x3xf32>
    %624 = vector.broadcast %623 : vector<1x3xf32> to vector<8x3xf32>
    %625 = arith.select %622, %624, %584 : vector<8x3xi1>, vector<8x3xf32>
    %626 = vector.extract_strided_slice %378 {offsets = [6, 0], sizes = [1, 9], strides = [1, 1]} : vector<8x9xf32> to vector<1x9xf32>
    %627 = vector.extract_strided_slice %618 {offsets = [0, 0], sizes = [1, 1], strides = [1, 1]} : vector<1x3xf32> to vector<1x1xf32>
    %628 = vector.broadcast %627 : vector<1x1xf32> to vector<1x9xf32>
    %629 = arith.mulf %628, %3 : vector<1x9xf32>
    %630 = vector.extract_strided_slice %618 {offsets = [0, 1], sizes = [1, 1], strides = [1, 1]} : vector<1x3xf32> to vector<1x1xf32>
    %631 = vector.broadcast %630 : vector<1x1xf32> to vector<1x9xf32>
    %632 = arith.mulf %631, %4 : vector<1x9xf32>
    %633 = arith.addf %629, %632 : vector<1x9xf32>
    %634 = vector.extract_strided_slice %618 {offsets = [0, 2], sizes = [1, 1], strides = [1, 1]} : vector<1x3xf32> to vector<1x1xf32>
    %635 = vector.broadcast %634 : vector<1x1xf32> to vector<1x9xf32>
    %636 = arith.mulf %635, %5 : vector<1x9xf32>
    %637 = arith.addf %633, %636 : vector<1x9xf32>
    %638 = arith.addf %637, %7 : vector<1x9xf32>
    %639 = vector.extract_strided_slice %626 {offsets = [0, 0], sizes = [1, 6], strides = [1, 1]} : vector<1x9xf32> to vector<1x6xf32>
    %640 = vector.extract_strided_slice %638 {offsets = [0, 0], sizes = [1, 6], strides = [1, 1]} : vector<1x9xf32> to vector<1x6xf32>
    %641 = arith.addf %639, %640 : vector<1x6xf32>
    %642 = arith.negf %641 : vector<1x6xf32>
    %643 = math.exp %642 : vector<1x6xf32>
    %cst_54 = arith.constant 1.000000e+00 : f32
    %644 = vector.broadcast %cst_54 : f32 to vector<1x6xf32>
    %645 = arith.addf %644, %643 : vector<1x6xf32>
    %646 = arith.divf %644, %645 : vector<1x6xf32>
    %647 = vector.extract_strided_slice %626 {offsets = [0, 6], sizes = [1, 3], strides = [1, 1]} : vector<1x9xf32> to vector<1x3xf32>
    %648 = vector.extract_strided_slice %646 {offsets = [0, 0], sizes = [1, 3], strides = [1, 1]} : vector<1x6xf32> to vector<1x3xf32>
    %649 = vector.extract_strided_slice %638 {offsets = [0, 6], sizes = [1, 3], strides = [1, 1]} : vector<1x9xf32> to vector<1x3xf32>
    %650 = arith.mulf %648, %649 : vector<1x3xf32>
    %651 = arith.addf %647, %650 : vector<1x3xf32>
    %652 = math.tanh %651 : vector<1x3xf32>
    %653 = vector.extract_strided_slice %646 {offsets = [0, 3], sizes = [1, 3], strides = [1, 1]} : vector<1x6xf32> to vector<1x3xf32>
    %cst_55 = arith.constant 1.000000e+00 : f32
    %654 = vector.broadcast %cst_55 : f32 to vector<1x3xf32>
    %655 = arith.subf %654, %653 : vector<1x3xf32>
    %656 = arith.mulf %655, %652 : vector<1x3xf32>
    %657 = vector.extract_strided_slice %646 {offsets = [0, 3], sizes = [1, 3], strides = [1, 1]} : vector<1x6xf32> to vector<1x3xf32>
    %658 = arith.mulf %657, %618 : vector<1x3xf32>
    %659 = arith.addf %656, %658 : vector<1x3xf32>
    %c6_i32_56 = arith.constant 6 : i32
    %660 = vector.broadcast %c6_i32_56 : i32 to vector<8x1xi32>
    %661 = arith.cmpi eq, %44, %660 : vector<8x1xi32>
    %662 = vector.shape_cast %661 : vector<8x1xi1> to vector<8x1xi1>
    %663 = vector.broadcast %662 : vector<8x1xi1> to vector<8x3xi1>
    %664 = vector.shape_cast %659 : vector<1x3xf32> to vector<1x3xf32>
    %665 = vector.broadcast %664 : vector<1x3xf32> to vector<8x3xf32>
    %666 = arith.select %663, %665, %625 : vector<8x3xi1>, vector<8x3xf32>
    %667 = vector.extract_strided_slice %378 {offsets = [7, 0], sizes = [1, 9], strides = [1, 1]} : vector<8x9xf32> to vector<1x9xf32>
    %668 = vector.extract_strided_slice %659 {offsets = [0, 0], sizes = [1, 1], strides = [1, 1]} : vector<1x3xf32> to vector<1x1xf32>
    %669 = vector.broadcast %668 : vector<1x1xf32> to vector<1x9xf32>
    %670 = arith.mulf %669, %3 : vector<1x9xf32>
    %671 = vector.extract_strided_slice %659 {offsets = [0, 1], sizes = [1, 1], strides = [1, 1]} : vector<1x3xf32> to vector<1x1xf32>
    %672 = vector.broadcast %671 : vector<1x1xf32> to vector<1x9xf32>
    %673 = arith.mulf %672, %4 : vector<1x9xf32>
    %674 = arith.addf %670, %673 : vector<1x9xf32>
    %675 = vector.extract_strided_slice %659 {offsets = [0, 2], sizes = [1, 1], strides = [1, 1]} : vector<1x3xf32> to vector<1x1xf32>
    %676 = vector.broadcast %675 : vector<1x1xf32> to vector<1x9xf32>
    %677 = arith.mulf %676, %5 : vector<1x9xf32>
    %678 = arith.addf %674, %677 : vector<1x9xf32>
    %679 = arith.addf %678, %7 : vector<1x9xf32>
    %680 = vector.extract_strided_slice %667 {offsets = [0, 0], sizes = [1, 6], strides = [1, 1]} : vector<1x9xf32> to vector<1x6xf32>
    %681 = vector.extract_strided_slice %679 {offsets = [0, 0], sizes = [1, 6], strides = [1, 1]} : vector<1x9xf32> to vector<1x6xf32>
    %682 = arith.addf %680, %681 : vector<1x6xf32>
    %683 = arith.negf %682 : vector<1x6xf32>
    %684 = math.exp %683 : vector<1x6xf32>
    %cst_57 = arith.constant 1.000000e+00 : f32
    %685 = vector.broadcast %cst_57 : f32 to vector<1x6xf32>
    %686 = arith.addf %685, %684 : vector<1x6xf32>
    %687 = arith.divf %685, %686 : vector<1x6xf32>
    %688 = vector.extract_strided_slice %667 {offsets = [0, 6], sizes = [1, 3], strides = [1, 1]} : vector<1x9xf32> to vector<1x3xf32>
    %689 = vector.extract_strided_slice %687 {offsets = [0, 0], sizes = [1, 3], strides = [1, 1]} : vector<1x6xf32> to vector<1x3xf32>
    %690 = vector.extract_strided_slice %679 {offsets = [0, 6], sizes = [1, 3], strides = [1, 1]} : vector<1x9xf32> to vector<1x3xf32>
    %691 = arith.mulf %689, %690 : vector<1x3xf32>
    %692 = arith.addf %688, %691 : vector<1x3xf32>
    %693 = math.tanh %692 : vector<1x3xf32>
    %694 = vector.extract_strided_slice %687 {offsets = [0, 3], sizes = [1, 3], strides = [1, 1]} : vector<1x6xf32> to vector<1x3xf32>
    %cst_58 = arith.constant 1.000000e+00 : f32
    %695 = vector.broadcast %cst_58 : f32 to vector<1x3xf32>
    %696 = arith.subf %695, %694 : vector<1x3xf32>
    %697 = arith.mulf %696, %693 : vector<1x3xf32>
    %698 = vector.extract_strided_slice %687 {offsets = [0, 3], sizes = [1, 3], strides = [1, 1]} : vector<1x6xf32> to vector<1x3xf32>
    %699 = arith.mulf %698, %659 : vector<1x3xf32>
    %700 = arith.addf %697, %699 : vector<1x3xf32>
    %c7_i32_59 = arith.constant 7 : i32
    %701 = vector.broadcast %c7_i32_59 : i32 to vector<8x1xi32>
    %702 = arith.cmpi eq, %44, %701 : vector<8x1xi32>
    %703 = vector.shape_cast %702 : vector<8x1xi1> to vector<8x1xi1>
    %704 = vector.broadcast %703 : vector<8x1xi1> to vector<8x3xi1>
    %705 = vector.shape_cast %700 : vector<1x3xf32> to vector<1x3xf32>
    %706 = vector.broadcast %705 : vector<1x3xf32> to vector<8x3xf32>
    %707 = arith.select %704, %706, %666 : vector<8x3xi1>, vector<8x3xf32>
    %c8 = arith.constant 8 : index
    %c0_60 = arith.constant 0 : index
    %708 = vector.load %arg4[%c8, %c0_60] : memref<48x384xf32, #tpu.memory_space<vmem>>, vector<8x384xf32>
    %cst_61 = arith.constant dense<0.000000e+00> : vector<3x384xf32>
    %709 = tpu.matmul %707, %708, %cst_61 {dimension_numbers = #tpu.dot_dimension_numbers<[0], [0], [1], [1], [0, 1, 1, 1], [], []>} : vector<8x3xf32>, vector<8x384xf32>, vector<3x384xf32> -> vector<3x384xf32>
    %710 = arith.addf %377, %709 : vector<3x384xf32>
    %711 = vector.extract_strided_slice %12 {offsets = [16, 0], sizes = [8, 9], strides = [1, 1]} : vector<48x9xf32> to vector<8x9xf32>
    %cst_62 = arith.constant 0.000000e+00 : f32
    %712 = vector.broadcast %cst_62 : f32 to vector<8x3xf32>
    %713 = vector.extract_strided_slice %711 {offsets = [0, 0], sizes = [1, 9], strides = [1, 1]} : vector<8x9xf32> to vector<1x9xf32>
    %714 = vector.extract_strided_slice %700 {offsets = [0, 0], sizes = [1, 1], strides = [1, 1]} : vector<1x3xf32> to vector<1x1xf32>
    %715 = vector.broadcast %714 : vector<1x1xf32> to vector<1x9xf32>
    %716 = arith.mulf %715, %3 : vector<1x9xf32>
    %717 = vector.extract_strided_slice %700 {offsets = [0, 1], sizes = [1, 1], strides = [1, 1]} : vector<1x3xf32> to vector<1x1xf32>
    %718 = vector.broadcast %717 : vector<1x1xf32> to vector<1x9xf32>
    %719 = arith.mulf %718, %4 : vector<1x9xf32>
    %720 = arith.addf %716, %719 : vector<1x9xf32>
    %721 = vector.extract_strided_slice %700 {offsets = [0, 2], sizes = [1, 1], strides = [1, 1]} : vector<1x3xf32> to vector<1x1xf32>
    %722 = vector.broadcast %721 : vector<1x1xf32> to vector<1x9xf32>
    %723 = arith.mulf %722, %5 : vector<1x9xf32>
    %724 = arith.addf %720, %723 : vector<1x9xf32>
    %725 = arith.addf %724, %7 : vector<1x9xf32>
    %726 = vector.extract_strided_slice %713 {offsets = [0, 0], sizes = [1, 6], strides = [1, 1]} : vector<1x9xf32> to vector<1x6xf32>
    %727 = vector.extract_strided_slice %725 {offsets = [0, 0], sizes = [1, 6], strides = [1, 1]} : vector<1x9xf32> to vector<1x6xf32>
    %728 = arith.addf %726, %727 : vector<1x6xf32>
    %729 = arith.negf %728 : vector<1x6xf32>
    %730 = math.exp %729 : vector<1x6xf32>
    %cst_63 = arith.constant 1.000000e+00 : f32
    %731 = vector.broadcast %cst_63 : f32 to vector<1x6xf32>
    %732 = arith.addf %731, %730 : vector<1x6xf32>
    %733 = arith.divf %731, %732 : vector<1x6xf32>
    %734 = vector.extract_strided_slice %713 {offsets = [0, 6], sizes = [1, 3], strides = [1, 1]} : vector<1x9xf32> to vector<1x3xf32>
    %735 = vector.extract_strided_slice %733 {offsets = [0, 0], sizes = [1, 3], strides = [1, 1]} : vector<1x6xf32> to vector<1x3xf32>
    %736 = vector.extract_strided_slice %725 {offsets = [0, 6], sizes = [1, 3], strides = [1, 1]} : vector<1x9xf32> to vector<1x3xf32>
    %737 = arith.mulf %735, %736 : vector<1x3xf32>
    %738 = arith.addf %734, %737 : vector<1x3xf32>
    %739 = math.tanh %738 : vector<1x3xf32>
    %740 = vector.extract_strided_slice %733 {offsets = [0, 3], sizes = [1, 3], strides = [1, 1]} : vector<1x6xf32> to vector<1x3xf32>
    %cst_64 = arith.constant 1.000000e+00 : f32
    %741 = vector.broadcast %cst_64 : f32 to vector<1x3xf32>
    %742 = arith.subf %741, %740 : vector<1x3xf32>
    %743 = arith.mulf %742, %739 : vector<1x3xf32>
    %744 = vector.extract_strided_slice %733 {offsets = [0, 3], sizes = [1, 3], strides = [1, 1]} : vector<1x6xf32> to vector<1x3xf32>
    %745 = arith.mulf %744, %700 : vector<1x3xf32>
    %746 = arith.addf %743, %745 : vector<1x3xf32>
    %c0_i32_65 = arith.constant 0 : i32
    %747 = vector.broadcast %c0_i32_65 : i32 to vector<8x1xi32>
    %748 = arith.cmpi eq, %44, %747 : vector<8x1xi32>
    %749 = vector.shape_cast %748 : vector<8x1xi1> to vector<8x1xi1>
    %750 = vector.broadcast %749 : vector<8x1xi1> to vector<8x3xi1>
    %751 = vector.shape_cast %746 : vector<1x3xf32> to vector<1x3xf32>
    %752 = vector.broadcast %751 : vector<1x3xf32> to vector<8x3xf32>
    %753 = arith.select %750, %752, %712 : vector<8x3xi1>, vector<8x3xf32>
    %754 = vector.extract_strided_slice %711 {offsets = [1, 0], sizes = [1, 9], strides = [1, 1]} : vector<8x9xf32> to vector<1x9xf32>
    %755 = vector.extract_strided_slice %746 {offsets = [0, 0], sizes = [1, 1], strides = [1, 1]} : vector<1x3xf32> to vector<1x1xf32>
    %756 = vector.broadcast %755 : vector<1x1xf32> to vector<1x9xf32>
    %757 = arith.mulf %756, %3 : vector<1x9xf32>
    %758 = vector.extract_strided_slice %746 {offsets = [0, 1], sizes = [1, 1], strides = [1, 1]} : vector<1x3xf32> to vector<1x1xf32>
    %759 = vector.broadcast %758 : vector<1x1xf32> to vector<1x9xf32>
    %760 = arith.mulf %759, %4 : vector<1x9xf32>
    %761 = arith.addf %757, %760 : vector<1x9xf32>
    %762 = vector.extract_strided_slice %746 {offsets = [0, 2], sizes = [1, 1], strides = [1, 1]} : vector<1x3xf32> to vector<1x1xf32>
    %763 = vector.broadcast %762 : vector<1x1xf32> to vector<1x9xf32>
    %764 = arith.mulf %763, %5 : vector<1x9xf32>
    %765 = arith.addf %761, %764 : vector<1x9xf32>
    %766 = arith.addf %765, %7 : vector<1x9xf32>
    %767 = vector.extract_strided_slice %754 {offsets = [0, 0], sizes = [1, 6], strides = [1, 1]} : vector<1x9xf32> to vector<1x6xf32>
    %768 = vector.extract_strided_slice %766 {offsets = [0, 0], sizes = [1, 6], strides = [1, 1]} : vector<1x9xf32> to vector<1x6xf32>
    %769 = arith.addf %767, %768 : vector<1x6xf32>
    %770 = arith.negf %769 : vector<1x6xf32>
    %771 = math.exp %770 : vector<1x6xf32>
    %cst_66 = arith.constant 1.000000e+00 : f32
    %772 = vector.broadcast %cst_66 : f32 to vector<1x6xf32>
    %773 = arith.addf %772, %771 : vector<1x6xf32>
    %774 = arith.divf %772, %773 : vector<1x6xf32>
    %775 = vector.extract_strided_slice %754 {offsets = [0, 6], sizes = [1, 3], strides = [1, 1]} : vector<1x9xf32> to vector<1x3xf32>
    %776 = vector.extract_strided_slice %774 {offsets = [0, 0], sizes = [1, 3], strides = [1, 1]} : vector<1x6xf32> to vector<1x3xf32>
    %777 = vector.extract_strided_slice %766 {offsets = [0, 6], sizes = [1, 3], strides = [1, 1]} : vector<1x9xf32> to vector<1x3xf32>
    %778 = arith.mulf %776, %777 : vector<1x3xf32>
    %779 = arith.addf %775, %778 : vector<1x3xf32>
    %780 = math.tanh %779 : vector<1x3xf32>
    %781 = vector.extract_strided_slice %774 {offsets = [0, 3], sizes = [1, 3], strides = [1, 1]} : vector<1x6xf32> to vector<1x3xf32>
    %cst_67 = arith.constant 1.000000e+00 : f32
    %782 = vector.broadcast %cst_67 : f32 to vector<1x3xf32>
    %783 = arith.subf %782, %781 : vector<1x3xf32>
    %784 = arith.mulf %783, %780 : vector<1x3xf32>
    %785 = vector.extract_strided_slice %774 {offsets = [0, 3], sizes = [1, 3], strides = [1, 1]} : vector<1x6xf32> to vector<1x3xf32>
    %786 = arith.mulf %785, %746 : vector<1x3xf32>
    %787 = arith.addf %784, %786 : vector<1x3xf32>
    %c1_i32_68 = arith.constant 1 : i32
    %788 = vector.broadcast %c1_i32_68 : i32 to vector<8x1xi32>
    %789 = arith.cmpi eq, %44, %788 : vector<8x1xi32>
    %790 = vector.shape_cast %789 : vector<8x1xi1> to vector<8x1xi1>
    %791 = vector.broadcast %790 : vector<8x1xi1> to vector<8x3xi1>
    %792 = vector.shape_cast %787 : vector<1x3xf32> to vector<1x3xf32>
    %793 = vector.broadcast %792 : vector<1x3xf32> to vector<8x3xf32>
    %794 = arith.select %791, %793, %753 : vector<8x3xi1>, vector<8x3xf32>
    %795 = vector.extract_strided_slice %711 {offsets = [2, 0], sizes = [1, 9], strides = [1, 1]} : vector<8x9xf32> to vector<1x9xf32>
    %796 = vector.extract_strided_slice %787 {offsets = [0, 0], sizes = [1, 1], strides = [1, 1]} : vector<1x3xf32> to vector<1x1xf32>
    %797 = vector.broadcast %796 : vector<1x1xf32> to vector<1x9xf32>
    %798 = arith.mulf %797, %3 : vector<1x9xf32>
    %799 = vector.extract_strided_slice %787 {offsets = [0, 1], sizes = [1, 1], strides = [1, 1]} : vector<1x3xf32> to vector<1x1xf32>
    %800 = vector.broadcast %799 : vector<1x1xf32> to vector<1x9xf32>
    %801 = arith.mulf %800, %4 : vector<1x9xf32>
    %802 = arith.addf %798, %801 : vector<1x9xf32>
    %803 = vector.extract_strided_slice %787 {offsets = [0, 2], sizes = [1, 1], strides = [1, 1]} : vector<1x3xf32> to vector<1x1xf32>
    %804 = vector.broadcast %803 : vector<1x1xf32> to vector<1x9xf32>
    %805 = arith.mulf %804, %5 : vector<1x9xf32>
    %806 = arith.addf %802, %805 : vector<1x9xf32>
    %807 = arith.addf %806, %7 : vector<1x9xf32>
    %808 = vector.extract_strided_slice %795 {offsets = [0, 0], sizes = [1, 6], strides = [1, 1]} : vector<1x9xf32> to vector<1x6xf32>
    %809 = vector.extract_strided_slice %807 {offsets = [0, 0], sizes = [1, 6], strides = [1, 1]} : vector<1x9xf32> to vector<1x6xf32>
    %810 = arith.addf %808, %809 : vector<1x6xf32>
    %811 = arith.negf %810 : vector<1x6xf32>
    %812 = math.exp %811 : vector<1x6xf32>
    %cst_69 = arith.constant 1.000000e+00 : f32
    %813 = vector.broadcast %cst_69 : f32 to vector<1x6xf32>
    %814 = arith.addf %813, %812 : vector<1x6xf32>
    %815 = arith.divf %813, %814 : vector<1x6xf32>
    %816 = vector.extract_strided_slice %795 {offsets = [0, 6], sizes = [1, 3], strides = [1, 1]} : vector<1x9xf32> to vector<1x3xf32>
    %817 = vector.extract_strided_slice %815 {offsets = [0, 0], sizes = [1, 3], strides = [1, 1]} : vector<1x6xf32> to vector<1x3xf32>
    %818 = vector.extract_strided_slice %807 {offsets = [0, 6], sizes = [1, 3], strides = [1, 1]} : vector<1x9xf32> to vector<1x3xf32>
    %819 = arith.mulf %817, %818 : vector<1x3xf32>
    %820 = arith.addf %816, %819 : vector<1x3xf32>
    %821 = math.tanh %820 : vector<1x3xf32>
    %822 = vector.extract_strided_slice %815 {offsets = [0, 3], sizes = [1, 3], strides = [1, 1]} : vector<1x6xf32> to vector<1x3xf32>
    %cst_70 = arith.constant 1.000000e+00 : f32
    %823 = vector.broadcast %cst_70 : f32 to vector<1x3xf32>
    %824 = arith.subf %823, %822 : vector<1x3xf32>
    %825 = arith.mulf %824, %821 : vector<1x3xf32>
    %826 = vector.extract_strided_slice %815 {offsets = [0, 3], sizes = [1, 3], strides = [1, 1]} : vector<1x6xf32> to vector<1x3xf32>
    %827 = arith.mulf %826, %787 : vector<1x3xf32>
    %828 = arith.addf %825, %827 : vector<1x3xf32>
    %c2_i32_71 = arith.constant 2 : i32
    %829 = vector.broadcast %c2_i32_71 : i32 to vector<8x1xi32>
    %830 = arith.cmpi eq, %44, %829 : vector<8x1xi32>
    %831 = vector.shape_cast %830 : vector<8x1xi1> to vector<8x1xi1>
    %832 = vector.broadcast %831 : vector<8x1xi1> to vector<8x3xi1>
    %833 = vector.shape_cast %828 : vector<1x3xf32> to vector<1x3xf32>
    %834 = vector.broadcast %833 : vector<1x3xf32> to vector<8x3xf32>
    %835 = arith.select %832, %834, %794 : vector<8x3xi1>, vector<8x3xf32>
    %836 = vector.extract_strided_slice %711 {offsets = [3, 0], sizes = [1, 9], strides = [1, 1]} : vector<8x9xf32> to vector<1x9xf32>
    %837 = vector.extract_strided_slice %828 {offsets = [0, 0], sizes = [1, 1], strides = [1, 1]} : vector<1x3xf32> to vector<1x1xf32>
    %838 = vector.broadcast %837 : vector<1x1xf32> to vector<1x9xf32>
    %839 = arith.mulf %838, %3 : vector<1x9xf32>
    %840 = vector.extract_strided_slice %828 {offsets = [0, 1], sizes = [1, 1], strides = [1, 1]} : vector<1x3xf32> to vector<1x1xf32>
    %841 = vector.broadcast %840 : vector<1x1xf32> to vector<1x9xf32>
    %842 = arith.mulf %841, %4 : vector<1x9xf32>
    %843 = arith.addf %839, %842 : vector<1x9xf32>
    %844 = vector.extract_strided_slice %828 {offsets = [0, 2], sizes = [1, 1], strides = [1, 1]} : vector<1x3xf32> to vector<1x1xf32>
    %845 = vector.broadcast %844 : vector<1x1xf32> to vector<1x9xf32>
    %846 = arith.mulf %845, %5 : vector<1x9xf32>
    %847 = arith.addf %843, %846 : vector<1x9xf32>
    %848 = arith.addf %847, %7 : vector<1x9xf32>
    %849 = vector.extract_strided_slice %836 {offsets = [0, 0], sizes = [1, 6], strides = [1, 1]} : vector<1x9xf32> to vector<1x6xf32>
    %850 = vector.extract_strided_slice %848 {offsets = [0, 0], sizes = [1, 6], strides = [1, 1]} : vector<1x9xf32> to vector<1x6xf32>
    %851 = arith.addf %849, %850 : vector<1x6xf32>
    %852 = arith.negf %851 : vector<1x6xf32>
    %853 = math.exp %852 : vector<1x6xf32>
    %cst_72 = arith.constant 1.000000e+00 : f32
    %854 = vector.broadcast %cst_72 : f32 to vector<1x6xf32>
    %855 = arith.addf %854, %853 : vector<1x6xf32>
    %856 = arith.divf %854, %855 : vector<1x6xf32>
    %857 = vector.extract_strided_slice %836 {offsets = [0, 6], sizes = [1, 3], strides = [1, 1]} : vector<1x9xf32> to vector<1x3xf32>
    %858 = vector.extract_strided_slice %856 {offsets = [0, 0], sizes = [1, 3], strides = [1, 1]} : vector<1x6xf32> to vector<1x3xf32>
    %859 = vector.extract_strided_slice %848 {offsets = [0, 6], sizes = [1, 3], strides = [1, 1]} : vector<1x9xf32> to vector<1x3xf32>
    %860 = arith.mulf %858, %859 : vector<1x3xf32>
    %861 = arith.addf %857, %860 : vector<1x3xf32>
    %862 = math.tanh %861 : vector<1x3xf32>
    %863 = vector.extract_strided_slice %856 {offsets = [0, 3], sizes = [1, 3], strides = [1, 1]} : vector<1x6xf32> to vector<1x3xf32>
    %cst_73 = arith.constant 1.000000e+00 : f32
    %864 = vector.broadcast %cst_73 : f32 to vector<1x3xf32>
    %865 = arith.subf %864, %863 : vector<1x3xf32>
    %866 = arith.mulf %865, %862 : vector<1x3xf32>
    %867 = vector.extract_strided_slice %856 {offsets = [0, 3], sizes = [1, 3], strides = [1, 1]} : vector<1x6xf32> to vector<1x3xf32>
    %868 = arith.mulf %867, %828 : vector<1x3xf32>
    %869 = arith.addf %866, %868 : vector<1x3xf32>
    %c3_i32_74 = arith.constant 3 : i32
    %870 = vector.broadcast %c3_i32_74 : i32 to vector<8x1xi32>
    %871 = arith.cmpi eq, %44, %870 : vector<8x1xi32>
    %872 = vector.shape_cast %871 : vector<8x1xi1> to vector<8x1xi1>
    %873 = vector.broadcast %872 : vector<8x1xi1> to vector<8x3xi1>
    %874 = vector.shape_cast %869 : vector<1x3xf32> to vector<1x3xf32>
    %875 = vector.broadcast %874 : vector<1x3xf32> to vector<8x3xf32>
    %876 = arith.select %873, %875, %835 : vector<8x3xi1>, vector<8x3xf32>
    %877 = vector.extract_strided_slice %711 {offsets = [4, 0], sizes = [1, 9], strides = [1, 1]} : vector<8x9xf32> to vector<1x9xf32>
    %878 = vector.extract_strided_slice %869 {offsets = [0, 0], sizes = [1, 1], strides = [1, 1]} : vector<1x3xf32> to vector<1x1xf32>
    %879 = vector.broadcast %878 : vector<1x1xf32> to vector<1x9xf32>
    %880 = arith.mulf %879, %3 : vector<1x9xf32>
    %881 = vector.extract_strided_slice %869 {offsets = [0, 1], sizes = [1, 1], strides = [1, 1]} : vector<1x3xf32> to vector<1x1xf32>
    %882 = vector.broadcast %881 : vector<1x1xf32> to vector<1x9xf32>
    %883 = arith.mulf %882, %4 : vector<1x9xf32>
    %884 = arith.addf %880, %883 : vector<1x9xf32>
    %885 = vector.extract_strided_slice %869 {offsets = [0, 2], sizes = [1, 1], strides = [1, 1]} : vector<1x3xf32> to vector<1x1xf32>
    %886 = vector.broadcast %885 : vector<1x1xf32> to vector<1x9xf32>
    %887 = arith.mulf %886, %5 : vector<1x9xf32>
    %888 = arith.addf %884, %887 : vector<1x9xf32>
    %889 = arith.addf %888, %7 : vector<1x9xf32>
    %890 = vector.extract_strided_slice %877 {offsets = [0, 0], sizes = [1, 6], strides = [1, 1]} : vector<1x9xf32> to vector<1x6xf32>
    %891 = vector.extract_strided_slice %889 {offsets = [0, 0], sizes = [1, 6], strides = [1, 1]} : vector<1x9xf32> to vector<1x6xf32>
    %892 = arith.addf %890, %891 : vector<1x6xf32>
    %893 = arith.negf %892 : vector<1x6xf32>
    %894 = math.exp %893 : vector<1x6xf32>
    %cst_75 = arith.constant 1.000000e+00 : f32
    %895 = vector.broadcast %cst_75 : f32 to vector<1x6xf32>
    %896 = arith.addf %895, %894 : vector<1x6xf32>
    %897 = arith.divf %895, %896 : vector<1x6xf32>
    %898 = vector.extract_strided_slice %877 {offsets = [0, 6], sizes = [1, 3], strides = [1, 1]} : vector<1x9xf32> to vector<1x3xf32>
    %899 = vector.extract_strided_slice %897 {offsets = [0, 0], sizes = [1, 3], strides = [1, 1]} : vector<1x6xf32> to vector<1x3xf32>
    %900 = vector.extract_strided_slice %889 {offsets = [0, 6], sizes = [1, 3], strides = [1, 1]} : vector<1x9xf32> to vector<1x3xf32>
    %901 = arith.mulf %899, %900 : vector<1x3xf32>
    %902 = arith.addf %898, %901 : vector<1x3xf32>
    %903 = math.tanh %902 : vector<1x3xf32>
    %904 = vector.extract_strided_slice %897 {offsets = [0, 3], sizes = [1, 3], strides = [1, 1]} : vector<1x6xf32> to vector<1x3xf32>
    %cst_76 = arith.constant 1.000000e+00 : f32
    %905 = vector.broadcast %cst_76 : f32 to vector<1x3xf32>
    %906 = arith.subf %905, %904 : vector<1x3xf32>
    %907 = arith.mulf %906, %903 : vector<1x3xf32>
    %908 = vector.extract_strided_slice %897 {offsets = [0, 3], sizes = [1, 3], strides = [1, 1]} : vector<1x6xf32> to vector<1x3xf32>
    %909 = arith.mulf %908, %869 : vector<1x3xf32>
    %910 = arith.addf %907, %909 : vector<1x3xf32>
    %c4_i32_77 = arith.constant 4 : i32
    %911 = vector.broadcast %c4_i32_77 : i32 to vector<8x1xi32>
    %912 = arith.cmpi eq, %44, %911 : vector<8x1xi32>
    %913 = vector.shape_cast %912 : vector<8x1xi1> to vector<8x1xi1>
    %914 = vector.broadcast %913 : vector<8x1xi1> to vector<8x3xi1>
    %915 = vector.shape_cast %910 : vector<1x3xf32> to vector<1x3xf32>
    %916 = vector.broadcast %915 : vector<1x3xf32> to vector<8x3xf32>
    %917 = arith.select %914, %916, %876 : vector<8x3xi1>, vector<8x3xf32>
    %918 = vector.extract_strided_slice %711 {offsets = [5, 0], sizes = [1, 9], strides = [1, 1]} : vector<8x9xf32> to vector<1x9xf32>
    %919 = vector.extract_strided_slice %910 {offsets = [0, 0], sizes = [1, 1], strides = [1, 1]} : vector<1x3xf32> to vector<1x1xf32>
    %920 = vector.broadcast %919 : vector<1x1xf32> to vector<1x9xf32>
    %921 = arith.mulf %920, %3 : vector<1x9xf32>
    %922 = vector.extract_strided_slice %910 {offsets = [0, 1], sizes = [1, 1], strides = [1, 1]} : vector<1x3xf32> to vector<1x1xf32>
    %923 = vector.broadcast %922 : vector<1x1xf32> to vector<1x9xf32>
    %924 = arith.mulf %923, %4 : vector<1x9xf32>
    %925 = arith.addf %921, %924 : vector<1x9xf32>
    %926 = vector.extract_strided_slice %910 {offsets = [0, 2], sizes = [1, 1], strides = [1, 1]} : vector<1x3xf32> to vector<1x1xf32>
    %927 = vector.broadcast %926 : vector<1x1xf32> to vector<1x9xf32>
    %928 = arith.mulf %927, %5 : vector<1x9xf32>
    %929 = arith.addf %925, %928 : vector<1x9xf32>
    %930 = arith.addf %929, %7 : vector<1x9xf32>
    %931 = vector.extract_strided_slice %918 {offsets = [0, 0], sizes = [1, 6], strides = [1, 1]} : vector<1x9xf32> to vector<1x6xf32>
    %932 = vector.extract_strided_slice %930 {offsets = [0, 0], sizes = [1, 6], strides = [1, 1]} : vector<1x9xf32> to vector<1x6xf32>
    %933 = arith.addf %931, %932 : vector<1x6xf32>
    %934 = arith.negf %933 : vector<1x6xf32>
    %935 = math.exp %934 : vector<1x6xf32>
    %cst_78 = arith.constant 1.000000e+00 : f32
    %936 = vector.broadcast %cst_78 : f32 to vector<1x6xf32>
    %937 = arith.addf %936, %935 : vector<1x6xf32>
    %938 = arith.divf %936, %937 : vector<1x6xf32>
    %939 = vector.extract_strided_slice %918 {offsets = [0, 6], sizes = [1, 3], strides = [1, 1]} : vector<1x9xf32> to vector<1x3xf32>
    %940 = vector.extract_strided_slice %938 {offsets = [0, 0], sizes = [1, 3], strides = [1, 1]} : vector<1x6xf32> to vector<1x3xf32>
    %941 = vector.extract_strided_slice %930 {offsets = [0, 6], sizes = [1, 3], strides = [1, 1]} : vector<1x9xf32> to vector<1x3xf32>
    %942 = arith.mulf %940, %941 : vector<1x3xf32>
    %943 = arith.addf %939, %942 : vector<1x3xf32>
    %944 = math.tanh %943 : vector<1x3xf32>
    %945 = vector.extract_strided_slice %938 {offsets = [0, 3], sizes = [1, 3], strides = [1, 1]} : vector<1x6xf32> to vector<1x3xf32>
    %cst_79 = arith.constant 1.000000e+00 : f32
    %946 = vector.broadcast %cst_79 : f32 to vector<1x3xf32>
    %947 = arith.subf %946, %945 : vector<1x3xf32>
    %948 = arith.mulf %947, %944 : vector<1x3xf32>
    %949 = vector.extract_strided_slice %938 {offsets = [0, 3], sizes = [1, 3], strides = [1, 1]} : vector<1x6xf32> to vector<1x3xf32>
    %950 = arith.mulf %949, %910 : vector<1x3xf32>
    %951 = arith.addf %948, %950 : vector<1x3xf32>
    %c5_i32_80 = arith.constant 5 : i32
    %952 = vector.broadcast %c5_i32_80 : i32 to vector<8x1xi32>
    %953 = arith.cmpi eq, %44, %952 : vector<8x1xi32>
    %954 = vector.shape_cast %953 : vector<8x1xi1> to vector<8x1xi1>
    %955 = vector.broadcast %954 : vector<8x1xi1> to vector<8x3xi1>
    %956 = vector.shape_cast %951 : vector<1x3xf32> to vector<1x3xf32>
    %957 = vector.broadcast %956 : vector<1x3xf32> to vector<8x3xf32>
    %958 = arith.select %955, %957, %917 : vector<8x3xi1>, vector<8x3xf32>
    %959 = vector.extract_strided_slice %711 {offsets = [6, 0], sizes = [1, 9], strides = [1, 1]} : vector<8x9xf32> to vector<1x9xf32>
    %960 = vector.extract_strided_slice %951 {offsets = [0, 0], sizes = [1, 1], strides = [1, 1]} : vector<1x3xf32> to vector<1x1xf32>
    %961 = vector.broadcast %960 : vector<1x1xf32> to vector<1x9xf32>
    %962 = arith.mulf %961, %3 : vector<1x9xf32>
    %963 = vector.extract_strided_slice %951 {offsets = [0, 1], sizes = [1, 1], strides = [1, 1]} : vector<1x3xf32> to vector<1x1xf32>
    %964 = vector.broadcast %963 : vector<1x1xf32> to vector<1x9xf32>
    %965 = arith.mulf %964, %4 : vector<1x9xf32>
    %966 = arith.addf %962, %965 : vector<1x9xf32>
    %967 = vector.extract_strided_slice %951 {offsets = [0, 2], sizes = [1, 1], strides = [1, 1]} : vector<1x3xf32> to vector<1x1xf32>
    %968 = vector.broadcast %967 : vector<1x1xf32> to vector<1x9xf32>
    %969 = arith.mulf %968, %5 : vector<1x9xf32>
    %970 = arith.addf %966, %969 : vector<1x9xf32>
    %971 = arith.addf %970, %7 : vector<1x9xf32>
    %972 = vector.extract_strided_slice %959 {offsets = [0, 0], sizes = [1, 6], strides = [1, 1]} : vector<1x9xf32> to vector<1x6xf32>
    %973 = vector.extract_strided_slice %971 {offsets = [0, 0], sizes = [1, 6], strides = [1, 1]} : vector<1x9xf32> to vector<1x6xf32>
    %974 = arith.addf %972, %973 : vector<1x6xf32>
    %975 = arith.negf %974 : vector<1x6xf32>
    %976 = math.exp %975 : vector<1x6xf32>
    %cst_81 = arith.constant 1.000000e+00 : f32
    %977 = vector.broadcast %cst_81 : f32 to vector<1x6xf32>
    %978 = arith.addf %977, %976 : vector<1x6xf32>
    %979 = arith.divf %977, %978 : vector<1x6xf32>
    %980 = vector.extract_strided_slice %959 {offsets = [0, 6], sizes = [1, 3], strides = [1, 1]} : vector<1x9xf32> to vector<1x3xf32>
    %981 = vector.extract_strided_slice %979 {offsets = [0, 0], sizes = [1, 3], strides = [1, 1]} : vector<1x6xf32> to vector<1x3xf32>
    %982 = vector.extract_strided_slice %971 {offsets = [0, 6], sizes = [1, 3], strides = [1, 1]} : vector<1x9xf32> to vector<1x3xf32>
    %983 = arith.mulf %981, %982 : vector<1x3xf32>
    %984 = arith.addf %980, %983 : vector<1x3xf32>
    %985 = math.tanh %984 : vector<1x3xf32>
    %986 = vector.extract_strided_slice %979 {offsets = [0, 3], sizes = [1, 3], strides = [1, 1]} : vector<1x6xf32> to vector<1x3xf32>
    %cst_82 = arith.constant 1.000000e+00 : f32
    %987 = vector.broadcast %cst_82 : f32 to vector<1x3xf32>
    %988 = arith.subf %987, %986 : vector<1x3xf32>
    %989 = arith.mulf %988, %985 : vector<1x3xf32>
    %990 = vector.extract_strided_slice %979 {offsets = [0, 3], sizes = [1, 3], strides = [1, 1]} : vector<1x6xf32> to vector<1x3xf32>
    %991 = arith.mulf %990, %951 : vector<1x3xf32>
    %992 = arith.addf %989, %991 : vector<1x3xf32>
    %c6_i32_83 = arith.constant 6 : i32
    %993 = vector.broadcast %c6_i32_83 : i32 to vector<8x1xi32>
    %994 = arith.cmpi eq, %44, %993 : vector<8x1xi32>
    %995 = vector.shape_cast %994 : vector<8x1xi1> to vector<8x1xi1>
    %996 = vector.broadcast %995 : vector<8x1xi1> to vector<8x3xi1>
    %997 = vector.shape_cast %992 : vector<1x3xf32> to vector<1x3xf32>
    %998 = vector.broadcast %997 : vector<1x3xf32> to vector<8x3xf32>
    %999 = arith.select %996, %998, %958 : vector<8x3xi1>, vector<8x3xf32>
    %1000 = vector.extract_strided_slice %711 {offsets = [7, 0], sizes = [1, 9], strides = [1, 1]} : vector<8x9xf32> to vector<1x9xf32>
    %1001 = vector.extract_strided_slice %992 {offsets = [0, 0], sizes = [1, 1], strides = [1, 1]} : vector<1x3xf32> to vector<1x1xf32>
    %1002 = vector.broadcast %1001 : vector<1x1xf32> to vector<1x9xf32>
    %1003 = arith.mulf %1002, %3 : vector<1x9xf32>
    %1004 = vector.extract_strided_slice %992 {offsets = [0, 1], sizes = [1, 1], strides = [1, 1]} : vector<1x3xf32> to vector<1x1xf32>
    %1005 = vector.broadcast %1004 : vector<1x1xf32> to vector<1x9xf32>
    %1006 = arith.mulf %1005, %4 : vector<1x9xf32>
    %1007 = arith.addf %1003, %1006 : vector<1x9xf32>
    %1008 = vector.extract_strided_slice %992 {offsets = [0, 2], sizes = [1, 1], strides = [1, 1]} : vector<1x3xf32> to vector<1x1xf32>
    %1009 = vector.broadcast %1008 : vector<1x1xf32> to vector<1x9xf32>
    %1010 = arith.mulf %1009, %5 : vector<1x9xf32>
    %1011 = arith.addf %1007, %1010 : vector<1x9xf32>
    %1012 = arith.addf %1011, %7 : vector<1x9xf32>
    %1013 = vector.extract_strided_slice %1000 {offsets = [0, 0], sizes = [1, 6], strides = [1, 1]} : vector<1x9xf32> to vector<1x6xf32>
    %1014 = vector.extract_strided_slice %1012 {offsets = [0, 0], sizes = [1, 6], strides = [1, 1]} : vector<1x9xf32> to vector<1x6xf32>
    %1015 = arith.addf %1013, %1014 : vector<1x6xf32>
    %1016 = arith.negf %1015 : vector<1x6xf32>
    %1017 = math.exp %1016 : vector<1x6xf32>
    %cst_84 = arith.constant 1.000000e+00 : f32
    %1018 = vector.broadcast %cst_84 : f32 to vector<1x6xf32>
    %1019 = arith.addf %1018, %1017 : vector<1x6xf32>
    %1020 = arith.divf %1018, %1019 : vector<1x6xf32>
    %1021 = vector.extract_strided_slice %1000 {offsets = [0, 6], sizes = [1, 3], strides = [1, 1]} : vector<1x9xf32> to vector<1x3xf32>
    %1022 = vector.extract_strided_slice %1020 {offsets = [0, 0], sizes = [1, 3], strides = [1, 1]} : vector<1x6xf32> to vector<1x3xf32>
    %1023 = vector.extract_strided_slice %1012 {offsets = [0, 6], sizes = [1, 3], strides = [1, 1]} : vector<1x9xf32> to vector<1x3xf32>
    %1024 = arith.mulf %1022, %1023 : vector<1x3xf32>
    %1025 = arith.addf %1021, %1024 : vector<1x3xf32>
    %1026 = math.tanh %1025 : vector<1x3xf32>
    %1027 = vector.extract_strided_slice %1020 {offsets = [0, 3], sizes = [1, 3], strides = [1, 1]} : vector<1x6xf32> to vector<1x3xf32>
    %cst_85 = arith.constant 1.000000e+00 : f32
    %1028 = vector.broadcast %cst_85 : f32 to vector<1x3xf32>
    %1029 = arith.subf %1028, %1027 : vector<1x3xf32>
    %1030 = arith.mulf %1029, %1026 : vector<1x3xf32>
    %1031 = vector.extract_strided_slice %1020 {offsets = [0, 3], sizes = [1, 3], strides = [1, 1]} : vector<1x6xf32> to vector<1x3xf32>
    %1032 = arith.mulf %1031, %992 : vector<1x3xf32>
    %1033 = arith.addf %1030, %1032 : vector<1x3xf32>
    %c7_i32_86 = arith.constant 7 : i32
    %1034 = vector.broadcast %c7_i32_86 : i32 to vector<8x1xi32>
    %1035 = arith.cmpi eq, %44, %1034 : vector<8x1xi32>
    %1036 = vector.shape_cast %1035 : vector<8x1xi1> to vector<8x1xi1>
    %1037 = vector.broadcast %1036 : vector<8x1xi1> to vector<8x3xi1>
    %1038 = vector.shape_cast %1033 : vector<1x3xf32> to vector<1x3xf32>
    %1039 = vector.broadcast %1038 : vector<1x3xf32> to vector<8x3xf32>
    %1040 = arith.select %1037, %1039, %999 : vector<8x3xi1>, vector<8x3xf32>
    %c16 = arith.constant 16 : index
    %c0_87 = arith.constant 0 : index
    %1041 = vector.load %arg4[%c16, %c0_87] : memref<48x384xf32, #tpu.memory_space<vmem>>, vector<8x384xf32>
    %cst_88 = arith.constant dense<0.000000e+00> : vector<3x384xf32>
    %1042 = tpu.matmul %1040, %1041, %cst_88 {dimension_numbers = #tpu.dot_dimension_numbers<[0], [0], [1], [1], [0, 1, 1, 1], [], []>} : vector<8x3xf32>, vector<8x384xf32>, vector<3x384xf32> -> vector<3x384xf32>
    %1043 = arith.addf %710, %1042 : vector<3x384xf32>
    %1044 = vector.extract_strided_slice %12 {offsets = [24, 0], sizes = [8, 9], strides = [1, 1]} : vector<48x9xf32> to vector<8x9xf32>
    %cst_89 = arith.constant 0.000000e+00 : f32
    %1045 = vector.broadcast %cst_89 : f32 to vector<8x3xf32>
    %1046 = vector.extract_strided_slice %1044 {offsets = [0, 0], sizes = [1, 9], strides = [1, 1]} : vector<8x9xf32> to vector<1x9xf32>
    %1047 = vector.extract_strided_slice %1033 {offsets = [0, 0], sizes = [1, 1], strides = [1, 1]} : vector<1x3xf32> to vector<1x1xf32>
    %1048 = vector.broadcast %1047 : vector<1x1xf32> to vector<1x9xf32>
    %1049 = arith.mulf %1048, %3 : vector<1x9xf32>
    %1050 = vector.extract_strided_slice %1033 {offsets = [0, 1], sizes = [1, 1], strides = [1, 1]} : vector<1x3xf32> to vector<1x1xf32>
    %1051 = vector.broadcast %1050 : vector<1x1xf32> to vector<1x9xf32>
    %1052 = arith.mulf %1051, %4 : vector<1x9xf32>
    %1053 = arith.addf %1049, %1052 : vector<1x9xf32>
    %1054 = vector.extract_strided_slice %1033 {offsets = [0, 2], sizes = [1, 1], strides = [1, 1]} : vector<1x3xf32> to vector<1x1xf32>
    %1055 = vector.broadcast %1054 : vector<1x1xf32> to vector<1x9xf32>
    %1056 = arith.mulf %1055, %5 : vector<1x9xf32>
    %1057 = arith.addf %1053, %1056 : vector<1x9xf32>
    %1058 = arith.addf %1057, %7 : vector<1x9xf32>
    %1059 = vector.extract_strided_slice %1046 {offsets = [0, 0], sizes = [1, 6], strides = [1, 1]} : vector<1x9xf32> to vector<1x6xf32>
    %1060 = vector.extract_strided_slice %1058 {offsets = [0, 0], sizes = [1, 6], strides = [1, 1]} : vector<1x9xf32> to vector<1x6xf32>
    %1061 = arith.addf %1059, %1060 : vector<1x6xf32>
    %1062 = arith.negf %1061 : vector<1x6xf32>
    %1063 = math.exp %1062 : vector<1x6xf32>
    %cst_90 = arith.constant 1.000000e+00 : f32
    %1064 = vector.broadcast %cst_90 : f32 to vector<1x6xf32>
    %1065 = arith.addf %1064, %1063 : vector<1x6xf32>
    %1066 = arith.divf %1064, %1065 : vector<1x6xf32>
    %1067 = vector.extract_strided_slice %1046 {offsets = [0, 6], sizes = [1, 3], strides = [1, 1]} : vector<1x9xf32> to vector<1x3xf32>
    %1068 = vector.extract_strided_slice %1066 {offsets = [0, 0], sizes = [1, 3], strides = [1, 1]} : vector<1x6xf32> to vector<1x3xf32>
    %1069 = vector.extract_strided_slice %1058 {offsets = [0, 6], sizes = [1, 3], strides = [1, 1]} : vector<1x9xf32> to vector<1x3xf32>
    %1070 = arith.mulf %1068, %1069 : vector<1x3xf32>
    %1071 = arith.addf %1067, %1070 : vector<1x3xf32>
    %1072 = math.tanh %1071 : vector<1x3xf32>
    %1073 = vector.extract_strided_slice %1066 {offsets = [0, 3], sizes = [1, 3], strides = [1, 1]} : vector<1x6xf32> to vector<1x3xf32>
    %cst_91 = arith.constant 1.000000e+00 : f32
    %1074 = vector.broadcast %cst_91 : f32 to vector<1x3xf32>
    %1075 = arith.subf %1074, %1073 : vector<1x3xf32>
    %1076 = arith.mulf %1075, %1072 : vector<1x3xf32>
    %1077 = vector.extract_strided_slice %1066 {offsets = [0, 3], sizes = [1, 3], strides = [1, 1]} : vector<1x6xf32> to vector<1x3xf32>
    %1078 = arith.mulf %1077, %1033 : vector<1x3xf32>
    %1079 = arith.addf %1076, %1078 : vector<1x3xf32>
    %c0_i32_92 = arith.constant 0 : i32
    %1080 = vector.broadcast %c0_i32_92 : i32 to vector<8x1xi32>
    %1081 = arith.cmpi eq, %44, %1080 : vector<8x1xi32>
    %1082 = vector.shape_cast %1081 : vector<8x1xi1> to vector<8x1xi1>
    %1083 = vector.broadcast %1082 : vector<8x1xi1> to vector<8x3xi1>
    %1084 = vector.shape_cast %1079 : vector<1x3xf32> to vector<1x3xf32>
    %1085 = vector.broadcast %1084 : vector<1x3xf32> to vector<8x3xf32>
    %1086 = arith.select %1083, %1085, %1045 : vector<8x3xi1>, vector<8x3xf32>
    %1087 = vector.extract_strided_slice %1044 {offsets = [1, 0], sizes = [1, 9], strides = [1, 1]} : vector<8x9xf32> to vector<1x9xf32>
    %1088 = vector.extract_strided_slice %1079 {offsets = [0, 0], sizes = [1, 1], strides = [1, 1]} : vector<1x3xf32> to vector<1x1xf32>
    %1089 = vector.broadcast %1088 : vector<1x1xf32> to vector<1x9xf32>
    %1090 = arith.mulf %1089, %3 : vector<1x9xf32>
    %1091 = vector.extract_strided_slice %1079 {offsets = [0, 1], sizes = [1, 1], strides = [1, 1]} : vector<1x3xf32> to vector<1x1xf32>
    %1092 = vector.broadcast %1091 : vector<1x1xf32> to vector<1x9xf32>
    %1093 = arith.mulf %1092, %4 : vector<1x9xf32>
    %1094 = arith.addf %1090, %1093 : vector<1x9xf32>
    %1095 = vector.extract_strided_slice %1079 {offsets = [0, 2], sizes = [1, 1], strides = [1, 1]} : vector<1x3xf32> to vector<1x1xf32>
    %1096 = vector.broadcast %1095 : vector<1x1xf32> to vector<1x9xf32>
    %1097 = arith.mulf %1096, %5 : vector<1x9xf32>
    %1098 = arith.addf %1094, %1097 : vector<1x9xf32>
    %1099 = arith.addf %1098, %7 : vector<1x9xf32>
    %1100 = vector.extract_strided_slice %1087 {offsets = [0, 0], sizes = [1, 6], strides = [1, 1]} : vector<1x9xf32> to vector<1x6xf32>
    %1101 = vector.extract_strided_slice %1099 {offsets = [0, 0], sizes = [1, 6], strides = [1, 1]} : vector<1x9xf32> to vector<1x6xf32>
    %1102 = arith.addf %1100, %1101 : vector<1x6xf32>
    %1103 = arith.negf %1102 : vector<1x6xf32>
    %1104 = math.exp %1103 : vector<1x6xf32>
    %cst_93 = arith.constant 1.000000e+00 : f32
    %1105 = vector.broadcast %cst_93 : f32 to vector<1x6xf32>
    %1106 = arith.addf %1105, %1104 : vector<1x6xf32>
    %1107 = arith.divf %1105, %1106 : vector<1x6xf32>
    %1108 = vector.extract_strided_slice %1087 {offsets = [0, 6], sizes = [1, 3], strides = [1, 1]} : vector<1x9xf32> to vector<1x3xf32>
    %1109 = vector.extract_strided_slice %1107 {offsets = [0, 0], sizes = [1, 3], strides = [1, 1]} : vector<1x6xf32> to vector<1x3xf32>
    %1110 = vector.extract_strided_slice %1099 {offsets = [0, 6], sizes = [1, 3], strides = [1, 1]} : vector<1x9xf32> to vector<1x3xf32>
    %1111 = arith.mulf %1109, %1110 : vector<1x3xf32>
    %1112 = arith.addf %1108, %1111 : vector<1x3xf32>
    %1113 = math.tanh %1112 : vector<1x3xf32>
    %1114 = vector.extract_strided_slice %1107 {offsets = [0, 3], sizes = [1, 3], strides = [1, 1]} : vector<1x6xf32> to vector<1x3xf32>
    %cst_94 = arith.constant 1.000000e+00 : f32
    %1115 = vector.broadcast %cst_94 : f32 to vector<1x3xf32>
    %1116 = arith.subf %1115, %1114 : vector<1x3xf32>
    %1117 = arith.mulf %1116, %1113 : vector<1x3xf32>
    %1118 = vector.extract_strided_slice %1107 {offsets = [0, 3], sizes = [1, 3], strides = [1, 1]} : vector<1x6xf32> to vector<1x3xf32>
    %1119 = arith.mulf %1118, %1079 : vector<1x3xf32>
    %1120 = arith.addf %1117, %1119 : vector<1x3xf32>
    %c1_i32_95 = arith.constant 1 : i32
    %1121 = vector.broadcast %c1_i32_95 : i32 to vector<8x1xi32>
    %1122 = arith.cmpi eq, %44, %1121 : vector<8x1xi32>
    %1123 = vector.shape_cast %1122 : vector<8x1xi1> to vector<8x1xi1>
    %1124 = vector.broadcast %1123 : vector<8x1xi1> to vector<8x3xi1>
    %1125 = vector.shape_cast %1120 : vector<1x3xf32> to vector<1x3xf32>
    %1126 = vector.broadcast %1125 : vector<1x3xf32> to vector<8x3xf32>
    %1127 = arith.select %1124, %1126, %1086 : vector<8x3xi1>, vector<8x3xf32>
    %1128 = vector.extract_strided_slice %1044 {offsets = [2, 0], sizes = [1, 9], strides = [1, 1]} : vector<8x9xf32> to vector<1x9xf32>
    %1129 = vector.extract_strided_slice %1120 {offsets = [0, 0], sizes = [1, 1], strides = [1, 1]} : vector<1x3xf32> to vector<1x1xf32>
    %1130 = vector.broadcast %1129 : vector<1x1xf32> to vector<1x9xf32>
    %1131 = arith.mulf %1130, %3 : vector<1x9xf32>
    %1132 = vector.extract_strided_slice %1120 {offsets = [0, 1], sizes = [1, 1], strides = [1, 1]} : vector<1x3xf32> to vector<1x1xf32>
    %1133 = vector.broadcast %1132 : vector<1x1xf32> to vector<1x9xf32>
    %1134 = arith.mulf %1133, %4 : vector<1x9xf32>
    %1135 = arith.addf %1131, %1134 : vector<1x9xf32>
    %1136 = vector.extract_strided_slice %1120 {offsets = [0, 2], sizes = [1, 1], strides = [1, 1]} : vector<1x3xf32> to vector<1x1xf32>
    %1137 = vector.broadcast %1136 : vector<1x1xf32> to vector<1x9xf32>
    %1138 = arith.mulf %1137, %5 : vector<1x9xf32>
    %1139 = arith.addf %1135, %1138 : vector<1x9xf32>
    %1140 = arith.addf %1139, %7 : vector<1x9xf32>
    %1141 = vector.extract_strided_slice %1128 {offsets = [0, 0], sizes = [1, 6], strides = [1, 1]} : vector<1x9xf32> to vector<1x6xf32>
    %1142 = vector.extract_strided_slice %1140 {offsets = [0, 0], sizes = [1, 6], strides = [1, 1]} : vector<1x9xf32> to vector<1x6xf32>
    %1143 = arith.addf %1141, %1142 : vector<1x6xf32>
    %1144 = arith.negf %1143 : vector<1x6xf32>
    %1145 = math.exp %1144 : vector<1x6xf32>
    %cst_96 = arith.constant 1.000000e+00 : f32
    %1146 = vector.broadcast %cst_96 : f32 to vector<1x6xf32>
    %1147 = arith.addf %1146, %1145 : vector<1x6xf32>
    %1148 = arith.divf %1146, %1147 : vector<1x6xf32>
    %1149 = vector.extract_strided_slice %1128 {offsets = [0, 6], sizes = [1, 3], strides = [1, 1]} : vector<1x9xf32> to vector<1x3xf32>
    %1150 = vector.extract_strided_slice %1148 {offsets = [0, 0], sizes = [1, 3], strides = [1, 1]} : vector<1x6xf32> to vector<1x3xf32>
    %1151 = vector.extract_strided_slice %1140 {offsets = [0, 6], sizes = [1, 3], strides = [1, 1]} : vector<1x9xf32> to vector<1x3xf32>
    %1152 = arith.mulf %1150, %1151 : vector<1x3xf32>
    %1153 = arith.addf %1149, %1152 : vector<1x3xf32>
    %1154 = math.tanh %1153 : vector<1x3xf32>
    %1155 = vector.extract_strided_slice %1148 {offsets = [0, 3], sizes = [1, 3], strides = [1, 1]} : vector<1x6xf32> to vector<1x3xf32>
    %cst_97 = arith.constant 1.000000e+00 : f32
    %1156 = vector.broadcast %cst_97 : f32 to vector<1x3xf32>
    %1157 = arith.subf %1156, %1155 : vector<1x3xf32>
    %1158 = arith.mulf %1157, %1154 : vector<1x3xf32>
    %1159 = vector.extract_strided_slice %1148 {offsets = [0, 3], sizes = [1, 3], strides = [1, 1]} : vector<1x6xf32> to vector<1x3xf32>
    %1160 = arith.mulf %1159, %1120 : vector<1x3xf32>
    %1161 = arith.addf %1158, %1160 : vector<1x3xf32>
    %c2_i32_98 = arith.constant 2 : i32
    %1162 = vector.broadcast %c2_i32_98 : i32 to vector<8x1xi32>
    %1163 = arith.cmpi eq, %44, %1162 : vector<8x1xi32>
    %1164 = vector.shape_cast %1163 : vector<8x1xi1> to vector<8x1xi1>
    %1165 = vector.broadcast %1164 : vector<8x1xi1> to vector<8x3xi1>
    %1166 = vector.shape_cast %1161 : vector<1x3xf32> to vector<1x3xf32>
    %1167 = vector.broadcast %1166 : vector<1x3xf32> to vector<8x3xf32>
    %1168 = arith.select %1165, %1167, %1127 : vector<8x3xi1>, vector<8x3xf32>
    %1169 = vector.extract_strided_slice %1044 {offsets = [3, 0], sizes = [1, 9], strides = [1, 1]} : vector<8x9xf32> to vector<1x9xf32>
    %1170 = vector.extract_strided_slice %1161 {offsets = [0, 0], sizes = [1, 1], strides = [1, 1]} : vector<1x3xf32> to vector<1x1xf32>
    %1171 = vector.broadcast %1170 : vector<1x1xf32> to vector<1x9xf32>
    %1172 = arith.mulf %1171, %3 : vector<1x9xf32>
    %1173 = vector.extract_strided_slice %1161 {offsets = [0, 1], sizes = [1, 1], strides = [1, 1]} : vector<1x3xf32> to vector<1x1xf32>
    %1174 = vector.broadcast %1173 : vector<1x1xf32> to vector<1x9xf32>
    %1175 = arith.mulf %1174, %4 : vector<1x9xf32>
    %1176 = arith.addf %1172, %1175 : vector<1x9xf32>
    %1177 = vector.extract_strided_slice %1161 {offsets = [0, 2], sizes = [1, 1], strides = [1, 1]} : vector<1x3xf32> to vector<1x1xf32>
    %1178 = vector.broadcast %1177 : vector<1x1xf32> to vector<1x9xf32>
    %1179 = arith.mulf %1178, %5 : vector<1x9xf32>
    %1180 = arith.addf %1176, %1179 : vector<1x9xf32>
    %1181 = arith.addf %1180, %7 : vector<1x9xf32>
    %1182 = vector.extract_strided_slice %1169 {offsets = [0, 0], sizes = [1, 6], strides = [1, 1]} : vector<1x9xf32> to vector<1x6xf32>
    %1183 = vector.extract_strided_slice %1181 {offsets = [0, 0], sizes = [1, 6], strides = [1, 1]} : vector<1x9xf32> to vector<1x6xf32>
    %1184 = arith.addf %1182, %1183 : vector<1x6xf32>
    %1185 = arith.negf %1184 : vector<1x6xf32>
    %1186 = math.exp %1185 : vector<1x6xf32>
    %cst_99 = arith.constant 1.000000e+00 : f32
    %1187 = vector.broadcast %cst_99 : f32 to vector<1x6xf32>
    %1188 = arith.addf %1187, %1186 : vector<1x6xf32>
    %1189 = arith.divf %1187, %1188 : vector<1x6xf32>
    %1190 = vector.extract_strided_slice %1169 {offsets = [0, 6], sizes = [1, 3], strides = [1, 1]} : vector<1x9xf32> to vector<1x3xf32>
    %1191 = vector.extract_strided_slice %1189 {offsets = [0, 0], sizes = [1, 3], strides = [1, 1]} : vector<1x6xf32> to vector<1x3xf32>
    %1192 = vector.extract_strided_slice %1181 {offsets = [0, 6], sizes = [1, 3], strides = [1, 1]} : vector<1x9xf32> to vector<1x3xf32>
    %1193 = arith.mulf %1191, %1192 : vector<1x3xf32>
    %1194 = arith.addf %1190, %1193 : vector<1x3xf32>
    %1195 = math.tanh %1194 : vector<1x3xf32>
    %1196 = vector.extract_strided_slice %1189 {offsets = [0, 3], sizes = [1, 3], strides = [1, 1]} : vector<1x6xf32> to vector<1x3xf32>
    %cst_100 = arith.constant 1.000000e+00 : f32
    %1197 = vector.broadcast %cst_100 : f32 to vector<1x3xf32>
    %1198 = arith.subf %1197, %1196 : vector<1x3xf32>
    %1199 = arith.mulf %1198, %1195 : vector<1x3xf32>
    %1200 = vector.extract_strided_slice %1189 {offsets = [0, 3], sizes = [1, 3], strides = [1, 1]} : vector<1x6xf32> to vector<1x3xf32>
    %1201 = arith.mulf %1200, %1161 : vector<1x3xf32>
    %1202 = arith.addf %1199, %1201 : vector<1x3xf32>
    %c3_i32_101 = arith.constant 3 : i32
    %1203 = vector.broadcast %c3_i32_101 : i32 to vector<8x1xi32>
    %1204 = arith.cmpi eq, %44, %1203 : vector<8x1xi32>
    %1205 = vector.shape_cast %1204 : vector<8x1xi1> to vector<8x1xi1>
    %1206 = vector.broadcast %1205 : vector<8x1xi1> to vector<8x3xi1>
    %1207 = vector.shape_cast %1202 : vector<1x3xf32> to vector<1x3xf32>
    %1208 = vector.broadcast %1207 : vector<1x3xf32> to vector<8x3xf32>
    %1209 = arith.select %1206, %1208, %1168 : vector<8x3xi1>, vector<8x3xf32>
    %1210 = vector.extract_strided_slice %1044 {offsets = [4, 0], sizes = [1, 9], strides = [1, 1]} : vector<8x9xf32> to vector<1x9xf32>
    %1211 = vector.extract_strided_slice %1202 {offsets = [0, 0], sizes = [1, 1], strides = [1, 1]} : vector<1x3xf32> to vector<1x1xf32>
    %1212 = vector.broadcast %1211 : vector<1x1xf32> to vector<1x9xf32>
    %1213 = arith.mulf %1212, %3 : vector<1x9xf32>
    %1214 = vector.extract_strided_slice %1202 {offsets = [0, 1], sizes = [1, 1], strides = [1, 1]} : vector<1x3xf32> to vector<1x1xf32>
    %1215 = vector.broadcast %1214 : vector<1x1xf32> to vector<1x9xf32>
    %1216 = arith.mulf %1215, %4 : vector<1x9xf32>
    %1217 = arith.addf %1213, %1216 : vector<1x9xf32>
    %1218 = vector.extract_strided_slice %1202 {offsets = [0, 2], sizes = [1, 1], strides = [1, 1]} : vector<1x3xf32> to vector<1x1xf32>
    %1219 = vector.broadcast %1218 : vector<1x1xf32> to vector<1x9xf32>
    %1220 = arith.mulf %1219, %5 : vector<1x9xf32>
    %1221 = arith.addf %1217, %1220 : vector<1x9xf32>
    %1222 = arith.addf %1221, %7 : vector<1x9xf32>
    %1223 = vector.extract_strided_slice %1210 {offsets = [0, 0], sizes = [1, 6], strides = [1, 1]} : vector<1x9xf32> to vector<1x6xf32>
    %1224 = vector.extract_strided_slice %1222 {offsets = [0, 0], sizes = [1, 6], strides = [1, 1]} : vector<1x9xf32> to vector<1x6xf32>
    %1225 = arith.addf %1223, %1224 : vector<1x6xf32>
    %1226 = arith.negf %1225 : vector<1x6xf32>
    %1227 = math.exp %1226 : vector<1x6xf32>
    %cst_102 = arith.constant 1.000000e+00 : f32
    %1228 = vector.broadcast %cst_102 : f32 to vector<1x6xf32>
    %1229 = arith.addf %1228, %1227 : vector<1x6xf32>
    %1230 = arith.divf %1228, %1229 : vector<1x6xf32>
    %1231 = vector.extract_strided_slice %1210 {offsets = [0, 6], sizes = [1, 3], strides = [1, 1]} : vector<1x9xf32> to vector<1x3xf32>
    %1232 = vector.extract_strided_slice %1230 {offsets = [0, 0], sizes = [1, 3], strides = [1, 1]} : vector<1x6xf32> to vector<1x3xf32>
    %1233 = vector.extract_strided_slice %1222 {offsets = [0, 6], sizes = [1, 3], strides = [1, 1]} : vector<1x9xf32> to vector<1x3xf32>
    %1234 = arith.mulf %1232, %1233 : vector<1x3xf32>
    %1235 = arith.addf %1231, %1234 : vector<1x3xf32>
    %1236 = math.tanh %1235 : vector<1x3xf32>
    %1237 = vector.extract_strided_slice %1230 {offsets = [0, 3], sizes = [1, 3], strides = [1, 1]} : vector<1x6xf32> to vector<1x3xf32>
    %cst_103 = arith.constant 1.000000e+00 : f32
    %1238 = vector.broadcast %cst_103 : f32 to vector<1x3xf32>
    %1239 = arith.subf %1238, %1237 : vector<1x3xf32>
    %1240 = arith.mulf %1239, %1236 : vector<1x3xf32>
    %1241 = vector.extract_strided_slice %1230 {offsets = [0, 3], sizes = [1, 3], strides = [1, 1]} : vector<1x6xf32> to vector<1x3xf32>
    %1242 = arith.mulf %1241, %1202 : vector<1x3xf32>
    %1243 = arith.addf %1240, %1242 : vector<1x3xf32>
    %c4_i32_104 = arith.constant 4 : i32
    %1244 = vector.broadcast %c4_i32_104 : i32 to vector<8x1xi32>
    %1245 = arith.cmpi eq, %44, %1244 : vector<8x1xi32>
    %1246 = vector.shape_cast %1245 : vector<8x1xi1> to vector<8x1xi1>
    %1247 = vector.broadcast %1246 : vector<8x1xi1> to vector<8x3xi1>
    %1248 = vector.shape_cast %1243 : vector<1x3xf32> to vector<1x3xf32>
    %1249 = vector.broadcast %1248 : vector<1x3xf32> to vector<8x3xf32>
    %1250 = arith.select %1247, %1249, %1209 : vector<8x3xi1>, vector<8x3xf32>
    %1251 = vector.extract_strided_slice %1044 {offsets = [5, 0], sizes = [1, 9], strides = [1, 1]} : vector<8x9xf32> to vector<1x9xf32>
    %1252 = vector.extract_strided_slice %1243 {offsets = [0, 0], sizes = [1, 1], strides = [1, 1]} : vector<1x3xf32> to vector<1x1xf32>
    %1253 = vector.broadcast %1252 : vector<1x1xf32> to vector<1x9xf32>
    %1254 = arith.mulf %1253, %3 : vector<1x9xf32>
    %1255 = vector.extract_strided_slice %1243 {offsets = [0, 1], sizes = [1, 1], strides = [1, 1]} : vector<1x3xf32> to vector<1x1xf32>
    %1256 = vector.broadcast %1255 : vector<1x1xf32> to vector<1x9xf32>
    %1257 = arith.mulf %1256, %4 : vector<1x9xf32>
    %1258 = arith.addf %1254, %1257 : vector<1x9xf32>
    %1259 = vector.extract_strided_slice %1243 {offsets = [0, 2], sizes = [1, 1], strides = [1, 1]} : vector<1x3xf32> to vector<1x1xf32>
    %1260 = vector.broadcast %1259 : vector<1x1xf32> to vector<1x9xf32>
    %1261 = arith.mulf %1260, %5 : vector<1x9xf32>
    %1262 = arith.addf %1258, %1261 : vector<1x9xf32>
    %1263 = arith.addf %1262, %7 : vector<1x9xf32>
    %1264 = vector.extract_strided_slice %1251 {offsets = [0, 0], sizes = [1, 6], strides = [1, 1]} : vector<1x9xf32> to vector<1x6xf32>
    %1265 = vector.extract_strided_slice %1263 {offsets = [0, 0], sizes = [1, 6], strides = [1, 1]} : vector<1x9xf32> to vector<1x6xf32>
    %1266 = arith.addf %1264, %1265 : vector<1x6xf32>
    %1267 = arith.negf %1266 : vector<1x6xf32>
    %1268 = math.exp %1267 : vector<1x6xf32>
    %cst_105 = arith.constant 1.000000e+00 : f32
    %1269 = vector.broadcast %cst_105 : f32 to vector<1x6xf32>
    %1270 = arith.addf %1269, %1268 : vector<1x6xf32>
    %1271 = arith.divf %1269, %1270 : vector<1x6xf32>
    %1272 = vector.extract_strided_slice %1251 {offsets = [0, 6], sizes = [1, 3], strides = [1, 1]} : vector<1x9xf32> to vector<1x3xf32>
    %1273 = vector.extract_strided_slice %1271 {offsets = [0, 0], sizes = [1, 3], strides = [1, 1]} : vector<1x6xf32> to vector<1x3xf32>
    %1274 = vector.extract_strided_slice %1263 {offsets = [0, 6], sizes = [1, 3], strides = [1, 1]} : vector<1x9xf32> to vector<1x3xf32>
    %1275 = arith.mulf %1273, %1274 : vector<1x3xf32>
    %1276 = arith.addf %1272, %1275 : vector<1x3xf32>
    %1277 = math.tanh %1276 : vector<1x3xf32>
    %1278 = vector.extract_strided_slice %1271 {offsets = [0, 3], sizes = [1, 3], strides = [1, 1]} : vector<1x6xf32> to vector<1x3xf32>
    %cst_106 = arith.constant 1.000000e+00 : f32
    %1279 = vector.broadcast %cst_106 : f32 to vector<1x3xf32>
    %1280 = arith.subf %1279, %1278 : vector<1x3xf32>
    %1281 = arith.mulf %1280, %1277 : vector<1x3xf32>
    %1282 = vector.extract_strided_slice %1271 {offsets = [0, 3], sizes = [1, 3], strides = [1, 1]} : vector<1x6xf32> to vector<1x3xf32>
    %1283 = arith.mulf %1282, %1243 : vector<1x3xf32>
    %1284 = arith.addf %1281, %1283 : vector<1x3xf32>
    %c5_i32_107 = arith.constant 5 : i32
    %1285 = vector.broadcast %c5_i32_107 : i32 to vector<8x1xi32>
    %1286 = arith.cmpi eq, %44, %1285 : vector<8x1xi32>
    %1287 = vector.shape_cast %1286 : vector<8x1xi1> to vector<8x1xi1>
    %1288 = vector.broadcast %1287 : vector<8x1xi1> to vector<8x3xi1>
    %1289 = vector.shape_cast %1284 : vector<1x3xf32> to vector<1x3xf32>
    %1290 = vector.broadcast %1289 : vector<1x3xf32> to vector<8x3xf32>
    %1291 = arith.select %1288, %1290, %1250 : vector<8x3xi1>, vector<8x3xf32>
    %1292 = vector.extract_strided_slice %1044 {offsets = [6, 0], sizes = [1, 9], strides = [1, 1]} : vector<8x9xf32> to vector<1x9xf32>
    %1293 = vector.extract_strided_slice %1284 {offsets = [0, 0], sizes = [1, 1], strides = [1, 1]} : vector<1x3xf32> to vector<1x1xf32>
    %1294 = vector.broadcast %1293 : vector<1x1xf32> to vector<1x9xf32>
    %1295 = arith.mulf %1294, %3 : vector<1x9xf32>
    %1296 = vector.extract_strided_slice %1284 {offsets = [0, 1], sizes = [1, 1], strides = [1, 1]} : vector<1x3xf32> to vector<1x1xf32>
    %1297 = vector.broadcast %1296 : vector<1x1xf32> to vector<1x9xf32>
    %1298 = arith.mulf %1297, %4 : vector<1x9xf32>
    %1299 = arith.addf %1295, %1298 : vector<1x9xf32>
    %1300 = vector.extract_strided_slice %1284 {offsets = [0, 2], sizes = [1, 1], strides = [1, 1]} : vector<1x3xf32> to vector<1x1xf32>
    %1301 = vector.broadcast %1300 : vector<1x1xf32> to vector<1x9xf32>
    %1302 = arith.mulf %1301, %5 : vector<1x9xf32>
    %1303 = arith.addf %1299, %1302 : vector<1x9xf32>
    %1304 = arith.addf %1303, %7 : vector<1x9xf32>
    %1305 = vector.extract_strided_slice %1292 {offsets = [0, 0], sizes = [1, 6], strides = [1, 1]} : vector<1x9xf32> to vector<1x6xf32>
    %1306 = vector.extract_strided_slice %1304 {offsets = [0, 0], sizes = [1, 6], strides = [1, 1]} : vector<1x9xf32> to vector<1x6xf32>
    %1307 = arith.addf %1305, %1306 : vector<1x6xf32>
    %1308 = arith.negf %1307 : vector<1x6xf32>
    %1309 = math.exp %1308 : vector<1x6xf32>
    %cst_108 = arith.constant 1.000000e+00 : f32
    %1310 = vector.broadcast %cst_108 : f32 to vector<1x6xf32>
    %1311 = arith.addf %1310, %1309 : vector<1x6xf32>
    %1312 = arith.divf %1310, %1311 : vector<1x6xf32>
    %1313 = vector.extract_strided_slice %1292 {offsets = [0, 6], sizes = [1, 3], strides = [1, 1]} : vector<1x9xf32> to vector<1x3xf32>
    %1314 = vector.extract_strided_slice %1312 {offsets = [0, 0], sizes = [1, 3], strides = [1, 1]} : vector<1x6xf32> to vector<1x3xf32>
    %1315 = vector.extract_strided_slice %1304 {offsets = [0, 6], sizes = [1, 3], strides = [1, 1]} : vector<1x9xf32> to vector<1x3xf32>
    %1316 = arith.mulf %1314, %1315 : vector<1x3xf32>
    %1317 = arith.addf %1313, %1316 : vector<1x3xf32>
    %1318 = math.tanh %1317 : vector<1x3xf32>
    %1319 = vector.extract_strided_slice %1312 {offsets = [0, 3], sizes = [1, 3], strides = [1, 1]} : vector<1x6xf32> to vector<1x3xf32>
    %cst_109 = arith.constant 1.000000e+00 : f32
    %1320 = vector.broadcast %cst_109 : f32 to vector<1x3xf32>
    %1321 = arith.subf %1320, %1319 : vector<1x3xf32>
    %1322 = arith.mulf %1321, %1318 : vector<1x3xf32>
    %1323 = vector.extract_strided_slice %1312 {offsets = [0, 3], sizes = [1, 3], strides = [1, 1]} : vector<1x6xf32> to vector<1x3xf32>
    %1324 = arith.mulf %1323, %1284 : vector<1x3xf32>
    %1325 = arith.addf %1322, %1324 : vector<1x3xf32>
    %c6_i32_110 = arith.constant 6 : i32
    %1326 = vector.broadcast %c6_i32_110 : i32 to vector<8x1xi32>
    %1327 = arith.cmpi eq, %44, %1326 : vector<8x1xi32>
    %1328 = vector.shape_cast %1327 : vector<8x1xi1> to vector<8x1xi1>
    %1329 = vector.broadcast %1328 : vector<8x1xi1> to vector<8x3xi1>
    %1330 = vector.shape_cast %1325 : vector<1x3xf32> to vector<1x3xf32>
    %1331 = vector.broadcast %1330 : vector<1x3xf32> to vector<8x3xf32>
    %1332 = arith.select %1329, %1331, %1291 : vector<8x3xi1>, vector<8x3xf32>
    %1333 = vector.extract_strided_slice %1044 {offsets = [7, 0], sizes = [1, 9], strides = [1, 1]} : vector<8x9xf32> to vector<1x9xf32>
    %1334 = vector.extract_strided_slice %1325 {offsets = [0, 0], sizes = [1, 1], strides = [1, 1]} : vector<1x3xf32> to vector<1x1xf32>
    %1335 = vector.broadcast %1334 : vector<1x1xf32> to vector<1x9xf32>
    %1336 = arith.mulf %1335, %3 : vector<1x9xf32>
    %1337 = vector.extract_strided_slice %1325 {offsets = [0, 1], sizes = [1, 1], strides = [1, 1]} : vector<1x3xf32> to vector<1x1xf32>
    %1338 = vector.broadcast %1337 : vector<1x1xf32> to vector<1x9xf32>
    %1339 = arith.mulf %1338, %4 : vector<1x9xf32>
    %1340 = arith.addf %1336, %1339 : vector<1x9xf32>
    %1341 = vector.extract_strided_slice %1325 {offsets = [0, 2], sizes = [1, 1], strides = [1, 1]} : vector<1x3xf32> to vector<1x1xf32>
    %1342 = vector.broadcast %1341 : vector<1x1xf32> to vector<1x9xf32>
    %1343 = arith.mulf %1342, %5 : vector<1x9xf32>
    %1344 = arith.addf %1340, %1343 : vector<1x9xf32>
    %1345 = arith.addf %1344, %7 : vector<1x9xf32>
    %1346 = vector.extract_strided_slice %1333 {offsets = [0, 0], sizes = [1, 6], strides = [1, 1]} : vector<1x9xf32> to vector<1x6xf32>
    %1347 = vector.extract_strided_slice %1345 {offsets = [0, 0], sizes = [1, 6], strides = [1, 1]} : vector<1x9xf32> to vector<1x6xf32>
    %1348 = arith.addf %1346, %1347 : vector<1x6xf32>
    %1349 = arith.negf %1348 : vector<1x6xf32>
    %1350 = math.exp %1349 : vector<1x6xf32>
    %cst_111 = arith.constant 1.000000e+00 : f32
    %1351 = vector.broadcast %cst_111 : f32 to vector<1x6xf32>
    %1352 = arith.addf %1351, %1350 : vector<1x6xf32>
    %1353 = arith.divf %1351, %1352 : vector<1x6xf32>
    %1354 = vector.extract_strided_slice %1333 {offsets = [0, 6], sizes = [1, 3], strides = [1, 1]} : vector<1x9xf32> to vector<1x3xf32>
    %1355 = vector.extract_strided_slice %1353 {offsets = [0, 0], sizes = [1, 3], strides = [1, 1]} : vector<1x6xf32> to vector<1x3xf32>
    %1356 = vector.extract_strided_slice %1345 {offsets = [0, 6], sizes = [1, 3], strides = [1, 1]} : vector<1x9xf32> to vector<1x3xf32>
    %1357 = arith.mulf %1355, %1356 : vector<1x3xf32>
    %1358 = arith.addf %1354, %1357 : vector<1x3xf32>
    %1359 = math.tanh %1358 : vector<1x3xf32>
    %1360 = vector.extract_strided_slice %1353 {offsets = [0, 3], sizes = [1, 3], strides = [1, 1]} : vector<1x6xf32> to vector<1x3xf32>
    %cst_112 = arith.constant 1.000000e+00 : f32
    %1361 = vector.broadcast %cst_112 : f32 to vector<1x3xf32>
    %1362 = arith.subf %1361, %1360 : vector<1x3xf32>
    %1363 = arith.mulf %1362, %1359 : vector<1x3xf32>
    %1364 = vector.extract_strided_slice %1353 {offsets = [0, 3], sizes = [1, 3], strides = [1, 1]} : vector<1x6xf32> to vector<1x3xf32>
    %1365 = arith.mulf %1364, %1325 : vector<1x3xf32>
    %1366 = arith.addf %1363, %1365 : vector<1x3xf32>
    %c7_i32_113 = arith.constant 7 : i32
    %1367 = vector.broadcast %c7_i32_113 : i32 to vector<8x1xi32>
    %1368 = arith.cmpi eq, %44, %1367 : vector<8x1xi32>
    %1369 = vector.shape_cast %1368 : vector<8x1xi1> to vector<8x1xi1>
    %1370 = vector.broadcast %1369 : vector<8x1xi1> to vector<8x3xi1>
    %1371 = vector.shape_cast %1366 : vector<1x3xf32> to vector<1x3xf32>
    %1372 = vector.broadcast %1371 : vector<1x3xf32> to vector<8x3xf32>
    %1373 = arith.select %1370, %1372, %1332 : vector<8x3xi1>, vector<8x3xf32>
    %c24 = arith.constant 24 : index
    %c0_114 = arith.constant 0 : index
    %1374 = vector.load %arg4[%c24, %c0_114] : memref<48x384xf32, #tpu.memory_space<vmem>>, vector<8x384xf32>
    %cst_115 = arith.constant dense<0.000000e+00> : vector<3x384xf32>
    %1375 = tpu.matmul %1373, %1374, %cst_115 {dimension_numbers = #tpu.dot_dimension_numbers<[0], [0], [1], [1], [0, 1, 1, 1], [], []>} : vector<8x3xf32>, vector<8x384xf32>, vector<3x384xf32> -> vector<3x384xf32>
    %1376 = arith.addf %1043, %1375 : vector<3x384xf32>
    %1377 = vector.extract_strided_slice %12 {offsets = [32, 0], sizes = [8, 9], strides = [1, 1]} : vector<48x9xf32> to vector<8x9xf32>
    %cst_116 = arith.constant 0.000000e+00 : f32
    %1378 = vector.broadcast %cst_116 : f32 to vector<8x3xf32>
    %1379 = vector.extract_strided_slice %1377 {offsets = [0, 0], sizes = [1, 9], strides = [1, 1]} : vector<8x9xf32> to vector<1x9xf32>
    %1380 = vector.extract_strided_slice %1366 {offsets = [0, 0], sizes = [1, 1], strides = [1, 1]} : vector<1x3xf32> to vector<1x1xf32>
    %1381 = vector.broadcast %1380 : vector<1x1xf32> to vector<1x9xf32>
    %1382 = arith.mulf %1381, %3 : vector<1x9xf32>
    %1383 = vector.extract_strided_slice %1366 {offsets = [0, 1], sizes = [1, 1], strides = [1, 1]} : vector<1x3xf32> to vector<1x1xf32>
    %1384 = vector.broadcast %1383 : vector<1x1xf32> to vector<1x9xf32>
    %1385 = arith.mulf %1384, %4 : vector<1x9xf32>
    %1386 = arith.addf %1382, %1385 : vector<1x9xf32>
    %1387 = vector.extract_strided_slice %1366 {offsets = [0, 2], sizes = [1, 1], strides = [1, 1]} : vector<1x3xf32> to vector<1x1xf32>
    %1388 = vector.broadcast %1387 : vector<1x1xf32> to vector<1x9xf32>
    %1389 = arith.mulf %1388, %5 : vector<1x9xf32>
    %1390 = arith.addf %1386, %1389 : vector<1x9xf32>
    %1391 = arith.addf %1390, %7 : vector<1x9xf32>
    %1392 = vector.extract_strided_slice %1379 {offsets = [0, 0], sizes = [1, 6], strides = [1, 1]} : vector<1x9xf32> to vector<1x6xf32>
    %1393 = vector.extract_strided_slice %1391 {offsets = [0, 0], sizes = [1, 6], strides = [1, 1]} : vector<1x9xf32> to vector<1x6xf32>
    %1394 = arith.addf %1392, %1393 : vector<1x6xf32>
    %1395 = arith.negf %1394 : vector<1x6xf32>
    %1396 = math.exp %1395 : vector<1x6xf32>
    %cst_117 = arith.constant 1.000000e+00 : f32
    %1397 = vector.broadcast %cst_117 : f32 to vector<1x6xf32>
    %1398 = arith.addf %1397, %1396 : vector<1x6xf32>
    %1399 = arith.divf %1397, %1398 : vector<1x6xf32>
    %1400 = vector.extract_strided_slice %1379 {offsets = [0, 6], sizes = [1, 3], strides = [1, 1]} : vector<1x9xf32> to vector<1x3xf32>
    %1401 = vector.extract_strided_slice %1399 {offsets = [0, 0], sizes = [1, 3], strides = [1, 1]} : vector<1x6xf32> to vector<1x3xf32>
    %1402 = vector.extract_strided_slice %1391 {offsets = [0, 6], sizes = [1, 3], strides = [1, 1]} : vector<1x9xf32> to vector<1x3xf32>
    %1403 = arith.mulf %1401, %1402 : vector<1x3xf32>
    %1404 = arith.addf %1400, %1403 : vector<1x3xf32>
    %1405 = math.tanh %1404 : vector<1x3xf32>
    %1406 = vector.extract_strided_slice %1399 {offsets = [0, 3], sizes = [1, 3], strides = [1, 1]} : vector<1x6xf32> to vector<1x3xf32>
    %cst_118 = arith.constant 1.000000e+00 : f32
    %1407 = vector.broadcast %cst_118 : f32 to vector<1x3xf32>
    %1408 = arith.subf %1407, %1406 : vector<1x3xf32>
    %1409 = arith.mulf %1408, %1405 : vector<1x3xf32>
    %1410 = vector.extract_strided_slice %1399 {offsets = [0, 3], sizes = [1, 3], strides = [1, 1]} : vector<1x6xf32> to vector<1x3xf32>
    %1411 = arith.mulf %1410, %1366 : vector<1x3xf32>
    %1412 = arith.addf %1409, %1411 : vector<1x3xf32>
    %c0_i32_119 = arith.constant 0 : i32
    %1413 = vector.broadcast %c0_i32_119 : i32 to vector<8x1xi32>
    %1414 = arith.cmpi eq, %44, %1413 : vector<8x1xi32>
    %1415 = vector.shape_cast %1414 : vector<8x1xi1> to vector<8x1xi1>
    %1416 = vector.broadcast %1415 : vector<8x1xi1> to vector<8x3xi1>
    %1417 = vector.shape_cast %1412 : vector<1x3xf32> to vector<1x3xf32>
    %1418 = vector.broadcast %1417 : vector<1x3xf32> to vector<8x3xf32>
    %1419 = arith.select %1416, %1418, %1378 : vector<8x3xi1>, vector<8x3xf32>
    %1420 = vector.extract_strided_slice %1377 {offsets = [1, 0], sizes = [1, 9], strides = [1, 1]} : vector<8x9xf32> to vector<1x9xf32>
    %1421 = vector.extract_strided_slice %1412 {offsets = [0, 0], sizes = [1, 1], strides = [1, 1]} : vector<1x3xf32> to vector<1x1xf32>
    %1422 = vector.broadcast %1421 : vector<1x1xf32> to vector<1x9xf32>
    %1423 = arith.mulf %1422, %3 : vector<1x9xf32>
    %1424 = vector.extract_strided_slice %1412 {offsets = [0, 1], sizes = [1, 1], strides = [1, 1]} : vector<1x3xf32> to vector<1x1xf32>
    %1425 = vector.broadcast %1424 : vector<1x1xf32> to vector<1x9xf32>
    %1426 = arith.mulf %1425, %4 : vector<1x9xf32>
    %1427 = arith.addf %1423, %1426 : vector<1x9xf32>
    %1428 = vector.extract_strided_slice %1412 {offsets = [0, 2], sizes = [1, 1], strides = [1, 1]} : vector<1x3xf32> to vector<1x1xf32>
    %1429 = vector.broadcast %1428 : vector<1x1xf32> to vector<1x9xf32>
    %1430 = arith.mulf %1429, %5 : vector<1x9xf32>
    %1431 = arith.addf %1427, %1430 : vector<1x9xf32>
    %1432 = arith.addf %1431, %7 : vector<1x9xf32>
    %1433 = vector.extract_strided_slice %1420 {offsets = [0, 0], sizes = [1, 6], strides = [1, 1]} : vector<1x9xf32> to vector<1x6xf32>
    %1434 = vector.extract_strided_slice %1432 {offsets = [0, 0], sizes = [1, 6], strides = [1, 1]} : vector<1x9xf32> to vector<1x6xf32>
    %1435 = arith.addf %1433, %1434 : vector<1x6xf32>
    %1436 = arith.negf %1435 : vector<1x6xf32>
    %1437 = math.exp %1436 : vector<1x6xf32>
    %cst_120 = arith.constant 1.000000e+00 : f32
    %1438 = vector.broadcast %cst_120 : f32 to vector<1x6xf32>
    %1439 = arith.addf %1438, %1437 : vector<1x6xf32>
    %1440 = arith.divf %1438, %1439 : vector<1x6xf32>
    %1441 = vector.extract_strided_slice %1420 {offsets = [0, 6], sizes = [1, 3], strides = [1, 1]} : vector<1x9xf32> to vector<1x3xf32>
    %1442 = vector.extract_strided_slice %1440 {offsets = [0, 0], sizes = [1, 3], strides = [1, 1]} : vector<1x6xf32> to vector<1x3xf32>
    %1443 = vector.extract_strided_slice %1432 {offsets = [0, 6], sizes = [1, 3], strides = [1, 1]} : vector<1x9xf32> to vector<1x3xf32>
    %1444 = arith.mulf %1442, %1443 : vector<1x3xf32>
    %1445 = arith.addf %1441, %1444 : vector<1x3xf32>
    %1446 = math.tanh %1445 : vector<1x3xf32>
    %1447 = vector.extract_strided_slice %1440 {offsets = [0, 3], sizes = [1, 3], strides = [1, 1]} : vector<1x6xf32> to vector<1x3xf32>
    %cst_121 = arith.constant 1.000000e+00 : f32
    %1448 = vector.broadcast %cst_121 : f32 to vector<1x3xf32>
    %1449 = arith.subf %1448, %1447 : vector<1x3xf32>
    %1450 = arith.mulf %1449, %1446 : vector<1x3xf32>
    %1451 = vector.extract_strided_slice %1440 {offsets = [0, 3], sizes = [1, 3], strides = [1, 1]} : vector<1x6xf32> to vector<1x3xf32>
    %1452 = arith.mulf %1451, %1412 : vector<1x3xf32>
    %1453 = arith.addf %1450, %1452 : vector<1x3xf32>
    %c1_i32_122 = arith.constant 1 : i32
    %1454 = vector.broadcast %c1_i32_122 : i32 to vector<8x1xi32>
    %1455 = arith.cmpi eq, %44, %1454 : vector<8x1xi32>
    %1456 = vector.shape_cast %1455 : vector<8x1xi1> to vector<8x1xi1>
    %1457 = vector.broadcast %1456 : vector<8x1xi1> to vector<8x3xi1>
    %1458 = vector.shape_cast %1453 : vector<1x3xf32> to vector<1x3xf32>
    %1459 = vector.broadcast %1458 : vector<1x3xf32> to vector<8x3xf32>
    %1460 = arith.select %1457, %1459, %1419 : vector<8x3xi1>, vector<8x3xf32>
    %1461 = vector.extract_strided_slice %1377 {offsets = [2, 0], sizes = [1, 9], strides = [1, 1]} : vector<8x9xf32> to vector<1x9xf32>
    %1462 = vector.extract_strided_slice %1453 {offsets = [0, 0], sizes = [1, 1], strides = [1, 1]} : vector<1x3xf32> to vector<1x1xf32>
    %1463 = vector.broadcast %1462 : vector<1x1xf32> to vector<1x9xf32>
    %1464 = arith.mulf %1463, %3 : vector<1x9xf32>
    %1465 = vector.extract_strided_slice %1453 {offsets = [0, 1], sizes = [1, 1], strides = [1, 1]} : vector<1x3xf32> to vector<1x1xf32>
    %1466 = vector.broadcast %1465 : vector<1x1xf32> to vector<1x9xf32>
    %1467 = arith.mulf %1466, %4 : vector<1x9xf32>
    %1468 = arith.addf %1464, %1467 : vector<1x9xf32>
    %1469 = vector.extract_strided_slice %1453 {offsets = [0, 2], sizes = [1, 1], strides = [1, 1]} : vector<1x3xf32> to vector<1x1xf32>
    %1470 = vector.broadcast %1469 : vector<1x1xf32> to vector<1x9xf32>
    %1471 = arith.mulf %1470, %5 : vector<1x9xf32>
    %1472 = arith.addf %1468, %1471 : vector<1x9xf32>
    %1473 = arith.addf %1472, %7 : vector<1x9xf32>
    %1474 = vector.extract_strided_slice %1461 {offsets = [0, 0], sizes = [1, 6], strides = [1, 1]} : vector<1x9xf32> to vector<1x6xf32>
    %1475 = vector.extract_strided_slice %1473 {offsets = [0, 0], sizes = [1, 6], strides = [1, 1]} : vector<1x9xf32> to vector<1x6xf32>
    %1476 = arith.addf %1474, %1475 : vector<1x6xf32>
    %1477 = arith.negf %1476 : vector<1x6xf32>
    %1478 = math.exp %1477 : vector<1x6xf32>
    %cst_123 = arith.constant 1.000000e+00 : f32
    %1479 = vector.broadcast %cst_123 : f32 to vector<1x6xf32>
    %1480 = arith.addf %1479, %1478 : vector<1x6xf32>
    %1481 = arith.divf %1479, %1480 : vector<1x6xf32>
    %1482 = vector.extract_strided_slice %1461 {offsets = [0, 6], sizes = [1, 3], strides = [1, 1]} : vector<1x9xf32> to vector<1x3xf32>
    %1483 = vector.extract_strided_slice %1481 {offsets = [0, 0], sizes = [1, 3], strides = [1, 1]} : vector<1x6xf32> to vector<1x3xf32>
    %1484 = vector.extract_strided_slice %1473 {offsets = [0, 6], sizes = [1, 3], strides = [1, 1]} : vector<1x9xf32> to vector<1x3xf32>
    %1485 = arith.mulf %1483, %1484 : vector<1x3xf32>
    %1486 = arith.addf %1482, %1485 : vector<1x3xf32>
    %1487 = math.tanh %1486 : vector<1x3xf32>
    %1488 = vector.extract_strided_slice %1481 {offsets = [0, 3], sizes = [1, 3], strides = [1, 1]} : vector<1x6xf32> to vector<1x3xf32>
    %cst_124 = arith.constant 1.000000e+00 : f32
    %1489 = vector.broadcast %cst_124 : f32 to vector<1x3xf32>
    %1490 = arith.subf %1489, %1488 : vector<1x3xf32>
    %1491 = arith.mulf %1490, %1487 : vector<1x3xf32>
    %1492 = vector.extract_strided_slice %1481 {offsets = [0, 3], sizes = [1, 3], strides = [1, 1]} : vector<1x6xf32> to vector<1x3xf32>
    %1493 = arith.mulf %1492, %1453 : vector<1x3xf32>
    %1494 = arith.addf %1491, %1493 : vector<1x3xf32>
    %c2_i32_125 = arith.constant 2 : i32
    %1495 = vector.broadcast %c2_i32_125 : i32 to vector<8x1xi32>
    %1496 = arith.cmpi eq, %44, %1495 : vector<8x1xi32>
    %1497 = vector.shape_cast %1496 : vector<8x1xi1> to vector<8x1xi1>
    %1498 = vector.broadcast %1497 : vector<8x1xi1> to vector<8x3xi1>
    %1499 = vector.shape_cast %1494 : vector<1x3xf32> to vector<1x3xf32>
    %1500 = vector.broadcast %1499 : vector<1x3xf32> to vector<8x3xf32>
    %1501 = arith.select %1498, %1500, %1460 : vector<8x3xi1>, vector<8x3xf32>
    %1502 = vector.extract_strided_slice %1377 {offsets = [3, 0], sizes = [1, 9], strides = [1, 1]} : vector<8x9xf32> to vector<1x9xf32>
    %1503 = vector.extract_strided_slice %1494 {offsets = [0, 0], sizes = [1, 1], strides = [1, 1]} : vector<1x3xf32> to vector<1x1xf32>
    %1504 = vector.broadcast %1503 : vector<1x1xf32> to vector<1x9xf32>
    %1505 = arith.mulf %1504, %3 : vector<1x9xf32>
    %1506 = vector.extract_strided_slice %1494 {offsets = [0, 1], sizes = [1, 1], strides = [1, 1]} : vector<1x3xf32> to vector<1x1xf32>
    %1507 = vector.broadcast %1506 : vector<1x1xf32> to vector<1x9xf32>
    %1508 = arith.mulf %1507, %4 : vector<1x9xf32>
    %1509 = arith.addf %1505, %1508 : vector<1x9xf32>
    %1510 = vector.extract_strided_slice %1494 {offsets = [0, 2], sizes = [1, 1], strides = [1, 1]} : vector<1x3xf32> to vector<1x1xf32>
    %1511 = vector.broadcast %1510 : vector<1x1xf32> to vector<1x9xf32>
    %1512 = arith.mulf %1511, %5 : vector<1x9xf32>
    %1513 = arith.addf %1509, %1512 : vector<1x9xf32>
    %1514 = arith.addf %1513, %7 : vector<1x9xf32>
    %1515 = vector.extract_strided_slice %1502 {offsets = [0, 0], sizes = [1, 6], strides = [1, 1]} : vector<1x9xf32> to vector<1x6xf32>
    %1516 = vector.extract_strided_slice %1514 {offsets = [0, 0], sizes = [1, 6], strides = [1, 1]} : vector<1x9xf32> to vector<1x6xf32>
    %1517 = arith.addf %1515, %1516 : vector<1x6xf32>
    %1518 = arith.negf %1517 : vector<1x6xf32>
    %1519 = math.exp %1518 : vector<1x6xf32>
    %cst_126 = arith.constant 1.000000e+00 : f32
    %1520 = vector.broadcast %cst_126 : f32 to vector<1x6xf32>
    %1521 = arith.addf %1520, %1519 : vector<1x6xf32>
    %1522 = arith.divf %1520, %1521 : vector<1x6xf32>
    %1523 = vector.extract_strided_slice %1502 {offsets = [0, 6], sizes = [1, 3], strides = [1, 1]} : vector<1x9xf32> to vector<1x3xf32>
    %1524 = vector.extract_strided_slice %1522 {offsets = [0, 0], sizes = [1, 3], strides = [1, 1]} : vector<1x6xf32> to vector<1x3xf32>
    %1525 = vector.extract_strided_slice %1514 {offsets = [0, 6], sizes = [1, 3], strides = [1, 1]} : vector<1x9xf32> to vector<1x3xf32>
    %1526 = arith.mulf %1524, %1525 : vector<1x3xf32>
    %1527 = arith.addf %1523, %1526 : vector<1x3xf32>
    %1528 = math.tanh %1527 : vector<1x3xf32>
    %1529 = vector.extract_strided_slice %1522 {offsets = [0, 3], sizes = [1, 3], strides = [1, 1]} : vector<1x6xf32> to vector<1x3xf32>
    %cst_127 = arith.constant 1.000000e+00 : f32
    %1530 = vector.broadcast %cst_127 : f32 to vector<1x3xf32>
    %1531 = arith.subf %1530, %1529 : vector<1x3xf32>
    %1532 = arith.mulf %1531, %1528 : vector<1x3xf32>
    %1533 = vector.extract_strided_slice %1522 {offsets = [0, 3], sizes = [1, 3], strides = [1, 1]} : vector<1x6xf32> to vector<1x3xf32>
    %1534 = arith.mulf %1533, %1494 : vector<1x3xf32>
    %1535 = arith.addf %1532, %1534 : vector<1x3xf32>
    %c3_i32_128 = arith.constant 3 : i32
    %1536 = vector.broadcast %c3_i32_128 : i32 to vector<8x1xi32>
    %1537 = arith.cmpi eq, %44, %1536 : vector<8x1xi32>
    %1538 = vector.shape_cast %1537 : vector<8x1xi1> to vector<8x1xi1>
    %1539 = vector.broadcast %1538 : vector<8x1xi1> to vector<8x3xi1>
    %1540 = vector.shape_cast %1535 : vector<1x3xf32> to vector<1x3xf32>
    %1541 = vector.broadcast %1540 : vector<1x3xf32> to vector<8x3xf32>
    %1542 = arith.select %1539, %1541, %1501 : vector<8x3xi1>, vector<8x3xf32>
    %1543 = vector.extract_strided_slice %1377 {offsets = [4, 0], sizes = [1, 9], strides = [1, 1]} : vector<8x9xf32> to vector<1x9xf32>
    %1544 = vector.extract_strided_slice %1535 {offsets = [0, 0], sizes = [1, 1], strides = [1, 1]} : vector<1x3xf32> to vector<1x1xf32>
    %1545 = vector.broadcast %1544 : vector<1x1xf32> to vector<1x9xf32>
    %1546 = arith.mulf %1545, %3 : vector<1x9xf32>
    %1547 = vector.extract_strided_slice %1535 {offsets = [0, 1], sizes = [1, 1], strides = [1, 1]} : vector<1x3xf32> to vector<1x1xf32>
    %1548 = vector.broadcast %1547 : vector<1x1xf32> to vector<1x9xf32>
    %1549 = arith.mulf %1548, %4 : vector<1x9xf32>
    %1550 = arith.addf %1546, %1549 : vector<1x9xf32>
    %1551 = vector.extract_strided_slice %1535 {offsets = [0, 2], sizes = [1, 1], strides = [1, 1]} : vector<1x3xf32> to vector<1x1xf32>
    %1552 = vector.broadcast %1551 : vector<1x1xf32> to vector<1x9xf32>
    %1553 = arith.mulf %1552, %5 : vector<1x9xf32>
    %1554 = arith.addf %1550, %1553 : vector<1x9xf32>
    %1555 = arith.addf %1554, %7 : vector<1x9xf32>
    %1556 = vector.extract_strided_slice %1543 {offsets = [0, 0], sizes = [1, 6], strides = [1, 1]} : vector<1x9xf32> to vector<1x6xf32>
    %1557 = vector.extract_strided_slice %1555 {offsets = [0, 0], sizes = [1, 6], strides = [1, 1]} : vector<1x9xf32> to vector<1x6xf32>
    %1558 = arith.addf %1556, %1557 : vector<1x6xf32>
    %1559 = arith.negf %1558 : vector<1x6xf32>
    %1560 = math.exp %1559 : vector<1x6xf32>
    %cst_129 = arith.constant 1.000000e+00 : f32
    %1561 = vector.broadcast %cst_129 : f32 to vector<1x6xf32>
    %1562 = arith.addf %1561, %1560 : vector<1x6xf32>
    %1563 = arith.divf %1561, %1562 : vector<1x6xf32>
    %1564 = vector.extract_strided_slice %1543 {offsets = [0, 6], sizes = [1, 3], strides = [1, 1]} : vector<1x9xf32> to vector<1x3xf32>
    %1565 = vector.extract_strided_slice %1563 {offsets = [0, 0], sizes = [1, 3], strides = [1, 1]} : vector<1x6xf32> to vector<1x3xf32>
    %1566 = vector.extract_strided_slice %1555 {offsets = [0, 6], sizes = [1, 3], strides = [1, 1]} : vector<1x9xf32> to vector<1x3xf32>
    %1567 = arith.mulf %1565, %1566 : vector<1x3xf32>
    %1568 = arith.addf %1564, %1567 : vector<1x3xf32>
    %1569 = math.tanh %1568 : vector<1x3xf32>
    %1570 = vector.extract_strided_slice %1563 {offsets = [0, 3], sizes = [1, 3], strides = [1, 1]} : vector<1x6xf32> to vector<1x3xf32>
    %cst_130 = arith.constant 1.000000e+00 : f32
    %1571 = vector.broadcast %cst_130 : f32 to vector<1x3xf32>
    %1572 = arith.subf %1571, %1570 : vector<1x3xf32>
    %1573 = arith.mulf %1572, %1569 : vector<1x3xf32>
    %1574 = vector.extract_strided_slice %1563 {offsets = [0, 3], sizes = [1, 3], strides = [1, 1]} : vector<1x6xf32> to vector<1x3xf32>
    %1575 = arith.mulf %1574, %1535 : vector<1x3xf32>
    %1576 = arith.addf %1573, %1575 : vector<1x3xf32>
    %c4_i32_131 = arith.constant 4 : i32
    %1577 = vector.broadcast %c4_i32_131 : i32 to vector<8x1xi32>
    %1578 = arith.cmpi eq, %44, %1577 : vector<8x1xi32>
    %1579 = vector.shape_cast %1578 : vector<8x1xi1> to vector<8x1xi1>
    %1580 = vector.broadcast %1579 : vector<8x1xi1> to vector<8x3xi1>
    %1581 = vector.shape_cast %1576 : vector<1x3xf32> to vector<1x3xf32>
    %1582 = vector.broadcast %1581 : vector<1x3xf32> to vector<8x3xf32>
    %1583 = arith.select %1580, %1582, %1542 : vector<8x3xi1>, vector<8x3xf32>
    %1584 = vector.extract_strided_slice %1377 {offsets = [5, 0], sizes = [1, 9], strides = [1, 1]} : vector<8x9xf32> to vector<1x9xf32>
    %1585 = vector.extract_strided_slice %1576 {offsets = [0, 0], sizes = [1, 1], strides = [1, 1]} : vector<1x3xf32> to vector<1x1xf32>
    %1586 = vector.broadcast %1585 : vector<1x1xf32> to vector<1x9xf32>
    %1587 = arith.mulf %1586, %3 : vector<1x9xf32>
    %1588 = vector.extract_strided_slice %1576 {offsets = [0, 1], sizes = [1, 1], strides = [1, 1]} : vector<1x3xf32> to vector<1x1xf32>
    %1589 = vector.broadcast %1588 : vector<1x1xf32> to vector<1x9xf32>
    %1590 = arith.mulf %1589, %4 : vector<1x9xf32>
    %1591 = arith.addf %1587, %1590 : vector<1x9xf32>
    %1592 = vector.extract_strided_slice %1576 {offsets = [0, 2], sizes = [1, 1], strides = [1, 1]} : vector<1x3xf32> to vector<1x1xf32>
    %1593 = vector.broadcast %1592 : vector<1x1xf32> to vector<1x9xf32>
    %1594 = arith.mulf %1593, %5 : vector<1x9xf32>
    %1595 = arith.addf %1591, %1594 : vector<1x9xf32>
    %1596 = arith.addf %1595, %7 : vector<1x9xf32>
    %1597 = vector.extract_strided_slice %1584 {offsets = [0, 0], sizes = [1, 6], strides = [1, 1]} : vector<1x9xf32> to vector<1x6xf32>
    %1598 = vector.extract_strided_slice %1596 {offsets = [0, 0], sizes = [1, 6], strides = [1, 1]} : vector<1x9xf32> to vector<1x6xf32>
    %1599 = arith.addf %1597, %1598 : vector<1x6xf32>
    %1600 = arith.negf %1599 : vector<1x6xf32>
    %1601 = math.exp %1600 : vector<1x6xf32>
    %cst_132 = arith.constant 1.000000e+00 : f32
    %1602 = vector.broadcast %cst_132 : f32 to vector<1x6xf32>
    %1603 = arith.addf %1602, %1601 : vector<1x6xf32>
    %1604 = arith.divf %1602, %1603 : vector<1x6xf32>
    %1605 = vector.extract_strided_slice %1584 {offsets = [0, 6], sizes = [1, 3], strides = [1, 1]} : vector<1x9xf32> to vector<1x3xf32>
    %1606 = vector.extract_strided_slice %1604 {offsets = [0, 0], sizes = [1, 3], strides = [1, 1]} : vector<1x6xf32> to vector<1x3xf32>
    %1607 = vector.extract_strided_slice %1596 {offsets = [0, 6], sizes = [1, 3], strides = [1, 1]} : vector<1x9xf32> to vector<1x3xf32>
    %1608 = arith.mulf %1606, %1607 : vector<1x3xf32>
    %1609 = arith.addf %1605, %1608 : vector<1x3xf32>
    %1610 = math.tanh %1609 : vector<1x3xf32>
    %1611 = vector.extract_strided_slice %1604 {offsets = [0, 3], sizes = [1, 3], strides = [1, 1]} : vector<1x6xf32> to vector<1x3xf32>
    %cst_133 = arith.constant 1.000000e+00 : f32
    %1612 = vector.broadcast %cst_133 : f32 to vector<1x3xf32>
    %1613 = arith.subf %1612, %1611 : vector<1x3xf32>
    %1614 = arith.mulf %1613, %1610 : vector<1x3xf32>
    %1615 = vector.extract_strided_slice %1604 {offsets = [0, 3], sizes = [1, 3], strides = [1, 1]} : vector<1x6xf32> to vector<1x3xf32>
    %1616 = arith.mulf %1615, %1576 : vector<1x3xf32>
    %1617 = arith.addf %1614, %1616 : vector<1x3xf32>
    %c5_i32_134 = arith.constant 5 : i32
    %1618 = vector.broadcast %c5_i32_134 : i32 to vector<8x1xi32>
    %1619 = arith.cmpi eq, %44, %1618 : vector<8x1xi32>
    %1620 = vector.shape_cast %1619 : vector<8x1xi1> to vector<8x1xi1>
    %1621 = vector.broadcast %1620 : vector<8x1xi1> to vector<8x3xi1>
    %1622 = vector.shape_cast %1617 : vector<1x3xf32> to vector<1x3xf32>
    %1623 = vector.broadcast %1622 : vector<1x3xf32> to vector<8x3xf32>
    %1624 = arith.select %1621, %1623, %1583 : vector<8x3xi1>, vector<8x3xf32>
    %1625 = vector.extract_strided_slice %1377 {offsets = [6, 0], sizes = [1, 9], strides = [1, 1]} : vector<8x9xf32> to vector<1x9xf32>
    %1626 = vector.extract_strided_slice %1617 {offsets = [0, 0], sizes = [1, 1], strides = [1, 1]} : vector<1x3xf32> to vector<1x1xf32>
    %1627 = vector.broadcast %1626 : vector<1x1xf32> to vector<1x9xf32>
    %1628 = arith.mulf %1627, %3 : vector<1x9xf32>
    %1629 = vector.extract_strided_slice %1617 {offsets = [0, 1], sizes = [1, 1], strides = [1, 1]} : vector<1x3xf32> to vector<1x1xf32>
    %1630 = vector.broadcast %1629 : vector<1x1xf32> to vector<1x9xf32>
    %1631 = arith.mulf %1630, %4 : vector<1x9xf32>
    %1632 = arith.addf %1628, %1631 : vector<1x9xf32>
    %1633 = vector.extract_strided_slice %1617 {offsets = [0, 2], sizes = [1, 1], strides = [1, 1]} : vector<1x3xf32> to vector<1x1xf32>
    %1634 = vector.broadcast %1633 : vector<1x1xf32> to vector<1x9xf32>
    %1635 = arith.mulf %1634, %5 : vector<1x9xf32>
    %1636 = arith.addf %1632, %1635 : vector<1x9xf32>
    %1637 = arith.addf %1636, %7 : vector<1x9xf32>
    %1638 = vector.extract_strided_slice %1625 {offsets = [0, 0], sizes = [1, 6], strides = [1, 1]} : vector<1x9xf32> to vector<1x6xf32>
    %1639 = vector.extract_strided_slice %1637 {offsets = [0, 0], sizes = [1, 6], strides = [1, 1]} : vector<1x9xf32> to vector<1x6xf32>
    %1640 = arith.addf %1638, %1639 : vector<1x6xf32>
    %1641 = arith.negf %1640 : vector<1x6xf32>
    %1642 = math.exp %1641 : vector<1x6xf32>
    %cst_135 = arith.constant 1.000000e+00 : f32
    %1643 = vector.broadcast %cst_135 : f32 to vector<1x6xf32>
    %1644 = arith.addf %1643, %1642 : vector<1x6xf32>
    %1645 = arith.divf %1643, %1644 : vector<1x6xf32>
    %1646 = vector.extract_strided_slice %1625 {offsets = [0, 6], sizes = [1, 3], strides = [1, 1]} : vector<1x9xf32> to vector<1x3xf32>
    %1647 = vector.extract_strided_slice %1645 {offsets = [0, 0], sizes = [1, 3], strides = [1, 1]} : vector<1x6xf32> to vector<1x3xf32>
    %1648 = vector.extract_strided_slice %1637 {offsets = [0, 6], sizes = [1, 3], strides = [1, 1]} : vector<1x9xf32> to vector<1x3xf32>
    %1649 = arith.mulf %1647, %1648 : vector<1x3xf32>
    %1650 = arith.addf %1646, %1649 : vector<1x3xf32>
    %1651 = math.tanh %1650 : vector<1x3xf32>
    %1652 = vector.extract_strided_slice %1645 {offsets = [0, 3], sizes = [1, 3], strides = [1, 1]} : vector<1x6xf32> to vector<1x3xf32>
    %cst_136 = arith.constant 1.000000e+00 : f32
    %1653 = vector.broadcast %cst_136 : f32 to vector<1x3xf32>
    %1654 = arith.subf %1653, %1652 : vector<1x3xf32>
    %1655 = arith.mulf %1654, %1651 : vector<1x3xf32>
    %1656 = vector.extract_strided_slice %1645 {offsets = [0, 3], sizes = [1, 3], strides = [1, 1]} : vector<1x6xf32> to vector<1x3xf32>
    %1657 = arith.mulf %1656, %1617 : vector<1x3xf32>
    %1658 = arith.addf %1655, %1657 : vector<1x3xf32>
    %c6_i32_137 = arith.constant 6 : i32
    %1659 = vector.broadcast %c6_i32_137 : i32 to vector<8x1xi32>
    %1660 = arith.cmpi eq, %44, %1659 : vector<8x1xi32>
    %1661 = vector.shape_cast %1660 : vector<8x1xi1> to vector<8x1xi1>
    %1662 = vector.broadcast %1661 : vector<8x1xi1> to vector<8x3xi1>
    %1663 = vector.shape_cast %1658 : vector<1x3xf32> to vector<1x3xf32>
    %1664 = vector.broadcast %1663 : vector<1x3xf32> to vector<8x3xf32>
    %1665 = arith.select %1662, %1664, %1624 : vector<8x3xi1>, vector<8x3xf32>
    %1666 = vector.extract_strided_slice %1377 {offsets = [7, 0], sizes = [1, 9], strides = [1, 1]} : vector<8x9xf32> to vector<1x9xf32>
    %1667 = vector.extract_strided_slice %1658 {offsets = [0, 0], sizes = [1, 1], strides = [1, 1]} : vector<1x3xf32> to vector<1x1xf32>
    %1668 = vector.broadcast %1667 : vector<1x1xf32> to vector<1x9xf32>
    %1669 = arith.mulf %1668, %3 : vector<1x9xf32>
    %1670 = vector.extract_strided_slice %1658 {offsets = [0, 1], sizes = [1, 1], strides = [1, 1]} : vector<1x3xf32> to vector<1x1xf32>
    %1671 = vector.broadcast %1670 : vector<1x1xf32> to vector<1x9xf32>
    %1672 = arith.mulf %1671, %4 : vector<1x9xf32>
    %1673 = arith.addf %1669, %1672 : vector<1x9xf32>
    %1674 = vector.extract_strided_slice %1658 {offsets = [0, 2], sizes = [1, 1], strides = [1, 1]} : vector<1x3xf32> to vector<1x1xf32>
    %1675 = vector.broadcast %1674 : vector<1x1xf32> to vector<1x9xf32>
    %1676 = arith.mulf %1675, %5 : vector<1x9xf32>
    %1677 = arith.addf %1673, %1676 : vector<1x9xf32>
    %1678 = arith.addf %1677, %7 : vector<1x9xf32>
    %1679 = vector.extract_strided_slice %1666 {offsets = [0, 0], sizes = [1, 6], strides = [1, 1]} : vector<1x9xf32> to vector<1x6xf32>
    %1680 = vector.extract_strided_slice %1678 {offsets = [0, 0], sizes = [1, 6], strides = [1, 1]} : vector<1x9xf32> to vector<1x6xf32>
    %1681 = arith.addf %1679, %1680 : vector<1x6xf32>
    %1682 = arith.negf %1681 : vector<1x6xf32>
    %1683 = math.exp %1682 : vector<1x6xf32>
    %cst_138 = arith.constant 1.000000e+00 : f32
    %1684 = vector.broadcast %cst_138 : f32 to vector<1x6xf32>
    %1685 = arith.addf %1684, %1683 : vector<1x6xf32>
    %1686 = arith.divf %1684, %1685 : vector<1x6xf32>
    %1687 = vector.extract_strided_slice %1666 {offsets = [0, 6], sizes = [1, 3], strides = [1, 1]} : vector<1x9xf32> to vector<1x3xf32>
    %1688 = vector.extract_strided_slice %1686 {offsets = [0, 0], sizes = [1, 3], strides = [1, 1]} : vector<1x6xf32> to vector<1x3xf32>
    %1689 = vector.extract_strided_slice %1678 {offsets = [0, 6], sizes = [1, 3], strides = [1, 1]} : vector<1x9xf32> to vector<1x3xf32>
    %1690 = arith.mulf %1688, %1689 : vector<1x3xf32>
    %1691 = arith.addf %1687, %1690 : vector<1x3xf32>
    %1692 = math.tanh %1691 : vector<1x3xf32>
    %1693 = vector.extract_strided_slice %1686 {offsets = [0, 3], sizes = [1, 3], strides = [1, 1]} : vector<1x6xf32> to vector<1x3xf32>
    %cst_139 = arith.constant 1.000000e+00 : f32
    %1694 = vector.broadcast %cst_139 : f32 to vector<1x3xf32>
    %1695 = arith.subf %1694, %1693 : vector<1x3xf32>
    %1696 = arith.mulf %1695, %1692 : vector<1x3xf32>
    %1697 = vector.extract_strided_slice %1686 {offsets = [0, 3], sizes = [1, 3], strides = [1, 1]} : vector<1x6xf32> to vector<1x3xf32>
    %1698 = arith.mulf %1697, %1658 : vector<1x3xf32>
    %1699 = arith.addf %1696, %1698 : vector<1x3xf32>
    %c7_i32_140 = arith.constant 7 : i32
    %1700 = vector.broadcast %c7_i32_140 : i32 to vector<8x1xi32>
    %1701 = arith.cmpi eq, %44, %1700 : vector<8x1xi32>
    %1702 = vector.shape_cast %1701 : vector<8x1xi1> to vector<8x1xi1>
    %1703 = vector.broadcast %1702 : vector<8x1xi1> to vector<8x3xi1>
    %1704 = vector.shape_cast %1699 : vector<1x3xf32> to vector<1x3xf32>
    %1705 = vector.broadcast %1704 : vector<1x3xf32> to vector<8x3xf32>
    %1706 = arith.select %1703, %1705, %1665 : vector<8x3xi1>, vector<8x3xf32>
    %c32 = arith.constant 32 : index
    %c0_141 = arith.constant 0 : index
    %1707 = vector.load %arg4[%c32, %c0_141] : memref<48x384xf32, #tpu.memory_space<vmem>>, vector<8x384xf32>
    %cst_142 = arith.constant dense<0.000000e+00> : vector<3x384xf32>
    %1708 = tpu.matmul %1706, %1707, %cst_142 {dimension_numbers = #tpu.dot_dimension_numbers<[0], [0], [1], [1], [0, 1, 1, 1], [], []>} : vector<8x3xf32>, vector<8x384xf32>, vector<3x384xf32> -> vector<3x384xf32>
    %1709 = arith.addf %1376, %1708 : vector<3x384xf32>
    %1710 = vector.extract_strided_slice %12 {offsets = [40, 0], sizes = [8, 9], strides = [1, 1]} : vector<48x9xf32> to vector<8x9xf32>
    %cst_143 = arith.constant 0.000000e+00 : f32
    %1711 = vector.broadcast %cst_143 : f32 to vector<8x3xf32>
    %1712 = vector.extract_strided_slice %1710 {offsets = [0, 0], sizes = [1, 9], strides = [1, 1]} : vector<8x9xf32> to vector<1x9xf32>
    %1713 = vector.extract_strided_slice %1699 {offsets = [0, 0], sizes = [1, 1], strides = [1, 1]} : vector<1x3xf32> to vector<1x1xf32>
    %1714 = vector.broadcast %1713 : vector<1x1xf32> to vector<1x9xf32>
    %1715 = arith.mulf %1714, %3 : vector<1x9xf32>
    %1716 = vector.extract_strided_slice %1699 {offsets = [0, 1], sizes = [1, 1], strides = [1, 1]} : vector<1x3xf32> to vector<1x1xf32>
    %1717 = vector.broadcast %1716 : vector<1x1xf32> to vector<1x9xf32>
    %1718 = arith.mulf %1717, %4 : vector<1x9xf32>
    %1719 = arith.addf %1715, %1718 : vector<1x9xf32>
    %1720 = vector.extract_strided_slice %1699 {offsets = [0, 2], sizes = [1, 1], strides = [1, 1]} : vector<1x3xf32> to vector<1x1xf32>
    %1721 = vector.broadcast %1720 : vector<1x1xf32> to vector<1x9xf32>
    %1722 = arith.mulf %1721, %5 : vector<1x9xf32>
    %1723 = arith.addf %1719, %1722 : vector<1x9xf32>
    %1724 = arith.addf %1723, %7 : vector<1x9xf32>
    %1725 = vector.extract_strided_slice %1712 {offsets = [0, 0], sizes = [1, 6], strides = [1, 1]} : vector<1x9xf32> to vector<1x6xf32>
    %1726 = vector.extract_strided_slice %1724 {offsets = [0, 0], sizes = [1, 6], strides = [1, 1]} : vector<1x9xf32> to vector<1x6xf32>
    %1727 = arith.addf %1725, %1726 : vector<1x6xf32>
    %1728 = arith.negf %1727 : vector<1x6xf32>
    %1729 = math.exp %1728 : vector<1x6xf32>
    %cst_144 = arith.constant 1.000000e+00 : f32
    %1730 = vector.broadcast %cst_144 : f32 to vector<1x6xf32>
    %1731 = arith.addf %1730, %1729 : vector<1x6xf32>
    %1732 = arith.divf %1730, %1731 : vector<1x6xf32>
    %1733 = vector.extract_strided_slice %1712 {offsets = [0, 6], sizes = [1, 3], strides = [1, 1]} : vector<1x9xf32> to vector<1x3xf32>
    %1734 = vector.extract_strided_slice %1732 {offsets = [0, 0], sizes = [1, 3], strides = [1, 1]} : vector<1x6xf32> to vector<1x3xf32>
    %1735 = vector.extract_strided_slice %1724 {offsets = [0, 6], sizes = [1, 3], strides = [1, 1]} : vector<1x9xf32> to vector<1x3xf32>
    %1736 = arith.mulf %1734, %1735 : vector<1x3xf32>
    %1737 = arith.addf %1733, %1736 : vector<1x3xf32>
    %1738 = math.tanh %1737 : vector<1x3xf32>
    %1739 = vector.extract_strided_slice %1732 {offsets = [0, 3], sizes = [1, 3], strides = [1, 1]} : vector<1x6xf32> to vector<1x3xf32>
    %cst_145 = arith.constant 1.000000e+00 : f32
    %1740 = vector.broadcast %cst_145 : f32 to vector<1x3xf32>
    %1741 = arith.subf %1740, %1739 : vector<1x3xf32>
    %1742 = arith.mulf %1741, %1738 : vector<1x3xf32>
    %1743 = vector.extract_strided_slice %1732 {offsets = [0, 3], sizes = [1, 3], strides = [1, 1]} : vector<1x6xf32> to vector<1x3xf32>
    %1744 = arith.mulf %1743, %1699 : vector<1x3xf32>
    %1745 = arith.addf %1742, %1744 : vector<1x3xf32>
    %c0_i32_146 = arith.constant 0 : i32
    %1746 = vector.broadcast %c0_i32_146 : i32 to vector<8x1xi32>
    %1747 = arith.cmpi eq, %44, %1746 : vector<8x1xi32>
    %1748 = vector.shape_cast %1747 : vector<8x1xi1> to vector<8x1xi1>
    %1749 = vector.broadcast %1748 : vector<8x1xi1> to vector<8x3xi1>
    %1750 = vector.shape_cast %1745 : vector<1x3xf32> to vector<1x3xf32>
    %1751 = vector.broadcast %1750 : vector<1x3xf32> to vector<8x3xf32>
    %1752 = arith.select %1749, %1751, %1711 : vector<8x3xi1>, vector<8x3xf32>
    %1753 = vector.extract_strided_slice %1710 {offsets = [1, 0], sizes = [1, 9], strides = [1, 1]} : vector<8x9xf32> to vector<1x9xf32>
    %1754 = vector.extract_strided_slice %1745 {offsets = [0, 0], sizes = [1, 1], strides = [1, 1]} : vector<1x3xf32> to vector<1x1xf32>
    %1755 = vector.broadcast %1754 : vector<1x1xf32> to vector<1x9xf32>
    %1756 = arith.mulf %1755, %3 : vector<1x9xf32>
    %1757 = vector.extract_strided_slice %1745 {offsets = [0, 1], sizes = [1, 1], strides = [1, 1]} : vector<1x3xf32> to vector<1x1xf32>
    %1758 = vector.broadcast %1757 : vector<1x1xf32> to vector<1x9xf32>
    %1759 = arith.mulf %1758, %4 : vector<1x9xf32>
    %1760 = arith.addf %1756, %1759 : vector<1x9xf32>
    %1761 = vector.extract_strided_slice %1745 {offsets = [0, 2], sizes = [1, 1], strides = [1, 1]} : vector<1x3xf32> to vector<1x1xf32>
    %1762 = vector.broadcast %1761 : vector<1x1xf32> to vector<1x9xf32>
    %1763 = arith.mulf %1762, %5 : vector<1x9xf32>
    %1764 = arith.addf %1760, %1763 : vector<1x9xf32>
    %1765 = arith.addf %1764, %7 : vector<1x9xf32>
    %1766 = vector.extract_strided_slice %1753 {offsets = [0, 0], sizes = [1, 6], strides = [1, 1]} : vector<1x9xf32> to vector<1x6xf32>
    %1767 = vector.extract_strided_slice %1765 {offsets = [0, 0], sizes = [1, 6], strides = [1, 1]} : vector<1x9xf32> to vector<1x6xf32>
    %1768 = arith.addf %1766, %1767 : vector<1x6xf32>
    %1769 = arith.negf %1768 : vector<1x6xf32>
    %1770 = math.exp %1769 : vector<1x6xf32>
    %cst_147 = arith.constant 1.000000e+00 : f32
    %1771 = vector.broadcast %cst_147 : f32 to vector<1x6xf32>
    %1772 = arith.addf %1771, %1770 : vector<1x6xf32>
    %1773 = arith.divf %1771, %1772 : vector<1x6xf32>
    %1774 = vector.extract_strided_slice %1753 {offsets = [0, 6], sizes = [1, 3], strides = [1, 1]} : vector<1x9xf32> to vector<1x3xf32>
    %1775 = vector.extract_strided_slice %1773 {offsets = [0, 0], sizes = [1, 3], strides = [1, 1]} : vector<1x6xf32> to vector<1x3xf32>
    %1776 = vector.extract_strided_slice %1765 {offsets = [0, 6], sizes = [1, 3], strides = [1, 1]} : vector<1x9xf32> to vector<1x3xf32>
    %1777 = arith.mulf %1775, %1776 : vector<1x3xf32>
    %1778 = arith.addf %1774, %1777 : vector<1x3xf32>
    %1779 = math.tanh %1778 : vector<1x3xf32>
    %1780 = vector.extract_strided_slice %1773 {offsets = [0, 3], sizes = [1, 3], strides = [1, 1]} : vector<1x6xf32> to vector<1x3xf32>
    %cst_148 = arith.constant 1.000000e+00 : f32
    %1781 = vector.broadcast %cst_148 : f32 to vector<1x3xf32>
    %1782 = arith.subf %1781, %1780 : vector<1x3xf32>
    %1783 = arith.mulf %1782, %1779 : vector<1x3xf32>
    %1784 = vector.extract_strided_slice %1773 {offsets = [0, 3], sizes = [1, 3], strides = [1, 1]} : vector<1x6xf32> to vector<1x3xf32>
    %1785 = arith.mulf %1784, %1745 : vector<1x3xf32>
    %1786 = arith.addf %1783, %1785 : vector<1x3xf32>
    %c1_i32_149 = arith.constant 1 : i32
    %1787 = vector.broadcast %c1_i32_149 : i32 to vector<8x1xi32>
    %1788 = arith.cmpi eq, %44, %1787 : vector<8x1xi32>
    %1789 = vector.shape_cast %1788 : vector<8x1xi1> to vector<8x1xi1>
    %1790 = vector.broadcast %1789 : vector<8x1xi1> to vector<8x3xi1>
    %1791 = vector.shape_cast %1786 : vector<1x3xf32> to vector<1x3xf32>
    %1792 = vector.broadcast %1791 : vector<1x3xf32> to vector<8x3xf32>
    %1793 = arith.select %1790, %1792, %1752 : vector<8x3xi1>, vector<8x3xf32>
    %1794 = vector.extract_strided_slice %1710 {offsets = [2, 0], sizes = [1, 9], strides = [1, 1]} : vector<8x9xf32> to vector<1x9xf32>
    %1795 = vector.extract_strided_slice %1786 {offsets = [0, 0], sizes = [1, 1], strides = [1, 1]} : vector<1x3xf32> to vector<1x1xf32>
    %1796 = vector.broadcast %1795 : vector<1x1xf32> to vector<1x9xf32>
    %1797 = arith.mulf %1796, %3 : vector<1x9xf32>
    %1798 = vector.extract_strided_slice %1786 {offsets = [0, 1], sizes = [1, 1], strides = [1, 1]} : vector<1x3xf32> to vector<1x1xf32>
    %1799 = vector.broadcast %1798 : vector<1x1xf32> to vector<1x9xf32>
    %1800 = arith.mulf %1799, %4 : vector<1x9xf32>
    %1801 = arith.addf %1797, %1800 : vector<1x9xf32>
    %1802 = vector.extract_strided_slice %1786 {offsets = [0, 2], sizes = [1, 1], strides = [1, 1]} : vector<1x3xf32> to vector<1x1xf32>
    %1803 = vector.broadcast %1802 : vector<1x1xf32> to vector<1x9xf32>
    %1804 = arith.mulf %1803, %5 : vector<1x9xf32>
    %1805 = arith.addf %1801, %1804 : vector<1x9xf32>
    %1806 = arith.addf %1805, %7 : vector<1x9xf32>
    %1807 = vector.extract_strided_slice %1794 {offsets = [0, 0], sizes = [1, 6], strides = [1, 1]} : vector<1x9xf32> to vector<1x6xf32>
    %1808 = vector.extract_strided_slice %1806 {offsets = [0, 0], sizes = [1, 6], strides = [1, 1]} : vector<1x9xf32> to vector<1x6xf32>
    %1809 = arith.addf %1807, %1808 : vector<1x6xf32>
    %1810 = arith.negf %1809 : vector<1x6xf32>
    %1811 = math.exp %1810 : vector<1x6xf32>
    %cst_150 = arith.constant 1.000000e+00 : f32
    %1812 = vector.broadcast %cst_150 : f32 to vector<1x6xf32>
    %1813 = arith.addf %1812, %1811 : vector<1x6xf32>
    %1814 = arith.divf %1812, %1813 : vector<1x6xf32>
    %1815 = vector.extract_strided_slice %1794 {offsets = [0, 6], sizes = [1, 3], strides = [1, 1]} : vector<1x9xf32> to vector<1x3xf32>
    %1816 = vector.extract_strided_slice %1814 {offsets = [0, 0], sizes = [1, 3], strides = [1, 1]} : vector<1x6xf32> to vector<1x3xf32>
    %1817 = vector.extract_strided_slice %1806 {offsets = [0, 6], sizes = [1, 3], strides = [1, 1]} : vector<1x9xf32> to vector<1x3xf32>
    %1818 = arith.mulf %1816, %1817 : vector<1x3xf32>
    %1819 = arith.addf %1815, %1818 : vector<1x3xf32>
    %1820 = math.tanh %1819 : vector<1x3xf32>
    %1821 = vector.extract_strided_slice %1814 {offsets = [0, 3], sizes = [1, 3], strides = [1, 1]} : vector<1x6xf32> to vector<1x3xf32>
    %cst_151 = arith.constant 1.000000e+00 : f32
    %1822 = vector.broadcast %cst_151 : f32 to vector<1x3xf32>
    %1823 = arith.subf %1822, %1821 : vector<1x3xf32>
    %1824 = arith.mulf %1823, %1820 : vector<1x3xf32>
    %1825 = vector.extract_strided_slice %1814 {offsets = [0, 3], sizes = [1, 3], strides = [1, 1]} : vector<1x6xf32> to vector<1x3xf32>
    %1826 = arith.mulf %1825, %1786 : vector<1x3xf32>
    %1827 = arith.addf %1824, %1826 : vector<1x3xf32>
    %c2_i32_152 = arith.constant 2 : i32
    %1828 = vector.broadcast %c2_i32_152 : i32 to vector<8x1xi32>
    %1829 = arith.cmpi eq, %44, %1828 : vector<8x1xi32>
    %1830 = vector.shape_cast %1829 : vector<8x1xi1> to vector<8x1xi1>
    %1831 = vector.broadcast %1830 : vector<8x1xi1> to vector<8x3xi1>
    %1832 = vector.shape_cast %1827 : vector<1x3xf32> to vector<1x3xf32>
    %1833 = vector.broadcast %1832 : vector<1x3xf32> to vector<8x3xf32>
    %1834 = arith.select %1831, %1833, %1793 : vector<8x3xi1>, vector<8x3xf32>
    %1835 = vector.extract_strided_slice %1710 {offsets = [3, 0], sizes = [1, 9], strides = [1, 1]} : vector<8x9xf32> to vector<1x9xf32>
    %1836 = vector.extract_strided_slice %1827 {offsets = [0, 0], sizes = [1, 1], strides = [1, 1]} : vector<1x3xf32> to vector<1x1xf32>
    %1837 = vector.broadcast %1836 : vector<1x1xf32> to vector<1x9xf32>
    %1838 = arith.mulf %1837, %3 : vector<1x9xf32>
    %1839 = vector.extract_strided_slice %1827 {offsets = [0, 1], sizes = [1, 1], strides = [1, 1]} : vector<1x3xf32> to vector<1x1xf32>
    %1840 = vector.broadcast %1839 : vector<1x1xf32> to vector<1x9xf32>
    %1841 = arith.mulf %1840, %4 : vector<1x9xf32>
    %1842 = arith.addf %1838, %1841 : vector<1x9xf32>
    %1843 = vector.extract_strided_slice %1827 {offsets = [0, 2], sizes = [1, 1], strides = [1, 1]} : vector<1x3xf32> to vector<1x1xf32>
    %1844 = vector.broadcast %1843 : vector<1x1xf32> to vector<1x9xf32>
    %1845 = arith.mulf %1844, %5 : vector<1x9xf32>
    %1846 = arith.addf %1842, %1845 : vector<1x9xf32>
    %1847 = arith.addf %1846, %7 : vector<1x9xf32>
    %1848 = vector.extract_strided_slice %1835 {offsets = [0, 0], sizes = [1, 6], strides = [1, 1]} : vector<1x9xf32> to vector<1x6xf32>
    %1849 = vector.extract_strided_slice %1847 {offsets = [0, 0], sizes = [1, 6], strides = [1, 1]} : vector<1x9xf32> to vector<1x6xf32>
    %1850 = arith.addf %1848, %1849 : vector<1x6xf32>
    %1851 = arith.negf %1850 : vector<1x6xf32>
    %1852 = math.exp %1851 : vector<1x6xf32>
    %cst_153 = arith.constant 1.000000e+00 : f32
    %1853 = vector.broadcast %cst_153 : f32 to vector<1x6xf32>
    %1854 = arith.addf %1853, %1852 : vector<1x6xf32>
    %1855 = arith.divf %1853, %1854 : vector<1x6xf32>
    %1856 = vector.extract_strided_slice %1835 {offsets = [0, 6], sizes = [1, 3], strides = [1, 1]} : vector<1x9xf32> to vector<1x3xf32>
    %1857 = vector.extract_strided_slice %1855 {offsets = [0, 0], sizes = [1, 3], strides = [1, 1]} : vector<1x6xf32> to vector<1x3xf32>
    %1858 = vector.extract_strided_slice %1847 {offsets = [0, 6], sizes = [1, 3], strides = [1, 1]} : vector<1x9xf32> to vector<1x3xf32>
    %1859 = arith.mulf %1857, %1858 : vector<1x3xf32>
    %1860 = arith.addf %1856, %1859 : vector<1x3xf32>
    %1861 = math.tanh %1860 : vector<1x3xf32>
    %1862 = vector.extract_strided_slice %1855 {offsets = [0, 3], sizes = [1, 3], strides = [1, 1]} : vector<1x6xf32> to vector<1x3xf32>
    %cst_154 = arith.constant 1.000000e+00 : f32
    %1863 = vector.broadcast %cst_154 : f32 to vector<1x3xf32>
    %1864 = arith.subf %1863, %1862 : vector<1x3xf32>
    %1865 = arith.mulf %1864, %1861 : vector<1x3xf32>
    %1866 = vector.extract_strided_slice %1855 {offsets = [0, 3], sizes = [1, 3], strides = [1, 1]} : vector<1x6xf32> to vector<1x3xf32>
    %1867 = arith.mulf %1866, %1827 : vector<1x3xf32>
    %1868 = arith.addf %1865, %1867 : vector<1x3xf32>
    %c3_i32_155 = arith.constant 3 : i32
    %1869 = vector.broadcast %c3_i32_155 : i32 to vector<8x1xi32>
    %1870 = arith.cmpi eq, %44, %1869 : vector<8x1xi32>
    %1871 = vector.shape_cast %1870 : vector<8x1xi1> to vector<8x1xi1>
    %1872 = vector.broadcast %1871 : vector<8x1xi1> to vector<8x3xi1>
    %1873 = vector.shape_cast %1868 : vector<1x3xf32> to vector<1x3xf32>
    %1874 = vector.broadcast %1873 : vector<1x3xf32> to vector<8x3xf32>
    %1875 = arith.select %1872, %1874, %1834 : vector<8x3xi1>, vector<8x3xf32>
    %1876 = vector.extract_strided_slice %1710 {offsets = [4, 0], sizes = [1, 9], strides = [1, 1]} : vector<8x9xf32> to vector<1x9xf32>
    %1877 = vector.extract_strided_slice %1868 {offsets = [0, 0], sizes = [1, 1], strides = [1, 1]} : vector<1x3xf32> to vector<1x1xf32>
    %1878 = vector.broadcast %1877 : vector<1x1xf32> to vector<1x9xf32>
    %1879 = arith.mulf %1878, %3 : vector<1x9xf32>
    %1880 = vector.extract_strided_slice %1868 {offsets = [0, 1], sizes = [1, 1], strides = [1, 1]} : vector<1x3xf32> to vector<1x1xf32>
    %1881 = vector.broadcast %1880 : vector<1x1xf32> to vector<1x9xf32>
    %1882 = arith.mulf %1881, %4 : vector<1x9xf32>
    %1883 = arith.addf %1879, %1882 : vector<1x9xf32>
    %1884 = vector.extract_strided_slice %1868 {offsets = [0, 2], sizes = [1, 1], strides = [1, 1]} : vector<1x3xf32> to vector<1x1xf32>
    %1885 = vector.broadcast %1884 : vector<1x1xf32> to vector<1x9xf32>
    %1886 = arith.mulf %1885, %5 : vector<1x9xf32>
    %1887 = arith.addf %1883, %1886 : vector<1x9xf32>
    %1888 = arith.addf %1887, %7 : vector<1x9xf32>
    %1889 = vector.extract_strided_slice %1876 {offsets = [0, 0], sizes = [1, 6], strides = [1, 1]} : vector<1x9xf32> to vector<1x6xf32>
    %1890 = vector.extract_strided_slice %1888 {offsets = [0, 0], sizes = [1, 6], strides = [1, 1]} : vector<1x9xf32> to vector<1x6xf32>
    %1891 = arith.addf %1889, %1890 : vector<1x6xf32>
    %1892 = arith.negf %1891 : vector<1x6xf32>
    %1893 = math.exp %1892 : vector<1x6xf32>
    %cst_156 = arith.constant 1.000000e+00 : f32
    %1894 = vector.broadcast %cst_156 : f32 to vector<1x6xf32>
    %1895 = arith.addf %1894, %1893 : vector<1x6xf32>
    %1896 = arith.divf %1894, %1895 : vector<1x6xf32>
    %1897 = vector.extract_strided_slice %1876 {offsets = [0, 6], sizes = [1, 3], strides = [1, 1]} : vector<1x9xf32> to vector<1x3xf32>
    %1898 = vector.extract_strided_slice %1896 {offsets = [0, 0], sizes = [1, 3], strides = [1, 1]} : vector<1x6xf32> to vector<1x3xf32>
    %1899 = vector.extract_strided_slice %1888 {offsets = [0, 6], sizes = [1, 3], strides = [1, 1]} : vector<1x9xf32> to vector<1x3xf32>
    %1900 = arith.mulf %1898, %1899 : vector<1x3xf32>
    %1901 = arith.addf %1897, %1900 : vector<1x3xf32>
    %1902 = math.tanh %1901 : vector<1x3xf32>
    %1903 = vector.extract_strided_slice %1896 {offsets = [0, 3], sizes = [1, 3], strides = [1, 1]} : vector<1x6xf32> to vector<1x3xf32>
    %cst_157 = arith.constant 1.000000e+00 : f32
    %1904 = vector.broadcast %cst_157 : f32 to vector<1x3xf32>
    %1905 = arith.subf %1904, %1903 : vector<1x3xf32>
    %1906 = arith.mulf %1905, %1902 : vector<1x3xf32>
    %1907 = vector.extract_strided_slice %1896 {offsets = [0, 3], sizes = [1, 3], strides = [1, 1]} : vector<1x6xf32> to vector<1x3xf32>
    %1908 = arith.mulf %1907, %1868 : vector<1x3xf32>
    %1909 = arith.addf %1906, %1908 : vector<1x3xf32>
    %c4_i32_158 = arith.constant 4 : i32
    %1910 = vector.broadcast %c4_i32_158 : i32 to vector<8x1xi32>
    %1911 = arith.cmpi eq, %44, %1910 : vector<8x1xi32>
    %1912 = vector.shape_cast %1911 : vector<8x1xi1> to vector<8x1xi1>
    %1913 = vector.broadcast %1912 : vector<8x1xi1> to vector<8x3xi1>
    %1914 = vector.shape_cast %1909 : vector<1x3xf32> to vector<1x3xf32>
    %1915 = vector.broadcast %1914 : vector<1x3xf32> to vector<8x3xf32>
    %1916 = arith.select %1913, %1915, %1875 : vector<8x3xi1>, vector<8x3xf32>
    %1917 = vector.extract_strided_slice %1710 {offsets = [5, 0], sizes = [1, 9], strides = [1, 1]} : vector<8x9xf32> to vector<1x9xf32>
    %1918 = vector.extract_strided_slice %1909 {offsets = [0, 0], sizes = [1, 1], strides = [1, 1]} : vector<1x3xf32> to vector<1x1xf32>
    %1919 = vector.broadcast %1918 : vector<1x1xf32> to vector<1x9xf32>
    %1920 = arith.mulf %1919, %3 : vector<1x9xf32>
    %1921 = vector.extract_strided_slice %1909 {offsets = [0, 1], sizes = [1, 1], strides = [1, 1]} : vector<1x3xf32> to vector<1x1xf32>
    %1922 = vector.broadcast %1921 : vector<1x1xf32> to vector<1x9xf32>
    %1923 = arith.mulf %1922, %4 : vector<1x9xf32>
    %1924 = arith.addf %1920, %1923 : vector<1x9xf32>
    %1925 = vector.extract_strided_slice %1909 {offsets = [0, 2], sizes = [1, 1], strides = [1, 1]} : vector<1x3xf32> to vector<1x1xf32>
    %1926 = vector.broadcast %1925 : vector<1x1xf32> to vector<1x9xf32>
    %1927 = arith.mulf %1926, %5 : vector<1x9xf32>
    %1928 = arith.addf %1924, %1927 : vector<1x9xf32>
    %1929 = arith.addf %1928, %7 : vector<1x9xf32>
    %1930 = vector.extract_strided_slice %1917 {offsets = [0, 0], sizes = [1, 6], strides = [1, 1]} : vector<1x9xf32> to vector<1x6xf32>
    %1931 = vector.extract_strided_slice %1929 {offsets = [0, 0], sizes = [1, 6], strides = [1, 1]} : vector<1x9xf32> to vector<1x6xf32>
    %1932 = arith.addf %1930, %1931 : vector<1x6xf32>
    %1933 = arith.negf %1932 : vector<1x6xf32>
    %1934 = math.exp %1933 : vector<1x6xf32>
    %cst_159 = arith.constant 1.000000e+00 : f32
    %1935 = vector.broadcast %cst_159 : f32 to vector<1x6xf32>
    %1936 = arith.addf %1935, %1934 : vector<1x6xf32>
    %1937 = arith.divf %1935, %1936 : vector<1x6xf32>
    %1938 = vector.extract_strided_slice %1917 {offsets = [0, 6], sizes = [1, 3], strides = [1, 1]} : vector<1x9xf32> to vector<1x3xf32>
    %1939 = vector.extract_strided_slice %1937 {offsets = [0, 0], sizes = [1, 3], strides = [1, 1]} : vector<1x6xf32> to vector<1x3xf32>
    %1940 = vector.extract_strided_slice %1929 {offsets = [0, 6], sizes = [1, 3], strides = [1, 1]} : vector<1x9xf32> to vector<1x3xf32>
    %1941 = arith.mulf %1939, %1940 : vector<1x3xf32>
    %1942 = arith.addf %1938, %1941 : vector<1x3xf32>
    %1943 = math.tanh %1942 : vector<1x3xf32>
    %1944 = vector.extract_strided_slice %1937 {offsets = [0, 3], sizes = [1, 3], strides = [1, 1]} : vector<1x6xf32> to vector<1x3xf32>
    %cst_160 = arith.constant 1.000000e+00 : f32
    %1945 = vector.broadcast %cst_160 : f32 to vector<1x3xf32>
    %1946 = arith.subf %1945, %1944 : vector<1x3xf32>
    %1947 = arith.mulf %1946, %1943 : vector<1x3xf32>
    %1948 = vector.extract_strided_slice %1937 {offsets = [0, 3], sizes = [1, 3], strides = [1, 1]} : vector<1x6xf32> to vector<1x3xf32>
    %1949 = arith.mulf %1948, %1909 : vector<1x3xf32>
    %1950 = arith.addf %1947, %1949 : vector<1x3xf32>
    %c5_i32_161 = arith.constant 5 : i32
    %1951 = vector.broadcast %c5_i32_161 : i32 to vector<8x1xi32>
    %1952 = arith.cmpi eq, %44, %1951 : vector<8x1xi32>
    %1953 = vector.shape_cast %1952 : vector<8x1xi1> to vector<8x1xi1>
    %1954 = vector.broadcast %1953 : vector<8x1xi1> to vector<8x3xi1>
    %1955 = vector.shape_cast %1950 : vector<1x3xf32> to vector<1x3xf32>
    %1956 = vector.broadcast %1955 : vector<1x3xf32> to vector<8x3xf32>
    %1957 = arith.select %1954, %1956, %1916 : vector<8x3xi1>, vector<8x3xf32>
    %1958 = vector.extract_strided_slice %1710 {offsets = [6, 0], sizes = [1, 9], strides = [1, 1]} : vector<8x9xf32> to vector<1x9xf32>
    %1959 = vector.extract_strided_slice %1950 {offsets = [0, 0], sizes = [1, 1], strides = [1, 1]} : vector<1x3xf32> to vector<1x1xf32>
    %1960 = vector.broadcast %1959 : vector<1x1xf32> to vector<1x9xf32>
    %1961 = arith.mulf %1960, %3 : vector<1x9xf32>
    %1962 = vector.extract_strided_slice %1950 {offsets = [0, 1], sizes = [1, 1], strides = [1, 1]} : vector<1x3xf32> to vector<1x1xf32>
    %1963 = vector.broadcast %1962 : vector<1x1xf32> to vector<1x9xf32>
    %1964 = arith.mulf %1963, %4 : vector<1x9xf32>
    %1965 = arith.addf %1961, %1964 : vector<1x9xf32>
    %1966 = vector.extract_strided_slice %1950 {offsets = [0, 2], sizes = [1, 1], strides = [1, 1]} : vector<1x3xf32> to vector<1x1xf32>
    %1967 = vector.broadcast %1966 : vector<1x1xf32> to vector<1x9xf32>
    %1968 = arith.mulf %1967, %5 : vector<1x9xf32>
    %1969 = arith.addf %1965, %1968 : vector<1x9xf32>
    %1970 = arith.addf %1969, %7 : vector<1x9xf32>
    %1971 = vector.extract_strided_slice %1958 {offsets = [0, 0], sizes = [1, 6], strides = [1, 1]} : vector<1x9xf32> to vector<1x6xf32>
    %1972 = vector.extract_strided_slice %1970 {offsets = [0, 0], sizes = [1, 6], strides = [1, 1]} : vector<1x9xf32> to vector<1x6xf32>
    %1973 = arith.addf %1971, %1972 : vector<1x6xf32>
    %1974 = arith.negf %1973 : vector<1x6xf32>
    %1975 = math.exp %1974 : vector<1x6xf32>
    %cst_162 = arith.constant 1.000000e+00 : f32
    %1976 = vector.broadcast %cst_162 : f32 to vector<1x6xf32>
    %1977 = arith.addf %1976, %1975 : vector<1x6xf32>
    %1978 = arith.divf %1976, %1977 : vector<1x6xf32>
    %1979 = vector.extract_strided_slice %1958 {offsets = [0, 6], sizes = [1, 3], strides = [1, 1]} : vector<1x9xf32> to vector<1x3xf32>
    %1980 = vector.extract_strided_slice %1978 {offsets = [0, 0], sizes = [1, 3], strides = [1, 1]} : vector<1x6xf32> to vector<1x3xf32>
    %1981 = vector.extract_strided_slice %1970 {offsets = [0, 6], sizes = [1, 3], strides = [1, 1]} : vector<1x9xf32> to vector<1x3xf32>
    %1982 = arith.mulf %1980, %1981 : vector<1x3xf32>
    %1983 = arith.addf %1979, %1982 : vector<1x3xf32>
    %1984 = math.tanh %1983 : vector<1x3xf32>
    %1985 = vector.extract_strided_slice %1978 {offsets = [0, 3], sizes = [1, 3], strides = [1, 1]} : vector<1x6xf32> to vector<1x3xf32>
    %cst_163 = arith.constant 1.000000e+00 : f32
    %1986 = vector.broadcast %cst_163 : f32 to vector<1x3xf32>
    %1987 = arith.subf %1986, %1985 : vector<1x3xf32>
    %1988 = arith.mulf %1987, %1984 : vector<1x3xf32>
    %1989 = vector.extract_strided_slice %1978 {offsets = [0, 3], sizes = [1, 3], strides = [1, 1]} : vector<1x6xf32> to vector<1x3xf32>
    %1990 = arith.mulf %1989, %1950 : vector<1x3xf32>
    %1991 = arith.addf %1988, %1990 : vector<1x3xf32>
    %c6_i32_164 = arith.constant 6 : i32
    %1992 = vector.broadcast %c6_i32_164 : i32 to vector<8x1xi32>
    %1993 = arith.cmpi eq, %44, %1992 : vector<8x1xi32>
    %1994 = vector.shape_cast %1993 : vector<8x1xi1> to vector<8x1xi1>
    %1995 = vector.broadcast %1994 : vector<8x1xi1> to vector<8x3xi1>
    %1996 = vector.shape_cast %1991 : vector<1x3xf32> to vector<1x3xf32>
    %1997 = vector.broadcast %1996 : vector<1x3xf32> to vector<8x3xf32>
    %1998 = arith.select %1995, %1997, %1957 : vector<8x3xi1>, vector<8x3xf32>
    %1999 = vector.extract_strided_slice %1710 {offsets = [7, 0], sizes = [1, 9], strides = [1, 1]} : vector<8x9xf32> to vector<1x9xf32>
    %2000 = vector.extract_strided_slice %1991 {offsets = [0, 0], sizes = [1, 1], strides = [1, 1]} : vector<1x3xf32> to vector<1x1xf32>
    %2001 = vector.broadcast %2000 : vector<1x1xf32> to vector<1x9xf32>
    %2002 = arith.mulf %2001, %3 : vector<1x9xf32>
    %2003 = vector.extract_strided_slice %1991 {offsets = [0, 1], sizes = [1, 1], strides = [1, 1]} : vector<1x3xf32> to vector<1x1xf32>
    %2004 = vector.broadcast %2003 : vector<1x1xf32> to vector<1x9xf32>
    %2005 = arith.mulf %2004, %4 : vector<1x9xf32>
    %2006 = arith.addf %2002, %2005 : vector<1x9xf32>
    %2007 = vector.extract_strided_slice %1991 {offsets = [0, 2], sizes = [1, 1], strides = [1, 1]} : vector<1x3xf32> to vector<1x1xf32>
    %2008 = vector.broadcast %2007 : vector<1x1xf32> to vector<1x9xf32>
    %2009 = arith.mulf %2008, %5 : vector<1x9xf32>
    %2010 = arith.addf %2006, %2009 : vector<1x9xf32>
    %2011 = arith.addf %2010, %7 : vector<1x9xf32>
    %2012 = vector.extract_strided_slice %1999 {offsets = [0, 0], sizes = [1, 6], strides = [1, 1]} : vector<1x9xf32> to vector<1x6xf32>
    %2013 = vector.extract_strided_slice %2011 {offsets = [0, 0], sizes = [1, 6], strides = [1, 1]} : vector<1x9xf32> to vector<1x6xf32>
    %2014 = arith.addf %2012, %2013 : vector<1x6xf32>
    %2015 = arith.negf %2014 : vector<1x6xf32>
    %2016 = math.exp %2015 : vector<1x6xf32>
    %cst_165 = arith.constant 1.000000e+00 : f32
    %2017 = vector.broadcast %cst_165 : f32 to vector<1x6xf32>
    %2018 = arith.addf %2017, %2016 : vector<1x6xf32>
    %2019 = arith.divf %2017, %2018 : vector<1x6xf32>
    %2020 = vector.extract_strided_slice %1999 {offsets = [0, 6], sizes = [1, 3], strides = [1, 1]} : vector<1x9xf32> to vector<1x3xf32>
    %2021 = vector.extract_strided_slice %2019 {offsets = [0, 0], sizes = [1, 3], strides = [1, 1]} : vector<1x6xf32> to vector<1x3xf32>
    %2022 = vector.extract_strided_slice %2011 {offsets = [0, 6], sizes = [1, 3], strides = [1, 1]} : vector<1x9xf32> to vector<1x3xf32>
    %2023 = arith.mulf %2021, %2022 : vector<1x3xf32>
    %2024 = arith.addf %2020, %2023 : vector<1x3xf32>
    %2025 = math.tanh %2024 : vector<1x3xf32>
    %2026 = vector.extract_strided_slice %2019 {offsets = [0, 3], sizes = [1, 3], strides = [1, 1]} : vector<1x6xf32> to vector<1x3xf32>
    %cst_166 = arith.constant 1.000000e+00 : f32
    %2027 = vector.broadcast %cst_166 : f32 to vector<1x3xf32>
    %2028 = arith.subf %2027, %2026 : vector<1x3xf32>
    %2029 = arith.mulf %2028, %2025 : vector<1x3xf32>
    %2030 = vector.extract_strided_slice %2019 {offsets = [0, 3], sizes = [1, 3], strides = [1, 1]} : vector<1x6xf32> to vector<1x3xf32>
    %2031 = arith.mulf %2030, %1991 : vector<1x3xf32>
    %2032 = arith.addf %2029, %2031 : vector<1x3xf32>
    %c7_i32_167 = arith.constant 7 : i32
    %2033 = vector.broadcast %c7_i32_167 : i32 to vector<8x1xi32>
    %2034 = arith.cmpi eq, %44, %2033 : vector<8x1xi32>
    %2035 = vector.shape_cast %2034 : vector<8x1xi1> to vector<8x1xi1>
    %2036 = vector.broadcast %2035 : vector<8x1xi1> to vector<8x3xi1>
    %2037 = vector.shape_cast %2032 : vector<1x3xf32> to vector<1x3xf32>
    %2038 = vector.broadcast %2037 : vector<1x3xf32> to vector<8x3xf32>
    %2039 = arith.select %2036, %2038, %1998 : vector<8x3xi1>, vector<8x3xf32>
    %c40 = arith.constant 40 : index
    %c0_168 = arith.constant 0 : index
    %2040 = vector.load %arg4[%c40, %c0_168] : memref<48x384xf32, #tpu.memory_space<vmem>>, vector<8x384xf32>
    %cst_169 = arith.constant dense<0.000000e+00> : vector<3x384xf32>
    %2041 = tpu.matmul %2039, %2040, %cst_169 {dimension_numbers = #tpu.dot_dimension_numbers<[0], [0], [1], [1], [0, 1, 1, 1], [], []>} : vector<8x3xf32>, vector<8x384xf32>, vector<3x384xf32> -> vector<3x384xf32>
    %2042 = arith.addf %1709, %2041 : vector<3x384xf32>
    %2043 = vector.extract_strided_slice %2042 {offsets = [0, 0], sizes = [3, 97], strides = [1, 1]} : vector<3x384xf32> to vector<3x97xf32>
    %2044 = vector.extract_strided_slice %2042 {offsets = [0, 128], sizes = [3, 97], strides = [1, 1]} : vector<3x384xf32> to vector<3x97xf32>
    %2045 = vector.extract_strided_slice %2042 {offsets = [0, 256], sizes = [3, 97], strides = [1, 1]} : vector<3x384xf32> to vector<3x97xf32>
    %cst_170 = arith.constant dense<0.000000e+00> : vector<3x3xf32>
    %2046 = tpu.matmul %2043, %2044, %cst_170 {dimension_numbers = #tpu.dot_dimension_numbers<[1], [1], [0], [0], [0, 0, 1, 0], [], []>} : vector<3x97xf32>, vector<3x97xf32>, vector<3x3xf32> -> vector<3x3xf32>
    %cst_171 = arith.constant 0.10153462 : f32
    %2047 = vector.broadcast %cst_171 : f32 to vector<3x3xf32>
    %2048 = arith.mulf %2046, %2047 : vector<3x3xf32>
    %cst_172 = arith.constant dense<0xFF800000> : vector<3xf32>
    %2049 = vector.multi_reduction <maximumf>, %2048, %cst_172 [1] : vector<3x3xf32> to vector<3xf32>
    %2050 = vector.shape_cast %2049 : vector<3xf32> to vector<3x1xf32>
    %2051 = vector.broadcast %2050 : vector<3x1xf32> to vector<3x3xf32>
    %2052 = arith.subf %2048, %2051 : vector<3x3xf32>
    %2053 = math.exp %2052 : vector<3x3xf32>
    %cst_173 = arith.constant dense<0.000000e+00> : vector<3xf32>
    %2054 = vector.multi_reduction <add>, %2053, %cst_173 [1] : vector<3x3xf32> to vector<3xf32>
    %2055 = vector.shape_cast %2054 : vector<3xf32> to vector<3x1xf32>
    %2056 = tpu.reciprocal %2055 {approx = true} : vector<3x1xf32> -> vector<3x1xf32>
    %2057 = vector.broadcast %2056 : vector<3x1xf32> to vector<3x3xf32>
    %2058 = arith.mulf %2053, %2057 : vector<3x3xf32>
    %cst_174 = arith.constant dense<0.000000e+00> : vector<3x97xf32>
    %2059 = tpu.matmul %2058, %2045, %cst_174 {dimension_numbers = #tpu.dot_dimension_numbers<[1], [0], [0], [1], [0, 0, 1, 1], [], []>} : vector<3x3xf32>, vector<3x97xf32>, vector<3x97xf32> -> vector<3x97xf32>
    %c0_175 = arith.constant 0 : index
    %c0_176 = arith.constant 0 : index
    %2060 = vector.load %arg6[%c0_175, %c0_176] : memref<98x97xf32, #tpu.memory_space<vmem>>, vector<97x97xf32>
    %cst_177 = arith.constant dense<0.000000e+00> : vector<3x97xf32>
    %2061 = tpu.matmul %2059, %2060, %cst_177 {dimension_numbers = #tpu.dot_dimension_numbers<[1], [0], [0], [1], [0, 0, 1, 1], [], []>} : vector<3x97xf32>, vector<97x97xf32>, vector<3x97xf32> -> vector<3x97xf32>
    %c97 = arith.constant 97 : index
    %c0_178 = arith.constant 0 : index
    %2062 = vector.load %arg6[%c97, %c0_178] : memref<98x97xf32, #tpu.memory_space<vmem>>, vector<1x97xf32>
    %2063 = vector.broadcast %2062 : vector<1x97xf32> to vector<3x97xf32>
    %2064 = arith.addf %2061, %2063 : vector<3x97xf32>
    %2065 = vector.extract_strided_slice %2064 {offsets = [0, 0], sizes = [1, 97], strides = [1, 1]} : vector<3x97xf32> to vector<1x97xf32>
    %c0_179 = arith.constant 0 : index
    %c0_180 = arith.constant 0 : index
    %c0_181 = arith.constant 0 : index
    %2066 = vector.load %arg7[%c0_179, %c0_180, %c0_181] : memref<3x97x256xf32, #tpu.memory_space<vmem>>, vector<1x97x256xf32>
    %2067 = vector.shape_cast %2066 : vector<1x97x256xf32> to vector<97x256xf32>
    %cst_182 = arith.constant dense<0.000000e+00> : vector<1x256xf32>
    %2068 = tpu.matmul %2065, %2067, %cst_182 {dimension_numbers = #tpu.dot_dimension_numbers<[1], [0], [0], [1], [0, 0, 1, 1], [], []>} : vector<1x97xf32>, vector<97x256xf32>, vector<1x256xf32> -> vector<1x256xf32>
    %2069 = vector.extract_strided_slice %2064 {offsets = [1, 0], sizes = [1, 97], strides = [1, 1]} : vector<3x97xf32> to vector<1x97xf32>
    %c1_183 = arith.constant 1 : index
    %c0_184 = arith.constant 0 : index
    %c0_185 = arith.constant 0 : index
    %2070 = vector.load %arg7[%c1_183, %c0_184, %c0_185] : memref<3x97x256xf32, #tpu.memory_space<vmem>>, vector<1x97x256xf32>
    %2071 = vector.shape_cast %2070 : vector<1x97x256xf32> to vector<97x256xf32>
    %cst_186 = arith.constant dense<0.000000e+00> : vector<1x256xf32>
    %2072 = tpu.matmul %2069, %2071, %cst_186 {dimension_numbers = #tpu.dot_dimension_numbers<[1], [0], [0], [1], [0, 0, 1, 1], [], []>} : vector<1x97xf32>, vector<97x256xf32>, vector<1x256xf32> -> vector<1x256xf32>
    %2073 = arith.addf %2068, %2072 : vector<1x256xf32>
    %2074 = vector.extract_strided_slice %2064 {offsets = [2, 0], sizes = [1, 97], strides = [1, 1]} : vector<3x97xf32> to vector<1x97xf32>
    %c2 = arith.constant 2 : index
    %c0_187 = arith.constant 0 : index
    %c0_188 = arith.constant 0 : index
    %2075 = vector.load %arg7[%c2, %c0_187, %c0_188] : memref<3x97x256xf32, #tpu.memory_space<vmem>>, vector<1x97x256xf32>
    %2076 = vector.shape_cast %2075 : vector<1x97x256xf32> to vector<97x256xf32>
    %cst_189 = arith.constant dense<0.000000e+00> : vector<1x256xf32>
    %2077 = tpu.matmul %2074, %2076, %cst_189 {dimension_numbers = #tpu.dot_dimension_numbers<[1], [0], [0], [1], [0, 0, 1, 1], [], []>} : vector<1x97xf32>, vector<97x256xf32>, vector<1x256xf32> -> vector<1x256xf32>
    %2078 = arith.addf %2073, %2077 : vector<1x256xf32>
    %c0_190 = arith.constant 0 : index
    %c0_191 = arith.constant 0 : index
    %2079 = vector.load %arg8[%c0_190, %c0_191] : memref<1x256xf32, #tpu.memory_space<vmem>>, vector<1x256xf32>
    %2080 = arith.addf %2078, %2079 : vector<1x256xf32>
    %2081 = arith.negf %2080 : vector<1x256xf32>
    %2082 = math.exp %2081 : vector<1x256xf32>
    %cst_192 = arith.constant 1.000000e+00 : f32
    %2083 = vector.broadcast %cst_192 : f32 to vector<1x256xf32>
    %2084 = arith.addf %2083, %2082 : vector<1x256xf32>
    %2085 = arith.divf %2083, %2084 : vector<1x256xf32>
    %c0_193 = arith.constant 0 : index
    %c0_194 = arith.constant 0 : index
    %c0_195 = arith.constant 0 : index
    %2086 = vector.load %arg9[%c0_193, %c0_194, %c0_195] : memref<1x1x256xf32, #tpu.memory_space<vmem>>, vector<1x1x256xf32>
    %2087 = vector.shape_cast %2086 : vector<1x1x256xf32> to vector<1x256xf32>
    %2088 = vector.shape_cast %2085 : vector<1x256xf32> to vector<1x1x256xf32>
    tpu.vector_store %arg9[%c0_193, %c0_194, %c0_195], %2088 {strides = array<i32>} : memref<1x1x256xf32, #tpu.memory_space<vmem>>, vector<1x1x256xf32>,
    return
  }
  func.func @transform_0(%arg0: i32) -> (i32, i32, i32) {
    %c0_i32 = arith.constant 0 : i32
    %c0_i32_0 = arith.constant 0 : i32
    %c0_i32_1 = arith.constant 0 : i32
    return %arg0, %c0_i32, %c0_i32_0 : i32, i32, i32
  }
  func.func @transform_1(%arg0: i32) -> (i32, i32, i32) {
    %c0_i32 = arith.constant 0 : i32
    %c0_i32_0 = arith.constant 0 : i32
    %c0_i32_1 = arith.constant 0 : i32
    return %arg0, %c0_i32, %c0_i32_0 : i32, i32, i32
  }
  func.func @transform_2(%arg0: i32) -> (i32, i32) {
    %c0_i32 = arith.constant 0 : i32
    %c0_i32_0 = arith.constant 0 : i32
    %c0_i32_1 = arith.constant 0 : i32
    return %c0_i32, %c0_i32_0 : i32, i32
  }
  func.func @transform_3(%arg0: i32) -> (i32, i32) {
    %c0_i32 = arith.constant 0 : i32
    %c0_i32_0 = arith.constant 0 : i32
    %c0_i32_1 = arith.constant 0 : i32
    return %c0_i32, %c0_i32_0 : i32, i32
  }
  func.func @transform_4(%arg0: i32) -> (i32, i32) {
    %c0_i32 = arith.constant 0 : i32
    %c0_i32_0 = arith.constant 0 : i32
    %c0_i32_1 = arith.constant 0 : i32
    return %c0_i32, %c0_i32_0 : i32, i32
  }
  func.func @transform_5(%arg0: i32) -> (i32, i32) {
    %c0_i32 = arith.constant 0 : i32
    %c0_i32_0 = arith.constant 0 : i32
    %c0_i32_1 = arith.constant 0 : i32
    return %c0_i32, %c0_i32_0 : i32, i32
  }
  func.func @transform_6(%arg0: i32) -> (i32, i32, i32) {
    %c0_i32 = arith.constant 0 : i32
    %c0_i32_0 = arith.constant 0 : i32
    %c0_i32_1 = arith.constant 0 : i32
    %c0_i32_2 = arith.constant 0 : i32
    return %c0_i32, %c0_i32_0, %c0_i32_1 : i32, i32, i32
  }
  func.func @transform_7(%arg0: i32) -> (i32, i32) {
    %c0_i32 = arith.constant 0 : i32
    %c0_i32_0 = arith.constant 0 : i32
    %c0_i32_1 = arith.constant 0 : i32
    return %c0_i32, %c0_i32_0 : i32, i32
  }
  func.func @transform_8(%arg0: i32) -> (i32, i32, i32) {
    %c0_i32 = arith.constant 0 : i32
    %c0_i32_0 = arith.constant 0 : i32
    %c0_i32_1 = arith.constant 0 : i32
    return %arg0, %c0_i32, %c0_i32_0 : i32, i32, i32
  }
}

</mosaic_0001>

<bundles_post_ra>
// kernel: fpe16_forward.1
= control target key start
LH: loop header
LB: loop body
LE: loop exit
PB: predicated region body
PF: predicated region fallthrough
CT: control target
= control target key end

     0   :  { %13 = vsyncpa [#allocation3], 0  ;;  %s6741_s0 = inlined_call_operand.vmem [shape: f32[4,3,48], index: 0, kind: input, shape index: {}]   ;;  %s6742_s1 = inlined_call_operand.vmem [shape: f32[4,1,3], index: 1, kind: input, shape index: {}]   ;;  %s6743_s2 = inlined_call_operand.vmem [shape: f32[8,16], index: 2, kind: input, shape index: {}]   ;;  %s6744_s3 = inlined_call_operand.hbm [shape: f32[48,384], index: 3, kind: input, shape index: {}]   ;;  %s6745_s4 = inlined_call_operand.vmem [shape: f32[2,384], index: 4, kind: input, shape index: {}]   ;;  %s6746_s5 = inlined_call_operand.hbm [shape: f32[98,97], index: 5, kind: input, shape index: {}]   ;;  %s6747_s6 = inlined_call_operand.hbm [shape: f32[3,97,256], index: 6, kind: input, shape index: {}]   ;;  %s6748_s7 = inlined_call_operand.vmem [shape: f32[1,256], index: 7, kind: input, shape index: {}]   ;;  %s6749_s8 = inlined_call_operand.vmem [shape: f32[4,1,256], index: 8, kind: output, shape index: {}]  }
   0x1   :  { %14 = vsyncpa [#allocation5], 0  ;;  %s5703_s27 = smov 0  }
   0x2 LB: > { %s260_s30 = sshll.u32 %s6746_s5, 4  ;;  %s5712_s9 = sadd.s32 4294967295, %s5635_s27   ;;  %s5635_s27 = sphi %s5703_s27, %s20_s27   ;;  %s261_s30 = int_to_ptr.hbm [resolvable:$true] %s260_s30 }
   0x3   : > { %p4903_p0 = scmp.ge.s32.totalorder %s5635_s27, 1  ;;  %p229_p1 = scmp.lt.s32.totalorder %s5635_s27, 5 }
   0x4   : > { %p5032_p2 = scmp.eq.s32.totalorder %s5712_s9, 0  ;;  %s5637_s11 = smov [#allocation4]  }
   0x5   : > { %p5717_p3 = pnand %p4903_p0, %p229_p1  ;;  %s262_s12 = sshll.u32 %s5637_s11, 4  ;;  %s263_s12 = int_to_ptr.vmem [resolvable:$true] %s262_s12 }
   0x6   : > { %s243_s15 = sshll.u32 %s6744_s3, 4  ;;  %s5638_s17 = smov [#allocation2]   ;;  %s244_s15 = int_to_ptr.hbm [resolvable:$true] %s243_s15 }
   0x7   : > { %p5022_p4 = pneg %p5717_p3  ;;  %s245_s18 = sshll.u32 %s5638_s17, 4  ;;  %s246_s18 = int_to_ptr.vmem [resolvable:$true] %s245_s18 }
   0x8   : > { %s5639_s19 = smov 128   ;;  %s5640_s20 = smov 8  }
   0x9   : > { %p5728_p5 = pnand %p5032_p2, %p5022_p4  ;;  %s274_s23 = sshll.u32 %s6747_s6, 4  ;;  %s275_s23 = int_to_ptr.hbm [resolvable:$true] %s274_s23 }
   0xa   : > { %s5641_s24 = smov 384   ;;  %s5642_s25 = smov 24  }
   0xb   : > { %5028 = dma.hbm_to_vmem [thread:$0]  (!%p5728_p5), %s261_s30, 1664, %s263_s12, [#allocation5], %s5639_s19, %s5639_s19, %s5640_s20  }
   0xc   : > { %5025 = dma.hbm_to_vmem [thread:$0]  (!%p5728_p5), %s244_s15, 2304, %s246_s18, [#allocation3], %s5641_s24, %s5641_s24, %s5642_s25  }
   0xd   : > { %s5643_s26 = smov [#allocation6]   ;;  %s5644_s29 = smov 256  }
   0xe   : > { %s276_s28 = sshll.u32 %s5643_s26, 4  ;;  %s5645_s11 = smov 16   ;;  %s277_s28 = int_to_ptr.vmem [resolvable:$true] %s276_s28 }
   0xf   : > { %5031 = dma.hbm_to_vmem [thread:$0]  (!%p5728_p5), %s275_s23, 9984, %s277_s28, [#allocation5], %s5644_s29, %s5644_s29, %s5645_s11  }
  0x10   : > { %308 = sbr.rel (%p5717_p3) target bundleno = 23372 (0x5b4c), region = 52 }
  0x15   : > { %5626 = dma.done.wait (%p5032_p2), [#allocation3], 2304  }
  0x16   : > { %5628 = vsyncadd (%p5032_p2), [#allocation3], 4294964992 }
  0x17   : > { %5630 = dma.done.wait (%p5032_p2), [#allocation5], 11648  }
  0x18   : > { %5632 = vsyncadd (%p5032_p2), [#allocation5], 4294955648  ;;  %p354_p6 = scmp.lt.s32.totalorder %s5712_s9, 3  ;;  %v5646_v0 = vmov 0   ;;  %v5647_v3 = vmov 1   ;;  %v5770_v4 = vld [vmem:[%s6743_s2] sm:$0xff] }
  0x19   : > { %5069 = vset.pattern.permute.xlu1 %v5646_v0  ;;  %vm418_vm0 = vcmask 1042432   ;;  %v5648_v5 = vmov 2   ;;  %vm399_vm1 = vcmask 23552   ;;  %v5784_v24 = vrot.slane %v5770_v4, 4  ;;  %s5649_s19 = smov 122   ;;  %s5650_s20 = smov 6  }
  0x1a   : > { %s6753_s9 = smov (!%p354_p6, %s5712_s9), 3  ;;  %4914 = vmatpush.msk.msra.mxu0 %vm418_vm0, %v5770_v4  ;;  %v5795_v31 = vperm.slane %v5770_v4, 6  ;;  %vm482_vm7 = vcmask 105568   ;;  %s5651_s21 = smov 3  }
  0x1b   : > { %s4912_s30 = sshll.u32 %s6753_s9, 2  ;;  %s5764_s16 = scalar_lea.vmem %s6742_s1, %s6753_s9 }
  0x1c   : > { %s357_s13 = scalar_lea.vmem %s6741_s0, %s4912_s30  ;;  %v660_v2 = vld [vmem:[%s5764_s16] sm:$0x1]  ;;  %s5652_s22 = smov 125  }
  0x1d   : > { %v365_v1 = vld [vmem:[%s357_s13] sm:$0x7]  ;;  %665 = vperm.xlu1 %5069, %v660_v2   ;;  %s5657_s10 = smov 119   ;;  %s4913_s18 = sshll.u32 %s6753_s9, 1 }
  0x1e   : > { %367 = vxpose.xlu0.b32.start.end [1/1] (short) (narrow) %v365_v1, 48 }
  0x25   : > { %5070 = vset.pattern.permute.xlu1 %v5648_v5 }
  0x26   : > { %681 = vperm.xlu1 %5070, %v660_v2  }
  0x85   : > { %5068 = vset.pattern.permute.xlu0 %v5647_v3 }
  0x8f   : > { %v666_v12 = vpop.permute.xlu1 %665 }
  0x90   : > { %v668_v16 = vperm.slane %v666_v12, 0 }
  0x92   : > { %v669_v20 = vmul.f32 %v668_v16, %v5770_v4 }
  0x98   : > { %v682_v13 = vpop.permute.xlu1 %681 }
  0x99   : > { %v684_v14 = vperm.slane %v682_v13, 0 }
  0x9b   : > { %v685_v18 = vmul.f32 %v684_v14, %v5770_v4 }
  0x9d   : > { %v687_v22 = vrot.slane %v685_v18, 2 }
  0xb4   : > { %671 = vperm.xlu0 %5068, %v660_v2  }
  0xc2   : > { %v383_v6 = vpop.trf.xlu0 }
  0xc3   : > { %4915 = vmatmul.msk.f32.vlgmr.msra.gmra.mxu0 %vm399_vm1, %v383_v6 }
  0xca   : > { %v384_v7 = vpop.trf.xlu0 }
  0xcb   : > { %4916 = vmatmul.msk.f32.gmra.mxu0 %vm399_vm1, %v384_v7 }
  0xd2   : > { %v385_v8 = vpop.trf.xlu0 }
  0xd3   : > { %4917 = vmatmul.msk.f32.gmra.mxu0 %vm399_vm1, %v385_v8 }
  0xda   : > { %v386_v9 = vpop.trf.xlu0 }
  0xdb   : > { %4918 = vmatmul.msk.f32.gmra.mxu0 %vm399_vm1, %v386_v9 }
  0xe2   : > { %v387_v10 = vpop.trf.xlu0 }
  0xe3   : > { %4919 = vmatmul.msk.f32.gmra.mxu0 %vm399_vm1, %v387_v10 }
  0xea   : > { %v388_v11 = vpop.trf.xlu0 }
  0xeb   : > { %4920 = vmatmul.msk.f32.gmra.mxu0 %vm399_vm1, %v388_v11 }
 0x126   : > { %v672_v15 = vpop.permute.xlu0 %671 }
 0x127   : > { %v674_v17 = vperm.slane %v672_v15, 0 }
 0x129   : > { %v675_v19 = vmul.f32 %v674_v17, %v5770_v4 }
 0x12b   : > { %v677_v21 = vrot.slane %v675_v19, 1 }
 0x12d   : > { %v679_v23 = vadd.f32 %v677_v21, %v669_v20  ;;  %v5211_v21 = vld [vmem:[%s5764_s16] ss:$0 sm:$0xff] }
 0x12f   : > { %v689_v25 = vadd.f32 %v687_v22, %v679_v23 }
 0x131   : > { %v692_v26 = vadd.f32 %v5784_v24, %v689_v25 }
 0x133   : > { %v694_v27 = vrot.slane %v692_v26, 3  ;;  %v5653_v26 = vmov 4  }
 0x134   : > { %5072 = vset.pattern.permute.xlu2 %v5653_v26  ;;  %5085 = vset.pattern.permute.xlu0 %v5653_v26 }
 0x135   : > { %716 = vrot.lane.b32.xlu2 %v694_v27, %s5649_s19 }
 0x140   : > { %v5788_v28 = vpop.f32.mrf.mxu0 }
 0x141   : > { %v5801_v33 = vadd.f32 %v5795_v31, %v5788_v28  ;;  %v470_v36 = vmul.f32 0.01, %v5788_v28  ;;  %vm464_vm2 = vcmp.ge.f32.partialorder %v5788_v28, 0.0 }
 0x143   : > { %v696_v34 = vadd.f32 %v694_v27, %v5801_v33  ;;  %v5817_v42 = vsel %vm464_vm2, %v5788_v28, %v470_v36  ;;  %v5654_v27 = vmov 3  }
 0x144   : > { %v483_v47 = vsel %vm482_vm7, %v5817_v42, -inf  ;;  %5071 = vset.pattern.permute.xlu1 %v5654_v27 }
 0x145   : > { %v4922_v38 = vmul.f32 -1.442695, %v696_v34 }
 0x147   : > { %5213 = vpow2.f32 %v4922_v38 }
 0x148   : > { %v5790_v29 = vpop.f32.mrf.mxu0 }
 0x149   : > { %v471_v39 = vmul.f32 0.01, %v5790_v29  ;;  %vm465_vm4 = vcmp.ge.f32.partialorder %v5790_v29, 0.0 }
 0x14b   : > { %v5823_v44 = vsel %vm465_vm4, %v5790_v29, %v471_v39 }
 0x14c   : > { %v484_v51 = vsel %vm482_vm7, %v5823_v44, -inf }
 0x14d   : > { %v5214_v56 = vpop.eup %5213 }
 0x14e   : > { %v700_v61 = vadd.f32 1.0, %v5214_v56 }
 0x150   : > { %v5792_v30 = vpop.f32.mrf.mxu0  ;;  %5215 = vrcp.f32 %v700_v61  ;;  %v712_v14 = vand.u32 2147483648, %v700_v61  ;;  %vm706_vm10 = vweird.f32 %v700_v61  ;;  %v710_v15 = vand.u32 2147483647, %v700_v61 }
 0x151   : > { %v472_v40 = vmul.f32 0.01, %v5792_v30  ;;  %vm466_vm5 = vcmp.ge.f32.partialorder %v5792_v30, 0.0 }
 0x152   : > { %v713_v17 = vor.u32 1.1754944e-38, %v712_v14  ;;  %vm711_vm12 = vcmp.eq.f32.partialorder %v710_v15, 8.507059e+37 }
 0x153   : > { %v5826_v45 = vsel %vm466_vm5, %v5792_v30, %v472_v40 }
 0x154   : > { %v485_v52 = vsel %vm482_vm7, %v5826_v45, -inf }
 0x156   : > { %v5216_v3 = vpop.eup %5215 }
 0x157   : > { %v702_v7 = vmul.f32 %v5216_v3, %v700_v61  ;;  %vm707_vm9 = vweird.f32 %v5216_v3 }
 0x158   : > { %v5797_v32 = vpop.f32.mrf.mxu0  ;;  %vm708_vm11 = vmor %vm706_vm10, %vm707_vm9 }
 0x159   : > { %v473_v41 = vmul.f32 0.01, %v5797_v32  ;;  %vm467_vm6 = vcmp.ge.f32.partialorder %v5797_v32, 0.0  ;;  %v703_v11 = vsub.f32 1.0, %v702_v7 }
 0x15b   : > { %v5829_v46 = vsel %vm467_vm6, %v5797_v32, %v473_v41  ;;  %v704_v12 = vmul.f32 %v5216_v3, %v703_v11  ;;  %v5655_v41 = vmov 5  }
 0x15c   : > { %v486_v53 = vsel %vm482_vm7, %v5829_v46, -inf }
 0x15d   : > { %v492_v58 = vmax.f32 %v485_v52, %v486_v53  ;;  %v705_v13 = vadd.f32 %v5216_v3, %v704_v12  ;;  %v5875_v52 = vrot.slane %v5770_v4, 5 }
 0x15f   : > { %v709_v16 = vsel %vm708_vm11, %v5216_v3, %v705_v13 }
 0x160   : > { %v5804_v35 = vpop.f32.mrf.mxu0  ;;  %v714_v19 = vsel %vm711_vm12, %v713_v17, %v709_v16 }
 0x161   : > { %v474_v37 = vmul.f32 0.01, %v5804_v35  ;;  %vm468_vm3 = vcmp.ge.f32.partialorder %v5804_v35, 0.0  ;;  %v726_v36 = vsub.f32 1.0, %v714_v19 }
 0x163   : > { %v5820_v43 = vsel %vm468_vm3, %v5804_v35, %v474_v37 }
 0x164   : > { %v487_v48 = vsel %vm482_vm7, %v5820_v43, -inf }
 0x165   : > { %v488_v54 = vmax.f32 %v483_v47, %v487_v48  ;;  %v5871_v48 = vrot.slane %v5770_v4, 3 }
 0x168   : > { %v5835_v49 = vpop.f32.mrf.mxu0 }
 0x169   : > { %vm469_vm8 = vcmp.ge.f32.partialorder %v5835_v49, 0.0  ;;  %v475_v50 = vmul.f32 0.01, %v5835_v49 }
 0x16b   : > { %v5846_v55 = vsel %vm469_vm8, %v5835_v49, %v475_v50 }
 0x16c   : > { %v489_v57 = vsel %vm482_vm7, %v5846_v55, -inf }
 0x16d   : > { %v490_v59 = vmax.f32 %v484_v51, %v489_v57 }
 0x16f   : > { %v491_v60 = vmax.f32 %v488_v54, %v490_v59 }
 0x171   : > { %v493_v62 = vmax.f32 %v491_v60, %v492_v58  ;;  %v5880_v58 = vrot.slane %v5770_v4, 7 }
 0x173   : > { %v494_v63 = vrot.slane %v493_v62, 4 }
 0x175   : > { %v495_v1 = vmax.f32 %v493_v62, %v494_v63 }
 0x177   : > { %v496_v2 = vrot.slane %v495_v1, 2 }
 0x179   : > { %v497_v5 = vmax.f32 %v495_v1, %v496_v2 }
 0x17b   : > { %v498_v6 = vrot.slane %v497_v5, 1 }
 0x17d   : > { %v5850_v8 = vmax.f32 %v497_v5, %v498_v6 }
 0x17f   : > { %v504_v9 = vsub.f32 %v5820_v43, %v5850_v8  ;;  %v505_v10 = vsub.f32 %v5846_v55, %v5850_v8 }
 0x18f   : > { %v717_v18 = vpop.permute.xlu2 %716 }
 0x190   : > { %v719_v20 = vmul.f32 %v717_v18, %v714_v19 }
 0x192   : > { %721 = vrot.lane.b32.xlu2 %v719_v20, %s5650_s20 }
 0x19a   : > { %733 = vrot.lane.b32.xlu2 %v5211_v21, %s5651_s21  ;;  %s364_s21 = scalar_lea.vmem %s6749_s8, %s4913_s18 }
 0x1ec   : > { %v722_v22 = vpop.permute.xlu2 %721 }
 0x1ed   : > { %v724_v23 = vadd.f32 %v722_v22, %v5801_v33 }
 0x1ef   : > { %5217 = vtanh.f32 %v724_v23 }
 0x1f4   : > { %v734_v34 = vpop.permute.xlu2 %733 }
 0x1f5   : > { %v5218_v25 = vpop.eup %5217  ;;  %v736_v38 = vmul.f32 %v734_v34, %v714_v19 }
 0x1f6   : > { %728 = vrot.lane.b32.xlu1 %v5218_v25, %s5652_s22  ;;  %v661_v25 = vlaneseq }
 0x1f8   : > { %v5890_v34 = vshrl.u32 %v661_v25, 7 }
 0x1fa   : > { %vm738_vm3 = vcmp.eq.s32.totalorder %v5890_v34, 0  ;;  %vm811_vm4 = vcmp.eq.s32.totalorder %v5890_v34, 1  ;;  %vm882_vm10 = vcmp.eq.s32.totalorder %v5890_v34, 2 }
 0x268   : > { %v729_v37 = vpop.permute.xlu1 %728 }
 0x269   : > { %v731_v39 = vmul.f32 %v729_v37, %v726_v36 }
 0x26b   : > { %v5863_v40 = vadd.f32 %v736_v38, %v731_v39 }
 0x26d   : > { %752 = vperm.xlu2 %5072, %v5863_v40   ;;  %745 = vperm.xlu1 %5071, %v5863_v40   ;;  %v807_v16 = vrot.slane %v5863_v40, 7  ;;  %v741_v39 = vperm.slane %v5863_v40, 0 }
 0x275   : > { %5073 = vset.pattern.permute.xlu1 %v5655_v41 }
 0x276   : > { %758 = vperm.xlu1 %5073, %v5863_v40  }
 0x27e   : > { %5074 = vset.pattern.permute.xlu1 %v5654_v27 }
 0x2c7   : > { %v753_v50 = vpop.permute.xlu2 %752 }
 0x2c8   : > { %v755_v53 = vmul.f32 %v753_v50, %v5784_v24 }
 0x2df   : > { %v746_v47 = vpop.permute.xlu1 %745 }
 0x2e0   : > { %v750_v51 = vmul.f32 %v5871_v48, %v746_v47 }
 0x2e2   : > { %v756_v56 = vadd.f32 %v755_v53, %v750_v51  ;;  %v742_v51 = vsel %vm738_vm3, %v741_v39, 0.0 }
 0x2e8   : > { %v759_v54 = vpop.permute.xlu1 %758 }
 0x2e9   : > { %v763_v57 = vmul.f32 %v5875_v52, %v759_v54  ;;  %v5902_v54 = vrot.slane %v5770_v4, 2 }
 0x2eb   : > { %v764_v59 = vadd.f32 %v763_v57, %v756_v56 }
 0x2ed   : > { %v767_v60 = vadd.f32 %v5880_v58, %v764_v59 }
 0x2ef   : > { %v769_v61 = vrot.slane %v767_v60, 7 }
 0x2f1   : > { %791 = vrot.lane.b32.xlu2 %v769_v61, %s5649_s19  ;;  %v771_v62 = vadd.f32 %v769_v61, %v5801_v33 }
 0x2f3   : > { %v4923_v63 = vmul.f32 -1.442695, %v771_v62 }
 0x2f5   : > { %5219 = vpow2.f32 %v4923_v63  ;;  %v5908_v63 = vrot.slane %v5770_v4, 6 }
 0x2fb   : > { %v5220_v1 = vpop.eup %5219 }
 0x2fc   : > { %v775_v2 = vadd.f32 1.0, %v5220_v1 }
 0x2fe   : > { %5221 = vrcp.f32 %v775_v2  ;;  %v787_v7 = vand.u32 2147483648, %v775_v2  ;;  %v785_v12 = vand.u32 2147483647, %v775_v2  ;;  %vm781_vm14 = vweird.f32 %v775_v2 }
 0x300   : > { %v788_v14 = vor.u32 1.1754944e-38, %v787_v7  ;;  %vm786_vm2 = vcmp.eq.f32.partialorder %v785_v12, 8.507059e+37 }
 0x304   : > { %v5222_v3 = vpop.eup %5221 }
 0x305   : > { %v777_v5 = vmul.f32 %v5222_v3, %v775_v2  ;;  %vm782_vm13 = vweird.f32 %v5222_v3 }
 0x306   : > { %vm783_vm15 = vmor %vm781_vm14, %vm782_vm13 }
 0x307   : > { %v778_v6 = vsub.f32 1.0, %v777_v5 }
 0x309   : > { %v779_v11 = vmul.f32 %v5222_v3, %v778_v6 }
 0x30b   : > { %v780_v13 = vadd.f32 %v5222_v3, %v779_v11 }
 0x30d   : > { %v784_v15 = vsel %vm783_vm15, %v5222_v3, %v780_v13  ;;  %vm951_vm15 = vcmp.eq.s32.totalorder %v5890_v34, 3 }
 0x30e   : > { %v789_v17 = vsel %vm786_vm2, %v788_v14, %v784_v15 }
 0x30f   : > { %v809_v18 = vmul.f32 %v807_v16, %v789_v17  ;;  %v801_v36 = vsub.f32 1.0, %v789_v17 }
 0x34b   : > { %v792_v19 = vpop.permute.xlu2 %791 }
 0x34c   : > { %v794_v20 = vmul.f32 %v792_v19, %v789_v17 }
 0x34e   : > { %796 = vrot.lane.b32.xlu1 %v794_v20, %s5650_s20 }
 0x3c0   : > { %v797_v21 = vpop.permute.xlu1 %796 }
 0x3c1   : > { %v799_v22 = vadd.f32 %v797_v21, %v5801_v33 }
 0x3c3   : > { %5223 = vtanh.f32 %v799_v22 }
 0x3c9   : > { %v5224_v23 = vpop.eup %5223 }
 0x3ca   : > { %803 = vrot.lane.b32.xlu2 %v5224_v23, %s5652_s22 }
 0x424   : > { %v804_v37 = vpop.permute.xlu2 %803 }
 0x425   : > { %v806_v38 = vmul.f32 %v804_v37, %v801_v36 }
 0x427   : > { %v810_v47 = vadd.f32 %v809_v18, %v806_v38 }
 0x429   : > { %v814_v50 = vperm.slane %v810_v47, 1  ;;  %825 = vperm.xlu2 %5072, %v810_v47   ;;  %818 = vperm.xlu1 %5074, %v810_v47   ;;  %v878_v21 = vrot.slane %v810_v47, 7 }
 0x42b   : > { %v815_v53 = vsel %vm811_vm4, %v814_v50, %v742_v51 }
 0x431   : > { %5075 = vset.pattern.permute.xlu1 %v5655_v41 }
 0x432   : > { %831 = vperm.xlu1 %5075, %v810_v47  }
 0x43a   : > { %5076 = vset.pattern.permute.xlu1 %v5654_v27 }
 0x483   : > { %v826_v56 = vpop.permute.xlu2 %825 }
 0x484   : > { %v828_v59 = vmul.f32 %v826_v56, %v5871_v48 }
 0x49b   : > { %v819_v40 = vpop.permute.xlu1 %818 }
 0x49c   : > { %v823_v57 = vmul.f32 %v5902_v54, %v819_v40 }
 0x49e   : > { %v829_v61 = vadd.f32 %v828_v59, %v823_v57 }
 0x4a4   : > { %v832_v60 = vpop.permute.xlu1 %831 }
 0x4a5   : > { %v834_v62 = vmul.f32 %v832_v60, %v5784_v24 }
 0x4a7   : > { %v835_v1 = vadd.f32 %v834_v62, %v829_v61  ;;  %v5922_v61 = vrot.slane %v5770_v4, 1 }
 0x4a9   : > { %v838_v2 = vadd.f32 %v5908_v63, %v835_v1 }
 0x4ab   : > { %v840_v3 = vrot.slane %v838_v2, 7 }
 0x4ad   : > { %862 = vrot.lane.b32.xlu2 %v840_v3, %s5649_s19  ;;  %v842_v5 = vadd.f32 %v840_v3, %v5801_v33 }
 0x4af   : > { %v4924_v6 = vmul.f32 -1.442695, %v842_v5 }
 0x4b1   : > { %5225 = vpow2.f32 %v4924_v6 }
 0x4b7   : > { %v5226_v7 = vpop.eup %5225 }
 0x4b8   : > { %v846_v11 = vadd.f32 1.0, %v5226_v7 }
 0x4ba   : > { %5227 = vrcp.f32 %v846_v11  ;;  %v858_v15 = vand.u32 2147483648, %v846_v11  ;;  %v856_v17 = vand.u32 2147483647, %v846_v11  ;;  %vm852_vm6 = vweird.f32 %v846_v11 }
 0x4bc   : > { %v859_v19 = vor.u32 1.1754944e-38, %v858_v15  ;;  %vm857_vm9 = vcmp.eq.f32.partialorder %v856_v17, 8.507059e+37 }
 0x4c0   : > { %v5228_v12 = vpop.eup %5227 }
 0x4c1   : > { %v848_v13 = vmul.f32 %v5228_v12, %v846_v11  ;;  %vm853_vm5 = vweird.f32 %v5228_v12 }
 0x4c2   : > { %vm854_vm8 = vmor %vm852_vm6, %vm853_vm5 }
 0x4c3   : > { %v849_v14 = vsub.f32 1.0, %v848_v13 }
 0x4c5   : > { %v850_v16 = vmul.f32 %v5228_v12, %v849_v14 }
 0x4c7   : > { %v851_v18 = vadd.f32 %v5228_v12, %v850_v16 }
 0x4c9   : > { %v855_v20 = vsel %vm854_vm8, %v5228_v12, %v851_v18 }
 0x4ca   : > { %v860_v22 = vsel %vm857_vm9, %v859_v19, %v855_v20  ;;  %vm1018_vm9 = vcmp.eq.s32.totalorder %v5890_v34, 4 }
 0x4cb   : > { %v880_v23 = vmul.f32 %v878_v21, %v860_v22  ;;  %v872_v51 = vsub.f32 1.0, %v860_v22 }
 0x507   : > { %v863_v36 = vpop.permute.xlu2 %862 }
 0x508   : > { %v865_v37 = vmul.f32 %v863_v36, %v860_v22 }
 0x50a   : > { %867 = vrot.lane.b32.xlu1 %v865_v37, %s5650_s20 }
 0x57c   : > { %v868_v38 = vpop.permute.xlu1 %867 }
 0x57d   : > { %v870_v39 = vadd.f32 %v868_v38, %v5801_v33 }
 0x57f   : > { %5229 = vtanh.f32 %v870_v39 }
 0x585   : > { %v5230_v50 = vpop.eup %5229 }
 0x586   : > { %874 = vrot.lane.b32.xlu2 %v5230_v50, %s5652_s22 }
 0x5e0   : > { %v875_v40 = vpop.permute.xlu2 %874 }
 0x5e1   : > { %v877_v56 = vmul.f32 %v875_v40, %v872_v51 }
 0x5e3   : > { %v881_v57 = vadd.f32 %v880_v23, %v877_v56 }
 0x5e5   : > { %v885_v47 = vperm.slane %v881_v57, 2  ;;  %896 = vperm.xlu2 %5072, %v881_v57   ;;  %889 = vperm.xlu1 %5076, %v881_v57   ;;  %v947_v37 = vrot.slane %v881_v57, 7 }
 0x5e7   : > { %v886_v59 = vsel %vm882_vm10, %v885_v47, %v815_v53 }
 0x5ed   : > { %5077 = vset.pattern.permute.xlu1 %v5655_v41 }
 0x5ee   : > { %902 = vperm.xlu1 %5077, %v881_v57  }
 0x5f6   : > { %5078 = vset.pattern.permute.xlu1 %v5654_v27 }
 0x63f   : > { %v897_v62 = vpop.permute.xlu2 %896 }
 0x640   : > { %v899_v2 = vmul.f32 %v897_v62, %v5902_v54 }
 0x657   : > { %v890_v60 = vpop.permute.xlu1 %889 }
 0x658   : > { %v894_v1 = vmul.f32 %v5922_v61, %v890_v60 }
 0x65a   : > { %v900_v5 = vadd.f32 %v899_v2, %v894_v1 }
 0x660   : > { %v903_v3 = vpop.permute.xlu1 %902 }
 0x661   : > { %v905_v6 = vmul.f32 %v903_v3, %v5871_v48 }
 0x663   : > { %v906_v7 = vadd.f32 %v905_v6, %v900_v5 }
 0x665   : > { %v907_v53 = vadd.f32 %v906_v7, %v5875_v52 }
 0x667   : > { %v909_v11 = vrot.slane %v907_v53, 7 }
 0x669   : > { %931 = vrot.lane.b32.xlu2 %v909_v11, %s5649_s19  ;;  %v911_v12 = vadd.f32 %v909_v11, %v5801_v33 }
 0x66b   : > { %v4925_v13 = vmul.f32 -1.442695, %v911_v12 }
 0x66d   : > { %5231 = vpow2.f32 %v4925_v13 }
 0x673   : > { %v5232_v14 = vpop.eup %5231 }
 0x674   : > { %v915_v15 = vadd.f32 1.0, %v5232_v14 }
 0x676   : > { %5233 = vrcp.f32 %v915_v15  ;;  %v927_v19 = vand.u32 2147483648, %v915_v15  ;;  %v925_v21 = vand.u32 2147483647, %v915_v15  ;;  %vm921_vm12 = vweird.f32 %v915_v15 }
 0x678   : > { %v928_v23 = vor.u32 1.1754944e-38, %v927_v19  ;;  %vm926_vm14 = vcmp.eq.f32.partialorder %v925_v21, 8.507059e+37 }
 0x67c   : > { %v5234_v16 = vpop.eup %5233 }
 0x67d   : > { %v917_v17 = vmul.f32 %v5234_v16, %v915_v15  ;;  %vm922_vm11 = vweird.f32 %v5234_v16 }
 0x67e   : > { %vm923_vm13 = vmor %vm921_vm12, %vm922_vm11 }
 0x67f   : > { %v918_v18 = vsub.f32 1.0, %v917_v17 }
 0x681   : > { %v919_v20 = vmul.f32 %v5234_v16, %v918_v18 }
 0x683   : > { %v920_v22 = vadd.f32 %v5234_v16, %v919_v20 }
 0x685   : > { %v924_v36 = vsel %vm923_vm13, %v5234_v16, %v920_v22 }
 0x686   : > { %v929_v38 = vsel %vm926_vm14, %v928_v23, %v924_v36 }
 0x687   : > { %v949_v39 = vmul.f32 %v947_v37, %v929_v38  ;;  %v941_v60 = vsub.f32 1.0, %v929_v38 }
 0x6c3   : > { %v932_v50 = vpop.permute.xlu2 %931 }
 0x6c4   : > { %v934_v51 = vmul.f32 %v932_v50, %v929_v38 }
 0x6c6   : > { %936 = vrot.lane.b32.xlu1 %v934_v51, %s5650_s20 }
 0x738   : > { %v937_v40 = vpop.permute.xlu1 %936 }
 0x739   : > { %v939_v56 = vadd.f32 %v937_v40, %v5801_v33 }
 0x73b   : > { %5235 = vtanh.f32 %v939_v56 }
 0x741   : > { %v5236_v47 = vpop.eup %5235 }
 0x742   : > { %943 = vrot.lane.b32.xlu2 %v5236_v47, %s5652_s22 }
 0x79c   : > { %v944_v62 = vpop.permute.xlu2 %943 }
 0x79d   : > { %v946_v1 = vmul.f32 %v944_v62, %v941_v60 }
 0x79f   : > { %v950_v2 = vadd.f32 %v949_v39, %v946_v1 }
 0x7a1   : > { %v954_v57 = vperm.slane %v950_v2, 3  ;;  %963 = vperm.xlu2 %5072, %v950_v2   ;;  %958 = vperm.xlu1 %5078, %v950_v2   ;;  %v1014_v51 = vrot.slane %v950_v2, 7 }
 0x7a3   : > { %v955_v3 = vsel %vm951_vm15, %v954_v57, %v886_v59 }
 0x7a9   : > { %5079 = vset.pattern.permute.xlu1 %v5655_v41 }
 0x7aa   : > { %969 = vperm.xlu1 %5079, %v950_v2  }
 0x7b2   : > { %5080 = vset.pattern.permute.xlu1 %v5654_v27 }
 0x7fb   : > { %v964_v6 = vpop.permute.xlu2 %963 }
 0x7fc   : > { %v966_v53 = vmul.f32 %v964_v6, %v5922_v61 }
 0x813   : > { %v959_v5 = vpop.permute.xlu1 %958 }
 0x814   : > { %v961_v7 = vmul.f32 %v959_v5, %v5770_v4 }
 0x816   : > { %v967_v12 = vadd.f32 %v966_v53, %v961_v7 }
 0x81c   : > { %v970_v11 = vpop.permute.xlu1 %969 }
 0x81d   : > { %v972_v13 = vmul.f32 %v970_v11, %v5902_v54 }
 0x81f   : > { %v973_v14 = vadd.f32 %v972_v13, %v967_v12 }
 0x821   : > { %v974_v15 = vadd.f32 %v973_v14, %v5784_v24 }
 0x823   : > { %v976_v16 = vrot.slane %v974_v15, 7 }
 0x825   : > { %998 = vrot.lane.b32.xlu2 %v976_v16, %s5649_s19  ;;  %v978_v59 = vadd.f32 %v976_v16, %v5801_v33 }
 0x827   : > { %v4926_v17 = vmul.f32 -1.442695, %v978_v59 }
 0x829   : > { %5237 = vpow2.f32 %v4926_v17 }
 0x82f   : > { %v5238_v18 = vpop.eup %5237 }
 0x830   : > { %v982_v19 = vadd.f32 1.0, %v5238_v18 }
 0x832   : > { %5239 = vrcp.f32 %v982_v19  ;;  %v994_v23 = vand.u32 2147483648, %v982_v19  ;;  %v992_v37 = vand.u32 2147483647, %v982_v19  ;;  %vm988_vm5 = vweird.f32 %v982_v19 }
 0x834   : > { %v995_v39 = vor.u32 1.1754944e-38, %v994_v23  ;;  %vm993_vm8 = vcmp.eq.f32.partialorder %v992_v37, 8.507059e+37 }
 0x838   : > { %v5240_v20 = vpop.eup %5239 }
 0x839   : > { %v984_v21 = vmul.f32 %v5240_v20, %v982_v19  ;;  %vm989_vm2 = vweird.f32 %v5240_v20 }
 0x83a   : > { %vm990_vm6 = vmor %vm988_vm5, %vm989_vm2  ;;  %vm1085_vm2 = vcmp.eq.s32.totalorder %v5890_v34, 5 }
 0x83b   : > { %v985_v22 = vsub.f32 1.0, %v984_v21 }
 0x83d   : > { %v986_v36 = vmul.f32 %v5240_v20, %v985_v22 }
 0x83f   : > { %v987_v38 = vadd.f32 %v5240_v20, %v986_v36 }
 0x841   : > { %v991_v50 = vsel %vm990_vm6, %v5240_v20, %v987_v38 }
 0x842   : > { %v996_v40 = vsel %vm993_vm8, %v995_v39, %v991_v50 }
 0x843   : > { %v1016_v56 = vmul.f32 %v1014_v51, %v996_v40  ;;  %v1008_v5 = vsub.f32 1.0, %v996_v40 }
 0x87f   : > { %v999_v47 = vpop.permute.xlu2 %998 }
 0x880   : > { %v1001_v60 = vmul.f32 %v999_v47, %v996_v40 }
 0x882   : > { %1003 = vrot.lane.b32.xlu1 %v1001_v60, %s5650_s20 }
 0x8f4   : > { %v1004_v62 = vpop.permute.xlu1 %1003 }
 0x8f5   : > { %v1006_v1 = vadd.f32 %v1004_v62, %v5801_v33 }
 0x8f7   : > { %5241 = vtanh.f32 %v1006_v1 }
 0x8fd   : > { %v5242_v57 = vpop.eup %5241 }
 0x8fe   : > { %1010 = vrot.lane.b32.xlu2 %v5242_v57, %s5652_s22 }
 0x958   : > { %v1011_v6 = vpop.permute.xlu2 %1010 }
 0x959   : > { %v1013_v7 = vmul.f32 %v1011_v6, %v1008_v5 }
 0x95b   : > { %v1017_v53 = vadd.f32 %v1016_v56, %v1013_v7 }
 0x95d   : > { %1030 = vperm.xlu2 %5072, %v1017_v53   ;;  %1025 = vperm.xlu1 %5080, %v1017_v53   ;;  %v1021_v2 = vperm.slane %v1017_v53, 4  ;;  %v1081_v60 = vrot.slane %v1017_v53, 7 }
 0x95f   : > { %v1022_v11 = vsel %vm1018_vm9, %v1021_v2, %v955_v3 }
 0x965   : > { %5081 = vset.pattern.permute.xlu1 %v5655_v41 }
 0x966   : > { %1036 = vperm.xlu1 %5081, %v1017_v53  }
 0x96e   : > { %5082 = vset.pattern.permute.xlu1 %v5654_v27 }
 0x9b7   : > { %v1031_v13 = vpop.permute.xlu2 %1030 }
 0x9b8   : > { %v1033_v15 = vmul.f32 %v1031_v13, %v5770_v4 }
 0x9cf   : > { %v1026_v12 = vpop.permute.xlu1 %1025 }
 0x9d0   : > { %v1028_v14 = vmul.f32 %v1026_v12, %v5880_v58 }
 0x9d2   : > { %v1034_v59 = vadd.f32 %v1033_v15, %v1028_v14 }
 0x9d8   : > { %v1037_v16 = vpop.permute.xlu1 %1036 }
 0x9d9   : > { %v1039_v17 = vmul.f32 %v1037_v16, %v5922_v61 }
 0x9db   : > { %v1040_v18 = vadd.f32 %v1039_v17, %v1034_v59 }
 0x9dd   : > { %v1041_v19 = vadd.f32 %v1040_v18, %v5871_v48 }
 0x9df   : > { %v1043_v20 = vrot.slane %v1041_v19, 7 }
 0x9e1   : > { %1065 = vrot.lane.b32.xlu2 %v1043_v20, %s5649_s19  ;;  %v1045_v3 = vadd.f32 %v1043_v20, %v5801_v33 }
 0x9e3   : > { %v4927_v21 = vmul.f32 -1.442695, %v1045_v3 }
 0x9e5   : > { %5243 = vpow2.f32 %v4927_v21 }
 0x9eb   : > { %v5244_v22 = vpop.eup %5243 }
 0x9ec   : > { %v1049_v23 = vadd.f32 1.0, %v5244_v22 }
 0x9ee   : > { %5245 = vrcp.f32 %v1049_v23  ;;  %v1061_v39 = vand.u32 2147483648, %v1049_v23  ;;  %v1059_v51 = vand.u32 2147483647, %v1049_v23  ;;  %vm1055_vm12 = vweird.f32 %v1049_v23 }
 0x9f0   : > { %v1062_v56 = vor.u32 1.1754944e-38, %v1061_v39  ;;  %vm1060_vm14 = vcmp.eq.f32.partialorder %v1059_v51, 8.507059e+37 }
 0x9f4   : > { %v5246_v36 = vpop.eup %5245 }
 0x9f5   : > { %v1051_v37 = vmul.f32 %v5246_v36, %v1049_v23  ;;  %vm1056_vm11 = vweird.f32 %v5246_v36 }
 0x9f6   : > { %vm1057_vm13 = vmor %vm1055_vm12, %vm1056_vm11  ;;  %vm1152_vm12 = vcmp.eq.s32.totalorder %v5890_v34, 6 }
 0x9f7   : > { %v1052_v38 = vsub.f32 1.0, %v1051_v37 }
 0x9f9   : > { %v1053_v50 = vmul.f32 %v5246_v36, %v1052_v38 }
 0x9fb   : > { %v1054_v40 = vadd.f32 %v5246_v36, %v1053_v50 }
 0x9fd   : > { %v1058_v47 = vsel %vm1057_vm13, %v5246_v36, %v1054_v40 }
 0x9fe   : > { %v1063_v62 = vsel %vm1060_vm14, %v1062_v56, %v1058_v47 }
 0x9ff   : > { %v1083_v1 = vmul.f32 %v1081_v60, %v1063_v62  ;;  %v1075_v12 = vsub.f32 1.0, %v1063_v62 }
 0xa3b   : > { %v1066_v57 = vpop.permute.xlu2 %1065 }
 0xa3c   : > { %v1068_v5 = vmul.f32 %v1066_v57, %v1063_v62 }
 0xa3e   : > { %1070 = vrot.lane.b32.xlu1 %v1068_v5, %s5650_s20 }
 0xab0   : > { %v1071_v6 = vpop.permute.xlu1 %1070 }
 0xab1   : > { %v1073_v7 = vadd.f32 %v1071_v6, %v5801_v33 }
 0xab3   : > { %5247 = vtanh.f32 %v1073_v7 }
 0xab9   : > { %v5248_v2 = vpop.eup %5247 }
 0xaba   : > { %1077 = vrot.lane.b32.xlu2 %v5248_v2, %s5652_s22 }
 0xb14   : > { %v1078_v13 = vpop.permute.xlu2 %1077 }
 0xb15   : > { %v1080_v14 = vmul.f32 %v1078_v13, %v1075_v12 }
 0xb17   : > { %v1084_v15 = vadd.f32 %v1083_v1, %v1080_v14 }
 0xb19   : > { %1097 = vperm.xlu2 %5072, %v1084_v15   ;;  %1092 = vperm.xlu1 %5082, %v1084_v15   ;;  %v1088_v53 = vperm.slane %v1084_v15, 5  ;;  %v1148_v57 = vrot.slane %v1084_v15, 7 }
 0xb1b   : > { %v1089_v16 = vsel %vm1085_vm2, %v1088_v53, %v1022_v11 }
 0xb21   : > { %5083 = vset.pattern.permute.xlu1 %v5655_v41  ;;  %5084 = vset.pattern.permute.xlu2 %v5654_v27 }
 0xb22   : > { %1103 = vperm.xlu1 %5083, %v1084_v15  }
 0xb73   : > { %v1098_v17 = vpop.permute.xlu2 %1097 }
 0xb74   : > { %v1100_v19 = vmul.f32 %v1098_v17, %v5880_v58 }
 0xb8b   : > { %v1093_v59 = vpop.permute.xlu1 %1092 }
 0xb8c   : > { %v1095_v18 = vmul.f32 %v1093_v59, %v5908_v63 }
 0xb8e   : > { %v1101_v3 = vadd.f32 %v1100_v19, %v1095_v18 }
 0xb94   : > { %v1104_v20 = vpop.permute.xlu1 %1103 }
 0xb95   : > { %v1106_v21 = vmul.f32 %v1104_v20, %v5770_v4 }
 0xb97   : > { %v1107_v22 = vadd.f32 %v1106_v21, %v1101_v3 }
 0xb99   : > { %v1108_v23 = vadd.f32 %v1107_v22, %v5902_v54 }
 0xb9b   : > { %v1110_v36 = vrot.slane %v1108_v23, 7 }
 0xb9d   : > { %1132 = vrot.lane.b32.xlu2 %v1110_v36, %s5649_s19  ;;  %v1112_v11 = vadd.f32 %v1110_v36, %v5801_v33 }
 0xb9f   : > { %v4928_v37 = vmul.f32 -1.442695, %v1112_v11 }
 0xba1   : > { %5249 = vpow2.f32 %v4928_v37 }
 0xba7   : > { %v5250_v38 = vpop.eup %5249 }
 0xba8   : > { %v1116_v39 = vadd.f32 1.0, %v5250_v38 }
 0xbaa   : > { %5251 = vrcp.f32 %v1116_v39  ;;  %v1128_v56 = vand.u32 2147483648, %v1116_v39  ;;  %v1126_v4 = vand.u32 2147483647, %v1116_v39  ;;  %vm1122_vm6 = vweird.f32 %v1116_v39 }
 0xbac   : > { %v1129_v62 = vor.u32 1.1754944e-38, %v1128_v56  ;;  %vm1127_vm11 = vcmp.eq.f32.partialorder %v1126_v4, 8.507059e+37 }
 0xbb0   : > { %v5252_v50 = vpop.eup %5251 }
 0xbb1   : > { %v1118_v51 = vmul.f32 %v5252_v50, %v1116_v39  ;;  %vm1123_vm5 = vweird.f32 %v5252_v50 }
 0xbb2   : > { %vm1124_vm8 = vmor %vm1122_vm6, %vm1123_vm5 }
 0xbb3   : > { %v1119_v40 = vsub.f32 1.0, %v1118_v51 }
 0xbb5   : > { %v1120_v47 = vmul.f32 %v5252_v50, %v1119_v40 }
 0xbb7   : > { %v1121_v60 = vadd.f32 %v5252_v50, %v1120_v47 }
 0xbb9   : > { %v1125_v1 = vsel %vm1124_vm8, %v5252_v50, %v1121_v60  ;;  %vm1219_vm8 = vcmp.eq.s32.totalorder %v5890_v34, 7 }
 0xbba   : > { %v1130_v5 = vsel %vm1127_vm11, %v1129_v62, %v1125_v1 }
 0xbbb   : > { %v1150_v6 = vmul.f32 %v1148_v57, %v1130_v5  ;;  %v1142_v53 = vsub.f32 1.0, %v1130_v5 }
 0xbf7   : > { %v1133_v7 = vpop.permute.xlu2 %1132 }
 0xbf8   : > { %v1135_v2 = vmul.f32 %v1133_v7, %v1130_v5 }
 0xbfa   : > { %1137 = vrot.lane.b32.xlu0 %v1135_v2, %s5650_s20 }
 0xc6c   : > { %v1138_v12 = vpop.permute.xlu0 %1137 }
 0xc6d   : > { %v1140_v13 = vadd.f32 %v1138_v12, %v5801_v33 }
 0xc6f   : > { %5253 = vtanh.f32 %v1140_v13 }
 0xc75   : > { %v5254_v14 = vpop.eup %5253 }
 0xc76   : > { %1144 = vrot.lane.b32.xlu1 %v5254_v14, %s5652_s22 }
 0xce8   : > { %v1145_v59 = vpop.permute.xlu1 %1144 }
 0xce9   : > { %v1147_v17 = vmul.f32 %v1145_v59, %v1142_v53 }
 0xceb   : > { %v1151_v18 = vadd.f32 %v1150_v6, %v1147_v17 }
 0xced   : > { %1170 = vperm.xlu1 %5083, %v1151_v18   ;;  %1164 = vperm.xlu0 %5085, %v1151_v18   ;;  %v1155_v15 = vperm.slane %v1151_v18, 6  ;;  %v1215_v7 = vrot.slane %v1151_v18, 7 }
 0xcee   : > { %1159 = vperm.xlu2 %5084, %v1151_v18  }
 0xcef   : > { %v1156_v19 = vsel %vm1152_vm12, %v1155_v15, %v1089_v16 }
 0xcf5   : > { %5087 = vset.pattern.permute.xlu1 %v5653_v26  ;;  %5086 = vset.pattern.permute.xlu0 %v5654_v27 }
 0xcf6   : > { %5088 = vset.pattern.permute.xlu2 %v5655_v41 }
 0xd48   : > { %v1160_v20 = vpop.permute.xlu2 %1159 }
 0xd49   : > { %v1162_v22 = vmul.f32 %v1160_v20, %v5875_v52 }
 0xd5f   : > { %v1171_v3 = vpop.permute.xlu1 %1170  ;;  %v1165_v21 = vpop.permute.xlu0 %1164 }
 0xd60   : > { %v1167_v23 = vmul.f32 %v1165_v21, %v5908_v63  ;;  %v1173_v36 = vmul.f32 %v1171_v3, %v5880_v58 }
 0xd62   : > { %v1168_v11 = vadd.f32 %v1167_v23, %v1162_v22 }
 0xd64   : > { %v1174_v37 = vadd.f32 %v1173_v36, %v1168_v11 }
 0xd66   : > { %v1175_v38 = vadd.f32 %v1174_v37, %v5922_v61 }
 0xd68   : > { %v1177_v16 = vrot.slane %v1175_v38, 7 }
 0xd6a   : > { %1199 = vrot.lane.b32.xlu2 %v1177_v16, %s5649_s19  ;;  %v1179_v39 = vadd.f32 %v1177_v16, %v5801_v33 }
 0xd6c   : > { %v4929_v50 = vmul.f32 -1.442695, %v1179_v39 }
 0xd6e   : > { %5255 = vpow2.f32 %v4929_v50 }
 0xd74   : > { %v5256_v51 = vpop.eup %5255 }
 0xd75   : > { %v1183_v40 = vadd.f32 1.0, %v5256_v51 }
 0xd77   : > { %5257 = vrcp.f32 %v1183_v40  ;;  %v1195_v60 = vand.u32 2147483648, %v1183_v40  ;;  %v1193_v1 = vand.u32 2147483647, %v1183_v40  ;;  %vm1189_vm14 = vweird.f32 %v1183_v40 }
 0xd79   : > { %v1196_v5 = vor.u32 1.1754944e-38, %v1195_v60  ;;  %vm1194_vm6 = vcmp.eq.f32.partialorder %v1193_v1, 8.507059e+37 }
 0xd7d   : > { %v5258_v56 = vpop.eup %5257 }
 0xd7e   : > { %v1185_v47 = vmul.f32 %v5258_v56, %v1183_v40  ;;  %vm1190_vm13 = vweird.f32 %v5258_v56  ;;  %v6010_v40 = vadd.f32 %v5795_v31, %v5790_v29 }
 0xd7f   : > { %vm1191_vm5 = vmor %vm1189_vm14, %vm1190_vm13 }
 0xd80   : > { %v1186_v4 = vsub.f32 1.0, %v1185_v47 }
 0xd82   : > { %v1187_v62 = vmul.f32 %v5258_v56, %v1186_v4 }
 0xd84   : > { %v1188_v57 = vadd.f32 %v5258_v56, %v1187_v62 }
 0xd86   : > { %v1192_v6 = vsel %vm1191_vm5, %v5258_v56, %v1188_v57 }
 0xd87   : > { %v1197_v2 = vsel %vm1194_vm6, %v1196_v5, %v1192_v6 }
 0xd88   : > { %v1217_v12 = vmul.f32 %v1215_v7, %v1197_v2  ;;  %v1209_v15 = vsub.f32 1.0, %v1197_v2 }
 0xdc4   : > { %v1200_v13 = vpop.permute.xlu2 %1199 }
 0xdc5   : > { %v1202_v14 = vmul.f32 %v1200_v13, %v1197_v2 }
 0xdc7   : > { %1204 = vrot.lane.b32.xlu1 %v1202_v14, %s5650_s20 }
 0xe39   : > { %v1205_v53 = vpop.permute.xlu1 %1204 }
 0xe3a   : > { %v1207_v59 = vadd.f32 %v1205_v53, %v5801_v33 }
 0xe3c   : > { %5259 = vtanh.f32 %v1207_v59 }
 0xe42   : > { %v5260_v17 = vpop.eup %5259 }
 0xe43   : > { %1211 = vrot.lane.b32.xlu2 %v5260_v17, %s5652_s22 }
 0xe9d   : > { %v1212_v20 = vpop.permute.xlu2 %1211 }
 0xe9e   : > { %v1214_v3 = vmul.f32 %v1212_v20, %v1209_v15 }
 0xea0   : > { %v1218_v21 = vadd.f32 %v1217_v12, %v1214_v3 }
 0xea2   : > { %1343 = vperm.xlu2 %5088, %v1218_v21   ;;  %1337 = vperm.xlu1 %5087, %v1218_v21   ;;  %v1222_v18 = vperm.slane %v1218_v21, 7 }
 0xea3   : > { %1332 = vperm.xlu0 %5086, %v1218_v21  }
 0xea4   : > { %v5993_v22 = vsel %vm1219_vm8, %v1222_v18, %v1156_v19  ;;  %v6004_v19 = vld [vmem:[%s6743_s2] sm:$0xff]  ;;  %v1388_v18 = vrot.slane %v1218_v21, 7 }
 0xeaa   : > { %5090 = vset.pattern.permute.xlu2 %v5653_v26  ;;  %5089 = vset.pattern.permute.xlu1 %v5654_v27 }
 0xeab   : > { %5091 = vset.pattern.permute.xlu0 %v5655_v41 }
 0xefc   : > { %v1344_v23 = vpop.permute.xlu2 %1343 }
 0xefd   : > { %v1346_v38 = vmul.f32 %v1344_v23, %v5908_v63 }
 0xf14   : > { %v1338_v33 = vpop.permute.xlu1 %1337 }
 0xf15   : > { %v1340_v36 = vmul.f32 %v1338_v33, %v5875_v52  ;;  %v1333_v11 = vpop.permute.xlu0 %1332 }
 0xf16   : > { %v1335_v37 = vmul.f32 %v1333_v11, %v5784_v24 }
 0xf18   : > { %v1341_v16 = vadd.f32 %v1340_v36, %v1335_v37 }
 0xf1a   : > { %v1347_v39 = vadd.f32 %v1346_v38, %v1341_v16 }
 0xf1c   : > { %v1348_v50 = vadd.f32 %v6004_v19, %v1347_v39 }
 0xf1e   : > { %v1350_v51 = vrot.slane %v1348_v50, 7 }
 0xf20   : > { %1372 = vrot.lane.b32.xlu1 %v1350_v51, %s5649_s19  ;;  %v1352_v56 = vadd.f32 %v1350_v51, %v6010_v40 }
 0xf22   : > { %v4933_v47 = vmul.f32 -1.442695, %v1352_v56 }
 0xf24   : > { %5261 = vpow2.f32 %v4933_v47 }
 0xf2a   : > { %v5262_v4 = vpop.eup %5261 }
 0xf2b   : > { %v1356_v60 = vadd.f32 1.0, %v5262_v4 }
 0xf2d   : > { %5263 = vrcp.f32 %v1356_v60  ;;  %v1368_v7 = vand.u32 2147483648, %v1356_v60  ;;  %vm1362_vm13 = vweird.f32 %v1356_v60  ;;  %v1366_v2 = vand.u32 2147483647, %v1356_v60 }
 0xf2f   : > { %v1369_v13 = vor.u32 1.1754944e-38, %v1368_v7  ;;  %vm1367_vm5 = vcmp.eq.f32.partialorder %v1366_v2, 8.507059e+37 }
 0xf33   : > { %v5264_v62 = vpop.eup %5263 }
 0xf34   : > { %v1358_v1 = vmul.f32 %v5264_v62, %v1356_v60  ;;  %vm1363_vm11 = vweird.f32 %v5264_v62 }
 0xf35   : > { %vm1364_vm14 = vmor %vm1362_vm13, %vm1363_vm11 }
 0xf36   : > { %v1359_v57 = vsub.f32 1.0, %v1358_v1 }
 0xf38   : > { %v1360_v5 = vmul.f32 %v5264_v62, %v1359_v57 }
 0xf3a   : > { %v1361_v6 = vadd.f32 %v5264_v62, %v1360_v5 }
 0xf3c   : > { %v1365_v12 = vsel %vm1364_vm14, %v5264_v62, %v1361_v6 }
 0xf3d   : > { %v1370_v53 = vsel %vm1367_vm5, %v1369_v13, %v1365_v12 }
 0xf3e   : > { %v1382_v3 = vsub.f32 1.0, %v1370_v53  ;;  %v1390_v36 = vmul.f32 %v1388_v18, %v1370_v53 }
 0xf92   : > { %v1373_v14 = vpop.permute.xlu1 %1372 }
 0xf93   : > { %v1375_v59 = vmul.f32 %v1373_v14, %v1370_v53 }
 0xf95   : > { %1377 = vrot.lane.b32.xlu2 %v1375_v59, %s5650_s20 }
 0xfef   : > { %v1378_v17 = vpop.permute.xlu2 %1377 }
 0xff0   : > { %v1380_v15 = vadd.f32 %v1378_v17, %v6010_v40 }
 0xff2   : > { %5265 = vtanh.f32 %v1380_v15 }
 0xff8   : > { %v5266_v20 = vpop.eup %5265 }
 0xff9   : > { %1384 = vrot.lane.b32.xlu0 %v5266_v20, %s5652_s22 }
0x106b   : > { %v1385_v33 = vpop.permute.xlu0 %1384 }
0x106c   : > { %v1387_v23 = vmul.f32 %v1385_v33, %v1382_v3 }
0x106e   : > { %v1391_v11 = vadd.f32 %v1390_v36, %v1387_v23 }
0x1070   : > { %1407 = vperm.xlu0 %5091, %v1391_v11   ;;  %1401 = vperm.xlu2 %5090, %v1391_v11   ;;  %v1452_v36 = vrot.slane %v1391_v11, 7 }
0x1071   : > { %1396 = vperm.xlu1 %5089, %v1391_v11  }
0x1078   : > { %5093 = vset.pattern.permute.xlu0 %v5653_v26  ;;  %5092 = vset.pattern.permute.xlu2 %v5654_v27 }
0x1079   : > { %5094 = vset.pattern.permute.xlu1 %v5655_v41 }
0x10ca   : > { %v1402_v37 = vpop.permute.xlu2 %1401 }
0x10cb   : > { %v1404_v39 = vmul.f32 %v1402_v37, %v5784_v24 }
0x10e2   : > { %v1408_v38 = vpop.permute.xlu0 %1407 }
0x10e3   : > { %v1397_v16 = vpop.permute.xlu1 %1396  ;;  %v1410_v50 = vmul.f32 %v1408_v38, %v5875_v52 }
0x10e4   : > { %v1399_v21 = vmul.f32 %v1397_v16, %v5871_v48 }
0x10e6   : > { %v1405_v51 = vadd.f32 %v1404_v39, %v1399_v21  ;;  %v1392_v39 = vperm.slane %v1391_v11, 0 }
0x10e8   : > { %v1411_v56 = vadd.f32 %v1410_v50, %v1405_v51  ;;  %v1393_v51 = vsel %vm738_vm3, %v1392_v39, 0.0 }
0x10ea   : > { %v1412_v47 = vadd.f32 %v1411_v56, %v5880_v58 }
0x10ec   : > { %v1414_v4 = vrot.slane %v1412_v47, 7 }
0x10ee   : > { %1436 = vrot.lane.b32.xlu1 %v1414_v4, %s5649_s19  ;;  %v1416_v60 = vadd.f32 %v1414_v4, %v6010_v40 }
0x10f0   : > { %v4934_v62 = vmul.f32 -1.442695, %v1416_v60 }
0x10f2   : > { %5267 = vpow2.f32 %v4934_v62 }
0x10f8   : > { %v5268_v1 = vpop.eup %5267 }
0x10f9   : > { %v1420_v57 = vadd.f32 1.0, %v5268_v1 }
0x10fb   : > { %5269 = vrcp.f32 %v1420_v57  ;;  %v1432_v13 = vand.u32 2147483648, %v1420_v57  ;;  %vm1426_vm11 = vweird.f32 %v1420_v57  ;;  %v1430_v14 = vand.u32 2147483647, %v1420_v57 }
0x10fd   : > { %v1433_v59 = vor.u32 1.1754944e-38, %v1432_v13  ;;  %vm1431_vm14 = vcmp.eq.f32.partialorder %v1430_v14, 8.507059e+37 }
0x1101   : > { %v5270_v5 = vpop.eup %5269 }
0x1102   : > { %v1422_v6 = vmul.f32 %v5270_v5, %v1420_v57  ;;  %vm1427_vm6 = vweird.f32 %v5270_v5 }
0x1103   : > { %vm1428_vm13 = vmor %vm1426_vm11, %vm1427_vm6 }
0x1104   : > { %v1423_v7 = vsub.f32 1.0, %v1422_v6 }
0x1106   : > { %v1424_v2 = vmul.f32 %v5270_v5, %v1423_v7 }
0x1108   : > { %v1425_v12 = vadd.f32 %v5270_v5, %v1424_v2 }
0x110a   : > { %v1429_v53 = vsel %vm1428_vm13, %v5270_v5, %v1425_v12 }
0x110b   : > { %v1434_v15 = vsel %vm1431_vm14, %v1433_v59, %v1429_v53 }
0x110c   : > { %v1446_v23 = vsub.f32 1.0, %v1434_v15  ;;  %v1454_v16 = vmul.f32 %v1452_v36, %v1434_v15 }
0x1160   : > { %v1437_v17 = vpop.permute.xlu1 %1436 }
0x1161   : > { %v1439_v20 = vmul.f32 %v1437_v17, %v1434_v15 }
0x1163   : > { %1441 = vrot.lane.b32.xlu2 %v1439_v20, %s5650_s20 }
0x11bd   : > { %v1442_v3 = vpop.permute.xlu2 %1441 }
0x11be   : > { %v1444_v18 = vadd.f32 %v1442_v3, %v6010_v40 }
0x11c0   : > { %5271 = vtanh.f32 %v1444_v18 }
0x11c6   : > { %v5272_v33 = vpop.eup %5271 }
0x11c7   : > { %1448 = vrot.lane.b32.xlu1 %v5272_v33, %s5652_s22 }
0x1239   : > { %v1449_v37 = vpop.permute.xlu1 %1448 }
0x123a   : > { %v1451_v38 = vmul.f32 %v1449_v37, %v1446_v23 }
0x123c   : > { %v1455_v21 = vadd.f32 %v1454_v16, %v1451_v38 }
0x123e   : > { %v1456_v50 = vperm.slane %v1455_v21, 1  ;;  %1471 = vperm.xlu1 %5094, %v1455_v21   ;;  %1465 = vperm.xlu0 %5093, %v1455_v21   ;;  %v1516_v36 = vrot.slane %v1455_v21, 7 }
0x123f   : > { %1460 = vperm.xlu2 %5092, %v1455_v21  }
0x1240   : > { %v1457_v56 = vsel %vm811_vm4, %v1456_v50, %v1393_v51 }
0x1246   : > { %5096 = vset.pattern.permute.xlu1 %v5653_v26  ;;  %5095 = vset.pattern.permute.xlu0 %v5654_v27 }
0x1247   : > { %5097 = vset.pattern.permute.xlu2 %v5655_v41 }
0x1299   : > { %v1461_v47 = vpop.permute.xlu2 %1460 }
0x129a   : > { %v1463_v60 = vmul.f32 %v1461_v47, %v5902_v54 }
0x12b0   : > { %v1472_v4 = vpop.permute.xlu1 %1471  ;;  %v1466_v11 = vpop.permute.xlu0 %1465 }
0x12b1   : > { %v1468_v62 = vmul.f32 %v1466_v11, %v5871_v48  ;;  %v1474_v1 = vmul.f32 %v1472_v4, %v5784_v24 }
0x12b3   : > { %v1469_v57 = vadd.f32 %v1468_v62, %v1463_v60 }
0x12b5   : > { %v1475_v5 = vadd.f32 %v1474_v1, %v1469_v57 }
0x12b7   : > { %v1476_v6 = vadd.f32 %v1475_v5, %v5908_v63 }
0x12b9   : > { %v1478_v7 = vrot.slane %v1476_v6, 7 }
0x12bb   : > { %1500 = vrot.lane.b32.xlu2 %v1478_v7, %s5649_s19  ;;  %v1480_v2 = vadd.f32 %v1478_v7, %v6010_v40 }
0x12bd   : > { %v4935_v12 = vmul.f32 -1.442695, %v1480_v2 }
0x12bf   : > { %5273 = vpow2.f32 %v4935_v12 }
0x12c5   : > { %v5274_v13 = vpop.eup %5273 }
0x12c6   : > { %v1484_v14 = vadd.f32 1.0, %v5274_v13 }
0x12c8   : > { %5275 = vrcp.f32 %v1484_v14  ;;  %v1496_v15 = vand.u32 2147483648, %v1484_v14  ;;  %v1494_v3 = vand.u32 2147483647, %v1484_v14  ;;  %vm1490_vm6 = vweird.f32 %v1484_v14 }
0x12ca   : > { %v1497_v33 = vor.u32 1.1754944e-38, %v1496_v15  ;;  %vm1495_vm13 = vcmp.eq.f32.partialorder %v1494_v3, 8.507059e+37 }
0x12ce   : > { %v5276_v53 = vpop.eup %5275 }
0x12cf   : > { %v1486_v59 = vmul.f32 %v5276_v53, %v1484_v14  ;;  %vm1491_vm5 = vweird.f32 %v5276_v53 }
0x12d0   : > { %vm1492_vm11 = vmor %vm1490_vm6, %vm1491_vm5 }
0x12d1   : > { %v1487_v17 = vsub.f32 1.0, %v1486_v59 }
0x12d3   : > { %v1488_v20 = vmul.f32 %v5276_v53, %v1487_v17 }
0x12d5   : > { %v1489_v18 = vadd.f32 %v5276_v53, %v1488_v20 }
0x12d7   : > { %v1493_v23 = vsel %vm1492_vm11, %v5276_v53, %v1489_v18 }
0x12d8   : > { %v1498_v37 = vsel %vm1495_vm13, %v1497_v33, %v1493_v23 }
0x12d9   : > { %v1518_v38 = vmul.f32 %v1516_v36, %v1498_v37  ;;  %v1510_v4 = vsub.f32 1.0, %v1498_v37 }
0x1315   : > { %v1501_v16 = vpop.permute.xlu2 %1500 }
0x1316   : > { %v1503_v39 = vmul.f32 %v1501_v16, %v1498_v37 }
0x1318   : > { %1505 = vrot.lane.b32.xlu1 %v1503_v39, %s5650_s20 }
0x138a   : > { %v1506_v50 = vpop.permute.xlu1 %1505 }
0x138b   : > { %v1508_v51 = vadd.f32 %v1506_v50, %v6010_v40 }
0x138d   : > { %5277 = vtanh.f32 %v1508_v51 }
0x1393   : > { %v5278_v47 = vpop.eup %5277 }
0x1394   : > { %1512 = vrot.lane.b32.xlu2 %v5278_v47, %s5652_s22 }
0x13ee   : > { %v1513_v11 = vpop.permute.xlu2 %1512 }
0x13ef   : > { %v1515_v60 = vmul.f32 %v1513_v11, %v1510_v4 }
0x13f1   : > { %v1519_v62 = vadd.f32 %v1518_v38, %v1515_v60 }
0x13f3   : > { %v1520_v1 = vperm.slane %v1519_v62, 2  ;;  %1535 = vperm.xlu2 %5097, %v1519_v62   ;;  %1529 = vperm.xlu1 %5096, %v1519_v62  }
0x13f4   : > { %1524 = vperm.xlu0 %5095, %v1519_v62  }
0x13f5   : > { %v1521_v21 = vsel %vm882_vm10, %v1520_v1, %v1457_v56 }
0x13fb   : > { %5099 = vset.pattern.permute.xlu2 %v5653_v26  ;;  %5098 = vset.pattern.permute.xlu1 %v5654_v27 }
0x13fc   : > { %5100 = vset.pattern.permute.xlu0 %v5655_v41 }
0x144d   : > { %v1536_v5 = vpop.permute.xlu2 %1535 }
0x144e   : > { %v1538_v12 = vmul.f32 %v1536_v5, %v5871_v48 }
0x1465   : > { %v1530_v57 = vpop.permute.xlu1 %1529 }
0x1466   : > { %v1532_v6 = vmul.f32 %v1530_v57, %v5902_v54  ;;  %v1525_v7 = vpop.permute.xlu0 %1524  ;;  %v1580_v57 = vrot.slane %v1519_v62, 7 }
0x1467   : > { %v1527_v2 = vmul.f32 %v1525_v7, %v5922_v61 }
0x1469   : > { %v1533_v13 = vadd.f32 %v1532_v6, %v1527_v2 }
0x146b   : > { %v1539_v14 = vadd.f32 %v1538_v12, %v1533_v13 }
0x146d   : > { %v1540_v53 = vadd.f32 %v1539_v14, %v5875_v52 }
0x146f   : > { %v1542_v56 = vrot.slane %v1540_v53, 7 }
0x1471   : > { %1564 = vrot.lane.b32.xlu1 %v1542_v56, %s5649_s19  ;;  %v1544_v59 = vadd.f32 %v1542_v56, %v6010_v40 }
0x1473   : > { %v4936_v17 = vmul.f32 -1.442695, %v1544_v59 }
0x1475   : > { %5279 = vpow2.f32 %v4936_v17 }
0x147b   : > { %v5280_v15 = vpop.eup %5279 }
0x147c   : > { %v1548_v20 = vadd.f32 1.0, %v5280_v15 }
0x147e   : > { %5281 = vrcp.f32 %v1548_v20  ;;  %v1560_v37 = vand.u32 2147483648, %v1548_v20  ;;  %vm1554_vm5 = vweird.f32 %v1548_v20  ;;  %v1558_v38 = vand.u32 2147483647, %v1548_v20 }
0x1480   : > { %v1561_v39 = vor.u32 1.1754944e-38, %v1560_v37  ;;  %vm1559_vm11 = vcmp.eq.f32.partialorder %v1558_v38, 8.507059e+37 }
0x1484   : > { %v5282_v3 = vpop.eup %5281 }
0x1485   : > { %v1550_v18 = vmul.f32 %v5282_v3, %v1548_v20  ;;  %vm1555_vm14 = vweird.f32 %v5282_v3 }
0x1486   : > { %vm1556_vm6 = vmor %vm1554_vm5, %vm1555_vm14 }
0x1487   : > { %v1551_v33 = vsub.f32 1.0, %v1550_v18 }
0x1489   : > { %v1552_v23 = vmul.f32 %v5282_v3, %v1551_v33 }
0x148b   : > { %v1553_v36 = vadd.f32 %v5282_v3, %v1552_v23 }
0x148d   : > { %v1557_v16 = vsel %vm1556_vm6, %v5282_v3, %v1553_v36 }
0x148e   : > { %v1562_v51 = vsel %vm1559_vm11, %v1561_v39, %v1557_v16 }
0x148f   : > { %v1574_v1 = vsub.f32 1.0, %v1562_v51  ;;  %v1582_v7 = vmul.f32 %v1580_v57, %v1562_v51 }
0x14e3   : > { %v1565_v50 = vpop.permute.xlu1 %1564 }
0x14e4   : > { %v1567_v47 = vmul.f32 %v1565_v50, %v1562_v51 }
0x14e6   : > { %1569 = vrot.lane.b32.xlu2 %v1567_v47, %s5650_s20 }
0x1540   : > { %v1570_v4 = vpop.permute.xlu2 %1569 }
0x1541   : > { %v1572_v11 = vadd.f32 %v1570_v4, %v6010_v40 }
0x1543   : > { %5283 = vtanh.f32 %v1572_v11 }
0x1549   : > { %v5284_v60 = vpop.eup %5283 }
0x154a   : > { %1576 = vrot.lane.b32.xlu0 %v5284_v60, %s5652_s22 }
0x15bc   : > { %v1577_v5 = vpop.permute.xlu0 %1576 }
0x15bd   : > { %v1579_v6 = vmul.f32 %v1577_v5, %v1574_v1 }
0x15bf   : > { %v1583_v2 = vadd.f32 %v1582_v7, %v1579_v6 }
0x15c1   : > { %v1584_v12 = vperm.slane %v1583_v2, 3  ;;  %1599 = vperm.xlu0 %5100, %v1583_v2   ;;  %1593 = vperm.xlu2 %5099, %v1583_v2  }
0x15c2   : > { %1588 = vperm.xlu1 %5098, %v1583_v2  }
0x15c3   : > { %v1585_v13 = vsel %vm951_vm15, %v1584_v12, %v1521_v21 }
0x15c9   : > { %5102 = vset.pattern.permute.xlu0 %v5653_v26  ;;  %5101 = vset.pattern.permute.xlu2 %v5654_v27 }
0x15ca   : > { %5103 = vset.pattern.permute.xlu1 %v5655_v41 }
0x161b   : > { %v1594_v14 = vpop.permute.xlu2 %1593 }
0x161c   : > { %v1596_v56 = vmul.f32 %v1594_v14, %v5922_v61  ;;  %v1644_v14 = vrot.slane %v1583_v2, 7 }
0x1633   : > { %v1600_v53 = vpop.permute.xlu0 %1599 }
0x1634   : > { %v1589_v62 = vpop.permute.xlu1 %1588  ;;  %v1602_v17 = vmul.f32 %v1600_v53, %v5902_v54 }
0x1635   : > { %v1591_v59 = vmul.f32 %v6004_v19, %v1589_v62 }
0x1637   : > { %v1597_v15 = vadd.f32 %v1596_v56, %v1591_v59 }
0x1639   : > { %v1603_v20 = vadd.f32 %v1602_v17, %v1597_v15 }
0x163b   : > { %v1604_v3 = vadd.f32 %v1603_v20, %v5784_v24 }
0x163d   : > { %v1606_v21 = vrot.slane %v1604_v3, 7 }
0x163f   : > { %1628 = vrot.lane.b32.xlu1 %v1606_v21, %s5649_s19  ;;  %v1608_v18 = vadd.f32 %v1606_v21, %v6010_v40 }
0x1641   : > { %v4937_v33 = vmul.f32 -1.442695, %v1608_v18 }
0x1643   : > { %5285 = vpow2.f32 %v4937_v33 }
0x1649   : > { %v5286_v23 = vpop.eup %5285 }
0x164a   : > { %v1612_v36 = vadd.f32 1.0, %v5286_v23 }
0x164c   : > { %5287 = vrcp.f32 %v1612_v36  ;;  %v1624_v51 = vand.u32 2147483648, %v1612_v36  ;;  %vm1618_vm14 = vweird.f32 %v1612_v36  ;;  %v1622_v47 = vand.u32 2147483647, %v1612_v36 }
0x164e   : > { %v1625_v11 = vor.u32 1.1754944e-38, %v1624_v51  ;;  %vm1623_vm6 = vcmp.eq.f32.partialorder %v1622_v47, 8.507059e+37 }
0x1652   : > { %v5288_v37 = vpop.eup %5287 }
0x1653   : > { %v1614_v38 = vmul.f32 %v5288_v37, %v1612_v36  ;;  %vm1619_vm13 = vweird.f32 %v5288_v37 }
0x1654   : > { %vm1620_vm5 = vmor %vm1618_vm14, %vm1619_vm13 }
0x1655   : > { %v1615_v16 = vsub.f32 1.0, %v1614_v38 }
0x1657   : > { %v1616_v39 = vmul.f32 %v5288_v37, %v1615_v16 }
0x1659   : > { %v1617_v50 = vadd.f32 %v5288_v37, %v1616_v39 }
0x165b   : > { %v1621_v4 = vsel %vm1620_vm5, %v5288_v37, %v1617_v50 }
0x165c   : > { %v1626_v1 = vsel %vm1623_vm6, %v1625_v11, %v1621_v4 }
0x165d   : > { %v1638_v12 = vsub.f32 1.0, %v1626_v1  ;;  %v1646_v56 = vmul.f32 %v1644_v14, %v1626_v1 }
0x16b1   : > { %v1629_v60 = vpop.permute.xlu1 %1628 }
0x16b2   : > { %v1631_v57 = vmul.f32 %v1629_v60, %v1626_v1 }
0x16b4   : > { %1633 = vrot.lane.b32.xlu2 %v1631_v57, %s5650_s20 }
0x170e   : > { %v1634_v5 = vpop.permute.xlu2 %1633 }
0x170f   : > { %v1636_v6 = vadd.f32 %v1634_v5, %v6010_v40 }
0x1711   : > { %5289 = vtanh.f32 %v1636_v6 }
0x1717   : > { %v5290_v7 = vpop.eup %5289 }
0x1718   : > { %1640 = vrot.lane.b32.xlu1 %v5290_v7, %s5652_s22 }
0x178a   : > { %v1641_v53 = vpop.permute.xlu1 %1640 }
0x178b   : > { %v1643_v62 = vmul.f32 %v1641_v53, %v1638_v12 }
0x178d   : > { %v1647_v59 = vadd.f32 %v1646_v56, %v1643_v62 }
0x178f   : > { %1663 = vperm.xlu1 %5103, %v1647_v59   ;;  %1657 = vperm.xlu0 %5102, %v1647_v59   ;;  %v1648_v17 = vperm.slane %v1647_v59, 4  ;;  %v1708_v7 = vrot.slane %v1647_v59, 7 }
0x1790   : > { %1652 = vperm.xlu2 %5101, %v1647_v59  }
0x1791   : > { %v1649_v15 = vsel %vm1018_vm9, %v1648_v17, %v1585_v13 }
0x1797   : > { %5105 = vset.pattern.permute.xlu1 %v5653_v26  ;;  %5104 = vset.pattern.permute.xlu0 %v5654_v27 }
0x1798   : > { %5106 = vset.pattern.permute.xlu2 %v5655_v41 }
0x17ea   : > { %v1653_v20 = vpop.permute.xlu2 %1652 }
0x17eb   : > { %v1655_v21 = vmul.f32 %v1653_v20, %v5880_v58 }
0x1801   : > { %v1664_v3 = vpop.permute.xlu1 %1663  ;;  %v1658_v2 = vpop.permute.xlu0 %1657 }
0x1802   : > { %v1660_v18 = vmul.f32 %v6004_v19, %v1658_v2  ;;  %v1666_v33 = vmul.f32 %v1664_v3, %v5922_v61 }
0x1804   : > { %v1661_v23 = vadd.f32 %v1660_v18, %v1655_v21 }
0x1806   : > { %v1667_v36 = vadd.f32 %v1666_v33, %v1661_v23 }
0x1808   : > { %v1668_v37 = vadd.f32 %v1667_v36, %v5871_v48 }
0x180a   : > { %v1670_v13 = vrot.slane %v1668_v37, 7 }
0x180c   : > { %1692 = vrot.lane.b32.xlu2 %v1670_v13, %s5649_s19  ;;  %v1672_v38 = vadd.f32 %v1670_v13, %v6010_v40 }
0x180e   : > { %v4938_v16 = vmul.f32 -1.442695, %v1672_v38 }
0x1810   : > { %5291 = vpow2.f32 %v4938_v16 }
0x1816   : > { %v5292_v39 = vpop.eup %5291 }
0x1817   : > { %v1676_v50 = vadd.f32 1.0, %v5292_v39 }
0x1819   : > { %5293 = vrcp.f32 %v1676_v50  ;;  %v1688_v11 = vand.u32 2147483648, %v1676_v50  ;;  %v1686_v1 = vand.u32 2147483647, %v1676_v50  ;;  %vm1682_vm13 = vweird.f32 %v1676_v50 }
0x181b   : > { %v1689_v5 = vor.u32 1.1754944e-38, %v1688_v11  ;;  %vm1687_vm5 = vcmp.eq.f32.partialorder %v1686_v1, 8.507059e+37 }
0x181f   : > { %v5294_v51 = vpop.eup %5293 }
0x1820   : > { %v1678_v47 = vmul.f32 %v5294_v51, %v1676_v50  ;;  %vm1683_vm11 = vweird.f32 %v5294_v51 }
0x1821   : > { %vm1684_vm14 = vmor %vm1682_vm13, %vm1683_vm11 }
0x1822   : > { %v1679_v4 = vsub.f32 1.0, %v1678_v47 }
0x1824   : > { %v1680_v60 = vmul.f32 %v5294_v51, %v1679_v4 }
0x1826   : > { %v1681_v57 = vadd.f32 %v5294_v51, %v1680_v60 }
0x1828   : > { %v1685_v6 = vsel %vm1684_vm14, %v5294_v51, %v1681_v57 }
0x1829   : > { %v1690_v12 = vsel %vm1687_vm5, %v1689_v5, %v1685_v6 }
0x182a   : > { %v1710_v14 = vmul.f32 %v1708_v7, %v1690_v12  ;;  %v1702_v3 = vsub.f32 1.0, %v1690_v12 }
0x1866   : > { %v1693_v53 = vpop.permute.xlu2 %1692 }
0x1867   : > { %v1695_v62 = vmul.f32 %v1693_v53, %v1690_v12 }
0x1869   : > { %1697 = vrot.lane.b32.xlu1 %v1695_v62, %s5650_s20 }
0x18db   : > { %v1698_v56 = vpop.permute.xlu1 %1697 }
0x18dc   : > { %v1700_v17 = vadd.f32 %v1698_v56, %v6010_v40 }
0x18de   : > { %5295 = vtanh.f32 %v1700_v17 }
0x18e4   : > { %v5296_v20 = vpop.eup %5295 }
0x18e5   : > { %1704 = vrot.lane.b32.xlu2 %v5296_v20, %s5652_s22 }
0x193f   : > { %v1705_v2 = vpop.permute.xlu2 %1704 }
0x1940   : > { %v1707_v21 = vmul.f32 %v1705_v2, %v1702_v3 }
0x1942   : > { %v1711_v18 = vadd.f32 %v1710_v14, %v1707_v21 }
0x1944   : > { %1727 = vperm.xlu2 %5106, %v1711_v18   ;;  %1721 = vperm.xlu1 %5105, %v1711_v18   ;;  %v1712_v59 = vperm.slane %v1711_v18, 5 }
0x1945   : > { %1716 = vperm.xlu0 %5104, %v1711_v18  }
0x1946   : > { %v1713_v33 = vsel %vm1085_vm2, %v1712_v59, %v1649_v15 }
0x194c   : > { %5108 = vset.pattern.permute.xlu2 %v5653_v26  ;;  %5107 = vset.pattern.permute.xlu1 %v5654_v27 }
0x194d   : > { %5109 = vset.pattern.permute.xlu0 %v5655_v41 }
0x199e   : > { %v1728_v36 = vpop.permute.xlu2 %1727 }
0x199f   : > { %v1730_v16 = vmul.f32 %v6004_v19, %v1728_v36 }
0x19b6   : > { %v1722_v23 = vpop.permute.xlu1 %1721 }
0x19b7   : > { %v1724_v37 = vmul.f32 %v1722_v23, %v5880_v58  ;;  %v1717_v13 = vpop.permute.xlu0 %1716  ;;  %v1772_v23 = vrot.slane %v1711_v18, 7 }
0x19b8   : > { %v1719_v38 = vmul.f32 %v1717_v13, %v5908_v63 }
0x19ba   : > { %v1725_v39 = vadd.f32 %v1724_v37, %v1719_v38 }
0x19bc   : > { %v1731_v50 = vadd.f32 %v1730_v16, %v1725_v39 }
0x19be   : > { %v1732_v51 = vadd.f32 %v1731_v50, %v5902_v54 }
0x19c0   : > { %v1734_v15 = vrot.slane %v1732_v51, 7 }
0x19c2   : > { %1756 = vrot.lane.b32.xlu1 %v1734_v15, %s5649_s19  ;;  %v1736_v47 = vadd.f32 %v1734_v15, %v6010_v40 }
0x19c4   : > { %v4939_v4 = vmul.f32 -1.442695, %v1736_v47 }
0x19c6   : > { %5297 = vpow2.f32 %v4939_v4 }
0x19cc   : > { %v5298_v11 = vpop.eup %5297 }
0x19cd   : > { %v1740_v60 = vadd.f32 1.0, %v5298_v11 }
0x19cf   : > { %5299 = vrcp.f32 %v1740_v60  ;;  %v1752_v12 = vand.u32 2147483648, %v1740_v60  ;;  %vm1746_vm11 = vweird.f32 %v1740_v60  ;;  %v1750_v14 = vand.u32 2147483647, %v1740_v60 }
0x19d1   : > { %v1753_v62 = vor.u32 1.1754944e-38, %v1752_v12  ;;  %vm1751_vm14 = vcmp.eq.f32.partialorder %v1750_v14, 8.507059e+37 }
0x19d5   : > { %v5300_v1 = vpop.eup %5299 }
0x19d6   : > { %v1742_v57 = vmul.f32 %v5300_v1, %v1740_v60  ;;  %vm1747_vm6 = vweird.f32 %v5300_v1 }
0x19d7   : > { %vm1748_vm13 = vmor %vm1746_vm11, %vm1747_vm6 }
0x19d8   : > { %v1743_v5 = vsub.f32 1.0, %v1742_v57 }
0x19da   : > { %v1744_v6 = vmul.f32 %v5300_v1, %v1743_v5 }
0x19dc   : > { %v1745_v7 = vadd.f32 %v5300_v1, %v1744_v6 }
0x19de   : > { %v1749_v53 = vsel %vm1748_vm13, %v5300_v1, %v1745_v7 }
0x19df   : > { %v1754_v17 = vsel %vm1751_vm14, %v1753_v62, %v1749_v53 }
0x19e0   : > { %v1766_v59 = vsub.f32 1.0, %v1754_v17  ;;  %v1774_v13 = vmul.f32 %v1772_v23, %v1754_v17 }
0x1a34   : > { %v1757_v56 = vpop.permute.xlu1 %1756 }
0x1a35   : > { %v1759_v20 = vmul.f32 %v1757_v56, %v1754_v17 }
0x1a37   : > { %1761 = vrot.lane.b32.xlu2 %v1759_v20, %s5650_s20 }
0x1a91   : > { %v1762_v3 = vpop.permute.xlu2 %1761 }
0x1a92   : > { %v1764_v2 = vadd.f32 %v1762_v3, %v6010_v40 }
0x1a94   : > { %5301 = vtanh.f32 %v1764_v2 }
0x1a9a   : > { %v5302_v21 = vpop.eup %5301 }
0x1a9b   : > { %1768 = vrot.lane.b32.xlu0 %v5302_v21, %s5652_s22 }
0x1b0d   : > { %v1769_v36 = vpop.permute.xlu0 %1768 }
0x1b0e   : > { %v1771_v37 = vmul.f32 %v1769_v36, %v1766_v59 }
0x1b10   : > { %v1775_v38 = vadd.f32 %v1774_v13, %v1771_v37 }
0x1b12   : > { %1791 = vperm.xlu0 %5109, %v1775_v38   ;;  %1785 = vperm.xlu2 %5108, %v1775_v38   ;;  %v1776_v16 = vperm.slane %v1775_v38, 6 }
0x1b13   : > { %1780 = vperm.xlu1 %5107, %v1775_v38  }
0x1b14   : > { %v1777_v39 = vsel %vm1152_vm12, %v1776_v16, %v1713_v33 }
0x1b1a   : > { %5111 = vset.pattern.permute.xlu0 %v5653_v26  ;;  %5110 = vset.pattern.permute.xlu2 %v5654_v27 }
0x1b1b   : > { %5112 = vset.pattern.permute.xlu1 %v5655_v41 }
0x1b6c   : > { %v1786_v50 = vpop.permute.xlu2 %1785 }
0x1b6d   : > { %v1788_v15 = vmul.f32 %v1786_v50, %v5908_v63  ;;  %v1836_v50 = vrot.slane %v1775_v38, 7 }
0x1b84   : > { %v1792_v51 = vpop.permute.xlu0 %1791 }
0x1b85   : > { %v1781_v18 = vpop.permute.xlu1 %1780  ;;  %v1794_v4 = vmul.f32 %v1792_v51, %v5880_v58 }
0x1b86   : > { %v1783_v47 = vmul.f32 %v1781_v18, %v5875_v52 }
0x1b88   : > { %v1789_v11 = vadd.f32 %v1788_v15, %v1783_v47 }
0x1b8a   : > { %v1795_v60 = vadd.f32 %v1794_v4, %v1789_v11 }
0x1b8c   : > { %v1796_v1 = vadd.f32 %v1795_v60, %v5922_v61 }
0x1b8e   : > { %v1798_v33 = vrot.slane %v1796_v1, 7 }
0x1b90   : > { %1820 = vrot.lane.b32.xlu1 %v1798_v33, %s5649_s19  ;;  %v1800_v57 = vadd.f32 %v1798_v33, %v6010_v40 }
0x1b92   : > { %v4940_v5 = vmul.f32 -1.442695, %v1800_v57 }
0x1b94   : > { %5303 = vpow2.f32 %v4940_v5 }
0x1b9a   : > { %v5304_v6 = vpop.eup %5303 }
0x1b9b   : > { %v1804_v7 = vadd.f32 1.0, %v5304_v6 }
0x1b9d   : > { %5305 = vrcp.f32 %v1804_v7  ;;  %v1816_v17 = vand.u32 2147483648, %v1804_v7  ;;  %vm1810_vm6 = vweird.f32 %v1804_v7  ;;  %v1814_v20 = vand.u32 2147483647, %v1804_v7 }
0x1b9f   : > { %v1817_v2 = vor.u32 1.1754944e-38, %v1816_v17  ;;  %vm1815_vm13 = vcmp.eq.f32.partialorder %v1814_v20, 8.507059e+37 }
0x1ba3   : > { %v5306_v12 = vpop.eup %5305 }
0x1ba4   : > { %v1806_v14 = vmul.f32 %v5306_v12, %v1804_v7  ;;  %vm1811_vm5 = vweird.f32 %v5306_v12  ;;  %v6127_v7 = vadd.f32 %v5795_v31, %v5792_v30 }
0x1ba5   : > { %vm1812_vm11 = vmor %vm1810_vm6, %vm1811_vm5 }
0x1ba6   : > { %v1807_v53 = vsub.f32 1.0, %v1806_v14 }
0x1ba8   : > { %v1808_v62 = vmul.f32 %v5306_v12, %v1807_v53 }
0x1baa   : > { %v1809_v56 = vadd.f32 %v5306_v12, %v1808_v62 }
0x1bac   : > { %v1813_v3 = vsel %vm1812_vm11, %v5306_v12, %v1809_v56 }
0x1bad   : > { %v1818_v59 = vsel %vm1815_vm13, %v1817_v2, %v1813_v3 }
0x1bae   : > { %v1830_v16 = vsub.f32 1.0, %v1818_v59  ;;  %v1838_v15 = vmul.f32 %v1836_v50, %v1818_v59 }
0x1c02   : > { %v1821_v21 = vpop.permute.xlu1 %1820 }
0x1c03   : > { %v1823_v23 = vmul.f32 %v1821_v21, %v1818_v59 }
0x1c05   : > { %1825 = vrot.lane.b32.xlu2 %v1823_v23, %s5650_s20 }
0x1c5f   : > { %v1826_v36 = vpop.permute.xlu2 %1825 }
0x1c60   : > { %v1828_v37 = vadd.f32 %v1826_v36, %v6010_v40 }
0x1c62   : > { %5307 = vtanh.f32 %v1828_v37 }
0x1c68   : > { %v5308_v13 = vpop.eup %5307 }
0x1c69   : > { %1832 = vrot.lane.b32.xlu1 %v5308_v13, %s5652_s22 }
0x1cdb   : > { %v1833_v51 = vpop.permute.xlu1 %1832 }
0x1cdc   : > { %v1835_v18 = vmul.f32 %v1833_v51, %v1830_v16 }
0x1cde   : > { %v1839_v47 = vadd.f32 %v1838_v15, %v1835_v18 }
0x1ce0   : > { %1960 = vperm.xlu1 %5112, %v1839_v47   ;;  %1954 = vperm.xlu0 %5111, %v1839_v47   ;;  %v1840_v4 = vperm.slane %v1839_v47, 7  ;;  %v2005_v37 = vrot.slane %v1839_v47, 7 }
0x1ce1   : > { %1949 = vperm.xlu2 %5110, %v1839_v47  }
0x1ce2   : > { %v6116_v11 = vsel %vm1219_vm8, %v1840_v4, %v1777_v39 }
0x1ce8   : > { %5114 = vset.pattern.permute.xlu1 %v5653_v26  ;;  %5113 = vset.pattern.permute.xlu0 %v5654_v27 }
0x1ce9   : > { %5115 = vset.pattern.permute.xlu2 %v5655_v41 }
0x1d3b   : > { %v1950_v40 = vpop.permute.xlu2 %1949 }
0x1d3c   : > { %v1952_v1 = vmul.f32 %v1950_v40, %v5784_v24 }
0x1d52   : > { %v1961_v38 = vpop.permute.xlu1 %1960  ;;  %v1955_v60 = vpop.permute.xlu0 %1954 }
0x1d53   : > { %v1957_v33 = vmul.f32 %v1955_v60, %v5875_v52  ;;  %v1963_v57 = vmul.f32 %v1961_v38, %v5908_v63 }
0x1d55   : > { %v1958_v5 = vadd.f32 %v1957_v33, %v1952_v1 }
0x1d57   : > { %v1964_v6 = vadd.f32 %v1963_v57, %v1958_v5 }
0x1d59   : > { %v1965_v39 = vadd.f32 %v6004_v19, %v1964_v6 }
0x1d5b   : > { %v1967_v12 = vrot.slane %v1965_v39, 7 }
0x1d5d   : > { %1989 = vrot.lane.b32.xlu2 %v1967_v12, %s5649_s19  ;;  %v1969_v14 = vadd.f32 %v1967_v12, %v6127_v7 }
0x1d5f   : > { %v4944_v53 = vmul.f32 -1.442695, %v1969_v14 }
0x1d61   : > { %5309 = vpow2.f32 %v4944_v53 }
0x1d67   : > { %v5310_v62 = vpop.eup %5309 }
0x1d68   : > { %v1973_v56 = vadd.f32 1.0, %v5310_v62 }
0x1d6a   : > { %5311 = vrcp.f32 %v1973_v56  ;;  %v1985_v2 = vand.u32 2147483648, %v1973_v56  ;;  %v1983_v19 = vand.u32 2147483647, %v1973_v56  ;;  %vm1979_vm5 = vweird.f32 %v1973_v56 }
0x1d6c   : > { %v1986_v23 = vor.u32 1.1754944e-38, %v1985_v2  ;;  %vm1984_vm11 = vcmp.eq.f32.partialorder %v1983_v19, 8.507059e+37 }
0x1d70   : > { %v5312_v17 = vpop.eup %5311 }
0x1d71   : > { %v1975_v20 = vmul.f32 %v5312_v17, %v1973_v56  ;;  %vm1980_vm14 = vweird.f32 %v5312_v17 }
0x1d72   : > { %vm1981_vm6 = vmor %vm1979_vm5, %vm1980_vm14 }
0x1d73   : > { %v1976_v3 = vsub.f32 1.0, %v1975_v20 }
0x1d75   : > { %v1977_v21 = vmul.f32 %v5312_v17, %v1976_v3 }
0x1d77   : > { %v1978_v59 = vadd.f32 %v5312_v17, %v1977_v21 }
0x1d79   : > { %v1982_v36 = vsel %vm1981_vm6, %v5312_v17, %v1978_v59 }
0x1d7a   : > { %v1987_v13 = vsel %vm1984_vm11, %v1986_v23, %v1982_v36 }
0x1d7b   : > { %v2007_v16 = vmul.f32 %v2005_v37, %v1987_v13  ;;  %v1999_v40 = vsub.f32 1.0, %v1987_v13 }
0x1db7   : > { %v1990_v50 = vpop.permute.xlu2 %1989 }
0x1db8   : > { %v1992_v51 = vmul.f32 %v1990_v50, %v1987_v13 }
0x1dba   : > { %1994 = vrot.lane.b32.xlu1 %v1992_v51, %s5650_s20 }
0x1e2c   : > { %v1995_v18 = vpop.permute.xlu1 %1994 }
0x1e2d   : > { %v1997_v15 = vadd.f32 %v1995_v18, %v6127_v7 }
0x1e2f   : > { %5313 = vtanh.f32 %v1997_v15 }
0x1e35   : > { %v5314_v4 = vpop.eup %5313 }
0x1e36   : > { %2001 = vrot.lane.b32.xlu2 %v5314_v4, %s5652_s22 }
0x1e90   : > { %v2002_v38 = vpop.permute.xlu2 %2001 }
0x1e91   : > { %v2004_v60 = vmul.f32 %v2002_v38, %v1999_v40 }
0x1e93   : > { %v2008_v1 = vadd.f32 %v2007_v16, %v2004_v60 }
0x1e95   : > { %2024 = vperm.xlu2 %5115, %v2008_v1   ;;  %2018 = vperm.xlu1 %5114, %v2008_v1   ;;  %v2069_v60 = vrot.slane %v2008_v1, 7 }
0x1e96   : > { %2013 = vperm.xlu0 %5113, %v2008_v1  }
0x1e9d   : > { %5117 = vset.pattern.permute.xlu2 %v5653_v26  ;;  %5116 = vset.pattern.permute.xlu1 %v5654_v27 }
0x1e9e   : > { %5118 = vset.pattern.permute.xlu0 %v5655_v41 }
0x1eef   : > { %v2025_v33 = vpop.permute.xlu2 %2024 }
0x1ef0   : > { %v2027_v39 = vmul.f32 %v2025_v33, %v5875_v52 }
0x1f07   : > { %v2019_v47 = vpop.permute.xlu1 %2018 }
0x1f08   : > { %v2021_v57 = vmul.f32 %v2019_v47, %v5784_v24  ;;  %v2014_v5 = vpop.permute.xlu0 %2013 }
0x1f09   : > { %v2016_v6 = vmul.f32 %v2014_v5, %v5871_v48  ;;  %v2009_v5 = vperm.slane %v2008_v1, 0 }
0x1f0b   : > { %v2022_v12 = vadd.f32 %v2021_v57, %v2016_v6 }
0x1f0d   : > { %v2028_v14 = vadd.f32 %v2027_v39, %v2022_v12  ;;  %v2010_v12 = vsel %vm738_vm3, %v2009_v5, 0.0 }
0x1f0f   : > { %v2029_v53 = vadd.f32 %v2028_v14, %v5880_v58 }
0x1f11   : > { %v2031_v62 = vrot.slane %v2029_v53, 7 }
0x1f13   : > { %2053 = vrot.lane.b32.xlu1 %v2031_v62, %s5649_s19  ;;  %v2033_v56 = vadd.f32 %v2031_v62, %v6127_v7 }
0x1f15   : > { %v4945_v17 = vmul.f32 -1.442695, %v2033_v56 }
0x1f17   : > { %5315 = vpow2.f32 %v4945_v17 }
0x1f1d   : > { %v5316_v20 = vpop.eup %5315 }
0x1f1e   : > { %v2037_v3 = vadd.f32 1.0, %v5316_v20 }
0x1f20   : > { %5317 = vrcp.f32 %v2037_v3  ;;  %v2049_v36 = vand.u32 2147483648, %v2037_v3  ;;  %vm2043_vm14 = vweird.f32 %v2037_v3  ;;  %v2047_v37 = vand.u32 2147483647, %v2037_v3 }
0x1f22   : > { %v2050_v16 = vor.u32 1.1754944e-38, %v2049_v36  ;;  %vm2048_vm6 = vcmp.eq.f32.partialorder %v2047_v37, 8.507059e+37 }
0x1f26   : > { %v5318_v2 = vpop.eup %5317 }
0x1f27   : > { %v2039_v21 = vmul.f32 %v5318_v2, %v2037_v3  ;;  %vm2044_vm13 = vweird.f32 %v5318_v2 }
0x1f28   : > { %vm2045_vm5 = vmor %vm2043_vm14, %vm2044_vm13 }
0x1f29   : > { %v2040_v19 = vsub.f32 1.0, %v2039_v21 }
0x1f2b   : > { %v2041_v59 = vmul.f32 %v5318_v2, %v2040_v19 }
0x1f2d   : > { %v2042_v23 = vadd.f32 %v5318_v2, %v2041_v59 }
0x1f2f   : > { %v2046_v13 = vsel %vm2045_vm5, %v5318_v2, %v2042_v23 }
0x1f30   : > { %v2051_v51 = vsel %vm2048_vm6, %v2050_v16, %v2046_v13 }
0x1f31   : > { %v2063_v38 = vsub.f32 1.0, %v2051_v51  ;;  %v2071_v57 = vmul.f32 %v2069_v60, %v2051_v51 }
0x1f85   : > { %v2054_v50 = vpop.permute.xlu1 %2053 }
0x1f86   : > { %v2056_v18 = vmul.f32 %v2054_v50, %v2051_v51 }
0x1f88   : > { %2058 = vrot.lane.b32.xlu2 %v2056_v18, %s5650_s20 }
0x1fe2   : > { %v2059_v15 = vpop.permute.xlu2 %2058 }
0x1fe3   : > { %v2061_v4 = vadd.f32 %v2059_v15, %v6127_v7 }
0x1fe5   : > { %5319 = vtanh.f32 %v2061_v4 }
0x1feb   : > { %v5320_v40 = vpop.eup %5319 }
0x1fec   : > { %2065 = vrot.lane.b32.xlu0 %v5320_v40, %s5652_s22 }
0x205e   : > { %v2066_v47 = vpop.permute.xlu0 %2065 }
0x205f   : > { %v2068_v33 = vmul.f32 %v2066_v47, %v2063_v38 }
0x2061   : > { %v2072_v6 = vadd.f32 %v2071_v57, %v2068_v33 }
0x2063   : > { %v2073_v39 = vperm.slane %v2072_v6, 1  ;;  %2088 = vperm.xlu0 %5118, %v2072_v6   ;;  %2082 = vperm.xlu2 %5117, %v2072_v6  }
0x2064   : > { %2077 = vperm.xlu1 %5116, %v2072_v6  }
0x2065   : > { %v2074_v14 = vsel %vm811_vm4, %v2073_v39, %v2010_v12 }
0x206b   : > { %5120 = vset.pattern.permute.xlu0 %v5653_v26  ;;  %5119 = vset.pattern.permute.xlu2 %v5654_v27 }
0x206c   : > { %5121 = vset.pattern.permute.xlu1 %v5655_v41 }
0x20bd   : > { %v2083_v53 = vpop.permute.xlu2 %2082 }
0x20be   : > { %v2085_v56 = vmul.f32 %v2083_v53, %v5871_v48  ;;  %v2133_v53 = vrot.slane %v2072_v6, 7 }
0x20d5   : > { %v2089_v62 = vpop.permute.xlu0 %2088 }
0x20d6   : > { %v2078_v1 = vpop.permute.xlu1 %2077  ;;  %v2091_v20 = vmul.f32 %v2089_v62, %v5784_v24 }
0x20d7   : > { %v2080_v17 = vmul.f32 %v2078_v1, %v5902_v54 }
0x20d9   : > { %v2086_v3 = vadd.f32 %v2085_v56, %v2080_v17 }
0x20db   : > { %v2092_v2 = vadd.f32 %v2091_v20, %v2086_v3 }
0x20dd   : > { %v2093_v21 = vadd.f32 %v2092_v2, %v5908_v63 }
0x20df   : > { %v2095_v19 = vrot.slane %v2093_v21, 7 }
0x20e1   : > { %2117 = vrot.lane.b32.xlu1 %v2095_v19, %s5649_s19  ;;  %v2097_v59 = vadd.f32 %v2095_v19, %v6127_v7 }
0x20e3   : > { %v4946_v23 = vmul.f32 -1.442695, %v2097_v59 }
0x20e5   : > { %5321 = vpow2.f32 %v4946_v23 }
0x20eb   : > { %v5322_v36 = vpop.eup %5321 }
0x20ec   : > { %v2101_v37 = vadd.f32 1.0, %v5322_v36 }
0x20ee   : > { %5323 = vrcp.f32 %v2101_v37  ;;  %v2113_v15 = vand.u32 2147483648, %v2101_v37  ;;  %vm2107_vm13 = vweird.f32 %v2101_v37  ;;  %v2111_v4 = vand.u32 2147483647, %v2101_v37 }
0x20f0   : > { %v2114_v38 = vor.u32 1.1754944e-38, %v2113_v15  ;;  %vm2112_vm5 = vcmp.eq.f32.partialorder %v2111_v4, 8.507059e+37 }
0x20f4   : > { %v5324_v13 = vpop.eup %5323 }
0x20f5   : > { %v2103_v16 = vmul.f32 %v5324_v13, %v2101_v37  ;;  %vm2108_vm11 = vweird.f32 %v5324_v13 }
0x20f6   : > { %vm2109_vm14 = vmor %vm2107_vm13, %vm2108_vm11 }
0x20f7   : > { %v2104_v50 = vsub.f32 1.0, %v2103_v16 }
0x20f9   : > { %v2105_v51 = vmul.f32 %v5324_v13, %v2104_v50 }
0x20fb   : > { %v2106_v18 = vadd.f32 %v5324_v13, %v2105_v51 }
0x20fd   : > { %v2110_v40 = vsel %vm2109_vm14, %v5324_v13, %v2106_v18 }
0x20fe   : > { %v2115_v47 = vsel %vm2112_vm5, %v2114_v38, %v2110_v40 }
0x20ff   : > { %v2127_v12 = vsub.f32 1.0, %v2115_v47  ;;  %v2135_v56 = vmul.f32 %v2133_v53, %v2115_v47 }
0x2153   : > { %v2118_v60 = vpop.permute.xlu1 %2117 }
0x2154   : > { %v2120_v33 = vmul.f32 %v2118_v60, %v2115_v47 }
0x2156   : > { %2122 = vrot.lane.b32.xlu2 %v2120_v33, %s5650_s20 }
0x21b0   : > { %v2123_v57 = vpop.permute.xlu2 %2122 }
0x21b1   : > { %v2125_v5 = vadd.f32 %v2123_v57, %v6127_v7 }
0x21b3   : > { %5325 = vtanh.f32 %v2125_v5 }
0x21b9   : > { %v5326_v39 = vpop.eup %5325 }
0x21ba   : > { %2129 = vrot.lane.b32.xlu1 %v5326_v39, %s5652_s22 }
0x222c   : > { %v2130_v62 = vpop.permute.xlu1 %2129 }
0x222d   : > { %v2132_v1 = vmul.f32 %v2130_v62, %v2127_v12 }
0x222f   : > { %v2136_v17 = vadd.f32 %v2135_v56, %v2132_v1 }
0x2231   : > { %v2137_v20 = vperm.slane %v2136_v17, 2  ;;  %2152 = vperm.xlu1 %5121, %v2136_v17   ;;  %2146 = vperm.xlu0 %5120, %v2136_v17   ;;  %v2197_v39 = vrot.slane %v2136_v17, 7 }
0x2232   : > { %2141 = vperm.xlu2 %5119, %v2136_v17  }
0x2233   : > { %v2138_v3 = vsel %vm882_vm10, %v2137_v20, %v2074_v14 }
0x2239   : > { %5123 = vset.pattern.permute.xlu1 %v5653_v26  ;;  %5122 = vset.pattern.permute.xlu0 %v5654_v27 }
0x223a   : > { %5124 = vset.pattern.permute.xlu2 %v5655_v41 }
0x228c   : > { %v2142_v2 = vpop.permute.xlu2 %2141 }
0x228d   : > { %v2144_v19 = vmul.f32 %v2142_v2, %v5922_v61 }
0x22a3   : > { %v2153_v21 = vpop.permute.xlu1 %2152  ;;  %v2147_v6 = vpop.permute.xlu0 %2146 }
0x22a4   : > { %v2149_v59 = vmul.f32 %v2147_v6, %v5902_v54  ;;  %v2155_v23 = vmul.f32 %v2153_v21, %v5871_v48 }
0x22a6   : > { %v2150_v36 = vadd.f32 %v2149_v59, %v2144_v19 }
0x22a8   : > { %v2156_v37 = vadd.f32 %v2155_v23, %v2150_v36 }
0x22aa   : > { %v2157_v13 = vadd.f32 %v2156_v37, %v5875_v52 }
0x22ac   : > { %v2159_v14 = vrot.slane %v2157_v13, 7 }
0x22ae   : > { %v2161_v16 = vadd.f32 %v2159_v14, %v6127_v7  ;;  %2181 = vrot.lane.b32.xlu2 %v2159_v14, %s5649_s19 }
0x22b0   : > { %v4947_v50 = vmul.f32 -1.442695, %v2161_v16  ;;  %v6185_v16 = vld [vmem:[%s6743_s2] sm:$0xff] }
0x22b2   : > { %5327 = vpow2.f32 %v4947_v50 }
0x22b8   : > { %v5328_v51 = vpop.eup %5327 }
0x22b9   : > { %v2165_v18 = vadd.f32 1.0, %v5328_v51 }
0x22bb   : > { %5329 = vrcp.f32 %v2165_v18  ;;  %v2177_v38 = vand.u32 2147483648, %v2165_v18  ;;  %v2175_v47 = vand.u32 2147483647, %v2165_v18  ;;  %vm2171_vm11 = vweird.f32 %v2165_v18 }
0x22bd   : > { %v2178_v57 = vor.u32 1.1754944e-38, %v2177_v38  ;;  %vm2176_vm14 = vcmp.eq.f32.partialorder %v2175_v47, 8.507059e+37 }
0x22c1   : > { %v5330_v15 = vpop.eup %5329 }
0x22c2   : > { %v2167_v4 = vmul.f32 %v5330_v15, %v2165_v18  ;;  %vm2172_vm6 = vweird.f32 %v5330_v15 }
0x22c3   : > { %vm2173_vm13 = vmor %vm2171_vm11, %vm2172_vm6 }
0x22c4   : > { %v2168_v40 = vsub.f32 1.0, %v2167_v4 }
0x22c6   : > { %v2169_v60 = vmul.f32 %v5330_v15, %v2168_v40 }
0x22c8   : > { %v2170_v33 = vadd.f32 %v5330_v15, %v2169_v60 }
0x22ca   : > { %v2174_v5 = vsel %vm2173_vm13, %v5330_v15, %v2170_v33 }
0x22cb   : > { %v2179_v12 = vsel %vm2176_vm14, %v2178_v57, %v2174_v5 }
0x22cc   : > { %v2199_v53 = vmul.f32 %v2197_v39, %v2179_v12  ;;  %v2191_v21 = vsub.f32 1.0, %v2179_v12 }
0x2308   : > { %v2182_v62 = vpop.permute.xlu2 %2181 }
0x2309   : > { %v2184_v1 = vmul.f32 %v2182_v62, %v2179_v12 }
0x230b   : > { %2186 = vrot.lane.b32.xlu1 %v2184_v1, %s5650_s20 }
0x237d   : > { %v2187_v56 = vpop.permute.xlu1 %2186 }
0x237e   : > { %v2189_v20 = vadd.f32 %v2187_v56, %v6127_v7 }
0x2380   : > { %5331 = vtanh.f32 %v2189_v20 }
0x2386   : > { %v5332_v2 = vpop.eup %5331 }
0x2387   : > { %2193 = vrot.lane.b32.xlu2 %v5332_v2, %s5652_s22 }
0x23e1   : > { %v2194_v6 = vpop.permute.xlu2 %2193 }
0x23e2   : > { %v2196_v19 = vmul.f32 %v2194_v6, %v2191_v21 }
0x23e4   : > { %v2200_v59 = vadd.f32 %v2199_v53, %v2196_v19 }
0x23e6   : > { %v2201_v23 = vperm.slane %v2200_v59, 3  ;;  %2216 = vperm.xlu2 %5124, %v2200_v59   ;;  %2210 = vperm.xlu1 %5123, %v2200_v59  }
0x23e7   : > { %2205 = vperm.xlu0 %5122, %v2200_v59  }
0x23e8   : > { %v2202_v17 = vsel %vm951_vm15, %v2201_v23, %v2138_v3 }
0x23ee   : > { %5126 = vset.pattern.permute.xlu2 %v5653_v26  ;;  %5125 = vset.pattern.permute.xlu1 %v5654_v27 }
0x23ef   : > { %5127 = vset.pattern.permute.xlu0 %v5655_v41 }
0x2440   : > { %v2217_v37 = vpop.permute.xlu2 %2216 }
0x2441   : > { %v2219_v3 = vmul.f32 %v2217_v37, %v5902_v54  ;;  %v2261_v37 = vrot.slane %v2200_v59, 7 }
0x2458   : > { %v2211_v36 = vpop.permute.xlu1 %2210 }
0x2459   : > { %v2213_v13 = vmul.f32 %v2211_v36, %v5922_v61  ;;  %v2206_v14 = vpop.permute.xlu0 %2205 }
0x245a   : > { %v2208_v50 = vmul.f32 %v6185_v16, %v2206_v14 }
0x245c   : > { %v2214_v51 = vadd.f32 %v2213_v13, %v2208_v50 }
0x245e   : > { %v2220_v18 = vadd.f32 %v2219_v3, %v2214_v51 }
0x2460   : > { %v2221_v15 = vadd.f32 %v2220_v18, %v5784_v24 }
0x2462   : > { %v2223_v4 = vrot.slane %v2221_v15, 7 }
0x2464   : > { %2245 = vrot.lane.b32.xlu1 %v2223_v4, %s5649_s19  ;;  %v2225_v40 = vadd.f32 %v2223_v4, %v6127_v7 }
0x2466   : > { %v4948_v38 = vmul.f32 -1.442695, %v2225_v40 }
0x2468   : > { %5333 = vpow2.f32 %v4948_v38 }
0x246e   : > { %v5334_v60 = vpop.eup %5333 }
0x246f   : > { %v2229_v47 = vadd.f32 1.0, %v5334_v60 }
0x2471   : > { %5335 = vrcp.f32 %v2229_v47  ;;  %v2241_v53 = vand.u32 2147483648, %v2229_v47  ;;  %vm2235_vm6 = vweird.f32 %v2229_v47  ;;  %v2239_v62 = vand.u32 2147483647, %v2229_v47 }
0x2473   : > { %v2242_v56 = vor.u32 1.1754944e-38, %v2241_v53  ;;  %vm2240_vm13 = vcmp.eq.f32.partialorder %v2239_v62, 8.507059e+37 }
0x2477   : > { %v5336_v33 = vpop.eup %5335 }
0x2478   : > { %v2231_v57 = vmul.f32 %v5336_v33, %v2229_v47  ;;  %vm2236_vm5 = vweird.f32 %v5336_v33 }
0x2479   : > { %vm2237_vm11 = vmor %vm2235_vm6, %vm2236_vm5 }
0x247a   : > { %v2232_v5 = vsub.f32 1.0, %v2231_v57 }
0x247c   : > { %v2233_v39 = vmul.f32 %v5336_v33, %v2232_v5 }
0x247e   : > { %v2234_v12 = vadd.f32 %v5336_v33, %v2233_v39 }
0x2480   : > { %v2238_v1 = vsel %vm2237_vm11, %v5336_v33, %v2234_v12 }
0x2481   : > { %v2243_v2 = vsel %vm2240_vm13, %v2242_v56, %v2238_v1 }
0x2482   : > { %v2255_v36 = vsub.f32 1.0, %v2243_v2  ;;  %v2263_v50 = vmul.f32 %v2261_v37, %v2243_v2 }
0x24d6   : > { %v2246_v20 = vpop.permute.xlu1 %2245 }
0x24d7   : > { %v2248_v21 = vmul.f32 %v2246_v20, %v2243_v2 }
0x24d9   : > { %2250 = vrot.lane.b32.xlu2 %v2248_v21, %s5650_s20 }
0x2533   : > { %v2251_v6 = vpop.permute.xlu2 %2250 }
0x2534   : > { %v2253_v19 = vadd.f32 %v2251_v6, %v6127_v7 }
0x2536   : > { %5337 = vtanh.f32 %v2253_v19 }
0x253c   : > { %v5338_v23 = vpop.eup %5337 }
0x253d   : > { %2257 = vrot.lane.b32.xlu0 %v5338_v23, %s5652_s22 }
0x25af   : > { %v2258_v13 = vpop.permute.xlu0 %2257 }
0x25b0   : > { %v2260_v14 = vmul.f32 %v2258_v13, %v2255_v36 }
0x25b2   : > { %v2264_v3 = vadd.f32 %v2263_v50, %v2260_v14 }
0x25b4   : > { %2280 = vperm.xlu0 %5127, %v2264_v3   ;;  %2274 = vperm.xlu2 %5126, %v2264_v3   ;;  %v2265_v51 = vperm.slane %v2264_v3, 4 }
0x25b5   : > { %2269 = vperm.xlu1 %5125, %v2264_v3  }
0x25b6   : > { %v2266_v18 = vsel %vm1018_vm9, %v2265_v51, %v2202_v17 }
0x25bc   : > { %5129 = vset.pattern.permute.xlu0 %v5653_v26  ;;  %5128 = vset.pattern.permute.xlu2 %v5654_v27 }
0x25bd   : > { %5130 = vset.pattern.permute.xlu1 %v5655_v41 }
0x260e   : > { %v2275_v15 = vpop.permute.xlu2 %2274 }
0x260f   : > { %v2277_v40 = vmul.f32 %v6185_v16, %v2275_v15 }
0x2626   : > { %v2281_v4 = vpop.permute.xlu0 %2280 }
0x2627   : > { %v2270_v59 = vpop.permute.xlu1 %2269  ;;  %v2283_v60 = vmul.f32 %v2281_v4, %v5922_v61  ;;  %v2325_v4 = vrot.slane %v2264_v3, 7 }
0x2628   : > { %v2272_v38 = vmul.f32 %v2270_v59, %v5880_v58 }
0x262a   : > { %v2278_v47 = vadd.f32 %v2277_v40, %v2272_v38 }
0x262c   : > { %v2284_v33 = vadd.f32 %v2283_v60, %v2278_v47 }
0x262e   : > { %v2285_v57 = vadd.f32 %v2284_v33, %v5871_v48 }
0x2630   : > { %v2287_v17 = vrot.slane %v2285_v57, 7 }
0x2632   : > { %2309 = vrot.lane.b32.xlu1 %v2287_v17, %s5649_s19  ;;  %v2289_v5 = vadd.f32 %v2287_v17, %v6127_v7 }
0x2634   : > { %v4949_v39 = vmul.f32 -1.442695, %v2289_v5 }
0x2636   : > { %5339 = vpow2.f32 %v4949_v39 }
0x263c   : > { %v5340_v12 = vpop.eup %5339 }
0x263d   : > { %v2293_v53 = vadd.f32 1.0, %v5340_v12 }
0x263f   : > { %5341 = vrcp.f32 %v2293_v53  ;;  %v2305_v21 = vand.u32 2147483648, %v2293_v53  ;;  %vm2299_vm5 = vweird.f32 %v2293_v53  ;;  %v2303_v6 = vand.u32 2147483647, %v2293_v53 }
0x2641   : > { %v2306_v23 = vor.u32 1.1754944e-38, %v2305_v21  ;;  %vm2304_vm11 = vcmp.eq.f32.partialorder %v2303_v6, 8.507059e+37 }
0x2645   : > { %v5342_v62 = vpop.eup %5341 }
0x2646   : > { %v2295_v1 = vmul.f32 %v5342_v62, %v2293_v53  ;;  %vm2300_vm14 = vweird.f32 %v5342_v62 }
0x2647   : > { %vm2301_vm6 = vmor %vm2299_vm5, %vm2300_vm14 }
0x2648   : > { %v2296_v56 = vsub.f32 1.0, %v2295_v1 }
0x264a   : > { %v2297_v20 = vmul.f32 %v5342_v62, %v2296_v56 }
0x264c   : > { %v2298_v2 = vadd.f32 %v5342_v62, %v2297_v20 }
0x264e   : > { %v2302_v19 = vsel %vm2301_vm6, %v5342_v62, %v2298_v2 }
0x264f   : > { %v2307_v37 = vsel %vm2304_vm11, %v2306_v23, %v2302_v19 }
0x2650   : > { %v2319_v15 = vsub.f32 1.0, %v2307_v37  ;;  %v2327_v38 = vmul.f32 %v2325_v4, %v2307_v37 }
0x26a4   : > { %v2310_v36 = vpop.permute.xlu1 %2309 }
0x26a5   : > { %v2312_v13 = vmul.f32 %v2310_v36, %v2307_v37 }
0x26a7   : > { %2314 = vrot.lane.b32.xlu2 %v2312_v13, %s5650_s20 }
0x2701   : > { %v2315_v14 = vpop.permute.xlu2 %2314 }
0x2702   : > { %v2317_v50 = vadd.f32 %v2315_v14, %v6127_v7 }
0x2704   : > { %5343 = vtanh.f32 %v2317_v50 }
0x270a   : > { %v5344_v51 = vpop.eup %5343 }
0x270b   : > { %2321 = vrot.lane.b32.xlu1 %v5344_v51, %s5652_s22 }
0x277d   : > { %v2322_v59 = vpop.permute.xlu1 %2321 }
0x277e   : > { %v2324_v40 = vmul.f32 %v2322_v59, %v2319_v15 }
0x2780   : > { %v2328_v60 = vadd.f32 %v2327_v38, %v2324_v40 }
0x2782   : > { %2344 = vperm.xlu1 %5130, %v2328_v60   ;;  %2338 = vperm.xlu0 %5129, %v2328_v60   ;;  %v2329_v47 = vperm.slane %v2328_v60, 5  ;;  %v2389_v15 = vrot.slane %v2328_v60, 7 }
0x2783   : > { %2333 = vperm.xlu2 %5128, %v2328_v60  }
0x2784   : > { %v2330_v33 = vsel %vm1085_vm2, %v2329_v47, %v2266_v18 }
0x278a   : > { %5132 = vset.pattern.permute.xlu1 %v5653_v26  ;;  %5131 = vset.pattern.permute.xlu0 %v5654_v27 }
0x278b   : > { %5133 = vset.pattern.permute.xlu2 %v5655_v41 }
0x27dd   : > { %v2334_v57 = vpop.permute.xlu2 %2333 }
0x27de   : > { %v2336_v5 = vmul.f32 %v2334_v57, %v5908_v63 }
0x27f4   : > { %v2345_v17 = vpop.permute.xlu1 %2344  ;;  %v2339_v3 = vpop.permute.xlu0 %2338 }
0x27f5   : > { %v2341_v39 = vmul.f32 %v2339_v3, %v5880_v58  ;;  %v2347_v12 = vmul.f32 %v6185_v16, %v2345_v17 }
0x27f7   : > { %v2342_v53 = vadd.f32 %v2341_v39, %v2336_v5 }
0x27f9   : > { %v2348_v62 = vadd.f32 %v2347_v12, %v2342_v53 }
0x27fb   : > { %v2349_v1 = vadd.f32 %v2348_v62, %v5902_v54 }
0x27fd   : > { %v2351_v18 = vrot.slane %v2349_v1, 7 }
0x27ff   : > { %v2353_v56 = vadd.f32 %v2351_v18, %v6127_v7  ;;  %2373 = vrot.lane.b32.xlu2 %v2351_v18, %s5649_s19 }
0x2801   : > { %v4950_v20 = vmul.f32 -1.442695, %v2353_v56 }
0x2803   : > { %5345 = vpow2.f32 %v4950_v20 }
0x2809   : > { %v5346_v2 = vpop.eup %5345 }
0x280a   : > { %v2357_v21 = vadd.f32 1.0, %v5346_v2 }
0x280c   : > { %5347 = vrcp.f32 %v2357_v21  ;;  %v2369_v36 = vand.u32 2147483648, %v2357_v21  ;;  %v2367_v13 = vand.u32 2147483647, %v2357_v21  ;;  %vm2363_vm14 = vweird.f32 %v2357_v21 }
0x280e   : > { %v2370_v50 = vor.u32 1.1754944e-38, %v2369_v36  ;;  %vm2368_vm6 = vcmp.eq.f32.partialorder %v2367_v13, 8.507059e+37 }
0x2812   : > { %v5348_v6 = vpop.eup %5347 }
0x2813   : > { %v2359_v19 = vmul.f32 %v5348_v6, %v2357_v21  ;;  %vm2364_vm13 = vweird.f32 %v5348_v6 }
0x2814   : > { %vm2365_vm5 = vmor %vm2363_vm14, %vm2364_vm13 }
0x2815   : > { %v2360_v23 = vsub.f32 1.0, %v2359_v19 }
0x2817   : > { %v2361_v37 = vmul.f32 %v5348_v6, %v2360_v23 }
0x2819   : > { %v2362_v14 = vadd.f32 %v5348_v6, %v2361_v37 }
0x281b   : > { %v2366_v51 = vsel %vm2365_vm5, %v5348_v6, %v2362_v14 }
0x281c   : > { %v2371_v4 = vsel %vm2368_vm6, %v2370_v50, %v2366_v51 }
0x281d   : > { %v2391_v59 = vmul.f32 %v2389_v15, %v2371_v4  ;;  %v2383_v3 = vsub.f32 1.0, %v2371_v4 }
0x2859   : > { %v2374_v40 = vpop.permute.xlu2 %2373 }
0x285a   : > { %v2376_v38 = vmul.f32 %v2374_v40, %v2371_v4 }
0x285c   : > { %2378 = vrot.lane.b32.xlu1 %v2376_v38, %s5650_s20 }
0x28ce   : > { %v2379_v47 = vpop.permute.xlu1 %2378 }
0x28cf   : > { %v2381_v57 = vadd.f32 %v2379_v47, %v6127_v7 }
0x28d1   : > { %5349 = vtanh.f32 %v2381_v57 }
0x28d7   : > { %v5350_v17 = vpop.eup %5349 }
0x28d8   : > { %2385 = vrot.lane.b32.xlu2 %v5350_v17, %s5652_s22 }
0x2932   : > { %v2386_v5 = vpop.permute.xlu2 %2385 }
0x2933   : > { %v2388_v39 = vmul.f32 %v2386_v5, %v2383_v3 }
0x2935   : > { %v2392_v12 = vadd.f32 %v2391_v59, %v2388_v39 }
0x2937   : > { %2408 = vperm.xlu2 %5133, %v2392_v12   ;;  %2402 = vperm.xlu1 %5132, %v2392_v12   ;;  %v2393_v60 = vperm.slane %v2392_v12, 6 }
0x2938   : > { %2397 = vperm.xlu0 %5131, %v2392_v12  }
0x2939   : > { %v2394_v53 = vsel %vm1152_vm12, %v2393_v60, %v2330_v33 }
0x293f   : > { %5135 = vset.pattern.permute.xlu2 %v5653_v26  ;;  %5134 = vset.pattern.permute.xlu1 %v5654_v27 }
0x2940   : > { %5136 = vset.pattern.permute.xlu0 %v5655_v41 }
0x2991   : > { %v2409_v1 = vpop.permute.xlu2 %2408 }
0x2992   : > { %v2411_v2 = vmul.f32 %v2409_v1, %v5880_v58  ;;  %v2453_v1 = vrot.slane %v2392_v12, 7 }
0x29a9   : > { %v2403_v62 = vpop.permute.xlu1 %2402 }
0x29aa   : > { %v2405_v18 = vmul.f32 %v2403_v62, %v5908_v63  ;;  %v2398_v56 = vpop.permute.xlu0 %2397 }
0x29ab   : > { %v2400_v20 = vmul.f32 %v2398_v56, %v5875_v52 }
0x29ad   : > { %v2406_v21 = vadd.f32 %v2405_v18, %v2400_v20 }
0x29af   : > { %v2412_v6 = vadd.f32 %v2411_v2, %v2406_v21 }
0x29b1   : > { %v2413_v19 = vadd.f32 %v2412_v6, %v5922_v61 }
0x29b3   : > { %v2415_v33 = vrot.slane %v2413_v19, 7 }
0x29b5   : > { %2437 = vrot.lane.b32.xlu1 %v2415_v33, %s5649_s19  ;;  %v2417_v23 = vadd.f32 %v2415_v33, %v6127_v7 }
0x29b7   : > { %v4951_v36 = vmul.f32 -1.442695, %v2417_v23 }
0x29b9   : > { %5351 = vpow2.f32 %v4951_v36 }
0x29bf   : > { %v5352_v37 = vpop.eup %5351 }
0x29c0   : > { %v2421_v13 = vadd.f32 1.0, %v5352_v37 }
0x29c2   : > { %5353 = vrcp.f32 %v2421_v13  ;;  %v2433_v59 = vand.u32 2147483648, %v2421_v13  ;;  %vm2427_vm13 = vweird.f32 %v2421_v13  ;;  %v2431_v40 = vand.u32 2147483647, %v2421_v13 }
0x29c4   : > { %v2434_v47 = vor.u32 1.1754944e-38, %v2433_v59  ;;  %vm2432_vm5 = vcmp.eq.f32.partialorder %v2431_v40, 8.507059e+37 }
0x29c8   : > { %v5354_v14 = vpop.eup %5353 }
0x29c9   : > { %v2423_v50 = vmul.f32 %v5354_v14, %v2421_v13  ;;  %vm2428_vm11 = vweird.f32 %v5354_v14 }
0x29ca   : > { %vm2429_vm14 = vmor %vm2427_vm13, %vm2428_vm11 }
0x29cb   : > { %v2424_v51 = vsub.f32 1.0, %v2423_v50  ;;  %v6251_v50 = vadd.f32 %v5795_v31, %v5797_v32 }
0x29cd   : > { %v2425_v15 = vmul.f32 %v5354_v14, %v2424_v51 }
0x29cf   : > { %v2426_v4 = vadd.f32 %v5354_v14, %v2425_v15 }
0x29d1   : > { %v2430_v38 = vsel %vm2429_vm14, %v5354_v14, %v2426_v4 }
0x29d2   : > { %v2435_v17 = vsel %vm2432_vm5, %v2434_v47, %v2430_v38 }
0x29d3   : > { %v2447_v62 = vsub.f32 1.0, %v2435_v17  ;;  %v2455_v20 = vmul.f32 %v2453_v1, %v2435_v17 }
0x2a27   : > { %v2438_v57 = vpop.permute.xlu1 %2437 }
0x2a28   : > { %v2440_v3 = vmul.f32 %v2438_v57, %v2435_v17 }
0x2a2a   : > { %2442 = vrot.lane.b32.xlu2 %v2440_v3, %s5650_s20 }
0x2a84   : > { %v2443_v5 = vpop.permute.xlu2 %2442 }
0x2a85   : > { %v2445_v39 = vadd.f32 %v2443_v5, %v6127_v7 }
0x2a87   : > { %5355 = vtanh.f32 %v2445_v39 }
0x2a8d   : > { %v5356_v60 = vpop.eup %5355 }
0x2a8e   : > { %2449 = vrot.lane.b32.xlu0 %v5356_v60, %s5652_s22 }
0x2b00   : > { %v2450_v18 = vpop.permute.xlu0 %2449 }
0x2b01   : > { %v2452_v56 = vmul.f32 %v2450_v18, %v2447_v62 }
0x2b03   : > { %v2456_v2 = vadd.f32 %v2455_v20, %v2452_v56 }
0x2b05   : > { %2577 = vperm.xlu0 %5136, %v2456_v2   ;;  %2571 = vperm.xlu2 %5135, %v2456_v2   ;;  %v2457_v21 = vperm.slane %v2456_v2, 7 }
0x2b06   : > { %2566 = vperm.xlu1 %5134, %v2456_v2  }
0x2b07   : > { %v6239_v6 = vsel %vm1219_vm8, %v2457_v21, %v2394_v53 }
0x2b0d   : > { %5138 = vset.pattern.permute.xlu0 %v5653_v26  ;;  %5137 = vset.pattern.permute.xlu2 %v5654_v27 }
0x2b0e   : > { %5139 = vset.pattern.permute.xlu1 %v5655_v41 }
0x2b5f   : > { %v2572_v7 = vpop.permute.xlu2 %2571 }
0x2b60   : > { %v2574_v33 = vmul.f32 %v2572_v7, %v5875_v52 }
0x2b77   : > { %v2578_v12 = vpop.permute.xlu0 %2577 }
0x2b78   : > { %v2567_v19 = vpop.permute.xlu1 %2566  ;;  %v2580_v36 = vmul.f32 %v2578_v12, %v5908_v63  ;;  %v2622_v12 = vrot.slane %v2456_v2, 7 }
0x2b79   : > { %v2569_v23 = vmul.f32 %v2567_v19, %v5784_v24 }
0x2b7b   : > { %v2575_v37 = vadd.f32 %v2574_v33, %v2569_v23 }
0x2b7d   : > { %v2581_v13 = vadd.f32 %v2580_v36, %v2575_v37 }
0x2b7f   : > { %v2582_v53 = vadd.f32 %v6185_v16, %v2581_v13 }
0x2b81   : > { %v2584_v14 = vrot.slane %v2582_v53, 7 }
0x2b83   : > { %2606 = vrot.lane.b32.xlu1 %v2584_v14, %s5649_s19  ;;  %v2586_v51 = vadd.f32 %v2584_v14, %v6251_v50 }
0x2b85   : > { %v4955_v15 = vmul.f32 -1.442695, %v2586_v51 }
0x2b87   : > { %5357 = vpow2.f32 %v4955_v15 }
0x2b8d   : > { %v5358_v4 = vpop.eup %5357 }
0x2b8e   : > { %v2590_v59 = vadd.f32 1.0, %v5358_v4 }
0x2b90   : > { %5359 = vrcp.f32 %v2590_v59  ;;  %v2602_v3 = vand.u32 2147483648, %v2590_v59  ;;  %vm2596_vm11 = vweird.f32 %v2590_v59  ;;  %v2600_v5 = vand.u32 2147483647, %v2590_v59 }
0x2b92   : > { %v2603_v60 = vor.u32 1.1754944e-38, %v2602_v3  ;;  %vm2601_vm14 = vcmp.eq.f32.partialorder %v2600_v5, 8.507059e+37 }
0x2b96   : > { %v5360_v40 = vpop.eup %5359 }
0x2b97   : > { %v2592_v38 = vmul.f32 %v5360_v40, %v2590_v59  ;;  %vm2597_vm6 = vweird.f32 %v5360_v40 }
0x2b98   : > { %vm2598_vm13 = vmor %vm2596_vm11, %vm2597_vm6 }
0x2b99   : > { %v2593_v47 = vsub.f32 1.0, %v2592_v38 }
0x2b9b   : > { %v2594_v57 = vmul.f32 %v5360_v40, %v2593_v47 }
0x2b9d   : > { %v2595_v17 = vadd.f32 %v5360_v40, %v2594_v57 }
0x2b9f   : > { %v2599_v39 = vsel %vm2598_vm13, %v5360_v40, %v2595_v17 }
0x2ba0   : > { %v2604_v1 = vsel %vm2601_vm14, %v2603_v60, %v2599_v39 }
0x2ba1   : > { %v2616_v7 = vsub.f32 1.0, %v2604_v1  ;;  %v2624_v23 = vmul.f32 %v2622_v12, %v2604_v1 }
0x2bf5   : > { %v2607_v62 = vpop.permute.xlu1 %2606 }
0x2bf6   : > { %v2609_v18 = vmul.f32 %v2607_v62, %v2604_v1 }
0x2bf8   : > { %2611 = vrot.lane.b32.xlu2 %v2609_v18, %s5650_s20 }
0x2c52   : > { %v2612_v56 = vpop.permute.xlu2 %2611 }
0x2c53   : > { %v2614_v20 = vadd.f32 %v2612_v56, %v6251_v50 }
0x2c55   : > { %5361 = vtanh.f32 %v2614_v20 }
0x2c5b   : > { %v5362_v21 = vpop.eup %5361 }
0x2c5c   : > { %2618 = vrot.lane.b32.xlu1 %v5362_v21, %s5652_s22 }
0x2cce   : > { %v2619_v19 = vpop.permute.xlu1 %2618 }
0x2ccf   : > { %v2621_v33 = vmul.f32 %v2619_v19, %v2616_v7 }
0x2cd1   : > { %v2625_v36 = vadd.f32 %v2624_v23, %v2621_v33 }
0x2cd3   : > { %2641 = vperm.xlu1 %5139, %v2625_v36   ;;  %2635 = vperm.xlu0 %5138, %v2625_v36   ;;  %v2686_v21 = vrot.slane %v2625_v36, 7 }
0x2cd4   : > { %2630 = vperm.xlu2 %5137, %v2625_v36  }
0x2cdb   : > { %5141 = vset.pattern.permute.xlu1 %v5653_v26  ;;  %5140 = vset.pattern.permute.xlu0 %v5654_v27 }
0x2cdc   : > { %5142 = vset.pattern.permute.xlu2 %v5655_v41 }
0x2d2e   : > { %v2631_v37 = vpop.permute.xlu2 %2630 }
0x2d2f   : > { %v2633_v14 = vmul.f32 %v2631_v37, %v5871_v48 }
0x2d45   : > { %v2642_v13 = vpop.permute.xlu1 %2641  ;;  %v2636_v53 = vpop.permute.xlu0 %2635 }
0x2d46   : > { %v2638_v2 = vmul.f32 %v2636_v53, %v5784_v24  ;;  %v2644_v51 = vmul.f32 %v2642_v13, %v5875_v52 }
0x2d48   : > { %v2639_v15 = vadd.f32 %v2638_v2, %v2633_v14 }
0x2d4a   : > { %v2645_v4 = vadd.f32 %v2644_v51, %v2639_v15  ;;  %v2626_v51 = vperm.slane %v2625_v36, 0 }
0x2d4c   : > { %v2646_v59 = vadd.f32 %v2645_v4, %v5880_v58 }
0x2d4e   : > { %v2648_v40 = vrot.slane %v2646_v59, 7  ;;  %v2627_v59 = vsel %vm738_vm3, %v2626_v51, 0.0 }
0x2d50   : > { %v2650_v38 = vadd.f32 %v2648_v40, %v6251_v50  ;;  %2670 = vrot.lane.b32.xlu2 %v2648_v40, %s5649_s19 }
0x2d52   : > { %v4956_v47 = vmul.f32 -1.442695, %v2650_v38 }
0x2d54   : > { %5363 = vpow2.f32 %v4956_v47 }
0x2d5a   : > { %v5364_v57 = vpop.eup %5363 }
0x2d5b   : > { %v2654_v17 = vadd.f32 1.0, %v5364_v57 }
0x2d5d   : > { %5365 = vrcp.f32 %v2654_v17  ;;  %v2666_v60 = vand.u32 2147483648, %v2654_v17  ;;  %v2664_v1 = vand.u32 2147483647, %v2654_v17  ;;  %vm2660_vm6 = vweird.f32 %v2654_v17 }
0x2d5f   : > { %v2667_v56 = vor.u32 1.1754944e-38, %v2666_v60  ;;  %vm2665_vm13 = vcmp.eq.f32.partialorder %v2664_v1, 8.507059e+37 }
0x2d63   : > { %v5366_v3 = vpop.eup %5365 }
0x2d64   : > { %v2656_v5 = vmul.f32 %v5366_v3, %v2654_v17  ;;  %vm2661_vm5 = vweird.f32 %v5366_v3 }
0x2d65   : > { %vm2662_vm11 = vmor %vm2660_vm6, %vm2661_vm5 }
0x2d66   : > { %v2657_v39 = vsub.f32 1.0, %v2656_v5 }
0x2d68   : > { %v2658_v62 = vmul.f32 %v5366_v3, %v2657_v39 }
0x2d6a   : > { %v2659_v18 = vadd.f32 %v5366_v3, %v2658_v62 }
0x2d6c   : > { %v2663_v20 = vsel %vm2662_vm11, %v5366_v3, %v2659_v18 }
0x2d6d   : > { %v2668_v7 = vsel %vm2665_vm13, %v2667_v56, %v2663_v20 }
0x2d6e   : > { %v2688_v12 = vmul.f32 %v2686_v21, %v2668_v7  ;;  %v2680_v53 = vsub.f32 1.0, %v2668_v7 }
0x2daa   : > { %v2671_v19 = vpop.permute.xlu2 %2670 }
0x2dab   : > { %v2673_v33 = vmul.f32 %v2671_v19, %v2668_v7 }
0x2dad   : > { %2675 = vrot.lane.b32.xlu1 %v2673_v33, %s5650_s20 }
0x2e1f   : > { %v2676_v23 = vpop.permute.xlu1 %2675 }
0x2e20   : > { %v2678_v37 = vadd.f32 %v2676_v23, %v6251_v50 }
0x2e22   : > { %5367 = vtanh.f32 %v2678_v37 }
0x2e28   : > { %v5368_v13 = vpop.eup %5367 }
0x2e29   : > { %2682 = vrot.lane.b32.xlu2 %v5368_v13, %s5652_s22 }
0x2e83   : > { %v2683_v14 = vpop.permute.xlu2 %2682 }
0x2e84   : > { %v2685_v2 = vmul.f32 %v2683_v14, %v2680_v53 }
0x2e86   : > { %v2689_v15 = vadd.f32 %v2688_v12, %v2685_v2 }
0x2e88   : > { %v2690_v4 = vperm.slane %v2689_v15, 1  ;;  %2705 = vperm.xlu2 %5142, %v2689_v15   ;;  %2699 = vperm.xlu1 %5141, %v2689_v15  }
0x2e89   : > { %2694 = vperm.xlu0 %5140, %v2689_v15  }
0x2e8a   : > { %v2691_v40 = vsel %vm811_vm4, %v2690_v4, %v2627_v59 }
0x2e90   : > { %5144 = vset.pattern.permute.xlu2 %v5653_v26  ;;  %5143 = vset.pattern.permute.xlu1 %v5654_v27 }
0x2e91   : > { %5145 = vset.pattern.permute.xlu0 %v5655_v41 }
0x2ee2   : > { %v2706_v47 = vpop.permute.xlu2 %2705 }
0x2ee3   : > { %v2708_v3 = vmul.f32 %v2706_v47, %v5784_v24 }
0x2efa   : > { %v2700_v38 = vpop.permute.xlu1 %2699 }
0x2efb   : > { %v2702_v36 = vmul.f32 %v2700_v38, %v5871_v48  ;;  %v2695_v57 = vpop.permute.xlu0 %2694 }
0x2efc   : > { %v2697_v17 = vmul.f32 %v2695_v57, %v5902_v54 }
0x2efe   : > { %v2703_v5 = vadd.f32 %v2702_v36, %v2697_v17  ;;  %v2750_v36 = vrot.slane %v2689_v15, 7 }
0x2f00   : > { %v2709_v39 = vadd.f32 %v2708_v3, %v2703_v5 }
0x2f02   : > { %v2710_v60 = vadd.f32 %v2709_v39, %v5908_v63 }
0x2f04   : > { %v2712_v62 = vrot.slane %v2710_v60, 7 }
0x2f06   : > { %2734 = vrot.lane.b32.xlu1 %v2712_v62, %s5649_s19  ;;  %v2714_v1 = vadd.f32 %v2712_v62, %v6251_v50 }
0x2f08   : > { %v4957_v18 = vmul.f32 -1.442695, %v2714_v1 }
0x2f0a   : > { %5369 = vpow2.f32 %v4957_v18 }
0x2f10   : > { %v5370_v56 = vpop.eup %5369 }
0x2f11   : > { %v2718_v20 = vadd.f32 1.0, %v5370_v56 }
0x2f13   : > { %5371 = vrcp.f32 %v2718_v20  ;;  %v2730_v23 = vand.u32 2147483648, %v2718_v20  ;;  %vm2724_vm5 = vweird.f32 %v2718_v20  ;;  %v2728_v37 = vand.u32 2147483647, %v2718_v20 }
0x2f15   : > { %v2731_v53 = vor.u32 1.1754944e-38, %v2730_v23  ;;  %vm2729_vm11 = vcmp.eq.f32.partialorder %v2728_v37, 8.507059e+37 }
0x2f19   : > { %v5372_v21 = vpop.eup %5371 }
0x2f1a   : > { %v2720_v7 = vmul.f32 %v5372_v21, %v2718_v20  ;;  %vm2725_vm14 = vweird.f32 %v5372_v21 }
0x2f1b   : > { %vm2726_vm6 = vmor %vm2724_vm5, %vm2725_vm14 }
0x2f1c   : > { %v2721_v12 = vsub.f32 1.0, %v2720_v7 }
0x2f1e   : > { %v2722_v19 = vmul.f32 %v5372_v21, %v2721_v12 }
0x2f20   : > { %v2723_v33 = vadd.f32 %v5372_v21, %v2722_v19 }
0x2f22   : > { %v2727_v13 = vsel %vm2726_vm6, %v5372_v21, %v2723_v33 }
0x2f23   : > { %v2732_v2 = vsel %vm2729_vm11, %v2731_v53, %v2727_v13 }
0x2f24   : > { %v2744_v47 = vsub.f32 1.0, %v2732_v2  ;;  %v2752_v3 = vmul.f32 %v2750_v36, %v2732_v2 }
0x2f78   : > { %v2735_v14 = vpop.permute.xlu1 %2734 }
0x2f79   : > { %v2737_v51 = vmul.f32 %v2735_v14, %v2732_v2 }
0x2f7b   : > { %2739 = vrot.lane.b32.xlu2 %v2737_v51, %s5650_s20 }
0x2fd5   : > { %v2740_v4 = vpop.permute.xlu2 %2739 }
0x2fd6   : > { %v2742_v59 = vadd.f32 %v2740_v4, %v6251_v50 }
0x2fd8   : > { %5373 = vtanh.f32 %v2742_v59 }
0x2fde   : > { %v5374_v38 = vpop.eup %5373 }
0x2fdf   : > { %2746 = vrot.lane.b32.xlu0 %v5374_v38, %s5652_s22 }
0x3051   : > { %v2747_v57 = vpop.permute.xlu0 %2746 }
0x3052   : > { %v2749_v17 = vmul.f32 %v2747_v57, %v2744_v47 }
0x3054   : > { %v2753_v5 = vadd.f32 %v2752_v3, %v2749_v17 }
0x3056   : > { %v2754_v39 = vperm.slane %v2753_v5, 2  ;;  %2769 = vperm.xlu0 %5145, %v2753_v5   ;;  %2763 = vperm.xlu2 %5144, %v2753_v5  }
0x3057   : > { %2758 = vperm.xlu1 %5143, %v2753_v5  }
0x3058   : > { %v2755_v60 = vsel %vm882_vm10, %v2754_v39, %v2691_v40 }
0x305e   : > { %5147 = vset.pattern.permute.xlu0 %v5653_v26  ;;  %5146 = vset.pattern.permute.xlu2 %v5654_v27 }
0x305f   : > { %5148 = vset.pattern.permute.xlu1 %v5655_v41 }
0x30b0   : > { %v2764_v62 = vpop.permute.xlu2 %2763 }
0x30b1   : > { %v2766_v18 = vmul.f32 %v2764_v62, %v5902_v54 }
0x30c8   : > { %v2770_v1 = vpop.permute.xlu0 %2769 }
0x30c9   : > { %v2759_v15 = vpop.permute.xlu1 %2758  ;;  %v2772_v20 = vmul.f32 %v2770_v1, %v5871_v48 }
0x30ca   : > { %v2761_v56 = vmul.f32 %v2759_v15, %v5922_v61  ;;  %v2814_v15 = vrot.slane %v2753_v5, 7 }
0x30cc   : > { %v2767_v21 = vadd.f32 %v2766_v18, %v2761_v56 }
0x30ce   : > { %v2773_v7 = vadd.f32 %v2772_v20, %v2767_v21 }
0x30d0   : > { %v2774_v12 = vadd.f32 %v2773_v7, %v5875_v52 }
0x30d2   : > { %v2776_v40 = vrot.slane %v2774_v12, 7 }
0x30d4   : > { %2798 = vrot.lane.b32.xlu1 %v2776_v40, %s5649_s19  ;;  %v2778_v19 = vadd.f32 %v2776_v40, %v6251_v50 }
0x30d6   : > { %v4958_v33 = vmul.f32 -1.442695, %v2778_v19 }
0x30d8   : > { %5375 = vpow2.f32 %v4958_v33 }
0x30de   : > { %v5376_v23 = vpop.eup %5375 }
0x30df   : > { %v2782_v37 = vadd.f32 1.0, %v5376_v23 }
0x30e1   : > { %5377 = vrcp.f32 %v2782_v37  ;;  %v2794_v4 = vand.u32 2147483648, %v2782_v37  ;;  %vm2788_vm14 = vweird.f32 %v2782_v37  ;;  %v2792_v59 = vand.u32 2147483647, %v2782_v37 }
0x30e3   : > { %v2795_v47 = vor.u32 1.1754944e-38, %v2794_v4  ;;  %vm2793_vm6 = vcmp.eq.f32.partialorder %v2792_v59, 8.507059e+37 }
0x30e7   : > { %v5378_v13 = vpop.eup %5377 }
0x30e8   : > { %v2784_v53 = vmul.f32 %v5378_v13, %v2782_v37  ;;  %vm2789_vm13 = vweird.f32 %v5378_v13 }
0x30e9   : > { %vm2790_vm5 = vmor %vm2788_vm14, %vm2789_vm13 }
0x30ea   : > { %v2785_v14 = vsub.f32 1.0, %v2784_v53 }
0x30ec   : > { %v2786_v2 = vmul.f32 %v5378_v13, %v2785_v14 }
0x30ee   : > { %v2787_v51 = vadd.f32 %v5378_v13, %v2786_v2 }
0x30f0   : > { %v2791_v38 = vsel %vm2790_vm5, %v5378_v13, %v2787_v51 }
0x30f1   : > { %v2796_v57 = vsel %vm2793_vm6, %v2795_v47, %v2791_v38 }
0x30f2   : > { %v2808_v1 = vsub.f32 1.0, %v2796_v57  ;;  %v2816_v20 = vmul.f32 %v2814_v15, %v2796_v57 }
0x3146   : > { %v2799_v36 = vpop.permute.xlu1 %2798 }
0x3147   : > { %v2801_v17 = vmul.f32 %v2799_v36, %v2796_v57 }
0x3149   : > { %2803 = vrot.lane.b32.xlu2 %v2801_v17, %s5650_s20 }
0x31a3   : > { %v2804_v3 = vpop.permute.xlu2 %2803 }
0x31a4   : > { %v2806_v39 = vadd.f32 %v2804_v3, %v6251_v50 }
0x31a6   : > { %5379 = vtanh.f32 %v2806_v39 }
0x31ac   : > { %v5380_v62 = vpop.eup %5379 }
0x31ad   : > { %2810 = vrot.lane.b32.xlu1 %v5380_v62, %s5652_s22 }
0x321f   : > { %v2811_v18 = vpop.permute.xlu1 %2810 }
0x3220   : > { %v2813_v56 = vmul.f32 %v2811_v18, %v2808_v1 }
0x3222   : > { %v2817_v21 = vadd.f32 %v2816_v20, %v2813_v56 }
0x3224   : > { %v2818_v7 = vperm.slane %v2817_v21, 3  ;;  %2833 = vperm.xlu1 %5148, %v2817_v21   ;;  %2827 = vperm.xlu0 %5147, %v2817_v21   ;;  %v2878_v15 = vrot.slane %v2817_v21, 7 }
0x3225   : > { %2822 = vperm.xlu2 %5146, %v2817_v21  }
0x3226   : > { %v2819_v12 = vsel %vm951_vm15, %v2818_v7, %v2755_v60 }
0x322c   : > { %5150 = vset.pattern.permute.xlu1 %v5653_v26  ;;  %5149 = vset.pattern.permute.xlu0 %v5654_v27 }
0x322d   : > { %5151 = vset.pattern.permute.xlu2 %v5655_v41 }
0x327f   : > { %v2823_v40 = vpop.permute.xlu2 %2822 }
0x3280   : > { %v2825_v33 = vmul.f32 %v6185_v16, %v2823_v40 }
0x3296   : > { %v2834_v19 = vpop.permute.xlu1 %2833  ;;  %v2828_v5 = vpop.permute.xlu0 %2827 }
0x3297   : > { %v2830_v23 = vmul.f32 %v2828_v5, %v5922_v61  ;;  %v2836_v37 = vmul.f32 %v2834_v19, %v5902_v54 }
0x3299   : > { %v2831_v13 = vadd.f32 %v2830_v23, %v2825_v33 }
0x329b   : > { %v2837_v53 = vadd.f32 %v2836_v37, %v2831_v13 }
0x329d   : > { %v2838_v14 = vadd.f32 %v2837_v53, %v5784_v24 }
0x329f   : > { %v2840_v60 = vrot.slane %v2838_v14, 7 }
0x32a1   : > { %v2842_v2 = vadd.f32 %v2840_v60, %v6251_v50  ;;  %2862 = vrot.lane.b32.xlu2 %v2840_v60, %s5649_s19 }
0x32a3   : > { %v4959_v51 = vmul.f32 -1.442695, %v2842_v2 }
0x32a5   : > { %5381 = vpow2.f32 %v4959_v51 }
0x32ab   : > { %v5382_v4 = vpop.eup %5381 }
0x32ac   : > { %v2846_v59 = vadd.f32 1.0, %v5382_v4 }
0x32ae   : > { %5383 = vrcp.f32 %v2846_v59  ;;  %v2858_v57 = vand.u32 2147483648, %v2846_v59  ;;  %v2856_v3 = vand.u32 2147483647, %v2846_v59  ;;  %vm2852_vm13 = vweird.f32 %v2846_v59 }
0x32b0   : > { %v2859_v62 = vor.u32 1.1754944e-38, %v2858_v57  ;;  %vm2857_vm5 = vcmp.eq.f32.partialorder %v2856_v3, 8.507059e+37 }
0x32b4   : > { %v5384_v38 = vpop.eup %5383 }
0x32b5   : > { %v2848_v47 = vmul.f32 %v5384_v38, %v2846_v59  ;;  %vm2853_vm11 = vweird.f32 %v5384_v38 }
0x32b6   : > { %vm2854_vm14 = vmor %vm2852_vm13, %vm2853_vm11 }
0x32b7   : > { %v2849_v36 = vsub.f32 1.0, %v2848_v47 }
0x32b9   : > { %v2850_v17 = vmul.f32 %v5384_v38, %v2849_v36 }
0x32bb   : > { %v2851_v39 = vadd.f32 %v5384_v38, %v2850_v17 }
0x32bd   : > { %v2855_v1 = vsel %vm2854_vm14, %v5384_v38, %v2851_v39 }
0x32be   : > { %v2860_v18 = vsel %vm2857_vm5, %v2859_v62, %v2855_v1 }
0x32bf   : > { %v2880_v56 = vmul.f32 %v2878_v15, %v2860_v18  ;;  %v2872_v33 = vsub.f32 1.0, %v2860_v18 }
0x32fb   : > { %v2863_v20 = vpop.permute.xlu2 %2862 }
0x32fc   : > { %v2865_v7 = vmul.f32 %v2863_v20, %v2860_v18 }
0x32fe   : > { %2867 = vrot.lane.b32.xlu1 %v2865_v7, %s5650_s20 }
0x3370   : > { %v2868_v40 = vpop.permute.xlu1 %2867 }
0x3371   : > { %v2870_v19 = vadd.f32 %v2868_v40, %v6251_v50 }
0x3373   : > { %5385 = vtanh.f32 %v2870_v19 }
0x3379   : > { %v5386_v5 = vpop.eup %5385 }
0x337a   : > { %2874 = vrot.lane.b32.xlu2 %v5386_v5, %s5652_s22 }
0x33d4   : > { %v2875_v23 = vpop.permute.xlu2 %2874 }
0x33d5   : > { %v2877_v37 = vmul.f32 %v2875_v23, %v2872_v33 }
0x33d7   : > { %v2881_v13 = vadd.f32 %v2880_v56, %v2877_v37 }
0x33d9   : > { %2897 = vperm.xlu2 %5151, %v2881_v13   ;;  %2891 = vperm.xlu1 %5150, %v2881_v13   ;;  %v2882_v21 = vperm.slane %v2881_v13, 4 }
0x33da   : > { %2886 = vperm.xlu0 %5149, %v2881_v13  }
0x33db   : > { %v2883_v53 = vsel %vm1018_vm9, %v2882_v21, %v2819_v12 }
0x33e1   : > { %5153 = vset.pattern.permute.xlu2 %v5653_v26  ;;  %5152 = vset.pattern.permute.xlu1 %v5654_v27 }
0x33e2   : > { %5154 = vset.pattern.permute.xlu0 %v5655_v41 }
0x3433   : > { %v2898_v60 = vpop.permute.xlu2 %2897 }
0x3434   : > { %v2900_v59 = vmul.f32 %v2898_v60, %v5922_v61  ;;  %v2942_v60 = vrot.slane %v2881_v13, 7 }
0x344b   : > { %v2892_v14 = vpop.permute.xlu1 %2891 }
0x344c   : > { %v2894_v2 = vmul.f32 %v6185_v16, %v2892_v14  ;;  %v2887_v51 = vpop.permute.xlu0 %2886 }
0x344d   : > { %v2889_v4 = vmul.f32 %v2887_v51, %v5880_v58 }
0x344f   : > { %v2895_v38 = vadd.f32 %v2894_v2, %v2889_v4 }
0x3451   : > { %v2901_v47 = vadd.f32 %v2900_v59, %v2895_v38 }
0x3453   : > { %v2902_v36 = vadd.f32 %v2901_v47, %v5871_v48 }
0x3455   : > { %v2904_v12 = vrot.slane %v2902_v36, 7 }
0x3457   : > { %2926 = vrot.lane.b32.xlu1 %v2904_v12, %s5649_s19  ;;  %v2906_v57 = vadd.f32 %v2904_v12, %v6251_v50 }
0x3459   : > { %v4960_v17 = vmul.f32 -1.442695, %v2906_v57 }
0x345b   : > { %5387 = vpow2.f32 %v4960_v17 }
0x3461   : > { %v5388_v3 = vpop.eup %5387 }
0x3462   : > { %v2910_v39 = vadd.f32 1.0, %v5388_v3  ;;  %v6337_v3 = vld [vmem:[%s6743_s2] sm:$0xff] }
0x3464   : > { %5389 = vrcp.f32 %v2910_v39  ;;  %v2922_v56 = vand.u32 2147483648, %v2910_v39  ;;  %vm2916_vm11 = vweird.f32 %v2910_v39  ;;  %v2920_v20 = vand.u32 2147483647, %v2910_v39 }
0x3466   : > { %v2923_v40 = vor.u32 1.1754944e-38, %v2922_v56  ;;  %vm2921_vm14 = vcmp.eq.f32.partialorder %v2920_v20, 8.507059e+37 }
0x346a   : > { %v5390_v16 = vpop.eup %5389 }
0x346b   : > { %v2912_v62 = vmul.f32 %v5390_v16, %v2910_v39  ;;  %vm2917_vm6 = vweird.f32 %v5390_v16 }
0x346c   : > { %vm2918_vm13 = vmor %vm2916_vm11, %vm2917_vm6 }
0x346d   : > { %v2913_v1 = vsub.f32 1.0, %v2912_v62 }
0x346f   : > { %v2914_v15 = vmul.f32 %v5390_v16, %v2913_v1 }
0x3471   : > { %v2915_v18 = vadd.f32 %v5390_v16, %v2914_v15 }
0x3473   : > { %v2919_v7 = vsel %vm2918_vm13, %v5390_v16, %v2915_v18 }
0x3474   : > { %v2924_v5 = vsel %vm2921_vm14, %v2923_v40, %v2919_v7 }
0x3475   : > { %v2936_v14 = vsub.f32 1.0, %v2924_v5  ;;  %v2944_v4 = vmul.f32 %v2942_v60, %v2924_v5 }
0x34c9   : > { %v2927_v19 = vpop.permute.xlu1 %2926 }
0x34ca   : > { %v2929_v33 = vmul.f32 %v2927_v19, %v2924_v5 }
0x34cc   : > { %2931 = vrot.lane.b32.xlu2 %v2929_v33, %s5650_s20 }
0x3526   : > { %v2932_v23 = vpop.permute.xlu2 %2931 }
0x3527   : > { %v2934_v37 = vadd.f32 %v2932_v23, %v6251_v50 }
0x3529   : > { %5391 = vtanh.f32 %v2934_v37 }
0x352f   : > { %v5392_v21 = vpop.eup %5391 }
0x3530   : > { %2938 = vrot.lane.b32.xlu0 %v5392_v21, %s5652_s22 }
0x35a2   : > { %v2939_v2 = vpop.permute.xlu0 %2938 }
0x35a3   : > { %v2941_v51 = vmul.f32 %v2939_v2, %v2936_v14 }
0x35a5   : > { %v2945_v59 = vadd.f32 %v2944_v4, %v2941_v51 }
0x35a7   : > { %2961 = vperm.xlu0 %5154, %v2945_v59   ;;  %2955 = vperm.xlu2 %5153, %v2945_v59   ;;  %v2946_v38 = vperm.slane %v2945_v59, 5 }
0x35a8   : > { %2950 = vperm.xlu1 %5152, %v2945_v59  }
0x35a9   : > { %v2947_v47 = vsel %vm1085_vm2, %v2946_v38, %v2883_v53 }
0x35af   : > { %5156 = vset.pattern.permute.xlu0 %v5653_v26  ;;  %5155 = vset.pattern.permute.xlu2 %v5654_v27 }
0x35b0   : > { %5157 = vset.pattern.permute.xlu1 %v5655_v41 }
0x3601   : > { %v2956_v36 = vpop.permute.xlu2 %2955 }
0x3602   : > { %v2958_v57 = vmul.f32 %v2956_v36, %v5880_v58 }
0x3619   : > { %v2962_v12 = vpop.permute.xlu0 %2961 }
0x361a   : > { %v2951_v13 = vpop.permute.xlu1 %2950  ;;  %v2964_v53 = vmul.f32 %v6337_v3, %v2962_v12 }
0x361b   : > { %v2953_v17 = vmul.f32 %v2951_v13, %v5908_v63  ;;  %v3006_v13 = vrot.slane %v2945_v59, 7 }
0x361d   : > { %v2959_v39 = vadd.f32 %v2958_v57, %v2953_v17 }
0x361f   : > { %v2965_v16 = vadd.f32 %v2964_v53, %v2959_v39 }
0x3621   : > { %v2966_v62 = vadd.f32 %v2965_v16, %v5902_v54 }
0x3623   : > { %v2968_v1 = vrot.slane %v2966_v62, 7 }
0x3625   : > { %2990 = vrot.lane.b32.xlu1 %v2968_v1, %s5649_s19  ;;  %v2970_v15 = vadd.f32 %v2968_v1, %v6251_v50 }
0x3627   : > { %v4961_v18 = vmul.f32 -1.442695, %v2970_v15 }
0x3629   : > { %5393 = vpow2.f32 %v4961_v18 }
0x362f   : > { %v5394_v56 = vpop.eup %5393 }
0x3630   : > { %v2974_v20 = vadd.f32 1.0, %v5394_v56 }
0x3632   : > { %5395 = vrcp.f32 %v2974_v20  ;;  %v2986_v23 = vand.u32 2147483648, %v2974_v20  ;;  %vm2980_vm6 = vweird.f32 %v2974_v20  ;;  %v2984_v37 = vand.u32 2147483647, %v2974_v20 }
0x3634   : > { %v2987_v14 = vor.u32 1.1754944e-38, %v2986_v23  ;;  %vm2985_vm13 = vcmp.eq.f32.partialorder %v2984_v37, 8.507059e+37 }
0x3638   : > { %v5396_v7 = vpop.eup %5395 }
0x3639   : > { %v2976_v40 = vmul.f32 %v5396_v7, %v2974_v20  ;;  %vm2981_vm5 = vweird.f32 %v5396_v7 }
0x363a   : > { %vm2982_vm11 = vmor %vm2980_vm6, %vm2981_vm5 }
0x363b   : > { %v2977_v19 = vsub.f32 1.0, %v2976_v40 }
0x363d   : > { %v2978_v5 = vmul.f32 %v5396_v7, %v2977_v19 }
0x363f   : > { %v2979_v33 = vadd.f32 %v5396_v7, %v2978_v5 }
0x3641   : > { %v2983_v21 = vsel %vm2982_vm11, %v5396_v7, %v2979_v33 }
0x3642   : > { %v2988_v2 = vsel %vm2985_vm13, %v2987_v14, %v2983_v21 }
0x3643   : > { %v3000_v12 = vsub.f32 1.0, %v2988_v2  ;;  %v3008_v53 = vmul.f32 %v3006_v13, %v2988_v2 }
0x3697   : > { %v2991_v60 = vpop.permute.xlu1 %2990 }
0x3698   : > { %v2993_v51 = vmul.f32 %v2991_v60, %v2988_v2 }
0x369a   : > { %2995 = vrot.lane.b32.xlu2 %v2993_v51, %s5650_s20 }
0x36f4   : > { %v2996_v4 = vpop.permute.xlu2 %2995 }
0x36f5   : > { %v2998_v38 = vadd.f32 %v2996_v4, %v6251_v50 }
0x36f7   : > { %5397 = vtanh.f32 %v2998_v38 }
0x36fd   : > { %v5398_v36 = vpop.eup %5397 }
0x36fe   : > { %3002 = vrot.lane.b32.xlu1 %v5398_v36, %s5652_s22 }
0x3770   : > { %v3003_v57 = vpop.permute.xlu1 %3002 }
0x3771   : > { %v3005_v17 = vmul.f32 %v3003_v57, %v3000_v12 }
0x3773   : > { %v3009_v39 = vadd.f32 %v3008_v53, %v3005_v17 }
0x3775   : > { %3025 = vperm.xlu1 %5157, %v3009_v39   ;;  %3019 = vperm.xlu0 %5156, %v3009_v39   ;;  %v3010_v16 = vperm.slane %v3009_v39, 6  ;;  %v3070_v13 = vrot.slane %v3009_v39, 7 }
0x3776   : > { %3014 = vperm.xlu2 %5155, %v3009_v39  }
0x3777   : > { %v3011_v62 = vsel %vm1152_vm12, %v3010_v16, %v2947_v47 }
0x377d   : > { %5159 = vset.pattern.permute.xlu1 %v5653_v26  ;;  %5158 = vset.pattern.permute.xlu0 %v5654_v27 }
0x377e   : > { %5160 = vset.pattern.permute.xlu2 %v5655_v41 }
0x37d0   : > { %v3015_v1 = vpop.permute.xlu2 %3014 }
0x37d1   : > { %v3017_v18 = vmul.f32 %v3015_v1, %v5875_v52 }
0x37e7   : > { %v3026_v15 = vpop.permute.xlu1 %3025  ;;  %v3020_v59 = vpop.permute.xlu0 %3019 }
0x37e8   : > { %v3022_v56 = vmul.f32 %v3020_v59, %v5908_v63  ;;  %v3028_v20 = vmul.f32 %v3026_v15, %v5880_v58 }
0x37ea   : > { %v3023_v7 = vadd.f32 %v3022_v56, %v3017_v18 }
0x37ec   : > { %v3029_v40 = vadd.f32 %v3028_v20, %v3023_v7 }
0x37ee   : > { %v3030_v19 = vadd.f32 %v3029_v40, %v5922_v61 }
0x37f0   : > { %v3032_v47 = vrot.slane %v3030_v19, 7 }
0x37f2   : > { %v3034_v5 = vadd.f32 %v3032_v47, %v6251_v50  ;;  %3054 = vrot.lane.b32.xlu2 %v3032_v47, %s5649_s19 }
0x37f4   : > { %v4962_v33 = vmul.f32 -1.442695, %v3034_v5 }
0x37f6   : > { %5399 = vpow2.f32 %v4962_v33 }
0x37fc   : > { %v5400_v23 = vpop.eup %5399 }
0x37fd   : > { %v3038_v37 = vadd.f32 1.0, %v5400_v23 }
0x37ff   : > { %5401 = vrcp.f32 %v3038_v37  ;;  %v3050_v2 = vand.u32 2147483648, %v3038_v37  ;;  %v3048_v4 = vand.u32 2147483647, %v3038_v37  ;;  %vm3044_vm5 = vweird.f32 %v3038_v37 }
0x3801   : > { %v3051_v36 = vor.u32 1.1754944e-38, %v3050_v2  ;;  %vm3049_vm11 = vcmp.eq.f32.partialorder %v3048_v4, 8.507059e+37 }
0x3805   : > { %v5402_v21 = vpop.eup %5401 }
0x3806   : > { %v3040_v14 = vmul.f32 %v5402_v21, %v3038_v37  ;;  %vm3045_vm14 = vweird.f32 %v5402_v21 }
0x3807   : > { %vm3046_vm6 = vmor %vm3044_vm5, %vm3045_vm14 }
0x3808   : > { %v3041_v60 = vsub.f32 1.0, %v3040_v14 }
0x380a   : > { %v3042_v51 = vmul.f32 %v5402_v21, %v3041_v60  ;;  %v6374_v60 = vadd.f32 %v5795_v31, %v5804_v35 }
0x380c   : > { %v3043_v38 = vadd.f32 %v5402_v21, %v3042_v51 }
0x380e   : > { %v3047_v12 = vsel %vm3046_vm6, %v5402_v21, %v3043_v38 }
0x380f   : > { %v3052_v57 = vsel %vm3049_vm11, %v3051_v36, %v3047_v12 }
0x3810   : > { %v3072_v17 = vmul.f32 %v3070_v13, %v3052_v57  ;;  %v3064_v18 = vsub.f32 1.0, %v3052_v57 }
0x384c   : > { %v3055_v53 = vpop.permute.xlu2 %3054 }
0x384d   : > { %v3057_v16 = vmul.f32 %v3055_v53, %v3052_v57 }
0x384f   : > { %3059 = vrot.lane.b32.xlu1 %v3057_v16, %s5650_s20 }
0x38c1   : > { %v3060_v1 = vpop.permute.xlu1 %3059 }
0x38c2   : > { %v3062_v15 = vadd.f32 %v3060_v1, %v6251_v50 }
0x38c4   : > { %5403 = vtanh.f32 %v3062_v15 }
0x38ca   : > { %v5404_v59 = vpop.eup %5403 }
0x38cb   : > { %3066 = vrot.lane.b32.xlu2 %v5404_v59, %s5652_s22 }
0x3925   : > { %v3067_v56 = vpop.permute.xlu2 %3066 }
0x3926   : > { %v3069_v20 = vmul.f32 %v3067_v56, %v3064_v18 }
0x3928   : > { %v3073_v7 = vadd.f32 %v3072_v17, %v3069_v20 }
0x392a   : > { %3194 = vperm.xlu2 %5160, %v3073_v7   ;;  %3188 = vperm.xlu1 %5159, %v3073_v7   ;;  %v3074_v39 = vperm.slane %v3073_v7, 7 }
0x392b   : > { %3183 = vperm.xlu0 %5158, %v3073_v7  }
0x392c   : > { %v6362_v40 = vsel %vm1219_vm8, %v3074_v39, %v3011_v62 }
0x3932   : > { %5162 = vset.pattern.permute.xlu2 %v5653_v26  ;;  %5161 = vset.pattern.permute.xlu1 %v5654_v27 }
0x3933   : > { %5163 = vset.pattern.permute.xlu0 %v5655_v41 }
0x3984   : > { %v3195_v19 = vpop.permute.xlu2 %3194 }
0x3985   : > { %v3197_v23 = vmul.f32 %v3195_v19, %v5908_v63 }
0x399c   : > { %v3189_v50 = vpop.permute.xlu1 %3188 }
0x399d   : > { %v3191_v47 = vmul.f32 %v3189_v50, %v5875_v52  ;;  %v3184_v5 = vpop.permute.xlu0 %3183 }
0x399e   : > { %v3186_v33 = vmul.f32 %v3184_v5, %v5784_v24 }
0x39a0   : > { %v3192_v37 = vadd.f32 %v3191_v47, %v3186_v33  ;;  %v3239_v47 = vrot.slane %v3073_v7, 7 }
0x39a2   : > { %v3198_v21 = vadd.f32 %v3197_v23, %v3192_v37 }
0x39a4   : > { %v3199_v62 = vadd.f32 %v6337_v3, %v3198_v21 }
0x39a6   : > { %v3201_v14 = vrot.slane %v3199_v62, 7 }
0x39a8   : > { %3223 = vrot.lane.b32.xlu1 %v3201_v14, %s5649_s19  ;;  %v3203_v2 = vadd.f32 %v3201_v14, %v6374_v60 }
0x39aa   : > { %v4966_v51 = vmul.f32 -1.442695, %v3203_v2 }
0x39ac   : > { %5405 = vpow2.f32 %v4966_v51 }
0x39b2   : > { %v5406_v4 = vpop.eup %5405 }
0x39b3   : > { %v3207_v38 = vadd.f32 1.0, %v5406_v4 }
0x39b5   : > { %5407 = vrcp.f32 %v3207_v38  ;;  %v3219_v53 = vand.u32 2147483648, %v3207_v38  ;;  %vm3213_vm14 = vweird.f32 %v3207_v38  ;;  %v3217_v16 = vand.u32 2147483647, %v3207_v38 }
0x39b7   : > { %v3220_v15 = vor.u32 1.1754944e-38, %v3219_v53  ;;  %vm3218_vm6 = vcmp.eq.f32.partialorder %v3217_v16, 8.507059e+37 }
0x39bb   : > { %v5408_v36 = vpop.eup %5407 }
0x39bc   : > { %v3209_v12 = vmul.f32 %v5408_v36, %v3207_v38  ;;  %vm3214_vm13 = vweird.f32 %v5408_v36 }
0x39bd   : > { %vm3215_vm5 = vmor %vm3213_vm14, %vm3214_vm13 }
0x39be   : > { %v3210_v13 = vsub.f32 1.0, %v3209_v12 }
0x39c0   : > { %v3211_v57 = vmul.f32 %v5408_v36, %v3210_v13 }
0x39c2   : > { %v3212_v17 = vadd.f32 %v5408_v36, %v3211_v57 }
0x39c4   : > { %v3216_v1 = vsel %vm3215_vm5, %v5408_v36, %v3212_v17 }
0x39c5   : > { %v3221_v18 = vsel %vm3218_vm6, %v3220_v15, %v3216_v1 }
0x39c6   : > { %v3233_v19 = vsub.f32 1.0, %v3221_v18  ;;  %v3241_v23 = vmul.f32 %v3239_v47, %v3221_v18 }
0x3a1a   : > { %v3224_v59 = vpop.permute.xlu1 %3223 }
0x3a1b   : > { %v3226_v56 = vmul.f32 %v3224_v59, %v3221_v18 }
0x3a1d   : > { %3228 = vrot.lane.b32.xlu2 %v3226_v56, %s5650_s20 }
0x3a77   : > { %v3229_v20 = vpop.permute.xlu2 %3228 }
0x3a78   : > { %v3231_v39 = vadd.f32 %v3229_v20, %v6374_v60 }
0x3a7a   : > { %5409 = vtanh.f32 %v3231_v39 }
0x3a80   : > { %v5410_v50 = vpop.eup %5409 }
0x3a81   : > { %3235 = vrot.lane.b32.xlu0 %v5410_v50, %s5652_s22 }
0x3af3   : > { %v3236_v5 = vpop.permute.xlu0 %3235 }
0x3af4   : > { %v3238_v33 = vmul.f32 %v3236_v5, %v3233_v19 }
0x3af6   : > { %v3242_v37 = vadd.f32 %v3241_v23, %v3238_v33 }
0x3af8   : > { %3258 = vperm.xlu0 %5163, %v3242_v37   ;;  %3252 = vperm.xlu2 %5162, %v3242_v37  }
0x3af9   : > { %3247 = vperm.xlu1 %5161, %v3242_v37  }
0x3b00   : > { %5165 = vset.pattern.permute.xlu0 %v5653_v26  ;;  %5164 = vset.pattern.permute.xlu2 %v5654_v27 }
0x3b01   : > { %5166 = vset.pattern.permute.xlu1 %v5655_v41 }
0x3b52   : > { %v3253_v21 = vpop.permute.xlu2 %3252 }
0x3b53   : > { %v3255_v2 = vmul.f32 %v3253_v21, %v5784_v24 }
0x3b6a   : > { %v3259_v62 = vpop.permute.xlu0 %3258 }
0x3b6b   : > { %v3248_v14 = vpop.permute.xlu1 %3247  ;;  %v3261_v51 = vmul.f32 %v3259_v62, %v5875_v52 }
0x3b6c   : > { %v3250_v7 = vmul.f32 %v3248_v14, %v5871_v48  ;;  %v3303_v14 = vrot.slane %v3242_v37, 7 }
0x3b6e   : > { %v3256_v4 = vadd.f32 %v3255_v2, %v3250_v7 }
0x3b70   : > { %v3262_v38 = vadd.f32 %v3261_v51, %v3256_v4  ;;  %v3243_v4 = vperm.slane %v3242_v37, 0 }
0x3b72   : > { %v3263_v36 = vadd.f32 %v3262_v38, %v5880_v58 }
0x3b74   : > { %v3265_v12 = vrot.slane %v3263_v36, 7 }
0x3b76   : > { %3287 = vrot.lane.b32.xlu1 %v3265_v12, %s5649_s19  ;;  %v3267_v13 = vadd.f32 %v3265_v12, %v6374_v60  ;;  %v3244_v12 = vsel %vm738_vm3, %v3243_v4, 0.0 }
0x3b78   : > { %v4967_v57 = vmul.f32 -1.442695, %v3267_v13 }
0x3b7a   : > { %5411 = vpow2.f32 %v4967_v57 }
0x3b80   : > { %v5412_v17 = vpop.eup %5411 }
0x3b81   : > { %v3271_v53 = vadd.f32 1.0, %v5412_v17 }
0x3b83   : > { %5413 = vrcp.f32 %v3271_v53  ;;  %v3283_v56 = vand.u32 2147483648, %v3271_v53  ;;  %vm3277_vm13 = vweird.f32 %v3271_v53  ;;  %v3281_v20 = vand.u32 2147483647, %v3271_v53 }
0x3b85   : > { %v3284_v50 = vor.u32 1.1754944e-38, %v3283_v56  ;;  %vm3282_vm5 = vcmp.eq.f32.partialorder %v3281_v20, 8.507059e+37 }
0x3b89   : > { %v5414_v16 = vpop.eup %5413 }
0x3b8a   : > { %v3273_v1 = vmul.f32 %v5414_v16, %v3271_v53  ;;  %vm3278_vm11 = vweird.f32 %v5414_v16 }
0x3b8b   : > { %vm3279_vm14 = vmor %vm3277_vm13, %vm3278_vm11 }
0x3b8c   : > { %v3274_v15 = vsub.f32 1.0, %v3273_v1 }
0x3b8e   : > { %v3275_v59 = vmul.f32 %v5414_v16, %v3274_v15 }
0x3b90   : > { %v3276_v18 = vadd.f32 %v5414_v16, %v3275_v59 }
0x3b92   : > { %v3280_v39 = vsel %vm3279_vm14, %v5414_v16, %v3276_v18 }
0x3b93   : > { %v3285_v47 = vsel %vm3282_vm5, %v3284_v50, %v3280_v39 }
0x3b94   : > { %v3297_v62 = vsub.f32 1.0, %v3285_v47  ;;  %v3305_v51 = vmul.f32 %v3303_v14, %v3285_v47 }
0x3be8   : > { %v3288_v19 = vpop.permute.xlu1 %3287 }
0x3be9   : > { %v3290_v5 = vmul.f32 %v3288_v19, %v3285_v47 }
0x3beb   : > { %3292 = vrot.lane.b32.xlu2 %v3290_v5, %s5650_s20 }
0x3c45   : > { %v3293_v33 = vpop.permute.xlu2 %3292 }
0x3c46   : > { %v3295_v23 = vadd.f32 %v3293_v33, %v6374_v60 }
0x3c48   : > { %5415 = vtanh.f32 %v3295_v23 }
0x3c4e   : > { %v5416_v21 = vpop.eup %5415 }
0x3c4f   : > { %3299 = vrot.lane.b32.xlu1 %v5416_v21, %s5652_s22 }
0x3cc1   : > { %v3300_v2 = vpop.permute.xlu1 %3299 }
0x3cc2   : > { %v3302_v7 = vmul.f32 %v3300_v2, %v3297_v62 }
0x3cc4   : > { %v3306_v38 = vadd.f32 %v3305_v51, %v3302_v7 }
0x3cc6   : > { %v3307_v36 = vperm.slane %v3306_v38, 1  ;;  %3322 = vperm.xlu1 %5166, %v3306_v38   ;;  %3316 = vperm.xlu0 %5165, %v3306_v38   ;;  %v3367_v51 = vrot.slane %v3306_v38, 7 }
0x3cc7   : > { %3311 = vperm.xlu2 %5164, %v3306_v38  }
0x3cc8   : > { %v3308_v13 = vsel %vm811_vm4, %v3307_v36, %v3244_v12 }
0x3cce   : > { %5168 = vset.pattern.permute.xlu1 %v5653_v26  ;;  %5167 = vset.pattern.permute.xlu0 %v5654_v27 }
0x3ccf   : > { %5169 = vset.pattern.permute.xlu2 %v5655_v41 }
0x3d21   : > { %v3312_v57 = vpop.permute.xlu2 %3311 }
0x3d22   : > { %v3314_v53 = vmul.f32 %v3312_v57, %v5902_v54 }
0x3d38   : > { %v3323_v17 = vpop.permute.xlu1 %3322  ;;  %v3317_v37 = vpop.permute.xlu0 %3316 }
0x3d39   : > { %v3319_v16 = vmul.f32 %v3317_v37, %v5871_v48  ;;  %v3325_v1 = vmul.f32 %v3323_v17, %v5784_v24 }
0x3d3b   : > { %v3320_v15 = vadd.f32 %v3319_v16, %v3314_v53 }
0x3d3d   : > { %v3326_v59 = vadd.f32 %v3325_v1, %v3320_v15 }
0x3d3f   : > { %v3327_v18 = vadd.f32 %v3326_v59, %v5908_v63 }
0x3d41   : > { %v3329_v56 = vrot.slane %v3327_v18, 7 }
0x3d43   : > { %v3331_v20 = vadd.f32 %v3329_v56, %v6374_v60  ;;  %3351 = vrot.lane.b32.xlu2 %v3329_v56, %s5649_s19 }
0x3d45   : > { %v4968_v39 = vmul.f32 -1.442695, %v3331_v20 }
0x3d47   : > { %5417 = vpow2.f32 %v4968_v39 }
0x3d4d   : > { %v5418_v50 = vpop.eup %5417 }
0x3d4e   : > { %v3335_v19 = vadd.f32 1.0, %v5418_v50 }
0x3d50   : > { %5419 = vrcp.f32 %v3335_v19  ;;  %v3347_v23 = vand.u32 2147483648, %v3335_v19  ;;  %v3345_v62 = vand.u32 2147483647, %v3335_v19  ;;  %vm3341_vm11 = vweird.f32 %v3335_v19 }
0x3d52   : > { %v3348_v2 = vor.u32 1.1754944e-38, %v3347_v23  ;;  %vm3346_vm14 = vcmp.eq.f32.partialorder %v3345_v62, 8.507059e+37 }
0x3d56   : > { %v5420_v47 = vpop.eup %5419 }
0x3d57   : > { %v3337_v5 = vmul.f32 %v5420_v47, %v3335_v19  ;;  %vm3342_vm6 = vweird.f32 %v5420_v47 }
0x3d58   : > { %vm3343_vm13 = vmor %vm3341_vm11, %vm3342_vm6 }
0x3d59   : > { %v3338_v33 = vsub.f32 1.0, %v3337_v5 }
0x3d5b   : > { %v3339_v21 = vmul.f32 %v5420_v47, %v3338_v33 }
0x3d5d   : > { %v3340_v14 = vadd.f32 %v5420_v47, %v3339_v21 }
0x3d5f   : > { %v3344_v7 = vsel %vm3343_vm13, %v5420_v47, %v3340_v14 }
0x3d60   : > { %v3349_v4 = vsel %vm3346_vm14, %v3348_v2, %v3344_v7 }
0x3d61   : > { %v3369_v36 = vmul.f32 %v3367_v51, %v3349_v4  ;;  %v3361_v16 = vsub.f32 1.0, %v3349_v4 }
0x3d9d   : > { %v3352_v12 = vpop.permute.xlu2 %3351 }
0x3d9e   : > { %v3354_v57 = vmul.f32 %v3352_v12, %v3349_v4 }
0x3da0   : > { %3356 = vrot.lane.b32.xlu1 %v3354_v57, %s5650_s20 }
0x3e12   : > { %v3357_v17 = vpop.permute.xlu1 %3356 }
0x3e13   : > { %v3359_v37 = vadd.f32 %v3357_v17, %v6374_v60 }
0x3e15   : > { %5421 = vtanh.f32 %v3359_v37 }
0x3e1b   : > { %v5422_v53 = vpop.eup %5421 }
0x3e1c   : > { %3363 = vrot.lane.b32.xlu2 %v5422_v53, %s5652_s22 }
0x3e76   : > { %v3364_v1 = vpop.permute.xlu2 %3363 }
0x3e77   : > { %v3366_v15 = vmul.f32 %v3364_v1, %v3361_v16 }
0x3e79   : > { %v3370_v59 = vadd.f32 %v3369_v36, %v3366_v15 }
0x3e7b   : > { %v3371_v18 = vperm.slane %v3370_v59, 2  ;;  %3386 = vperm.xlu2 %5169, %v3370_v59   ;;  %3380 = vperm.xlu1 %5168, %v3370_v59  }
0x3e7c   : > { %3375 = vperm.xlu0 %5167, %v3370_v59  }
0x3e7d   : > { %v3372_v38 = vsel %vm882_vm10, %v3371_v18, %v3308_v13 }
0x3e83   : > { %5171 = vset.pattern.permute.xlu2 %v5653_v26  ;;  %5170 = vset.pattern.permute.xlu1 %v5654_v27 }
0x3e84   : > { %5172 = vset.pattern.permute.xlu0 %v5655_v41 }
0x3ed5   : > { %v3387_v20 = vpop.permute.xlu2 %3386 }
0x3ed6   : > { %v3389_v47 = vmul.f32 %v3387_v20, %v5871_v48 }
0x3eed   : > { %v3381_v56 = vpop.permute.xlu1 %3380 }
0x3eee   : > { %v3383_v39 = vmul.f32 %v3381_v56, %v5902_v54  ;;  %v3376_v50 = vpop.permute.xlu0 %3375 }
0x3eef   : > { %v3378_v19 = vmul.f32 %v3376_v50, %v5922_v61  ;;  %v3431_v50 = vrot.slane %v3370_v59, 7 }
0x3ef1   : > { %v3384_v5 = vadd.f32 %v3383_v39, %v3378_v19 }
0x3ef3   : > { %v3390_v33 = vadd.f32 %v3389_v47, %v3384_v5 }
0x3ef5   : > { %v3391_v23 = vadd.f32 %v3390_v33, %v5875_v52 }
0x3ef7   : > { %v3393_v13 = vrot.slane %v3391_v23, 7 }
0x3ef9   : > { %3415 = vrot.lane.b32.xlu1 %v3393_v13, %s5649_s19  ;;  %v3395_v21 = vadd.f32 %v3393_v13, %v6374_v60 }
0x3efb   : > { %v4969_v62 = vmul.f32 -1.442695, %v3395_v21 }
0x3efd   : > { %5423 = vpow2.f32 %v4969_v62 }
0x3f03   : > { %v5424_v14 = vpop.eup %5423 }
0x3f04   : > { %v3399_v2 = vadd.f32 1.0, %v5424_v14 }
0x3f06   : > { %5425 = vrcp.f32 %v3399_v2  ;;  %v3411_v57 = vand.u32 2147483648, %v3399_v2  ;;  %vm3405_vm6 = vweird.f32 %v3399_v2  ;;  %v3409_v17 = vand.u32 2147483647, %v3399_v2 }
0x3f08   : > { %v3412_v53 = vor.u32 1.1754944e-38, %v3411_v57  ;;  %vm3410_vm13 = vcmp.eq.f32.partialorder %v3409_v17, 8.507059e+37 }
0x3f0c   : > { %v5426_v7 = vpop.eup %5425 }
0x3f0d   : > { %v3401_v51 = vmul.f32 %v5426_v7, %v3399_v2  ;;  %vm3406_vm5 = vweird.f32 %v5426_v7 }
0x3f0e   : > { %vm3407_vm11 = vmor %vm3405_vm6, %vm3406_vm5 }
0x3f0f   : > { %v3402_v4 = vsub.f32 1.0, %v3401_v51 }
0x3f11   : > { %v3403_v36 = vmul.f32 %v5426_v7, %v3402_v4 }
0x3f13   : > { %v3404_v12 = vadd.f32 %v5426_v7, %v3403_v36 }
0x3f15   : > { %v3408_v37 = vsel %vm3407_vm11, %v5426_v7, %v3404_v12 }
0x3f16   : > { %v3413_v1 = vsel %vm3410_vm13, %v3412_v53, %v3408_v37 }
0x3f17   : > { %v3425_v39 = vsub.f32 1.0, %v3413_v1  ;;  %v3433_v5 = vmul.f32 %v3431_v50, %v3413_v1 }
0x3f6b   : > { %v3416_v16 = vpop.permute.xlu1 %3415 }
0x3f6c   : > { %v3418_v15 = vmul.f32 %v3416_v16, %v3413_v1 }
0x3f6e   : > { %3420 = vrot.lane.b32.xlu2 %v3418_v15, %s5650_s20 }
0x3fc8   : > { %v3421_v18 = vpop.permute.xlu2 %3420 }
0x3fc9   : > { %v3423_v56 = vadd.f32 %v3421_v18, %v6374_v60 }
0x3fcb   : > { %5427 = vtanh.f32 %v3423_v56 }
0x3fd1   : > { %v5428_v20 = vpop.eup %5427 }
0x3fd2   : > { %3427 = vrot.lane.b32.xlu0 %v5428_v20, %s5652_s22 }
0x4044   : > { %v3428_v19 = vpop.permute.xlu0 %3427 }
0x4045   : > { %v3430_v47 = vmul.f32 %v3428_v19, %v3425_v39 }
0x4047   : > { %v3434_v33 = vadd.f32 %v3433_v5, %v3430_v47 }
0x4049   : > { %v3435_v23 = vperm.slane %v3434_v33, 3  ;;  %3450 = vperm.xlu0 %5172, %v3434_v33   ;;  %3444 = vperm.xlu2 %5171, %v3434_v33  }
0x404a   : > { %3439 = vperm.xlu1 %5170, %v3434_v33  }
0x404b   : > { %v3436_v13 = vsel %vm951_vm15, %v3435_v23, %v3372_v38 }
0x4051   : > { %5174 = vset.pattern.permute.xlu0 %v5653_v26  ;;  %5173 = vset.pattern.permute.xlu2 %v5654_v27 }
0x4052   : > { %5175 = vset.pattern.permute.xlu1 %v5655_v41 }
0x40a3   : > { %v3445_v21 = vpop.permute.xlu2 %3444 }
0x40a4   : > { %v3447_v14 = vmul.f32 %v3445_v21, %v5922_v61 }
0x40bb   : > { %v3451_v62 = vpop.permute.xlu0 %3450 }
0x40bc   : > { %v3440_v59 = vpop.permute.xlu1 %3439  ;;  %v3453_v7 = vmul.f32 %v3451_v62, %v5902_v54 }
0x40bd   : > { %v3442_v2 = vmul.f32 %v6337_v3, %v3440_v59 }
0x40bf   : > { %v3448_v51 = vadd.f32 %v3447_v14, %v3442_v2  ;;  %v3495_v14 = vrot.slane %v3434_v33, 7 }
0x40c1   : > { %v3454_v4 = vadd.f32 %v3453_v7, %v3448_v51 }
0x40c3   : > { %v3455_v36 = vadd.f32 %v3454_v4, %v5784_v24 }
0x40c5   : > { %v3457_v38 = vrot.slane %v3455_v36, 7 }
0x40c7   : > { %3479 = vrot.lane.b32.xlu1 %v3457_v38, %s5649_s19  ;;  %v3459_v12 = vadd.f32 %v3457_v38, %v6374_v60 }
0x40c9   : > { %v4970_v57 = vmul.f32 -1.442695, %v3459_v12 }
0x40cb   : > { %5429 = vpow2.f32 %v4970_v57 }
0x40d1   : > { %v5430_v17 = vpop.eup %5429 }
0x40d2   : > { %v3463_v37 = vadd.f32 1.0, %v5430_v17 }
0x40d4   : > { %5431 = vrcp.f32 %v3463_v37  ;;  %v3475_v56 = vand.u32 2147483648, %v3463_v37  ;;  %vm3469_vm5 = vweird.f32 %v3463_v37  ;;  %v3473_v20 = vand.u32 2147483647, %v3463_v37 }
0x40d6   : > { %v3476_v50 = vor.u32 1.1754944e-38, %v3475_v56  ;;  %vm3474_vm11 = vcmp.eq.f32.partialorder %v3473_v20, 8.507059e+37 }
0x40da   : > { %v5432_v53 = vpop.eup %5431 }
0x40db   : > { %v3465_v16 = vmul.f32 %v5432_v53, %v3463_v37  ;;  %vm3470_vm14 = vweird.f32 %v5432_v53 }
0x40dc   : > { %vm3471_vm6 = vmor %vm3469_vm5, %vm3470_vm14 }
0x40dd   : > { %v3466_v1 = vsub.f32 1.0, %v3465_v16 }
0x40df   : > { %v3467_v15 = vmul.f32 %v5432_v53, %v3466_v1 }
0x40e1   : > { %v3468_v18 = vadd.f32 %v5432_v53, %v3467_v15 }
0x40e3   : > { %v3472_v39 = vsel %vm3471_vm6, %v5432_v53, %v3468_v18 }
0x40e4   : > { %v3477_v47 = vsel %vm3474_vm11, %v3476_v50, %v3472_v39 }
0x40e5   : > { %v3489_v59 = vsub.f32 1.0, %v3477_v47  ;;  %v3497_v51 = vmul.f32 %v3495_v14, %v3477_v47 }
0x4139   : > { %v3480_v19 = vpop.permute.xlu1 %3479 }
0x413a   : > { %v3482_v5 = vmul.f32 %v3480_v19, %v3477_v47 }
0x413c   : > { %3484 = vrot.lane.b32.xlu2 %v3482_v5, %s5650_s20 }
0x4196   : > { %v3485_v23 = vpop.permute.xlu2 %3484 }
0x4197   : > { %v3487_v21 = vadd.f32 %v3485_v23, %v6374_v60 }
0x4199   : > { %5433 = vtanh.f32 %v3487_v21 }
0x419f   : > { %v5434_v62 = vpop.eup %5433 }
0x41a0   : > { %3491 = vrot.lane.b32.xlu1 %v5434_v62, %s5652_s22 }
0x4212   : > { %v3492_v2 = vpop.permute.xlu1 %3491 }
0x4213   : > { %v3494_v7 = vmul.f32 %v3492_v2, %v3489_v59 }
0x4215   : > { %v3498_v4 = vadd.f32 %v3497_v51, %v3494_v7 }
0x4217   : > { %3514 = vperm.xlu1 %5175, %v3498_v4   ;;  %3508 = vperm.xlu0 %5174, %v3498_v4   ;;  %v3499_v36 = vperm.slane %v3498_v4, 4  ;;  %v3559_v2 = vrot.slane %v3498_v4, 7 }
0x4218   : > { %3503 = vperm.xlu2 %5173, %v3498_v4  }
0x4219   : > { %v3500_v38 = vsel %vm1018_vm9, %v3499_v36, %v3436_v13 }
0x421f   : > { %5177 = vset.pattern.permute.xlu1 %v5653_v26  ;;  %5176 = vset.pattern.permute.xlu0 %v5654_v27 }
0x4220   : > { %5178 = vset.pattern.permute.xlu2 %v5655_v41 }
0x4272   : > { %v3504_v12 = vpop.permute.xlu2 %3503 }
0x4273   : > { %v3506_v17 = vmul.f32 %v3504_v12, %v5880_v58 }
0x4289   : > { %v3515_v57 = vpop.permute.xlu1 %3514  ;;  %v3509_v33 = vpop.permute.xlu0 %3508 }
0x428a   : > { %v3511_v37 = vmul.f32 %v6337_v3, %v3509_v33  ;;  %v3517_v53 = vmul.f32 %v3515_v57, %v5922_v61 }
0x428c   : > { %v3512_v16 = vadd.f32 %v3511_v37, %v3506_v17 }
0x428e   : > { %v3518_v1 = vadd.f32 %v3517_v53, %v3512_v16 }
0x4290   : > { %v3519_v15 = vadd.f32 %v3518_v1, %v5871_v48 }
0x4292   : > { %v3521_v13 = vrot.slane %v3519_v15, 7 }
0x4294   : > { %v3523_v18 = vadd.f32 %v3521_v13, %v6374_v60  ;;  %3543 = vrot.lane.b32.xlu2 %v3521_v13, %s5649_s19 }
0x4296   : > { %v4971_v56 = vmul.f32 -1.442695, %v3523_v18 }
0x4298   : > { %5435 = vpow2.f32 %v4971_v56 }
0x429e   : > { %v5436_v20 = vpop.eup %5435 }
0x429f   : > { %v3527_v39 = vadd.f32 1.0, %v5436_v20 }
0x42a1   : > { %5437 = vrcp.f32 %v3527_v39  ;;  %v3539_v5 = vand.u32 2147483648, %v3527_v39  ;;  %v3537_v21 = vand.u32 2147483647, %v3527_v39  ;;  %vm3533_vm14 = vweird.f32 %v3527_v39 }
0x42a3   : > { %v3540_v59 = vor.u32 1.1754944e-38, %v3539_v5  ;;  %vm3538_vm6 = vcmp.eq.f32.partialorder %v3537_v21, 8.507059e+37 }
0x42a7   : > { %v5438_v50 = vpop.eup %5437 }
0x42a8   : > { %v3529_v19 = vmul.f32 %v5438_v50, %v3527_v39  ;;  %vm3534_vm13 = vweird.f32 %v5438_v50 }
0x42a9   : > { %vm3535_vm5 = vmor %vm3533_vm14, %vm3534_vm13 }
0x42aa   : > { %v3530_v47 = vsub.f32 1.0, %v3529_v19 }
0x42ac   : > { %v3531_v23 = vmul.f32 %v5438_v50, %v3530_v47 }
0x42ae   : > { %v3532_v62 = vadd.f32 %v5438_v50, %v3531_v23 }
0x42b0   : > { %v3536_v14 = vsel %vm3535_vm5, %v5438_v50, %v3532_v62 }
0x42b1   : > { %v3541_v7 = vsel %vm3538_vm6, %v3540_v59, %v3536_v14 }
0x42b2   : > { %v3561_v51 = vmul.f32 %v3559_v2, %v3541_v7  ;;  %v3553_v37 = vsub.f32 1.0, %v3541_v7 }
0x42ee   : > { %v3544_v36 = vpop.permute.xlu2 %3543 }
0x42ef   : > { %v3546_v12 = vmul.f32 %v3544_v36, %v3541_v7 }
0x42f1   : > { %3548 = vrot.lane.b32.xlu1 %v3546_v12, %s5650_s20 }
0x4363   : > { %v3549_v57 = vpop.permute.xlu1 %3548 }
0x4364   : > { %v3551_v33 = vadd.f32 %v3549_v57, %v6374_v60 }
0x4366   : > { %5439 = vtanh.f32 %v3551_v33 }
0x436c   : > { %v5440_v17 = vpop.eup %5439 }
0x436d   : > { %3555 = vrot.lane.b32.xlu2 %v5440_v17, %s5652_s22 }
0x43c7   : > { %v3556_v53 = vpop.permute.xlu2 %3555 }
0x43c8   : > { %v3558_v16 = vmul.f32 %v3556_v53, %v3553_v37 }
0x43ca   : > { %v3562_v1 = vadd.f32 %v3561_v51, %v3558_v16 }
0x43cc   : > { %3578 = vperm.xlu2 %5178, %v3562_v1   ;;  %3572 = vperm.xlu1 %5177, %v3562_v1   ;;  %v3563_v4 = vperm.slane %v3562_v1, 5 }
0x43cd   : > { %3567 = vperm.xlu0 %5176, %v3562_v1  }
0x43ce   : > { %v3564_v15 = vsel %vm1085_vm2, %v3563_v4, %v3500_v38 }
0x43d4   : > { %5180 = vset.pattern.permute.xlu2 %v5653_v26  ;;  %5179 = vset.pattern.permute.xlu1 %v5654_v27 }
0x43d5   : > { %5181 = vset.pattern.permute.xlu0 %v5655_v41 }
0x4426   : > { %v3579_v18 = vpop.permute.xlu2 %3578 }
0x4427   : > { %v3581_v50 = vmul.f32 %v6337_v3, %v3579_v18 }
0x443e   : > { %v3573_v13 = vpop.permute.xlu1 %3572 }
0x443f   : > { %v3575_v56 = vmul.f32 %v3573_v13, %v5880_v58  ;;  %v3568_v20 = vpop.permute.xlu0 %3567 }
0x4440   : > { %v3570_v39 = vmul.f32 %v3568_v20, %v5908_v63 }
0x4442   : > { %v3576_v19 = vadd.f32 %v3575_v56, %v3570_v39  ;;  %v3623_v56 = vrot.slane %v3562_v1, 7 }
0x4444   : > { %v3582_v47 = vadd.f32 %v3581_v50, %v3576_v19 }
0x4446   : > { %v3583_v5 = vadd.f32 %v3582_v47, %v5902_v54 }
0x4448   : > { %v3585_v38 = vrot.slane %v3583_v5, 7 }
0x444a   : > { %3607 = vrot.lane.b32.xlu1 %v3585_v38, %s5649_s19  ;;  %v3587_v23 = vadd.f32 %v3585_v38, %v6374_v60 }
0x444c   : > { %v4972_v21 = vmul.f32 -1.442695, %v3587_v23 }
0x444e   : > { %5441 = vpow2.f32 %v4972_v21 }
0x4454   : > { %v5442_v62 = vpop.eup %5441 }
0x4455   : > { %v3591_v59 = vadd.f32 1.0, %v5442_v62 }
0x4457   : > { %5443 = vrcp.f32 %v3591_v59  ;;  %v3603_v3 = vand.u32 2147483648, %v3591_v59  ;;  %vm3597_vm13 = vweird.f32 %v3591_v59  ;;  %v3601_v12 = vand.u32 2147483647, %v3591_v59 }
0x4459   : > { %v3604_v33 = vor.u32 1.1754944e-38, %v3603_v3  ;;  %vm3602_vm5 = vcmp.eq.f32.partialorder %v3601_v12, 8.507059e+37 }
0x445d   : > { %v5444_v14 = vpop.eup %5443 }
0x445e   : > { %v3593_v2 = vmul.f32 %v5444_v14, %v3591_v59  ;;  %vm3598_vm11 = vweird.f32 %v5444_v14 }
0x445f   : > { %vm3599_vm14 = vmor %vm3597_vm13, %vm3598_vm11 }
0x4460   : > { %v3594_v7 = vsub.f32 1.0, %v3593_v2 }
0x4462   : > { %v3595_v51 = vmul.f32 %v5444_v14, %v3594_v7 }
0x4464   : > { %v3596_v36 = vadd.f32 %v5444_v14, %v3595_v51 }
0x4466   : > { %v3600_v57 = vsel %vm3599_vm14, %v5444_v14, %v3596_v36 }
0x4467   : > { %v3605_v37 = vsel %vm3602_vm5, %v3604_v33, %v3600_v57 }
0x4468   : > { %v3617_v18 = vsub.f32 1.0, %v3605_v37  ;;  %v3625_v50 = vmul.f32 %v3623_v56, %v3605_v37 }
0x44bc   : > { %v3608_v17 = vpop.permute.xlu1 %3607 }
0x44bd   : > { %v3610_v53 = vmul.f32 %v3608_v17, %v3605_v37 }
0x44bf   : > { %3612 = vrot.lane.b32.xlu2 %v3610_v53, %s5650_s20 }
0x4519   : > { %v3613_v16 = vpop.permute.xlu2 %3612 }
0x451a   : > { %v3615_v4 = vadd.f32 %v3613_v16, %v6374_v60 }
0x451c   : > { %5445 = vtanh.f32 %v3615_v4 }
0x4522   : > { %v5446_v13 = vpop.eup %5445 }
0x4523   : > { %3619 = vrot.lane.b32.xlu0 %v5446_v13, %s5652_s22 }
0x4595   : > { %v3620_v20 = vpop.permute.xlu0 %3619 }
0x4596   : > { %v3622_v39 = vmul.f32 %v3620_v20, %v3617_v18 }
0x4598   : > { %v3626_v19 = vadd.f32 %v3625_v50, %v3622_v39 }
0x459a   : > { %3642 = vperm.xlu0 %5181, %v3626_v19   ;;  %3636 = vperm.xlu2 %5180, %v3626_v19   ;;  %v3627_v47 = vperm.slane %v3626_v19, 6 }
0x459b   : > { %3631 = vperm.xlu1 %5179, %v3626_v19  }
0x459c   : > { %v3628_v5 = vsel %vm1152_vm12, %v3627_v47, %v3564_v15 }
0x45a2   : > { %5183 = vset.pattern.permute.xlu0 %v5653_v26  ;;  %5182 = vset.pattern.permute.xlu2 %v5654_v27 }
0x45a3   : > { %5184 = vset.pattern.permute.xlu1 %v5655_v41 }
0x45f4   : > { %v3637_v38 = vpop.permute.xlu2 %3636 }
0x45f5   : > { %v3639_v21 = vmul.f32 %v3637_v38, %v5908_v63 }
0x460c   : > { %v3643_v23 = vpop.permute.xlu0 %3642 }
0x460d   : > { %v3632_v1 = vpop.permute.xlu1 %3631  ;;  %v3645_v59 = vmul.f32 %v3643_v23, %v5880_v58 }
0x460e   : > { %v3634_v62 = vmul.f32 %v3632_v1, %v5875_v52  ;;  %v3687_v1 = vrot.slane %v3626_v19, 7 }
0x4610   : > { %v3640_v14 = vadd.f32 %v3639_v21, %v3634_v62 }
0x4612   : > { %v3646_v2 = vadd.f32 %v3645_v59, %v3640_v14 }
0x4614   : > { %v3647_v7 = vadd.f32 %v3646_v2, %v5922_v61 }
0x4616   : > { %v3649_v15 = vrot.slane %v3647_v7, 7 }
0x4618   : > { %3671 = vrot.lane.b32.xlu1 %v3649_v15, %s5649_s19  ;;  %v3651_v51 = vadd.f32 %v3649_v15, %v6374_v60 }
0x461a   : > { %v4973_v36 = vmul.f32 -1.442695, %v3651_v51 }
0x461c   : > { %5447 = vpow2.f32 %v4973_v36 }
0x4622   : > { %v5448_v3 = vpop.eup %5447 }
0x4623   : > { %v3655_v12 = vadd.f32 1.0, %v5448_v3 }
0x4625   : > { %5449 = vrcp.f32 %v3655_v12  ;;  %v3667_v16 = vand.u32 2147483648, %v3655_v12  ;;  %vm3661_vm11 = vweird.f32 %v3655_v12  ;;  %v3665_v4 = vand.u32 2147483647, %v3655_v12 }
0x4627   : > { %v3668_v18 = vor.u32 1.1754944e-38, %v3667_v16  ;;  %vm3666_vm14 = vcmp.eq.f32.partialorder %v3665_v4, 8.507059e+37 }
0x462b   : > { %v5450_v57 = vpop.eup %5449 }
0x462c   : > { %v3657_v33 = vmul.f32 %v5450_v57, %v3655_v12  ;;  %vm3662_vm6 = vweird.f32 %v5450_v57 }
0x462d   : > { %vm3663_vm13 = vmor %vm3661_vm11, %vm3662_vm6 }
0x462e   : > { %v3658_v17 = vsub.f32 1.0, %v3657_v33 }
0x4630   : > { %v3659_v37 = vmul.f32 %v5450_v57, %v3658_v17  ;;  %v6496_v17 = vadd.f32 %v5795_v31, %v5835_v49 }
0x4632   : > { %v3660_v53 = vadd.f32 %v5450_v57, %v3659_v37 }
0x4634   : > { %v3664_v13 = vsel %vm3663_vm13, %v5450_v57, %v3660_v53 }
0x4635   : > { %v3669_v20 = vsel %vm3666_vm14, %v3668_v18, %v3664_v13 }
0x4636   : > { %v3681_v23 = vsub.f32 1.0, %v3669_v20  ;;  %v3689_v59 = vmul.f32 %v3687_v1, %v3669_v20 }
0x468a   : > { %v3672_v56 = vpop.permute.xlu1 %3671 }
0x468b   : > { %v3674_v39 = vmul.f32 %v3672_v56, %v3669_v20 }
0x468d   : > { %3676 = vrot.lane.b32.xlu2 %v3674_v39, %s5650_s20 }
0x46e7   : > { %v3677_v50 = vpop.permute.xlu2 %3676 }
0x46e8   : > { %v3679_v47 = vadd.f32 %v3677_v50, %v6374_v60 }
0x46ea   : > { %5451 = vtanh.f32 %v3679_v47 }
0x46f0   : > { %v5452_v38 = vpop.eup %5451 }
0x46f1   : > { %3683 = vrot.lane.b32.xlu1 %v5452_v38, %s5652_s22 }
0x4763   : > { %v3684_v21 = vpop.permute.xlu1 %3683 }
0x4764   : > { %v3686_v62 = vmul.f32 %v3684_v21, %v3681_v23 }
0x4766   : > { %v3690_v14 = vadd.f32 %v3689_v59, %v3686_v62 }
0x4768   : > { %3811 = vperm.xlu1 %5184, %v3690_v14   ;;  %3805 = vperm.xlu0 %5183, %v3690_v14   ;;  %v3691_v2 = vperm.slane %v3690_v14, 7  ;;  %v3856_v1 = vrot.slane %v3690_v14, 7 }
0x4769   : > { %3800 = vperm.xlu2 %5182, %v3690_v14  }
0x476a   : > { %v6480_v7 = vsel %vm1219_vm8, %v3691_v2, %v3628_v5  ;;  %v6491_v5 = vld [vmem:[%s6743_s2] sm:$0xff] }
0x4770   : > { %5186 = vset.pattern.permute.xlu1 %v5653_v26  ;;  %5185 = vset.pattern.permute.xlu0 %v5654_v27 }
0x4771   : > { %5187 = vset.pattern.permute.xlu2 %v5655_v41 }
0x47c3   : > { %v3801_v60 = vpop.permute.xlu2 %3800 }
0x47c4   : > { %v3803_v51 = vmul.f32 %v3801_v60, %v5784_v24 }
0x47da   : > { %v3812_v19 = vpop.permute.xlu1 %3811  ;;  %v3806_v15 = vpop.permute.xlu0 %3805 }
0x47db   : > { %v3808_v36 = vmul.f32 %v3806_v15, %v5875_v52  ;;  %v3814_v3 = vmul.f32 %v3812_v19, %v5908_v63 }
0x47dd   : > { %v3809_v12 = vadd.f32 %v3808_v36, %v3803_v51 }
0x47df   : > { %v3815_v57 = vadd.f32 %v3814_v3, %v3809_v12 }
0x47e1   : > { %v3816_v33 = vadd.f32 %v6491_v5, %v3815_v57 }
0x47e3   : > { %v3818_v37 = vrot.slane %v3816_v33, 7 }
0x47e5   : > { %v3820_v53 = vadd.f32 %v3818_v37, %v6496_v17  ;;  %3840 = vrot.lane.b32.xlu2 %v3818_v37, %s5649_s19 }
0x47e7   : > { %v4977_v16 = vmul.f32 -1.442695, %v3820_v53 }
0x47e9   : > { %5453 = vpow2.f32 %v4977_v16 }
0x47ef   : > { %v5454_v4 = vpop.eup %5453 }
0x47f0   : > { %v3824_v13 = vadd.f32 1.0, %v5454_v4 }
0x47f2   : > { %5455 = vrcp.f32 %v3824_v13  ;;  %v3836_v39 = vand.u32 2147483648, %v3824_v13  ;;  %v3834_v47 = vand.u32 2147483647, %v3824_v13  ;;  %vm3830_vm6 = vweird.f32 %v3824_v13 }
0x47f4   : > { %v3837_v31 = vor.u32 1.1754944e-38, %v3836_v39  ;;  %vm3835_vm13 = vcmp.eq.f32.partialorder %v3834_v47, 8.507059e+37 }
0x47f8   : > { %v5456_v18 = vpop.eup %5455 }
0x47f9   : > { %v3826_v56 = vmul.f32 %v5456_v18, %v3824_v13  ;;  %vm3831_vm5 = vweird.f32 %v5456_v18 }
0x47fa   : > { %vm3832_vm11 = vmor %vm3830_vm6, %vm3831_vm5 }
0x47fb   : > { %v3827_v20 = vsub.f32 1.0, %v3826_v56 }
0x47fd   : > { %v3828_v50 = vmul.f32 %v5456_v18, %v3827_v20 }
0x47ff   : > { %v3829_v38 = vadd.f32 %v5456_v18, %v3828_v50 }
0x4801   : > { %v3833_v23 = vsel %vm3832_vm11, %v5456_v18, %v3829_v38 }
0x4802   : > { %v3838_v21 = vsel %vm3835_vm13, %v3837_v31, %v3833_v23 }
0x4803   : > { %v3858_v62 = vmul.f32 %v3856_v1, %v3838_v21  ;;  %v3850_v51 = vsub.f32 1.0, %v3838_v21 }
0x483f   : > { %v3841_v59 = vpop.permute.xlu2 %3840 }
0x4840   : > { %v3843_v2 = vmul.f32 %v3841_v59, %v3838_v21 }
0x4842   : > { %3845 = vrot.lane.b32.xlu1 %v3843_v2, %s5650_s20 }
0x48b4   : > { %v3846_v60 = vpop.permute.xlu1 %3845 }
0x48b5   : > { %v3848_v19 = vadd.f32 %v3846_v60, %v6496_v17 }
0x48b7   : > { %5457 = vtanh.f32 %v3848_v19 }
0x48bd   : > { %v5458_v15 = vpop.eup %5457 }
0x48be   : > { %3852 = vrot.lane.b32.xlu2 %v5458_v15, %s5652_s22 }
0x4918   : > { %v3853_v36 = vpop.permute.xlu2 %3852 }
0x4919   : > { %v3855_v3 = vmul.f32 %v3853_v36, %v3850_v51 }
0x491b   : > { %v3859_v12 = vadd.f32 %v3858_v62, %v3855_v3 }
0x491d   : > { %3875 = vperm.xlu2 %5187, %v3859_v12   ;;  %3869 = vperm.xlu1 %5186, %v3859_v12  }
0x491e   : > { %3864 = vperm.xlu0 %5185, %v3859_v12  }
0x4925   : > { %5189 = vset.pattern.permute.xlu2 %v5653_v26  ;;  %5188 = vset.pattern.permute.xlu1 %v5654_v27 }
0x4926   : > { %5190 = vset.pattern.permute.xlu0 %v5655_v41 }
0x4977   : > { %v3876_v57 = vpop.permute.xlu2 %3875 }
0x4978   : > { %v3878_v16 = vmul.f32 %v3876_v57, %v5875_v52 }
0x498f   : > { %v3870_v14 = vpop.permute.xlu1 %3869 }
0x4990   : > { %v3872_v33 = vmul.f32 %v3870_v14, %v5784_v24  ;;  %v3865_v37 = vpop.permute.xlu0 %3864 }
0x4991   : > { %v3867_v53 = vmul.f32 %v3865_v37, %v5871_v48 }
0x4993   : > { %v3873_v4 = vadd.f32 %v3872_v33, %v3867_v53  ;;  %v3920_v33 = vrot.slane %v3859_v12, 7 }
0x4995   : > { %v3879_v13 = vadd.f32 %v3878_v16, %v3873_v4  ;;  %v3860_v4 = vperm.slane %v3859_v12, 0 }
0x4997   : > { %v3880_v18 = vadd.f32 %v3879_v13, %v5880_v58 }
0x4999   : > { %v3882_v56 = vrot.slane %v3880_v18, 7 }
0x499b   : > { %3904 = vrot.lane.b32.xlu1 %v3882_v56, %s5649_s19  ;;  %v3884_v20 = vadd.f32 %v3882_v56, %v6496_v17  ;;  %v3861_v56 = vsel %vm738_vm3, %v3860_v4, 0.0 }
0x499d   : > { %v4978_v39 = vmul.f32 -1.442695, %v3884_v20 }
0x499f   : > { %5459 = vpow2.f32 %v4978_v39 }
0x49a5   : > { %v5460_v50 = vpop.eup %5459 }
0x49a6   : > { %v3888_v47 = vadd.f32 1.0, %v5460_v50 }
0x49a8   : > { %5461 = vrcp.f32 %v3888_v47  ;;  %v3900_v62 = vand.u32 2147483648, %v3888_v47  ;;  %vm3894_vm5 = vweird.f32 %v3888_v47  ;;  %v3898_v59 = vand.u32 2147483647, %v3888_v47 }
0x49aa   : > { %v3901_v60 = vor.u32 1.1754944e-38, %v3900_v62  ;;  %vm3899_vm11 = vcmp.eq.f32.partialorder %v3898_v59, 8.507059e+37 }
0x49ae   : > { %v5462_v38 = vpop.eup %5461 }
0x49af   : > { %v3890_v31 = vmul.f32 %v5462_v38, %v3888_v47  ;;  %vm3895_vm14 = vweird.f32 %v5462_v38 }
0x49b0   : > { %vm3896_vm6 = vmor %vm3894_vm5, %vm3895_vm14 }
0x49b1   : > { %v3891_v23 = vsub.f32 1.0, %v3890_v31 }
0x49b3   : > { %v3892_v1 = vmul.f32 %v5462_v38, %v3891_v23 }
0x49b5   : > { %v3893_v21 = vadd.f32 %v5462_v38, %v3892_v1 }
0x49b7   : > { %v3897_v2 = vsel %vm3896_vm6, %v5462_v38, %v3893_v21 }
0x49b8   : > { %v3902_v15 = vsel %vm3899_vm11, %v3901_v60, %v3897_v2 }
0x49b9   : > { %v3914_v57 = vsub.f32 1.0, %v3902_v15  ;;  %v3922_v16 = vmul.f32 %v3920_v33, %v3902_v15 }
0x4a0d   : > { %v3905_v19 = vpop.permute.xlu1 %3904 }
0x4a0e   : > { %v3907_v51 = vmul.f32 %v3905_v19, %v3902_v15 }
0x4a10   : > { %3909 = vrot.lane.b32.xlu2 %v3907_v51, %s5650_s20 }
0x4a6a   : > { %v3910_v36 = vpop.permute.xlu2 %3909 }
0x4a6b   : > { %v3912_v3 = vadd.f32 %v3910_v36, %v6496_v17 }
0x4a6d   : > { %5463 = vtanh.f32 %v3912_v3 }
0x4a73   : > { %v5464_v14 = vpop.eup %5463 }
0x4a74   : > { %3916 = vrot.lane.b32.xlu0 %v5464_v14, %s5652_s22 }
0x4ae6   : > { %v3917_v37 = vpop.permute.xlu0 %3916 }
0x4ae7   : > { %v3919_v53 = vmul.f32 %v3917_v37, %v3914_v57 }
0x4ae9   : > { %v3923_v13 = vadd.f32 %v3922_v16, %v3919_v53 }
0x4aeb   : > { %v3924_v18 = vperm.slane %v3923_v13, 1  ;;  %3939 = vperm.xlu0 %5190, %v3923_v13   ;;  %3933 = vperm.xlu2 %5189, %v3923_v13  }
0x4aec   : > { %3928 = vperm.xlu1 %5188, %v3923_v13  }
0x4aed   : > { %v3925_v20 = vsel %vm811_vm4, %v3924_v18, %v3861_v56 }
0x4af3   : > { %5192 = vset.pattern.permute.xlu0 %v5653_v26  ;;  %5191 = vset.pattern.permute.xlu2 %v5654_v27 }
0x4af4   : > { %5193 = vset.pattern.permute.xlu1 %v5655_v41 }
0x4b45   : > { %v3934_v39 = vpop.permute.xlu2 %3933 }
0x4b46   : > { %v3936_v47 = vmul.f32 %v3934_v39, %v5871_v48 }
0x4b5d   : > { %v3940_v50 = vpop.permute.xlu0 %3939 }
0x4b5e   : > { %v3929_v12 = vpop.permute.xlu1 %3928  ;;  %v3942_v31 = vmul.f32 %v3940_v50, %v5784_v24 }
0x4b5f   : > { %v3931_v38 = vmul.f32 %v3929_v12, %v5902_v54 }
0x4b61   : > { %v3937_v23 = vadd.f32 %v3936_v47, %v3931_v38  ;;  %v3984_v47 = vrot.slane %v3923_v13, 7 }
0x4b63   : > { %v3943_v1 = vadd.f32 %v3942_v31, %v3937_v23 }
0x4b65   : > { %v3944_v21 = vadd.f32 %v3943_v1, %v5908_v63 }
0x4b67   : > { %v3946_v62 = vrot.slane %v3944_v21, 7 }
0x4b69   : > { %3968 = vrot.lane.b32.xlu1 %v3946_v62, %s5649_s19  ;;  %v3948_v59 = vadd.f32 %v3946_v62, %v6496_v17 }
0x4b6b   : > { %v4979_v2 = vmul.f32 -1.442695, %v3948_v59 }
0x4b6d   : > { %5465 = vpow2.f32 %v4979_v2 }
0x4b73   : > { %v5466_v60 = vpop.eup %5465 }
0x4b74   : > { %v3952_v19 = vadd.f32 1.0, %v5466_v60 }
0x4b76   : > { %5467 = vrcp.f32 %v3952_v19  ;;  %v3964_v57 = vand.u32 2147483648, %v3952_v19  ;;  %vm3958_vm4 = vweird.f32 %v3952_v19  ;;  %v3962_v33 = vand.u32 2147483647, %v3952_v19 }
0x4b78   : > { %v3965_v53 = vor.u32 1.1754944e-38, %v3964_v57  ;;  %vm3963_vm14 = vcmp.eq.f32.partialorder %v3962_v33, 8.507059e+37 }
0x4b7c   : > { %v5468_v15 = vpop.eup %5467 }
0x4b7d   : > { %v3954_v51 = vmul.f32 %v5468_v15, %v3952_v19  ;;  %vm3959_vm3 = vweird.f32 %v5468_v15 }
0x4b7e   : > { %vm3960_vm13 = vmor %vm3958_vm4, %vm3959_vm3 }
0x4b7f   : > { %v3955_v36 = vsub.f32 1.0, %v3954_v51 }
0x4b81   : > { %v3956_v3 = vmul.f32 %v5468_v15, %v3955_v36 }
0x4b83   : > { %v3957_v14 = vadd.f32 %v5468_v15, %v3956_v3 }
0x4b85   : > { %v3961_v37 = vsel %vm3960_vm13, %v5468_v15, %v3957_v14 }
0x4b86   : > { %v3966_v4 = vsel %vm3963_vm14, %v3965_v53, %v3961_v37 }
0x4b87   : > { %v3978_v12 = vsub.f32 1.0, %v3966_v4  ;;  %v3986_v23 = vmul.f32 %v3984_v47, %v3966_v4 }
0x4bdb   : > { %v3969_v16 = vpop.permute.xlu1 %3968 }
0x4bdc   : > { %v3971_v18 = vmul.f32 %v3969_v16, %v3966_v4 }
0x4bde   : > { %3973 = vrot.lane.b32.xlu2 %v3971_v18, %s5650_s20 }
0x4c38   : > { %v3974_v56 = vpop.permute.xlu2 %3973 }
0x4c39   : > { %v3976_v39 = vadd.f32 %v3974_v56, %v6496_v17 }
0x4c3b   : > { %5469 = vtanh.f32 %v3976_v39 }
0x4c41   : > { %v5470_v50 = vpop.eup %5469 }
0x4c42   : > { %3980 = vrot.lane.b32.xlu1 %v5470_v50, %s5652_s22 }
0x4cb4   : > { %v3981_v38 = vpop.permute.xlu1 %3980 }
0x4cb5   : > { %v3983_v31 = vmul.f32 %v3981_v38, %v3978_v12 }
0x4cb7   : > { %v3987_v1 = vadd.f32 %v3986_v23, %v3983_v31 }
0x4cb9   : > { %v3988_v21 = vperm.slane %v3987_v1, 2  ;;  %4003 = vperm.xlu1 %5193, %v3987_v1   ;;  %3997 = vperm.xlu0 %5192, %v3987_v1   ;;  %v4048_v38 = vrot.slane %v3987_v1, 7 }
0x4cba   : > { %3992 = vperm.xlu2 %5191, %v3987_v1  }
0x4cbb   : > { %v3989_v62 = vsel %vm882_vm10, %v3988_v21, %v3925_v20 }
0x4cc1   : > { %5195 = vset.pattern.permute.xlu1 %v5653_v26  ;;  %5194 = vset.pattern.permute.xlu0 %v5654_v27 }
0x4cc2   : > { %5196 = vset.pattern.permute.xlu2 %v5655_v41 }
0x4d14   : > { %v3993_v59 = vpop.permute.xlu2 %3992 }
0x4d15   : > { %v3995_v60 = vmul.f32 %v3993_v59, %v5922_v61 }
0x4d2b   : > { %v4004_v2 = vpop.permute.xlu1 %4003  ;;  %v3998_v13 = vpop.permute.xlu0 %3997 }
0x4d2c   : > { %v4000_v19 = vmul.f32 %v3998_v13, %v5902_v54  ;;  %v4006_v15 = vmul.f32 %v4004_v2, %v5871_v48 }
0x4d2e   : > { %v4001_v51 = vadd.f32 %v4000_v19, %v3995_v60 }
0x4d30   : > { %v4007_v36 = vadd.f32 %v4006_v15, %v4001_v51 }
0x4d32   : > { %v4008_v3 = vadd.f32 %v4007_v36, %v5875_v52 }
0x4d34   : > { %v4010_v20 = vrot.slane %v4008_v3, 7 }
0x4d36   : > { %v4012_v14 = vadd.f32 %v4010_v20, %v6496_v17  ;;  %4032 = vrot.lane.b32.xlu2 %v4010_v20, %s5649_s19 }
0x4d38   : > { %v4980_v57 = vmul.f32 -1.442695, %v4012_v14 }
0x4d3a   : > { %5471 = vpow2.f32 %v4980_v57 }
0x4d40   : > { %v5472_v33 = vpop.eup %5471 }
0x4d41   : > { %v4016_v37 = vadd.f32 1.0, %v5472_v33 }
0x4d43   : > { %5473 = vrcp.f32 %v4016_v37  ;;  %v4028_v18 = vand.u32 2147483648, %v4016_v37  ;;  %v4026_v39 = vand.u32 2147483647, %v4016_v37  ;;  %vm4022_vm5 = vweird.f32 %v4016_v37 }
0x4d45   : > { %v4029_v12 = vor.u32 1.1754944e-38, %v4028_v18  ;;  %vm4027_vm11 = vcmp.eq.f32.partialorder %v4026_v39, 8.507059e+37 }
0x4d49   : > { %v5474_v53 = vpop.eup %5473 }
0x4d4a   : > { %v4018_v16 = vmul.f32 %v5474_v53, %v4016_v37  ;;  %vm4023_vm10 = vweird.f32 %v5474_v53 }
0x4d4b   : > { %vm4024_vm6 = vmor %vm4022_vm5, %vm4023_vm10 }
0x4d4c   : > { %v4019_v4 = vsub.f32 1.0, %v4018_v16 }
0x4d4e   : > { %v4020_v56 = vmul.f32 %v5474_v53, %v4019_v4 }
0x4d50   : > { %v4021_v50 = vadd.f32 %v5474_v53, %v4020_v56 }
0x4d52   : > { %v4025_v47 = vsel %vm4024_vm6, %v5474_v53, %v4021_v50 }
0x4d53   : > { %v4030_v31 = vsel %vm4027_vm11, %v4029_v12, %v4025_v47 }
0x4d54   : > { %v4050_v23 = vmul.f32 %v4048_v38, %v4030_v31  ;;  %v4042_v19 = vsub.f32 1.0, %v4030_v31 }
0x4d90   : > { %v4033_v21 = vpop.permute.xlu2 %4032 }
0x4d91   : > { %v4035_v59 = vmul.f32 %v4033_v21, %v4030_v31 }
0x4d93   : > { %4037 = vrot.lane.b32.xlu1 %v4035_v59, %s5650_s20 }
0x4e05   : > { %v4038_v2 = vpop.permute.xlu1 %4037 }
0x4e06   : > { %v4040_v13 = vadd.f32 %v4038_v2, %v6496_v17 }
0x4e08   : > { %5475 = vtanh.f32 %v4040_v13 }
0x4e0e   : > { %v5476_v60 = vpop.eup %5475 }
0x4e0f   : > { %4044 = vrot.lane.b32.xlu2 %v5476_v60, %s5652_s22 }
0x4e69   : > { %v4045_v15 = vpop.permute.xlu2 %4044 }
0x4e6a   : > { %v4047_v51 = vmul.f32 %v4045_v15, %v4042_v19 }
0x4e6c   : > { %v4051_v36 = vadd.f32 %v4050_v23, %v4047_v51 }
0x4e6e   : > { %v4052_v3 = vperm.slane %v4051_v36, 3  ;;  %4067 = vperm.xlu2 %5196, %v4051_v36   ;;  %4061 = vperm.xlu1 %5195, %v4051_v36  }
0x4e6f   : > { %4056 = vperm.xlu0 %5194, %v4051_v36  }
0x4e70   : > { %v4053_v1 = vsel %vm951_vm15, %v4052_v3, %v3989_v62 }
0x4e76   : > { %5198 = vset.pattern.permute.xlu2 %v5653_v26  ;;  %5197 = vset.pattern.permute.xlu1 %v5654_v27 }
0x4e77   : > { %5199 = vset.pattern.permute.xlu0 %v5655_v41 }
0x4ec8   : > { %v4068_v14 = vpop.permute.xlu2 %4067 }
0x4ec9   : > { %v4070_v53 = vmul.f32 %v4068_v14, %v5902_v54 }
0x4ee0   : > { %v4062_v20 = vpop.permute.xlu1 %4061 }
0x4ee1   : > { %v4064_v57 = vmul.f32 %v4062_v20, %v5922_v61  ;;  %v4057_v33 = vpop.permute.xlu0 %4056 }
0x4ee2   : > { %v4059_v37 = vmul.f32 %v6491_v5, %v4057_v33 }
0x4ee4   : > { %v4065_v16 = vadd.f32 %v4064_v57, %v4059_v37  ;;  %v4112_v57 = vrot.slane %v4051_v36, 7 }
0x4ee6   : > { %v4071_v4 = vadd.f32 %v4070_v53, %v4065_v16 }
0x4ee8   : > { %v4072_v18 = vadd.f32 %v4071_v4, %v5784_v24 }
0x4eea   : > { %v4074_v62 = vrot.slane %v4072_v18, 7 }
0x4eec   : > { %4096 = vrot.lane.b32.xlu1 %v4074_v62, %s5649_s19  ;;  %v4076_v56 = vadd.f32 %v4074_v62, %v6496_v17 }
0x4eee   : > { %v4981_v39 = vmul.f32 -1.442695, %v4076_v56 }
0x4ef0   : > { %5477 = vpow2.f32 %v4981_v39 }
0x4ef6   : > { %v5478_v50 = vpop.eup %5477 }
0x4ef7   : > { %v4080_v12 = vadd.f32 1.0, %v5478_v50 }
0x4ef9   : > { %5479 = vrcp.f32 %v4080_v12  ;;  %v4092_v59 = vand.u32 2147483648, %v4080_v12  ;;  %vm4086_vm3 = vweird.f32 %v4080_v12  ;;  %v4090_v2 = vand.u32 2147483647, %v4080_v12 }
0x4efb   : > { %v4093_v13 = vor.u32 1.1754944e-38, %v4092_v59  ;;  %vm4091_vm13 = vcmp.eq.f32.partialorder %v4090_v2, 8.507059e+37 }
0x4eff   : > { %v5480_v47 = vpop.eup %5479 }
0x4f00   : > { %v4082_v38 = vmul.f32 %v5480_v47, %v4080_v12  ;;  %vm4087_vm15 = vweird.f32 %v5480_v47 }
0x4f01   : > { %vm4088_vm4 = vmor %vm4086_vm3, %vm4087_vm15 }
0x4f02   : > { %v4083_v31 = vsub.f32 1.0, %v4082_v38 }
0x4f04   : > { %v4084_v23 = vmul.f32 %v5480_v47, %v4083_v31 }
0x4f06   : > { %v4085_v21 = vadd.f32 %v5480_v47, %v4084_v23 }
0x4f08   : > { %v4089_v24 = vsel %vm4088_vm4, %v5480_v47, %v4085_v21 }
0x4f09   : > { %v4094_v19 = vsel %vm4091_vm13, %v4093_v13, %v4089_v24 }
0x4f0a   : > { %v4106_v14 = vsub.f32 1.0, %v4094_v19  ;;  %v4114_v53 = vmul.f32 %v4112_v57, %v4094_v19 }
0x4f5e   : > { %v4097_v60 = vpop.permute.xlu1 %4096 }
0x4f5f   : > { %v4099_v15 = vmul.f32 %v4097_v60, %v4094_v19 }
0x4f61   : > { %4101 = vrot.lane.b32.xlu2 %v4099_v15, %s5650_s20 }
0x4fbb   : > { %v4102_v51 = vpop.permute.xlu2 %4101 }
0x4fbc   : > { %v4104_v3 = vadd.f32 %v4102_v51, %v6496_v17 }
0x4fbe   : > { %5481 = vtanh.f32 %v4104_v3 }
0x4fc4   : > { %v5482_v20 = vpop.eup %5481 }
0x4fc5   : > { %4108 = vrot.lane.b32.xlu0 %v5482_v20, %s5652_s22 }
0x5037   : > { %v4109_v33 = vpop.permute.xlu0 %4108 }
0x5038   : > { %v4111_v37 = vmul.f32 %v4109_v33, %v4106_v14 }
0x503a   : > { %v4115_v16 = vadd.f32 %v4114_v53, %v4111_v37 }
0x503c   : > { %4131 = vperm.xlu0 %5199, %v4115_v16   ;;  %4125 = vperm.xlu2 %5198, %v4115_v16   ;;  %v4116_v4 = vperm.slane %v4115_v16, 4 }
0x503d   : > { %4120 = vperm.xlu1 %5197, %v4115_v16  }
0x503e   : > { %v4117_v18 = vsel %vm1018_vm9, %v4116_v4, %v4053_v1 }
0x5044   : > { %5201 = vset.pattern.permute.xlu0 %v5653_v26  ;;  %5200 = vset.pattern.permute.xlu2 %v5654_v27 }
0x5045   : > { %5202 = vset.pattern.permute.xlu1 %v5655_v41 }
0x5096   : > { %v4126_v62 = vpop.permute.xlu2 %4125 }
0x5097   : > { %v4128_v39 = vmul.f32 %v6491_v5, %v4126_v62 }
0x50ae   : > { %v4132_v56 = vpop.permute.xlu0 %4131 }
0x50af   : > { %v4121_v36 = vpop.permute.xlu1 %4120  ;;  %v4134_v12 = vmul.f32 %v4132_v56, %v5922_v61  ;;  %v4176_v56 = vrot.slane %v4115_v16, 7 }
0x50b0   : > { %v4123_v50 = vmul.f32 %v4121_v36, %v5880_v58 }
0x50b2   : > { %v4129_v47 = vadd.f32 %v4128_v39, %v4123_v50 }
0x50b4   : > { %v4135_v38 = vadd.f32 %v4134_v12, %v4129_v47 }
0x50b6   : > { %v4136_v31 = vadd.f32 %v4135_v38, %v5871_v48 }
0x50b8   : > { %v4138_v1 = vrot.slane %v4136_v31, 7 }
0x50ba   : > { %4160 = vrot.lane.b32.xlu1 %v4138_v1, %s5649_s19  ;;  %v4140_v23 = vadd.f32 %v4138_v1, %v6496_v17 }
0x50bc   : > { %v4982_v21 = vmul.f32 -1.442695, %v4140_v23 }
0x50be   : > { %5483 = vpow2.f32 %v4982_v21 }
0x50c4   : > { %v5484_v59 = vpop.eup %5483 }
0x50c5   : > { %v4144_v2 = vadd.f32 1.0, %v5484_v59 }
0x50c7   : > { %5485 = vrcp.f32 %v4144_v2  ;;  %v4156_v51 = vand.u32 2147483648, %v4144_v2  ;;  %vm4150_vm14 = vweird.f32 %v4144_v2  ;;  %v4154_v3 = vand.u32 2147483647, %v4144_v2 }
0x50c9   : > { %v4157_v20 = vor.u32 1.1754944e-38, %v4156_v51  ;;  %vm4155_vm5 = vcmp.eq.f32.partialorder %v4154_v3, 8.507059e+37 }
0x50cd   : > { %v5486_v24 = vpop.eup %5485 }
0x50ce   : > { %v4146_v13 = vmul.f32 %v5486_v24, %v4144_v2  ;;  %vm4151_vm9 = vweird.f32 %v5486_v24 }
0x50cf   : > { %vm4152_vm10 = vmor %vm4150_vm14, %vm4151_vm9  ;;  %vm1263_vm9 = vcmask 64512   ;;  %vm572_vm14 = vcmask 97352  }
0x50d0   : > { %v4147_v60 = vsub.f32 1.0, %v4146_v13 }
0x50d2   : > { %v4148_v19 = vmul.f32 %v5486_v24, %v4147_v60 }
0x50d4   : > { %v4149_v15 = vadd.f32 %v5486_v24, %v4148_v19 }
0x50d6   : > { %v4153_v48 = vsel %vm4152_vm10, %v5486_v24, %v4149_v15  ;;  %vm4499_vm10 = vcmask 1040384  }
0x50d7   : > { %v4158_v57 = vsel %vm4155_vm5, %v4157_v20, %v4153_v48 }
0x50d8   : > { %v4170_v62 = vsub.f32 1.0, %v4158_v57  ;;  %v4178_v50 = vmul.f32 %v4176_v56, %v4158_v57 }
0x512c   : > { %v4161_v14 = vpop.permute.xlu1 %4160 }
0x512d   : > { %v4163_v33 = vmul.f32 %v4161_v14, %v4158_v57 }
0x512f   : > { %4165 = vrot.lane.b32.xlu2 %v4163_v33, %s5650_s20 }
0x5189   : > { %v4166_v37 = vpop.permute.xlu2 %4165 }
0x518a   : > { %v4168_v53 = vadd.f32 %v4166_v37, %v6496_v17 }
0x518c   : > { %5487 = vtanh.f32 %v4168_v53 }
0x5192   : > { %v5488_v4 = vpop.eup %5487 }
0x5193   : > { %4172 = vrot.lane.b32.xlu1 %v5488_v4, %s5652_s22 }
0x5205   : > { %v4173_v36 = vpop.permute.xlu1 %4172 }
0x5206   : > { %v4175_v39 = vmul.f32 %v4173_v36, %v4170_v62 }
0x5208   : > { %v4179_v12 = vadd.f32 %v4178_v50, %v4175_v39 }
0x520a   : > { %4195 = vperm.xlu1 %5202, %v4179_v12   ;;  %4189 = vperm.xlu0 %5201, %v4179_v12   ;;  %v4180_v47 = vperm.slane %v4179_v12, 5  ;;  %v4240_v33 = vrot.slane %v4179_v12, 7 }
0x520b   : > { %4184 = vperm.xlu2 %5200, %v4179_v12  }
0x520c   : > { %v4181_v38 = vsel %vm1085_vm2, %v4180_v47, %v4117_v18 }
0x5212   : > { %5204 = vset.pattern.permute.xlu1 %v5653_v26  ;;  %5203 = vset.pattern.permute.xlu0 %v5654_v27 }
0x5213   : > { %5205 = vset.pattern.permute.xlu2 %v5655_v41 }
0x5265   : > { %v4185_v31 = vpop.permute.xlu2 %4184 }
0x5266   : > { %v4187_v23 = vmul.f32 %v4185_v31, %v5908_v63 }
0x527c   : > { %v4196_v1 = vpop.permute.xlu1 %4195  ;;  %v4190_v16 = vpop.permute.xlu0 %4189 }
0x527d   : > { %v4192_v21 = vmul.f32 %v4190_v16, %v5880_v58  ;;  %v4198_v59 = vmul.f32 %v6491_v5, %v4196_v1 }
0x527f   : > { %v4193_v2 = vadd.f32 %v4192_v21, %v4187_v23 }
0x5281   : > { %v4199_v24 = vadd.f32 %v4198_v59, %v4193_v2 }
0x5283   : > { %v4200_v13 = vadd.f32 %v4199_v24, %v5902_v54 }
0x5285   : > { %v4202_v18 = vrot.slane %v4200_v13, 7 }
0x5287   : > { %v4204_v26 = vadd.f32 %v4202_v18, %v6496_v17  ;;  %4224 = vrot.lane.b32.xlu2 %v4202_v18, %s5649_s19 }
0x5289   : > { %v4983_v27 = vmul.f32 -1.442695, %v4204_v26 }
0x528b   : > { %5489 = vpow2.f32 %v4983_v27 }
0x5291   : > { %v5490_v60 = vpop.eup %5489 }
0x5292   : > { %v4208_v19 = vadd.f32 1.0, %v5490_v60 }
0x5294   : > { %5491 = vrcp.f32 %v4208_v19  ;;  %v4220_v48 = vand.u32 2147483648, %v4208_v19  ;;  %v4218_v5 = vand.u32 2147483647, %v4208_v19  ;;  %vm4214_vm6 = vweird.f32 %v4208_v19 }
0x5296   : > { %v4221_v54 = vor.u32 1.1754944e-38, %v4220_v48  ;;  %vm4219_vm15 = vcmp.eq.f32.partialorder %v4218_v5, 8.507059e+37 }
0x529a   : > { %v5492_v15 = vpop.eup %5491 }
0x529b   : > { %v4210_v51 = vmul.f32 %v5492_v15, %v4208_v19  ;;  %vm4215_vm2 = vweird.f32 %v5492_v15 }
0x529c   : > { %vm4216_vm11 = vmor %vm4214_vm6, %vm4215_vm2 }
0x529d   : > { %v4211_v3 = vsub.f32 1.0, %v4210_v51 }
0x529f   : > { %v4212_v20 = vmul.f32 %v5492_v15, %v4211_v3 }
0x52a1   : > { %v4213_v14 = vadd.f32 %v5492_v15, %v4212_v20 }
0x52a3   : > { %v4217_v57 = vsel %vm4216_vm11, %v5492_v15, %v4213_v14 }
0x52a4   : > { %v4222_v37 = vsel %vm4219_vm15, %v4221_v54, %v4217_v57 }
0x52a5   : > { %v4242_v53 = vmul.f32 %v4240_v33, %v4222_v37  ;;  %v4234_v50 = vsub.f32 1.0, %v4222_v37  ;;  %v500_v33 = vsub.f32 %v5817_v42, %v5850_v8  ;;  %v503_v42 = vsub.f32 %v5829_v46, %v5850_v8 }
0x52e1   : > { %v4225_v4 = vpop.permute.xlu2 %4224 }
0x52e2   : > { %v4227_v62 = vmul.f32 %v4225_v4, %v4222_v37  ;;  %v501_v37 = vsub.f32 %v5823_v44, %v5850_v8 }
0x52e4   : > { %4229 = vrot.lane.b32.xlu1 %v4227_v62, %s5650_s20  ;;  %v508_v4 = vmul.f32 1.442695, %v501_v37 }
0x5356   : > { %v4230_v56 = vpop.permute.xlu1 %4229 }
0x5357   : > { %v4232_v36 = vadd.f32 %v4230_v56, %v6496_v17  ;;  %v502_v56 = vsub.f32 %v5826_v45, %v5850_v8 }
0x5359   : > { %5493 = vtanh.f32 %v4232_v36  ;;  %v510_v36 = vmul.f32 1.442695, %v502_v56  ;;  %v2459_v56 = vld [vmem:[#allocation2 + $0x30] sm:$0xff] }
0x535f   : > { %v5494_v39 = vpop.eup %5493 }
0x5360   : > { %4236 = vrot.lane.b32.xlu2 %v5494_v39, %s5652_s22 }
0x53ba   : > { %v4237_v47 = vpop.permute.xlu2 %4236 }
0x53bb   : > { %v4239_v31 = vmul.f32 %v4237_v47, %v4234_v50  ;;  %v512_v50 = vmul.f32 1.442695, %v503_v42 }
0x53bd   : > { %v6587_v1 = vadd.f32 %v4242_v53, %v4239_v31  ;;  %v5656_v53 = vmov 12  }
0x53bf   : > { %4259 = vperm.xlu2 %5205, %v6587_v1   ;;  %4253 = vperm.xlu1 %5204, %v6587_v1   ;;  %v4244_v12 = vperm.slane %v6587_v1, 6 }
0x53c0   : > { %4248 = vperm.xlu0 %5203, %v6587_v1  }
0x53c1   : > { %v6595_v16 = vsel %vm1152_vm12, %v4244_v12, %v4181_v38 }
0x53c7   : > { %1846 = vrot.lane.b32.xlu2 %v6116_v11, %s5652_s22  ;;  %1228 = vrot.lane.b32.xlu1 %v5993_v22, %s5652_s22 }
0x53cf   : > { %3080 = vrot.lane.b32.xlu1 %v6362_v40, %s5652_s22 }
0x5419   : > { %v4260_v21 = vpop.permute.xlu2 %4259 }
0x541a   : > { %v4262_v13 = vmul.f32 %v4260_v21, %v5880_v58 }
0x5421   : > { %v1847_v44 = vpop.permute.xlu2 %1846 }
0x5431   : > { %v4254_v23 = vpop.permute.xlu1 %4253 }
0x5432   : > { %v4256_v59 = vmul.f32 %v4254_v23, %v5908_v63  ;;  %v4249_v2 = vpop.permute.xlu0 %4248 }
0x5433   : > { %v4251_v24 = vmul.f32 %v4249_v2, %v5875_v52  ;;  %v1224_v2 = vld [vmem:[#allocation2] sm:$0xff] }
0x5434   : > { %1282 = vmatpush.msra.mxu1 %v1224_v2 }
0x5435   : > { %v4257_v38 = vadd.f32 %v4256_v59, %v4251_v24  ;;  %v1225_v24 = vld [vmem:[#allocation2 + $0x8] sm:$0xff] }
0x5436   : > { %1302 = vmatpush.msra.mxu2 %v1225_v24 }
0x5437   : > { %v4263_v18 = vadd.f32 %v4262_v13, %v4257_v38  ;;  %v1226_v13 = vld [vmem:[#allocation2 + $0x10] sm:$0xff] }
0x5438   : > { %1322 = vmatpush.msra.mxu3 %v1226_v13 }
0x5439   : > { %v4264_v26 = vadd.f32 %v4263_v18, %v5922_v61  ;;  %v1229_v11 = vpop.permute.xlu1 %1228 }
0x543a   : > { %1231 = vxpose.xlu0.b32.start.end [1/1] (short) (narrow) %v1229_v11, 8 }
0x543b   : > { %v4266_v27 = vrot.slane %v4264_v26, 7 }
0x543d   : > { %4288 = vrot.lane.b32.xlu1 %v4266_v27, %s5649_s19  ;;  %v4268_v40 = vadd.f32 %v4266_v27, %v6496_v17 }
0x543f   : > { %v4984_v60 = vmul.f32 -1.442695, %v4268_v40 }
0x5441   : > { %v3081_v22 = vpop.permute.xlu1 %3080  ;;  %5495 = vpow2.f32 %v4984_v60 }
0x5447   : > { %v5496_v63 = vpop.eup %5495 }
0x5448   : > { %v4272_v19 = vadd.f32 1.0, %v5496_v63 }
0x544a   : > { %5497 = vrcp.f32 %v4272_v19  ;;  %v4284_v3 = vand.u32 2147483648, %v4272_v19  ;;  %vm4278_vm3 = vweird.f32 %v4272_v19  ;;  %v4282_v48 = vand.u32 2147483647, %v4272_v19 }
0x544c   : > { %v4285_v5 = vor.u32 1.1754944e-38, %v4284_v3  ;;  %vm4283_vm13 = vcmp.eq.f32.partialorder %v4282_v48, 8.507059e+37 }
0x5450   : > { %v5498_v52 = vpop.eup %5497 }
0x5451   : > { %v4274_v58 = vmul.f32 %v5498_v52, %v4272_v19  ;;  %vm4279_vm12 = vweird.f32 %v5498_v52  ;;  %v4304_v19 = vrot.slane %v6587_v1, 7 }
0x5452   : > { %vm4280_vm4 = vmor %vm4278_vm3, %vm4279_vm12  ;;  %vm4805_vm3 = vcmp.lt.s32.totalorder %v661_v25, 256 }
0x5453   : > { %v4275_v15 = vsub.f32 1.0, %v4274_v58  ;;  %v1844_v58 = vld [vmem:[#allocation2 + $0x28] sm:$0xff] }
0x5454   : > { %1939 = vmatpush.msrb.mxu3 %v1844_v58 }
0x5455   : > { %v4276_v51 = vmul.f32 %v5498_v52, %v4275_v15 }
0x5457   : > { %v4277_v61 = vadd.f32 %v5498_v52, %v4276_v51 }
0x5459   : > { %v4281_v20 = vsel %vm4280_vm4, %v5498_v52, %v4277_v61  ;;  %v1842_v52 = vld [vmem:[#allocation2 + $0x18] sm:$0xff] }
0x545a   : > { %v6611_v14 = vsel %vm4283_vm13, %v4285_v5, %v4281_v20  ;;  %1899 = vmatpush.msrb.mxu1 %v1842_v52  ;;  %v516_v20 = vmul.f32 1.442695, %v505_v10 }
0x545b   : > { %v4306_v61 = vmul.f32 %v4304_v19, %v6611_v14 }
0x5472   : > { %3083 = vxpose.xlu1.b32.start.end [1/1] (short) (narrow) %v3081_v22, 8 }
0x54a8   : > { %2463 = vrot.lane.b32.xlu0 %v6239_v6, %s5652_s22  ;;  %v506_v6 = vmul.f32 1.442695, %v500_v33 }
0x54aa   : > { %5499 = vpow2.f32 %v506_v6 }
0x54ab   : > { %5501 = vpow2.f32 %v508_v4 }
0x54ac   : > { %5503 = vpow2.f32 %v510_v36  ;;  %v2460_v36 = vld [vmem:[#allocation2 + $0x38] sm:$0xff] }
0x54ad   : > { %5505 = vpow2.f32 %v512_v50 }
0x54af   : > { %v4289_v54 = vpop.permute.xlu1 %4288 }
0x54b0   : > { %v4291_v57 = vmul.f32 %v4289_v54, %v6611_v14  ;;  %v6620_v62 = vpop.eup %5499 }
0x54b1   : > { %v6625_v39 = vpop.eup %5501  ;;  %v518_v54 = vsel %vm482_vm7, %v6620_v62, 0.0 }
0x54b2   : > { %4293 = vrot.lane.b32.xlu2 %v4291_v57, %s5650_s20  ;;  %v6630_v47 = vpop.eup %5503  ;;  %v519_v34 = vsel %vm482_vm7, %v6625_v39, 0.0 }
0x54b3   : > { %v6633_v31 = vpop.eup %5505  ;;  %v521_v57 = vsel %vm482_vm7, %v6630_v47, 0.0 }
0x54b4   : > { %v523_v55 = vsel %vm482_vm7, %v6633_v31, 0.0 }
0x54c5   : > { %5208 = vset.pattern.permute.xlu1 %v5656_v53 }
0x54cc   : > { %538 = vperm.xlu1 %5208, %v6620_v62  }
0x54d4   : > { %543 = vperm.xlu1 %5208, %v6625_v39   ;;  %v2461_v39 = vld [vmem:[#allocation2 + $0x40] sm:$0xff] }
0x54d8   : > { %1849 = vxpose.xlu2.b32.start.end [1/1] (short) (narrow) %v1847_v44, 8  ;;  %v3076_v44 = vld [vmem:[#allocation2 + $0x48] sm:$0xff] }
0x54dc   : > { %548 = vperm.xlu1 %5208, %v6630_v47   ;;  %v3077_v47 = vld [vmem:[#allocation2 + $0x50] sm:$0xff] }
0x54de   : > { %v1247_v46 = vpop.trf.xlu0 }
0x54df   : > { %4930 = vmatmul.msk.f32.vlgmr.msra.gmra.mxu1 %vm1263_vm9, %v1247_v46  ;;  %4931 = vmatmul.msk.f32.vlgmr.msra.gmra.mxu2 %vm1263_vm9, %v1247_v46 }
0x54e0   : > { %4932 = vmatmul.msk.f32.vlgmr.msra.gmra.mxu3 %vm1263_vm9, %v1247_v46  ;;  %2516 = vmatpush.msra.mxu1 %v2459_v56  ;;  %v3695_v46 = vld [vmem:[#allocation2 + $0x70] sm:$0xff] }
0x54e1   : > { %2556 = vmatpush.msra.mxu3 %v2461_v39 }
0x54e4   : > { %553 = vperm.xlu1 %5208, %v6633_v31   ;;  %v3078_v31 = vld [vmem:[#allocation2 + $0x58] sm:$0xff] }
0x550c   : > { %v4294_v45 = vpop.permute.xlu2 %4293 }
0x550d   : > { %v4296_v12 = vadd.f32 %v4294_v45, %v6496_v17  ;;  %v514_v17 = vmul.f32 1.442695, %v504_v9  ;;  %v3693_v45 = vld [vmem:[#allocation2 + $0x60] sm:$0xff] }
0x550f   : > { %5507 = vtanh.f32 %v4296_v12  ;;  %v3694_v12 = vld [vmem:[#allocation2 + $0x68] sm:$0xff] }
0x5510   : > { %5509 = vpow2.f32 %v514_v17 }
0x5511   : > { %5511 = vpow2.f32 %v516_v20 }
0x5515   : > { %v5508_v23 = vpop.eup %5507 }
0x5516   : > { %4300 = vrot.lane.b32.xlu0 %v5508_v23, %s5652_s22  ;;  %v6638_v21 = vpop.trf.xlu1  ;;  %v5510_v27 = vpop.eup %5509 }
0x5517   : > { %v5512_v5 = vpop.eup %5511  ;;  %v525_v10 = vsel %vm482_vm7, %v5510_v27, 0.0 }
0x551a   : > { %v2464_v59 = vpop.permute.xlu0 %2463 }
0x5538   : > { %2466 = vxpose.xlu0.b32.start.end [1/1] (short) (narrow) %v2464_v59, 8 }
0x553a   : > { %5206 = vset.pattern.permute.xlu2 %v5656_v53 }
0x553e   : > { %v539_v38 = vpop.permute.xlu1 %538 }
0x553f   : > { %v566_v18 = vmul.f32 %v539_v38, %v5788_v28  ;;  %v4298_v28 = vsub.f32 1.0, %v6611_v14 }
0x5541   : > { %3697 = vrot.lane.b32.xlu2 %v6480_v7, %s5652_s22  ;;  %v573_v22 = vsel %vm572_vm14, %v566_v18, 0.0 }
0x5546   : > { %v544_v26 = vpop.permute.xlu1 %543 }
0x5547   : > { %v567_v11 = vmul.f32 %v544_v26, %v5790_v29  ;;  %v1843_v29 = vld [vmem:[#allocation2 + $0x20] sm:$0xff] }
0x5548   : > { %1919 = vmatpush.msrb.mxu2 %v1843_v29 }
0x5549   : > { %v574_v40 = vsel %vm572_vm14, %v567_v11, 0.0  ;;  %558 = vperm.xlu2 %5206, %v5510_v27  }
0x554a   : > { %v575_v60 = vadd.f32 %v574_v40, %v573_v22  ;;  %2536 = vmatpush.msra.mxu2 %v2460_v36 }
0x554e   : > { %v549_v43 = vpop.permute.xlu1 %548 }
0x554f   : > { %v568_v9 = vmul.f32 %v549_v43, %v5792_v30 }
0x5551   : > { %v576_v63 = vsel %vm572_vm14, %v568_v9, 0.0 }
0x5552   : > { %v6655_v7 = vadd.f32 %v576_v63, %v575_v60 }
0x5556   : > { %v554_v37 = vpop.permute.xlu1 %553 }
0x5557   : > { %v569_v26 = vmul.f32 %v554_v37, %v5797_v32 }
0x5559   : > { %v578_v27 = vsel %vm572_vm14, %v569_v26, 0.0 }
0x5571   : > { %v1865_v51 = vpop.trf.xlu2 }
0x5572   : > { %4941 = vmatmul.msk.f32.vlgmr.msrb.gmra.mxu1 %vm1263_vm9, %v1865_v51  ;;  %4942 = vmatmul.msk.f32.vlgmr.msrb.gmra.mxu2 %vm1263_vm9, %v1865_v51 }
0x5573   : > { %4943 = vmatmul.msk.f32.vlgmr.msrb.gmra.mxu3 %vm1263_vm9, %v1865_v51  ;;  %3133 = vmatpush.msrb.mxu1 %v3076_v44  ;;  %v4312_v51 = vld [vmem:[#allocation2 + $0x88] sm:$0xff] }
0x5574   : > { %3153 = vmatpush.msrb.mxu2 %v3077_v47  ;;  %3173 = vmatpush.msrb.mxu3 %v3078_v31 }
0x5588   : > { %v4301_v15 = vpop.permute.xlu0 %4300 }
0x5589   : > { %v4303_v3 = vmul.f32 %v4301_v15, %v4298_v28  ;;  %v4311_v15 = vld [vmem:[#allocation2 + $0x80] sm:$0xff] }
0x558b   : > { %v4307_v30 = vadd.f32 %v4306_v61, %v4303_v3 }
0x558d   : > { %v4308_v48 = vperm.slane %v4307_v30, 7  ;;  %v1304_v30 = vpop.f32.mrf.mxu2 }
0x558f   : > { %v4309_v1 = vsel %vm1219_vm8, %v4308_v48, %v6595_v16  ;;  %v520_v16 = vadd.f32 %v519_v34, %v518_v54  ;;  %v1324_v48 = vpop.f32.mrf.mxu3  ;;  %vm4443_vm8 = vcmask 18432  }
0x5590   : > { %4314 = vrot.lane.b32.xlu1 %v4309_v1, %s5652_s22  ;;  %v1284_v1 = vpop.f32.mrf.mxu1 }
0x5591   : > { %v522_v33 = vadd.f32 %v521_v57, %v520_v16  ;;  %v632_v57 = vld [vmem:[%s6745_s4] ss:$2 sm:$0x7] }
0x5593   : > { %v524_v8 = vadd.f32 %v523_v55, %v522_v33 }
0x5595   : > { %v526_v6 = vadd.f32 %v525_v10, %v524_v8  ;;  %v639_v8 = vperm.slane %v632_v57, 0  ;;  %v640_v10 = vperm.slane %v632_v57, 1 }
0x559b   : > { %v3698_v14 = vpop.permute.xlu2 %3697 }
0x559f   : > { %5207 = vset.pattern.permute.xlu0 %v5656_v53  ;;  %v527_v53 = vsel %vm482_vm7, %v5512_v5, 0.0  ;;  %vm4415_vm7 = vcmask 793600  }
0x55a0   : > { %v528_v4 = vadd.f32 %v527_v53, %v526_v6  ;;  %v641_v6 = vperm.slane %v632_v57, 2 }
0x55a2   : > { %v529_v62 = vrot.slane %v528_v4, 4 }
0x55a3   : > { %v559_v18 = vpop.permute.xlu2 %558 }
0x55a4   : > { %v530_v23 = vadd.f32 %v529_v62, %v528_v4 }
0x55a6   : > { %563 = vperm.xlu0 %5207, %v5512_v5   ;;  %v531_v59 = vrot.slane %v530_v23, 2 }
0x55a8   : > { %v532_v2 = vadd.f32 %v531_v59, %v530_v23 }
0x55aa   : > { %v533_v24 = vrot.slane %v532_v2, 1 }
0x55ac   : > { %v534_v13 = vadd.f32 %v533_v24, %v532_v2 }
0x55ae   : > { %5513 = vrcp.f32 %v534_v13 }
0x55b4   : > { %v5514_v17 = vpop.eup %5513 }
0x55c5   : > { %3700 = vxpose.xlu1.b32.start.end [1/1] (short) (narrow) %v3698_v14, 8 }
0x55dc   : > { %v2482_v42 = vpop.trf.xlu0 }
0x55dd   : > { %4952 = vmatmul.msk.f32.vlgmr.msra.gmra.mxu1 %vm1263_vm9, %v2482_v42  ;;  %4953 = vmatmul.msk.f32.vlgmr.msra.gmra.mxu2 %vm1263_vm9, %v2482_v42 }
0x55de   : > { %4954 = vmatmul.msk.f32.vlgmr.msra.gmra.mxu3 %vm1263_vm9, %v2482_v42  ;;  %3750 = vmatpush.msra.mxu1 %v3693_v45 }
0x55df   : > { %3770 = vmatpush.msra.mxu2 %v3694_v12  ;;  %3790 = vmatpush.msra.mxu3 %v3695_v46 }
0x55e5   : > { %4963 = vmatmul.msk.f32.vlgmr.msrb.gmra.mxu1 %vm1263_vm9, %v6638_v21  ;;  %4964 = vmatmul.msk.f32.vlgmr.msrb.gmra.mxu2 %vm1263_vm9, %v6638_v21 }
0x55e6   : > { %4965 = vmatmul.msk.f32.vlgmr.msrb.gmra.mxu3 %vm1263_vm9, %v6638_v21  ;;  %v570_v21 = vmul.f32 %v559_v18, %v5804_v35  ;;  %4387 = vmatpush.msrb.mxu2 %v4311_v15 }
0x55e7   : > { %4407 = vmatpush.msrb.mxu3 %v4312_v51  ;;  %v4493_v51 = vld [vmem:[#allocation4 + $0x60] sm:$0x1] }
0x55e8   : > { %v580_v40 = vsel %vm572_vm14, %v570_v21, 0.0 }
0x55ef   : > { %v1901_v14 = vpop.f32.mrf.mxu1 }
0x55f5   : > { %v1921_v20 = vpop.f32.mrf.mxu2 }
0x55f6   : > { %v1941_v5 = vpop.f32.mrf.mxu3 }
0x5602   : > { %v4315_v50 = vpop.permute.xlu1 %4314 }
0x5603   : > { %4317 = vxpose.xlu2.b32.start.end [1/1] (short) (narrow) %v4315_v50, 8 }
0x5618   : > { %v564_v11 = vpop.permute.xlu0 %563 }
0x5619   : > { %v571_v22 = vmul.f32 %v564_v11, %v5835_v49  ;;  %v4310_v49 = vld [vmem:[#allocation2 + $0x78] sm:$0xff] }
0x561a   : > { %4367 = vmatpush.msrb.mxu1 %v4310_v49 }
0x561b   : > { %v582_v60 = vsel %vm572_vm14, %v571_v22, 0.0 }
0x561f   : > { %592 = vperm.xlu1 %5208, %v5514_v17  }
0x565a   : > { %v2518_v16 = vpop.f32.mrf.mxu1 }
0x5660   : > { %v2538_v54 = vpop.f32.mrf.mxu2 }
0x5661   : > { %v2558_v34 = vpop.f32.mrf.mxu3 }
0x5662   : > { %v3135_v56 = vpop.f32.mrf.mxu1 }
0x5665   : > { %5209 = vset.pattern.permute.xlu2 %v5646_v0  ;;  %v579_v0 = vadd.f32 %v578_v27, %v6655_v7 }
0x5667   : > { %v581_v43 = vadd.f32 %v580_v40, %v579_v0 }
0x5668   : > { %v3155_v33 = vpop.f32.mrf.mxu2 }
0x5669   : > { %v3716_v38 = vpop.trf.xlu1  ;;  %v583_v9 = vadd.f32 %v582_v60, %v581_v43  ;;  %v3175_v55 = vpop.f32.mrf.mxu3 }
0x566a   : > { %4974 = vmatmul.msk.f32.vlgmr.msra.gmra.mxu1 %vm1263_vm9, %v3716_v38  ;;  %4975 = vmatmul.msk.f32.vlgmr.msra.gmra.mxu2 %vm1263_vm9, %v3716_v38 }
0x566b   : > { %4976 = vmatmul.msk.f32.vlgmr.msra.gmra.mxu3 %vm1263_vm9, %v3716_v38  ;;  %v584_v63 = vrot.slane %v583_v9, 4  ;;  %4992 = vmatpush.msk.msra.mxu2 %vm4499_vm10, %v4493_v51  ;;  %v4700_v51 = vld [vmem:[#allocation6 + $0x268] sm:$0x1] }
0x566d   : > { %v585_v28 = vadd.f32 %v584_v63, %v583_v9 }
0x566f   : > { %v586_v19 = vrot.slane %v585_v28, 2 }
0x5671   : > { %v587_v52 = vadd.f32 %v586_v19, %v585_v28 }
0x5673   : > { %v588_v32 = vrot.slane %v587_v52, 1 }
0x5675   : > { %v589_v29 = vadd.f32 %v588_v32, %v587_v52 }
0x5691   : > { %v593_v58 = vpop.permute.xlu1 %592 }
0x5692   : > { %v595_v35 = vmul.f32 %v593_v58, %v589_v29 }
0x5694   : > { %597 = vrot.lane.b32.xlu0 %v595_v35, %s5657_s10 }
0x569c   : > { %v4333_v61 = vpop.trf.xlu2 }
0x569d   : > { %4985 = vmatmul.msk.f32.vlgmr.msrb.gmra.mxu1 %vm1263_vm9, %v4333_v61  ;;  %4986 = vmatmul.msk.f32.vlgmr.msrb.gmra.mxu2 %vm1263_vm9, %v4333_v61 }
0x569e   : > { %4987 = vmatmul.msk.f32.vlgmr.msrb.gmra.mxu3 %vm1263_vm9, %v4333_v61  ;;  %v4492_v61 = vld [vmem:[#allocation4 + $0x58] sm:$0xff] }
0x569f   : > { %4507 = vmatpush.msra.mxu2 %v4492_v61  ;;  %v4527_v61 = vld [vmem:[#allocation6 + $0x20] sm:$0xff] }
0x56e7   : > { %v3752_v13 = vpop.f32.mrf.mxu1 }
0x56ed   : > { %v3772_v31 = vpop.f32.mrf.mxu2 }
0x56ee   : > { %v3792_v45 = vpop.f32.mrf.mxu3 }
0x5706   : > { %v598_v7 = vpop.permute.xlu0 %597 }
0x5707   : > { %600 = vxpose.xlu0.b32.start.end [1/1] (short) (narrow) %v598_v7, 8  ;;  %v4491_v7 = vld [vmem:[#allocation4 + $0x50] sm:$0xff] }
0x5708   : > { %4508 = vmatpush.msra.mxu2 %v4491_v7  ;;  %v4528_v7 = vld [vmem:[#allocation6 + $0x28] sm:$0xff] }
0x571a   : > { %v4369_v63 = vpop.f32.mrf.mxu1 }
0x5720   : > { %v4389_v27 = vpop.f32.mrf.mxu2 }
0x5721   : > { %v4409_v22 = vpop.f32.mrf.mxu3 }
0x576e   : > { %5210 = vset.pattern.permute.xlu0 %v5655_v41  ;;  %v4921_v41 = vld [vmem:[%s6745_s4 + $0x1] ss:$2 sm:$0x7] }
0x576f   : > { %v651_v37 = vperm.slane %v4921_v41, 0  ;;  %v652_v53 = vperm.slane %v4921_v41, 1  ;;  %v653_v4 = vperm.slane %v4921_v41, 2  ;;  %v4574_v41 = vld [vmem:[#allocation6 + $0x190] sm:$0x1] }
0x5770   : > { %4994 = vmatpush.msk.msra.mxu3 %vm4499_vm10, %v4574_v41  ;;  %v4687_v41 = vld [vmem:[#allocation6 + $0x200] sm:$0xff] }
0x57ab   : > { %v616_v3 = vpop.trf.xlu0 }
0x57ac   : > { %635 = vperm.xlu2 %5209, %v616_v3   ;;  %v4490_v3 = vld [vmem:[#allocation4 + $0x48] sm:$0xff] }
0x57ad   : > { %4509 = vmatpush.msra.mxu2 %v4490_v3  ;;  %v4697_v3 = vld [vmem:[#allocation6 + $0x250] sm:$0xff] }
0x5806   : > { %v636_v62 = vpop.permute.xlu2 %635 }
0x5807   : > { %v645_v36 = vmul.f32 %v639_v8, %v636_v62  ;;  %v646_v39 = vmul.f32 %v640_v10, %v636_v62  ;;  %v647_v42 = vmul.f32 %v641_v6, %v636_v62  ;;  %v4575_v8 = vld [vmem:[#allocation6 + $0x198] sm:$0x1]  ;;  %v4572_v10 = vld [vmem:[#allocation6 + $0x180] sm:$0xff]  ;;  %v4573_v6 = vld [vmem:[#allocation6 + $0x188] sm:$0xff] }
0x5808   : > { %4996 = vmatpush.msk.msrb.mxu0 %vm4499_vm10, %v4575_v8  ;;  %4590 = vmatpush.msra.mxu3 %v4572_v10  ;;  %v4569_v62 = vld [vmem:[#allocation6 + $0x168] sm:$0xff]  ;;  %v4523_v10 = vld [vmem:[#allocation6] sm:$0xff] }
0x5809   : > { %v657_v44 = vadd.f32 %v651_v37, %v645_v36  ;;  %v658_v50 = vadd.f32 %v652_v53, %v646_v39  ;;  %v659_v47 = vadd.f32 %v653_v4, %v647_v42  ;;  %v4570_v37 = vld [vmem:[#allocation6 + $0x170] sm:$0xff]  ;;  %v4571_v53 = vld [vmem:[#allocation6 + $0x178] sm:$0xff]  ;;  %v4568_v4 = vld [vmem:[#allocation6 + $0x160] sm:$0xff] }
0x580a   : > { %4610 = vmatpush.msrb.mxu0 %v4573_v6  ;;  %4591 = vmatpush.msra.mxu3 %v4570_v37  ;;  %v4548_v36 = vld [vmem:[#allocation6 + $0xc8] sm:$0x1]  ;;  %v4566_v39 = vld [vmem:[#allocation6 + $0x150] sm:$0xff]  ;;  %v4567_v42 = vld [vmem:[#allocation6 + $0x158] sm:$0xff] }
0x580b   : > { %v1327_v12 = vadd.f32 %v1284_v1, %v657_v44  ;;  %v1328_v23 = vadd.f32 %v1304_v30, %v658_v50  ;;  %v1329_v46 = vadd.f32 %v1324_v48, %v659_v47  ;;  %v4489_v30 = vld [vmem:[#allocation4 + $0x40] sm:$0xff]  ;;  %v4488_v48 = vld [vmem:[#allocation4 + $0x38] sm:$0xff]  ;;  %v4487_v1 = vld [vmem:[#allocation4 + $0x30] sm:$0xff] }
0x580c   : > { %4510 = vmatpush.msra.mxu2 %v4489_v30  ;;  %4611 = vmatpush.msrb.mxu0 %v4571_v53  ;;  %v4545_v44 = vld [vmem:[#allocation6 + $0xb0] sm:$0xff]  ;;  %v4564_v50 = vld [vmem:[#allocation6 + $0x140] sm:$0xff]  ;;  %v4546_v47 = vld [vmem:[#allocation6 + $0xb8] sm:$0xff] }
0x580d   : > { %v1944_v59 = vadd.f32 %v1901_v14, %v1327_v12  ;;  %v1945_v2 = vadd.f32 %v1921_v20, %v1328_v23  ;;  %v1946_v24 = vadd.f32 %v1941_v5, %v1329_v46  ;;  %v4486_v20 = vld [vmem:[#allocation4 + $0x28] sm:$0xff]  ;;  %v4485_v5 = vld [vmem:[#allocation4 + $0x20] sm:$0xff]  ;;  %v4484_v14 = vld [vmem:[#allocation4 + $0x18] sm:$0xff]  ;;  %4592 = vmatpush.msra.mxu3 %v4568_v4 }
0x580e   : > { %4511 = vmatpush.msra.mxu2 %v4488_v48  ;;  %4612 = vmatpush.msrb.mxu0 %v4569_v62  ;;  %v4544_v12 = vld [vmem:[#allocation6 + $0xa8] sm:$0xff]  ;;  %v4541_v23 = vld [vmem:[#allocation6 + $0x90] sm:$0xff]  ;;  %v4542_v46 = vld [vmem:[#allocation6 + $0x98] sm:$0xff] }
0x580f   : > { %v2561_v17 = vadd.f32 %v2518_v16, %v1944_v59  ;;  %v2562_v38 = vadd.f32 %v2538_v54, %v1945_v2  ;;  %v2563_v18 = vadd.f32 %v2558_v34, %v1946_v24  ;;  %v4483_v54 = vld [vmem:[#allocation4 + $0x10] sm:$0xff]  ;;  %v4482_v34 = vld [vmem:[#allocation4 + $0x8] sm:$0xff]  ;;  %4593 = vmatpush.msra.mxu3 %v4566_v39  ;;  %v4562_v59 = vld [vmem:[#allocation6 + $0x130] sm:$0xff] }
0x5810   : > { %4512 = vmatpush.msra.mxu2 %v4487_v1  ;;  %4613 = vmatpush.msrb.mxu0 %v4567_v42  ;;  %v4563_v2 = vld [vmem:[#allocation6 + $0x138] sm:$0xff]  ;;  %v4539_v24 = vld [vmem:[#allocation6 + $0x80] sm:$0xff]  ;;  %v4696_v1 = vld [vmem:[#allocation6 + $0x248] sm:$0xff] }
0x5811   : > { %v3178_v26 = vadd.f32 %v3135_v56, %v2561_v17  ;;  %v3179_v11 = vadd.f32 %v3155_v33, %v2562_v38  ;;  %v3180_v21 = vadd.f32 %v3175_v55, %v2563_v18  ;;  %v4481_v55 = vld [vmem:[#allocation4] sm:$0xff]  ;;  %v4547_v56 = vld [vmem:[#allocation6 + $0xc0] sm:$0x1]  ;;  %4594 = vmatpush.msra.mxu3 %v4564_v50  ;;  %v4561_v38 = vld [vmem:[#allocation6 + $0x128] sm:$0xff] }
0x5812   : > { %4513 = vmatpush.msra.mxu2 %v4486_v20  ;;  %v4560_v17 = vld [vmem:[#allocation6 + $0x120] sm:$0xff]  ;;  %v4537_v18 = vld [vmem:[#allocation6 + $0x70] sm:$0xff]  ;;  %v4698_v30 = vld [vmem:[#allocation6 + $0x258] sm:$0xff] }
0x5813   : > { %v3796_v40 = vadd.f32 %v3772_v31, %v3179_v11  ;;  %v3797_v0 = vadd.f32 %v3792_v45, %v3180_v21  ;;  %v3795_v60 = vadd.f32 %v3752_v13, %v3178_v26  ;;  %v4565_v31 = vld [vmem:[#allocation6 + $0x148] sm:$0xff]  ;;  %v4543_v45 = vld [vmem:[#allocation6 + $0xa0] sm:$0xff]  ;;  %4595 = vmatpush.msra.mxu3 %v4562_v59  ;;  %v4538_v26 = vld [vmem:[#allocation6 + $0x78] sm:$0xff] }
0x5814   : > { %4514 = vmatpush.msra.mxu2 %v4485_v5  ;;  %4614 = vmatpush.msrb.mxu0 %v4565_v31  ;;  %v4540_v13 = vld [vmem:[#allocation6 + $0x88] sm:$0xff]  ;;  %v4558_v11 = vld [vmem:[#allocation6 + $0x110] sm:$0xff]  ;;  %v4559_v21 = vld [vmem:[#allocation6 + $0x118] sm:$0xff] }
0x5815   : > { %v4413_v43 = vadd.f32 %v4389_v27, %v3796_v40  ;;  %v4414_v9 = vadd.f32 %v4409_v22, %v3797_v0  ;;  %v4412_v28 = vadd.f32 %v4369_v63, %v3795_v60  ;;  %4596 = vmatpush.msra.mxu3 %v4560_v17  ;;  %v4535_v27 = vld [vmem:[#allocation6 + $0x60] sm:$0xff]  ;;  %v4536_v22 = vld [vmem:[#allocation6 + $0x68] sm:$0xff]  ;;  %v4533_v60 = vld [vmem:[#allocation6 + $0x50] sm:$0xff] }
0x5816   : > { %4515 = vmatpush.msra.mxu2 %v4484_v14  ;;  %4615 = vmatpush.msrb.mxu0 %v4563_v2  ;;  %v4556_v40 = vld [vmem:[#allocation6 + $0x100] sm:$0xff]  ;;  %v4557_v0 = vld [vmem:[#allocation6 + $0x108] sm:$0xff]  ;;  %v4555_v63 = vld [vmem:[#allocation6 + $0xf8] sm:$0xff] }
0x5817   : > { %4988 = vmatpush.xpose.msk.msra.mxu1 %vm4415_vm7, %v4413_v43  ;;  %4597 = vmatpush.msra.mxu3 %v4558_v11  ;;  %v4534_v43 = vld [vmem:[#allocation6 + $0x58] sm:$0xff]  ;;  %v4695_v48 = vld [vmem:[#allocation6 + $0x240] sm:$0xff]  ;;  %v4693_v20 = vld [vmem:[#allocation6 + $0x230] sm:$0xff] }
0x5818   : > { %4516 = vmatpush.msra.mxu2 %v4483_v54  ;;  %4616 = vmatpush.msrb.mxu0 %v4561_v38  ;;  %v4694_v5 = vld [vmem:[#allocation6 + $0x238] sm:$0xff]  ;;  %v4691_v54 = vld [vmem:[#allocation6 + $0x220] sm:$0xff]  ;;  %v4688_v8 = vld [vmem:[#allocation6 + $0x208] sm:$0xff] }
0x5819   : > { %4598 = vmatpush.msra.mxu3 %v4556_v40  ;;  %v4524_v6 = vld [vmem:[#allocation6 + $0x8] sm:$0xff]  ;;  %v4685_v37 = vld [vmem:[#allocation6 + $0x1f0] sm:$0xff]  ;;  %v4686_v53 = vld [vmem:[#allocation6 + $0x1f8] sm:$0xff] }
0x581a   : > { %4989 = vmatmul.msk.f32.vlgmr.msra.gmra.mxu1 %vm4415_vm7, %v4412_v28  ;;  %4517 = vmatpush.msra.mxu2 %v4482_v34  ;;  %v4531_v28 = vld [vmem:[#allocation6 + $0x40] sm:$0xff]  ;;  %v4692_v34 = vld [vmem:[#allocation6 + $0x228] sm:$0xff]  ;;  %v4678_v50 = vld [vmem:[#allocation6 + $0x1b8] sm:$0xff] }
0x581b   : > { %4990 = vmatpush.msk.msrb.mxu1 %vm418_vm0, %v4414_v9  ;;  %4617 = vmatpush.msrb.mxu0 %v4559_v21  ;;  %v4554_v9 = vld [vmem:[#allocation6 + $0xf0] sm:$0xff]  ;;  %v4683_v4 = vld [vmem:[#allocation6 + $0x1e0] sm:$0xff]  ;;  %v4684_v62 = vld [vmem:[#allocation6 + $0x1e8] sm:$0xff] }
0x581c   : > { %4518 = vmatpush.msra.mxu2 %v4481_v55  ;;  %4599 = vmatpush.msra.mxu3 %v4554_v9  ;;  %v4526_v55 = vld [vmem:[#allocation6 + $0x18] sm:$0xff]  ;;  %v4679_v39 = vld [vmem:[#allocation6 + $0x1c0] sm:$0xff]  ;;  %v4680_v42 = vld [vmem:[#allocation6 + $0x1c8] sm:$0xff] }
0x581d   : > { %4998 = vmatpush.msk.msra.mxu1 %vm4499_vm10, %v4547_v56  ;;  %4618 = vmatpush.msrb.mxu0 %v4557_v0  ;;  %v4681_v56 = vld [vmem:[#allocation6 + $0x1d0] sm:$0xff]  ;;  %v4676_v31 = vld [vmem:[#allocation6 + $0x1a8] sm:$0xff] }
0x581e   : > { %5000 = vmatpush.msk.msrb.mxu2 %vm4499_vm10, %v4548_v36  ;;  %v4682_v36 = vld [vmem:[#allocation6 + $0x1d8] sm:$0xff] }
0x581f   : > { %4638 = vmatpush.msra.mxu1 %v4545_v44  ;;  %4619 = vmatpush.msrb.mxu0 %v4555_v63  ;;  %v4677_v44 = vld [vmem:[#allocation6 + $0x1b0] sm:$0xff] }
0x5820   : > { %4658 = vmatpush.msrb.mxu2 %v4546_v47  ;;  %v4675_v47 = vld [vmem:[#allocation6 + $0x1a0] sm:$0xff] }
0x5821   : > { %4639 = vmatpush.msra.mxu1 %v4543_v45  ;;  %v5212_v45 = vld [vmem:[#allocation4 + $0x61] ss:$0 sm:$0xff] }
0x5822   : > { %4659 = vmatpush.msrb.mxu2 %v4544_v12 }
0x5823   : > { %4640 = vmatpush.msra.mxu1 %v4541_v23 }
0x5824   : > { %4660 = vmatpush.msrb.mxu2 %v4542_v46 }
0x5825   : > { %4641 = vmatpush.msra.mxu1 %v4539_v24 }
0x5826   : > { %4661 = vmatpush.msrb.mxu2 %v4540_v13  ;;  %v4752_v13 = vld [vmem:[%s6748_s7] sm:$0x3] }
0x5827   : > { %4642 = vmatpush.msra.mxu1 %v4537_v18  ;;  %v4755_v18 = vperm.slane %v4752_v13, 1  ;;  %v4754_v0 = vperm.slane %v4752_v13, 0 }
0x5828   : > { %4662 = vmatpush.msrb.mxu2 %v4538_v26 }
0x5829   : > { %4643 = vmatpush.msra.mxu1 %v4535_v27 }
0x582a   : > { %4663 = vmatpush.msrb.mxu2 %v4536_v22 }
0x582b   : > { %4644 = vmatpush.msra.mxu1 %v4533_v60 }
0x582c   : > { %4664 = vmatpush.msrb.mxu2 %v4534_v43 }
0x582d   : > { %4645 = vmatpush.msra.mxu1 %v4531_v28 }
0x5897   : > { %v4439_v19 = vpop.f32.mrf.mxu1 }
0x5898   : > { %v4442_v52 = vmul.f32 0.10153462, %v4439_v19  ;;  %v4532_v19 = vld [vmem:[#allocation6 + $0x48] sm:$0xff] }
0x5899   : > { %4665 = vmatpush.msrb.mxu2 %v4532_v19 }
0x589a   : > { %v4444_v32 = vsel %vm4443_vm8, %v4442_v52, -inf }
0x589b   : > { %4445 = vmax.xlane.f32.xlu1 %v4444_v32  ;;  %v4553_v32 = vld [vmem:[#allocation6 + $0xe8] sm:$0xff] }
0x589c   : > { %4620 = vmatpush.msrb.mxu0 %v4553_v32 }
0x590e   : > { %v4446_v29 = vpop.xlane.xlu1 %4445 }
0x590f   : > { %v4447_v58 = vsub.f32 %v4442_v52, %v4446_v29  ;;  %v4552_v52 = vld [vmem:[#allocation6 + $0xe0] sm:$0xff]  ;;  %v4529_v29 = vld [vmem:[#allocation6 + $0x30] sm:$0xff] }
0x5910   : > { %4600 = vmatpush.msra.mxu3 %v4552_v52  ;;  %4646 = vmatpush.msra.mxu1 %v4529_v29 }
0x5911   : > { %v4448_v35 = vmul.f32 1.442695, %v4447_v58  ;;  %v4530_v58 = vld [vmem:[#allocation6 + $0x38] sm:$0xff] }
0x5912   : > { %4666 = vmatpush.msrb.mxu2 %v4530_v58  ;;  %4647 = vmatpush.msra.mxu1 %v4527_v61 }
0x5913   : > { %5515 = vpow2.f32 %v4448_v35  ;;  %v4550_v35 = vld [vmem:[#allocation6 + $0xd0] sm:$0xff] }
0x5914   : > { %4601 = vmatpush.msra.mxu3 %v4550_v35  ;;  %4667 = vmatpush.msrb.mxu2 %v4528_v7 }
0x5916   : > { %4668 = vmatpush.msrb.mxu2 %v4526_v55 }
0x5918   : > { %4669 = vmatpush.msrb.mxu2 %v4524_v6 }
0x5919   : > { %v5516_v15 = vpop.eup %5515 }
0x591a   : > { %v4450_v49 = vsel %vm4443_vm8, %v5516_v15, 0.0 }
0x591b   : > { %4451 = vadd.xlane.f32.xlu0 %v4450_v49  ;;  %v4699_v49 = vld [vmem:[#allocation6 + $0x260] sm:$0x1] }
0x591c   : > { %5002 = vmatpush.msk.msrb.mxu3 %vm4499_vm10, %v4699_v49 }
0x591e   : > { %4714 = vmatpush.msrb.mxu3 %v4697_v3 }
0x5920   : > { %4715 = vmatpush.msrb.mxu3 %v4695_v48 }
0x5922   : > { %4716 = vmatpush.msrb.mxu3 %v4693_v20 }
0x5924   : > { %4717 = vmatpush.msrb.mxu3 %v4691_v54 }
0x598e   : > { %v4452_v16 = vpop.xlane.xlu0 %4451 }
0x598f   : > { %5517 = vrcp.f32 %v4452_v16  ;;  %v4689_v16 = vld [vmem:[#allocation6 + $0x210] sm:$0xff] }
0x5990   : > { %4718 = vmatpush.msrb.mxu3 %v4689_v16 }
0x5992   : > { %4719 = vmatpush.msrb.mxu3 %v4687_v41 }
0x5994   : > { %4720 = vmatpush.msrb.mxu3 %v4685_v37 }
0x5995   : > { %v5518_v57 = vpop.eup %5517 }
0x5996   : > { %v4454_v33 = vmul.f32 %v5518_v57, %v5516_v15  ;;  %v4551_v15 = vld [vmem:[#allocation6 + $0xd8] sm:$0xff]  ;;  %4721 = vmatpush.msrb.mxu3 %v4683_v4 }
0x5997   : > { %4621 = vmatpush.msrb.mxu0 %v4551_v15  ;;  %v4690_v57 = vld [vmem:[#allocation6 + $0x218] sm:$0xff] }
0x5998   : > { %4991 = vmatmul.msk.f32.vlgmr.msrb.gmra.mxu1 %vm399_vm1, %v4454_v33  ;;  %v4525_v33 = vld [vmem:[#allocation6 + $0x10] sm:$0xff]  ;;  %4722 = vmatpush.msrb.mxu3 %v4681_v56 }
0x5999   : > { %5004 = vmatpush.msk.msra.mxu0 %vm4499_vm10, %v4700_v51  ;;  %4648 = vmatpush.msra.mxu1 %v4525_v33 }
0x599a   : > { %4723 = vmatpush.msrb.mxu3 %v4679_v39 }
0x599b   : > { %4734 = vmatpush.msra.mxu0 %v4698_v30  ;;  %4649 = vmatpush.msra.mxu1 %v4523_v10 }
0x599c   : > { %4724 = vmatpush.msrb.mxu3 %v4677_v44 }
0x599d   : > { %4735 = vmatpush.msra.mxu0 %v4696_v1 }
0x599e   : > { %4725 = vmatpush.msrb.mxu3 %v4675_v47 }
0x599f   : > { %4736 = vmatpush.msra.mxu0 %v4694_v5 }
0x59a1   : > { %4737 = vmatpush.msra.mxu0 %v4692_v34 }
0x59a3   : > { %4738 = vmatpush.msra.mxu0 %v4690_v57 }
0x59a5   : > { %4739 = vmatpush.msra.mxu0 %v4688_v8 }
0x59a7   : > { %4740 = vmatpush.msra.mxu0 %v4686_v53 }
0x59a9   : > { %4741 = vmatpush.msra.mxu0 %v4684_v62 }
0x59ab   : > { %4742 = vmatpush.msra.mxu0 %v4682_v36 }
0x59ad   : > { %4743 = vmatpush.msra.mxu0 %v4680_v42 }
0x59af   : > { %4744 = vmatpush.msra.mxu0 %v4678_v50 }
0x59b1   : > { %4745 = vmatpush.msra.mxu0 %v4676_v31 }
0x5a15   : > { %v4478_v14 = vpop.f32.mrf.mxu1 }
0x5a16   : > { %4993 = vmatmul.msk.f32.vlgmr.msra.gmra.mxu2 %vm4415_vm7, %v4478_v14 }
0x5a99   : > { %v4520_v12 = vpop.f32.mrf.mxu2 }
0x5a9a   : > { %v4521_v23 = vadd.f32 %v5212_v45, %v4520_v12 }
0x5a9c   : > { %v4577_v46 = vrot.slane %v4521_v23, 1  ;;  %4999 = vmatmul.msk.f32.vlgmr.msra.gmra.mxu1 %vm4415_vm7, %v4521_v23  ;;  %5001 = vmatmul.msk.f32.vlgmr.msrb.gmra.mxu2 %vm4415_vm7, %v4521_v23  ;;  %v4701_v59 = vrot.slane %v4521_v23, 2 }
0x5a9e   : > { %4995 = vmatmul.msk.f32.vlgmr.msra.gmra.mxu3 %vm4415_vm7, %v4577_v46  ;;  %4997 = vmatmul.msk.f32.vlgmr.msrb.gmra.mxu0 %vm4415_vm7, %v4577_v46 }
0x5aa6   : > { %5003 = vmatmul.msk.f32.vlgmr.msrb.gmra.mxu3 %vm4415_vm7, %v4701_v59  ;;  %5005 = vmatmul.msk.f32.vlgmr.msra.gmra.mxu0 %vm4415_vm7, %v4701_v59 }
0x5b19   : > { %v4651_v27 = vpop.f32.mrf.mxu1 }
0x5b1b   : > { %v4623_v2 = vpop.f32.mrf.mxu0 }
0x5b1f   : > { %v4671_v24 = vpop.f32.mrf.mxu2 }
0x5b20   : > { %v4672_v38 = vadd.f32 %v4671_v24, %v4623_v2 }
0x5b21   : > { %v4603_v17 = vpop.f32.mrf.mxu3 }
0x5b22   : > { %v4652_v22 = vadd.f32 %v4651_v27, %v4603_v17 }
0x5b23   : > { %v4747_v26 = vpop.f32.mrf.mxu0 }
0x5b24   : > { %v4751_v11 = vadd.f32 %v4747_v26, %v4672_v38 }
0x5b26   : > { %v4759_v21 = vadd.f32 %v4755_v18, %v4751_v11 }
0x5b28   : > { %v5007_v40 = vmul.f32 -1.442695, %v4759_v21 }
0x5b29   : > { %v4727_v60 = vpop.f32.mrf.mxu3 }
0x5b2a   : > { %5519 = vpow2.f32 %v5007_v40  ;;  %v4750_v43 = vadd.f32 %v4727_v60, %v4652_v22 }
0x5b2c   : > { %v4758_v9 = vadd.f32 %v4754_v0, %v4750_v43 }
0x5b2e   : > { %v5006_v63 = vmul.f32 -1.442695, %v4758_v9 }
0x5b30   : > { %v5520_v28 = vpop.eup %5519  ;;  %5521 = vpow2.f32 %v5006_v63 }
0x5b31   : > { %v4767_v19 = vadd.f32 1.0, %v5520_v28 }
0x5b33   : > { %5523 = vrcp.f32 %v4767_v19  ;;  %v4794_v51 = vand.u32 2147483648, %v4767_v19  ;;  %vm4788_vm1 = vweird.f32 %v4767_v19  ;;  %v4792_v7 = vand.u32 2147483647, %v4767_v19 }
0x5b35   : > { %v4795_v1 = vor.u32 1.1754944e-38, %v4794_v51  ;;  %vm4793_vm2 = vcmp.eq.f32.partialorder %v4792_v7, 8.507059e+37 }
0x5b36   : > { %v5522_v52 = vpop.eup %5521 }
0x5b37   : > { %v4766_v32 = vadd.f32 1.0, %v5522_v52 }
0x5b39   : > { %v5524_v29 = vpop.eup %5523  ;;  %5525 = vrcp.f32 %v4766_v32  ;;  %v4779_v20 = vand.u32 2147483648, %v4766_v32  ;;  %v4777_v14 = vand.u32 2147483647, %v4766_v32  ;;  %vm4773_vm11 = vweird.f32 %v4766_v32 }
0x5b3a   : > { %v4784_v58 = vmul.f32 %v5524_v29, %v4767_v19  ;;  %vm4789_vm0 = vweird.f32 %v5524_v29 }
0x5b3b   : > { %vm4790_vm5 = vmor %vm4788_vm1, %vm4789_vm0  ;;  %v4780_v16 = vor.u32 1.1754944e-38, %v4779_v20  ;;  %vm4778_vm12 = vcmp.eq.f32.partialorder %v4777_v14, 8.507059e+37 }
0x5b3c   : > { %v4785_v35 = vsub.f32 1.0, %v4784_v58 }
0x5b3e   : > { %v4786_v15 = vmul.f32 %v5524_v29, %v4785_v35 }
0x5b3f   : > { %v5526_v49 = vpop.eup %5525 }
0x5b40   : > { %v4787_v61 = vadd.f32 %v5524_v29, %v4786_v15  ;;  %v4769_v3 = vmul.f32 %v5526_v49, %v4766_v32  ;;  %vm4774_vm6 = vweird.f32 %v5526_v49 }
0x5b41   : > { %vm4775_vm15 = vmor %vm4773_vm11, %vm4774_vm6 }
0x5b42   : > { %v4791_v30 = vsel %vm4790_vm5, %v5524_v29, %v4787_v61  ;;  %v4770_v48 = vsub.f32 1.0, %v4769_v3 }
0x5b43   : > { %v4796_v54 = vsel %vm4793_vm2, %v4795_v1, %v4791_v30 }
0x5b44   : > { %v4771_v5 = vmul.f32 %v5526_v49, %v4770_v48  ;;  %v4800_v57 = vrot.slane %v4796_v54, 7 }
0x5b46   : > { %v4772_v34 = vadd.f32 %v5526_v49, %v4771_v5 }
0x5b48   : > { %v4776_v33 = vsel %vm4775_vm15, %v5526_v49, %v4772_v34 }
0x5b49   : > { %v4781_v55 = vsel %vm4778_vm12, %v4780_v16, %v4776_v33 }
0x5b4a   : > { %v4801_v41 = vsel %vm4499_vm10, %v4781_v55, %v4800_v57 }
0x5b4b   : > { %4807 = vst.msk [vmem:[%s364_s21] sm:$0x3] %vm4805_vm3, %v4801_v41 }
0x5b4c PF: > { %s20_s27 = sadd.s32 1, %s5635_s27  }
0x5b4d   : > { %p17_p7 = scmp.ge.s32.totalorder %s20_s27, 6  }
0x5b4f   :  { %19 = sbr.rel (!%p17_p7) target bundleno = 2 (0x2), region = 101 }
0x5b54   :  { %4827 = vsyncpa [#allocation3], 1 }
0x5b55   :  { %4829 = vsyncpa [#allocation3 + $0x1], 1 }
0x5b56   :  { %4830 = vsyncpa [#allocation5], 1 }

</bundles_post_ra>
